<compile_context>
chip_gen: v6e
topology: v6e:2x2x1
jax: 0.10.0
libtpu: 0.0.40
codegen_flags: <defaults>
</compile_context>

<pallas_src>
import functools

import jax
import jax.numpy as jnp
from jax.experimental import pallas as pl
from jax.experimental.pallas import tpu as pltpu

EPS = 1e-3  # BatchNorm2d(eps=0.001)


# ----------------------------------------------------------------------------
# Pallas kernels (one fused kernel per module instance, gridded over batch)
# ----------------------------------------------------------------------------
def _down_kernel(a_ref, w_ref, p00_ref, p01_ref, p10_ref, p11_ref,
                 sc_ref, bc_ref, sp_ref, bp_ref, o_ref):
    """DownsamplerBlock: 3x3/s2 conv (im2col matmul) + 2x2 maxpool + BN + ReLU."""
    conv = jnp.dot(a_ref[0], w_ref[...], preferred_element_type=jnp.float32)
    conv = conv * sc_ref[...] + bc_ref[...]
    pool = jnp.maximum(jnp.maximum(p00_ref[0], p01_ref[0]),
                       jnp.maximum(p10_ref[0], p11_ref[0]))
    pool = pool * sp_ref[...] + bp_ref[...]
    cc = conv.shape[-1]
    o_ref[0, :, :cc] = jnp.maximum(conv, 0.0)
    o_ref[0, :, cc:] = jnp.maximum(pool, 0.0)


def _nb1d_kernel(x_ref, w1_ref, b1_ref, w2_ref, s1_ref, bb1_ref,
                 w3_ref, b3_ref, w4_ref, s2_ref, bb2_ref, o_ref, *, H, W, d):
    """non_bottleneck_1d: four separable (3x1 / 1x3, dilated) convs tap-accumulated
    in VMEM with bias / folded-BN / ReLU / residual epilogues fused."""
    M = H * W
    x = x_ref[0]                                    # (M, C) f32, flattened H*W rows
    C = x.shape[-1]
    midx = jax.lax.broadcasted_iota(jnp.int32, (M, C), 0)
    if (W & (W - 1)) == 0:
        widx = midx & (W - 1)                       # fast path: W is a power of two
    else:
        widx = midx % W

    def sep_conv(t, w_taps_ref, dil, horizontal):
        """3-tap conv along H (horizontal=False) or W (True) with dilation `dil`."""
        acc = jnp.zeros((M, C), jnp.float32)
        for tap in range(3):
            s = (tap - 1) * dil                     # this tap samples x[pos + s]
            if s == 0:
                sh = t
            else:
                if abs(s) >= (W if horizontal else H):
                    continue                        # tap lies fully in zero padding
                fs = s if horizontal else s * W     # shift in flattened rows
                pos, bound = (widx, W) if horizontal else (midx, M)
                rolled = pltpu.roll(t, (-fs) % M, 0)        # rolled[m] = t[(m+fs)%M]
                valid = (pos + fs >= 0) & (pos + fs < bound)
                sh = jnp.where(valid, rolled, 0.0)
            acc = acc + jnp.dot(sh.astype(jnp.bfloat16), w_taps_ref[tap],
                                preferred_element_type=jnp.float32)
        return acc

    t = jnp.maximum(sep_conv(x, w1_ref, 1, False) + b1_ref[...], 0.0)               # 3x1
    t = jnp.maximum(sep_conv(t, w2_ref, 1, True) * s1_ref[...] + bb1_ref[...], 0.0)  # 1x3 + BN1
    t = jnp.maximum(sep_conv(t, w3_ref, d, False) + b3_ref[...], 0.0)               # 3x1, dil d
    t = sep_conv(t, w4_ref, d, True) * s2_ref[...] + bb2_ref[...]                   # 1x3, dil d + BN2
    # TODO(synk): Dropout2d is an inference-mode identity here.
    o_ref[0] = jnp.maximum(t + x, 0.0)


def _sc_kernel(x_ref, wq_ref, bq_ref, wk_ref, bk_ref, wv_ref, bv_ref,
               w1m_ref, w1s_ref, w2_ref, lamb_ref, o_ref):
    """SCModule: Self_Attn (gamma folded into value conv) + Channel_Attn + combine."""
    x = x_ref[0]                                    # (HW, C) f32
    HW = x.shape[0]
    xb = x.astype(jnp.bfloat16)

    # --- Self_Attn ---
    q = jnp.dot(xb, wq_ref[...], preferred_element_type=jnp.float32) + bq_ref[...]
    k = jnp.dot(xb, wk_ref[...], preferred_element_type=jnp.float32) + bk_ref[...]
    v = jnp.dot(xb, wv_ref[...], preferred_element_type=jnp.float32) + bv_ref[...]
    energy = jax.lax.dot_general(q.astype(jnp.bfloat16), k.astype(jnp.bfloat16),
                                 (((1,), (1,)), ((), ())),
                                 preferred_element_type=jnp.float32)    # (HW, HW)
    energy = energy - jnp.max(energy, axis=-1, keepdims=True)
    e = jnp.exp(energy)
    attn = e / jnp.sum(e, axis=-1, keepdims=True)
    spat = jnp.dot(attn.astype(jnp.bfloat16), v.astype(jnp.bfloat16),
                   preferred_element_type=jnp.float32)                  # (HW, C)

    # --- Channel_Attn (spatial mean/std computed in native (HW, C) layout) ---
    mean = jnp.sum(x, axis=0, keepdims=True) * (1.0 / HW)               # (1, C)
    diff = x - mean
    var = jnp.sum(diff * diff, axis=0, keepdims=True) * (1.0 / max(HW - 1, 1))
    std = jnp.sqrt(var)
    h = jnp.maximum(
        jnp.dot(mean.astype(jnp.bfloat16), w1m_ref[...], preferred_element_type=jnp.float32)
        + jnp.dot(std.astype(jnp.bfloat16), w1s_ref[...], preferred_element_type=jnp.float32),
        0.0)
    z = jnp.dot(h.astype(jnp.bfloat16), w2_ref[...], preferred_element_type=jnp.float32)
    catt = 1.0 / (1.0 + jnp.exp(-z))                                    # sigmoid, (1, C)

    # out = gamma*spatial + lamb*channel_att*x + x  (gamma folded into wv / bv)
    o_ref[0] = spat + lamb_ref[...] * catt * x + x


# ----------------------------------------------------------------------------
# Module wrappers (JAX glue + pallas_call)
# ----------------------------------------------------------------------------
def downsampler_forward(x, p):
    N, H, W, Cin = x.shape
    Ho, Wo = H // 2, W // 2
    Mo = Ho * Wo
    Cc = p['w'].shape[1]
    Cout = Cc + Cin

    # im2col only for the 3 downsampler 3x3/s2 convs; the separable convs that
    # dominate the layer count use in-kernel tap accumulation instead.
    xp = jnp.pad(x, ((0, 0), (1, 1), (1, 1), (0, 0)))
    cols = [xp[:, i:i + 2 * Ho:2, j:j + 2 * Wo:2, :]
            for i in range(3) for j in range(3)]
    a = jnp.stack(cols, axis=3).reshape(N, Mo, 9 * Cin).astype(jnp.bfloat16)

    p00 = x[:, 0::2, 0::2, :].reshape(N, Mo, Cin)
    p01 = x[:, 0::2, 1::2, :].reshape(N, Mo, Cin)
    p10 = x[:, 1::2, 0::2, :].reshape(N, Mo, Cin)
    p11 = x[:, 1::2, 1::2, :].reshape(N, Mo, Cin)

    row = lambda c: pl.BlockSpec((1, Mo, c), lambda n: (n, 0, 0))
    full = lambda shape: pl.BlockSpec(shape, lambda n: (0,) * len(shape))
    out = pl.pallas_call(
        _down_kernel,
        out_shape=jax.ShapeDtypeStruct((N, Mo, Cout), jnp.float32),
        grid=(N,),
        in_specs=[row(9 * Cin), full((9 * Cin, Cc)),
                  row(Cin), row(Cin), row(Cin), row(Cin),
                  full((1, Cc)), full((1, Cc)), full((1, Cin)), full((1, Cin))],
        out_specs=row(Cout),
        compiler_params=pltpu.CompilerParams(dimension_semantics=("parallel",)),
    )(a, p['w'], p00, p01, p10, p11,
      p['s_conv'], p['b_conv'], p['s_pool'], p['b_pool'])
    return out.reshape(N, Ho, Wo, Cout)


def nb1d_forward(x, p, d):
    N, H, W, C = x.shape
    M = H * W
    x2 = x.reshape(N, M, C)
    kernel = functools.partial(_nb1d_kernel, H=H, W=W, d=d)
    wspec = pl.BlockSpec((3, C, C), lambda n: (0, 0, 0))
    vspec = pl.BlockSpec((1, C), lambda n: (0, 0))
    xspec = pl.BlockSpec((1, M, C), lambda n: (n, 0, 0))
    out = pl.pallas_call(
        kernel,
        out_shape=jax.ShapeDtypeStruct((N, M, C), jnp.float32),
        grid=(N,),
        in_specs=[xspec, wspec, vspec, wspec, vspec, vspec,
                  wspec, vspec, wspec, vspec, vspec],
        out_specs=pl.BlockSpec((1, M, C), lambda n: (n, 0, 0)),
        compiler_params=pltpu.CompilerParams(dimension_semantics=("parallel",)),
    )(x2, p['w1'], p['b1'], p['w2'], p['s1'], p['bb1'],
      p['w3'], p['b3'], p['w4'], p['s2'], p['bb2'])
    return out.reshape(N, H, W, C)


def sc_forward(x, p):
    N, H, W, C = x.shape
    M = H * W
    C8 = p['wq'].shape[1]
    Cr = p['w2'].shape[0]
    x2 = x.reshape(N, M, C)
    full = lambda shape: pl.BlockSpec(shape, lambda n: (0,) * len(shape))
    out = pl.pallas_call(
        _sc_kernel,
        out_shape=jax.ShapeDtypeStruct((N, M, C), jnp.float32),
        grid=(N,),
        in_specs=[pl.BlockSpec((1, M, C), lambda n: (n, 0, 0)),
                  full((C, C8)), full((1, C8)),
                  full((C, C8)), full((1, C8)),
                  full((C, C)), full((1, C)),
                  full((C, Cr)), full((C, Cr)), full((Cr, C)),
                  full((1, 1))],
        out_specs=pl.BlockSpec((1, M, C), lambda n: (n, 0, 0)),
        compiler_params=pltpu.CompilerParams(dimension_semantics=("parallel",)),
    )(x2, p['wq'], p['bq'], p['wk'], p['bk'], p['wv'], p['bv'],
      p['w1m'], p['w1s'], p['w2'], p['lamb'])
    return out.reshape(N, H, W, C)


def encoder_layer_specs(in_channels):
    chans = 32 if in_channels > 16 else 16
    specs = [('down', chans, 64, 0)]
    specs += [('nb', 64, 64, 1) for _ in range(5)]
    specs += [('down', 64, 128, 0)]
    for _ in range(2):
        for d in (2, 4, 8, 16):
            specs.append(('nb', 128, 128, d))
    return chans, tuple(specs)


def encoder_forward(x_nchw, prep, specs):
    x = jnp.transpose(x_nchw, (0, 2, 3, 1)).astype(jnp.float32)   # NCHW -> NHWC
    x = downsampler_forward(x, prep['initial'])
    for (kind, _cin, _cout, d), lp in zip(specs, prep['layers']):
        if kind == 'down':
            x = downsampler_forward(x, lp)
        else:
            x = nb1d_forward(x, lp, d)
    x = sc_forward(x, prep['sc'])     # predict=False -> encoder output_conv skipped
    return jnp.transpose(x, (0, 3, 1, 2))                          # NHWC -> NCHW


# ----------------------------------------------------------------------------
# Parameter preparation (fold BN, stack taps, transpose, cast to bf16)
# ----------------------------------------------------------------------------
def _fold_bn(bn, pre_bias):
    s = bn['gamma'] / jnp.sqrt(bn['var'] + EPS)
    b = bn['beta'] + s * (pre_bias - bn['mean'])
    return s, b


def prep_down(p):
    w = p['conv']['w']                          # (Cc, Cin, 3, 3)
    cc, cin = w.shape[0], w.shape[1]
    w_mat = jnp.transpose(w, (2, 3, 1, 0)).reshape(9 * cin, cc).astype(jnp.bfloat16)
    s = p['bn']['gamma'] / jnp.sqrt(p['bn']['var'] + EPS)
    b = p['bn']['beta'] - s * p['bn']['mean']
    return {'w': w_mat,
            's_conv': s[:cc].reshape(1, cc).astype(jnp.float32),
            'b_conv': (b[:cc] + s[:cc] * p['conv']['b']).reshape(1, cc).astype(jnp.float32),
            's_pool': s[cc:].reshape(1, cin).astype(jnp.float32),
            'b_pool': b[cc:].reshape(1, cin).astype(jnp.float32)}


def _stack_taps(w):
    # (Cout, Cin, 3, 1) or (Cout, Cin, 1, 3) -> (3, Cin, Cout) bf16
    cout, cin = w.shape[:2]
    taps = w.reshape(cout, cin, 3)
    return jnp.transpose(taps, (2, 1, 0)).astype(jnp.bfloat16)


def prep_nb1d(p):
    c = p['c1']['w'].shape[0]
    s1, bb1 = _fold_bn(p['bn1'], p['c2']['b'])
    s2, bb2 = _fold_bn(p['bn2'], p['c4']['b'])
    v = lambda a: a.reshape(1, c).astype(jnp.float32)
    return {'w1': _stack_taps(p['c1']['w']), 'b1': v(p['c1']['b']),
            'w2': _stack_taps(p['c2']['w']), 's1': v(s1), 'bb1': v(bb1),
            'w3': _stack_taps(p['c3']['w']), 'b3': v(p['c3']['b']),
            'w4': _stack_taps(p['c4']['w']), 's2': v(s2), 'bb2': v(bb2)}


def prep_sc(p, c):
    sp, ch = p['spatial'], p['channel']
    gamma = sp['gamma'][0]
    wq = sp['q']['w'].reshape(c // 8, c).T
    wk = sp['k']['w'].reshape(c // 8, c).T
    wv = sp['v']['w'].reshape(c, c).T
    w1 = ch['fc1_w'].T                              # (2c, c//8)
    return {'wq': wq.astype(jnp.bfloat16),
            'bq': sp['q']['b'].reshape(1, -1).astype(jnp.float32),
            'wk': wk.astype(jnp.bfloat16),
            'bk': sp['k']['b'].reshape(1, -1).astype(jnp.float32),
            'wv': (gamma * wv).astype(jnp.bfloat16),
            'bv': (gamma * sp['v']['b']).reshape(1, -1).astype(jnp.float32),
            'w1m': w1[:c].astype(jnp.bfloat16),
            'w1s': w1[c:].astype(jnp.bfloat16),
            'w2': ch['fc2_w'].T.astype(jnp.bfloat16),
            'lamb': ch['lamb'].reshape(1, 1).astype(jnp.float32)}


def prepare_encoder_params(raw, in_channels):
    _, specs = encoder_layer_specs(in_channels)
    layers = [prep_down(lp) if kind == 'down' else prep_nb1d(lp)
              for (kind, _a, _b, _d), lp in zip(specs, raw['layers'])]
    prep = {'initial': prep_down(raw['initial']),
            'layers': layers,
            'sc': prep_sc(raw['sc'], 128)}
    return prep, specs


# ----------------------------------------------------------------------------
# Deterministic synthetic parameters (PyTorch layouts)
# ----------------------------------------------------------------------------
class KeyGen:
    def __init__(self, seed):
        self.key = jax.random.PRNGKey(seed)

    def __call__(self):
        self.key, sub = jax.random.split(self.key)
        return sub


def make_conv(kg, cout, cin, kh, kw):
    w = jax.random.normal(kg(), (cout, cin, kh, kw), jnp.float32) / jnp.sqrt(cin * kh * kw)
    b = jax.random.normal(kg(), (cout,), jnp.float32) * 0.05
    return {'w': w, 'b': b}


def make_bn(kg, c):
    return {'gamma': jax.random.uniform(kg(), (c,), jnp.float32, 0.8, 1.2),
            'beta': jax.random.normal(kg(), (c,), jnp.float32) * 0.05,
            'mean': jax.random.normal(kg(), (c,), jnp.float32) * 0.05,
            'var': jax.random.uniform(kg(), (c,), jnp.float32, 0.8, 1.2)}


def make_down(kg, cin, cout):
    return {'conv': make_conv(kg, cout - cin, cin, 3, 3), 'bn': make_bn(kg, cout)}


def make_nb1d(kg, ch):
    return {'c1': make_conv(kg, ch, ch, 3, 1), 'c2': make_conv(kg, ch, ch, 1, 3),
            'bn1': make_bn(kg, ch),
            'c3': make_conv(kg, ch, ch, 3, 1), 'c4': make_conv(kg, ch, ch, 1, 3),
            'bn2': make_bn(kg, ch)}


def make_sc(kg, c):
    spatial = {'q': make_conv(kg, c // 8, c, 1, 1),
               'k': make_conv(kg, c // 8, c, 1, 1),
               'v': make_conv(kg, c, c, 1, 1),
               'gamma': jnp.ones((1,), jnp.float32)}
    r = 8
    channel = {'fc1_w': jax.random.normal(kg(), (c // r, 2 * c), jnp.float32) / jnp.sqrt(2 * c),
               'fc2_w': jax.random.normal(kg(), (c, c // r), jnp.float32) / jnp.sqrt(c // r),
               'lamb': jnp.ones((1,), jnp.float32)}
    return {'spatial': spatial, 'channel': channel}


def make_encoder_params(seed, in_channels):
    kg = KeyGen(seed)
    chans, specs = encoder_layer_specs(in_channels)
    initial = make_down(kg, in_channels, chans)
    layers = [make_down(kg, cin, cout) if kind == 'down' else make_nb1d(kg, cout)
              for kind, cin, cout, _d in specs]
    return {'initial': initial, 'layers': layers, 'sc': make_sc(kg, 128)}


# ----------------------------------------------------------------------------
# Pure-JAX references for lightweight numerical self-checks
# ----------------------------------------------------------------------------
def _ref_conv2d(x, w, b, stride=(1, 1), padding=((0, 0), (0, 0)), dilation=(1, 1)):
    out = jax.lax.conv_general_dilated(
        x, jnp.transpose(w, (2, 3, 1, 0)), window_strides=stride, padding=padding,
        rhs_dilation=dilation, dimension_numbers=('NHWC', 'HWIO', 'NHWC'))
    return out + b.reshape(1, 1, 1, -1)


def _ref_bn(x, bn):
    s = bn['gamma'] / jnp.sqrt(bn['var'] + EPS)
    return (x - bn['mean']) * s + bn['beta']


def _ref_down(x, p):
    conv = _ref_conv2d(x, p['conv']['w'], p['conv']['b'], (2, 2), ((1, 1), (1, 1)))
    N, H, W, C = x.shape
    pool = jnp.max(x.reshape(N, H // 2, 2, W // 2, 2, C), axis=(2, 4))
    return jax.nn.relu(_ref_bn(jnp.concatenate([conv, pool], -1), p['bn']))


def _ref_nb1d(x, p, d):
    t = jax.nn.relu(_ref_conv2d(x, p['c1']['w'], p['c1']['b'], padding=((1, 1), (0, 0))))
    t = jax.nn.relu(_ref_bn(_ref_conv2d(t, p['c2']['w'], p['c2']['b'],
                                        padding=((0, 0), (1, 1))), p['bn1']))
    t = jax.nn.relu(_ref_conv2d(t, p['c3']['w'], p['c3']['b'],
                                padding=((d, d), (0, 0)), dilation=(d, 1)))
    t = _ref_bn(_ref_conv2d(t, p['c4']['w'], p['c4']['b'],
                            padding=((0, 0), (d, d)), dilation=(1, d)), p['bn2'])
    return jax.nn.relu(t + x)


def _ref_sc(x, p):
    N, H, W, C = x.shape
    M = H * W
    x2 = x.reshape(N, M, C)
    sp, ch = p['spatial'], p['channel']
    wq = sp['q']['w'].reshape(C // 8, C)
    wk = sp['k']['w'].reshape(C // 8, C)
    wv = sp['v']['w'].reshape(C, C)
    q = x2 @ wq.T + sp['q']['b']
    k = x2 @ wk.T + sp['k']['b']
    v = x2 @ wv.T + sp['v']['b']
    attn = jax.nn.softmax(jnp.einsum('nic,njc->nij', q, k), axis=-1)
    spat = sp['gamma'][0] * jnp.einsum('nij,njc->nic', attn, v)
    mean = jnp.mean(x2, axis=1)
    std = jnp.std(x2, axis=1, ddof=1)
    feat = jnp.concatenate([mean, std], axis=1)
    catt = jax.nn.sigmoid(jax.nn.relu(feat @ ch['fc1_w'].T) @ ch['fc2_w'].T)
    return (spat + ch['lamb'][0] * catt[:, None, :] * x2 + x2).reshape(N, H, W, C)


# ----------------------------------------------------------------------------
if __name__ == "__main__":
    in_channels = 3
    N, H, W = 2, 32, 32

    raw = make_encoder_params(seed=0, in_channels=in_channels)
    prep, specs = prepare_encoder_params(raw, in_channels)

    x = jax.random.normal(jax.random.PRNGKey(0), (N, in_channels, H, W), jnp.float32)

    fwd = jax.jit(lambda xx, pp: encoder_forward(xx, pp, specs))
    out = fwd(x, prep)
    jax.block_until_ready(out)

    assert out.shape == (N, 128, H // 8, W // 8), out.shape
    assert bool(jnp.all(jnp.isfinite(out)))

    # Lightweight numerical self-checks of each fused kernel vs pure-JAX references
    # (loose tolerance to absorb bf16 MXU inputs; catches structural errors only).
    def _maxdiff(a, b):
        return float(jnp.max(jnp.abs(a - b)))

    TOL = 0.2
    kg = KeyGen(123)
    xd = jax.random.normal(kg(), (2, 16, 16, 16), jnp.float32)
    pdr = make_down(kg, 16, 64)
    md = _maxdiff(downsampler_forward(xd, prep_down(pdr)), _ref_down(xd, pdr))
    assert md < TOL, f"downsampler mismatch {md}"

    xn = jax.random.normal(kg(), (2, 8, 8, 64), jnp.float32)
    pnr = make_nb1d(kg, 64)
    md = _maxdiff(nb1d_forward(xn, prep_nb1d(pnr), 1), _ref_nb1d(xn, pnr, 1))
    assert md < TOL, f"nb1d(64,d=1) mismatch {md}"

    xn2 = jax.random.normal(kg(), (2, 4, 4, 128), jnp.float32)
    pnr2 = make_nb1d(kg, 128)
    md = _maxdiff(nb1d_forward(xn2, prep_nb1d(pnr2), 2), _ref_nb1d(xn2, pnr2, 2))
    assert md < TOL, f"nb1d(128,d=2) mismatch {md}"

    xs = jax.random.normal(kg(), (2, 4, 4, 128), jnp.float32)
    psr = make_sc(kg, 128)
    md = _maxdiff(sc_forward(xs, prep_sc(psr, 128)), _ref_sc(xs, psr))
    assert md < TOL, f"SCModule mismatch {md}"

    print("KERNEL_OK")
</pallas_src>

<mosaic_0001>
module attributes {stable_mosaic.version = 11 : i64} {
  func.func @_down_kernel(%arg0: i32, %arg1: memref<1x256x27xbf16, #tpu.memory_space<vmem>>, %arg2: memref<27x13xbf16, #tpu.memory_space<vmem>>, %arg3: memref<1x256x3xf32, #tpu.memory_space<vmem>>, %arg4: memref<1x256x3xf32, #tpu.memory_space<vmem>>, %arg5: memref<1x256x3xf32, #tpu.memory_space<vmem>>, %arg6: memref<1x256x3xf32, #tpu.memory_space<vmem>>, %arg7: memref<1x13xf32, #tpu.memory_space<vmem>>, %arg8: memref<1x13xf32, #tpu.memory_space<vmem>>, %arg9: memref<1x3xf32, #tpu.memory_space<vmem>>, %arg10: memref<1x3xf32, #tpu.memory_space<vmem>>, %arg11: memref<1x256x16xf32, #tpu.memory_space<vmem>>) attributes {dimension_semantics = [#tpu.dimension_semantics<parallel>], iteration_bounds = array<i64: 2>, scalar_prefetch = 0 : i64, scratch_operands = 0 : i64, tpu.core_type = #tpu.core_type<tc>, window_params = [{transform_indices = @transform_0, window_bounds = array<i64: 1, 256, 27>}, {pipeline_mode = #tpu.pipeline_mode<synchronous>, transform_indices = @transform_1, window_bounds = array<i64: 27, 13>}, {transform_indices = @transform_2, window_bounds = array<i64: 1, 256, 3>}, {transform_indices = @transform_3, window_bounds = array<i64: 1, 256, 3>}, {transform_indices = @transform_4, window_bounds = array<i64: 1, 256, 3>}, {transform_indices = @transform_5, window_bounds = array<i64: 1, 256, 3>}, {pipeline_mode = #tpu.pipeline_mode<synchronous>, transform_indices = @transform_6, window_bounds = array<i64: 1, 13>}, {pipeline_mode = #tpu.pipeline_mode<synchronous>, transform_indices = @transform_7, window_bounds = array<i64: 1, 13>}, {pipeline_mode = #tpu.pipeline_mode<synchronous>, transform_indices = @transform_8, window_bounds = array<i64: 1, 3>}, {pipeline_mode = #tpu.pipeline_mode<synchronous>, transform_indices = @transform_9, window_bounds = array<i64: 1, 3>}, {transform_indices = @transform_10, window_bounds = array<i64: 1, 256, 16>}]} {
    %c0 = arith.constant 0 : index
    %c0_0 = arith.constant 0 : index
    %c0_1 = arith.constant 0 : index
    %0 = vector.load %arg1[%c0, %c0_0, %c0_1] : memref<1x256x27xbf16, #tpu.memory_space<vmem>>, vector<1x256x27xbf16>
    %1 = vector.shape_cast %0 : vector<1x256x27xbf16> to vector<256x27xbf16>
    %c0_2 = arith.constant 0 : index
    %c0_3 = arith.constant 0 : index
    %2 = vector.load %arg2[%c0_2, %c0_3] : memref<27x13xbf16, #tpu.memory_space<vmem>>, vector<27x13xbf16>
    %cst = arith.constant dense<0.000000e+00> : vector<256x13xf32>
    %3 = tpu.matmul %1, %2, %cst {dimension_numbers = #tpu.dot_dimension_numbers<[1], [0], [0], [1], [0, 0, 1, 1], [], []>} : vector<256x27xbf16>, vector<27x13xbf16>, vector<256x13xf32> -> vector<256x13xf32>
    %c0_4 = arith.constant 0 : index
    %c0_5 = arith.constant 0 : index
    %4 = vector.load %arg7[%c0_4, %c0_5] : memref<1x13xf32, #tpu.memory_space<vmem>>, vector<1x13xf32>
    %5 = vector.broadcast %4 : vector<1x13xf32> to vector<256x13xf32>
    %6 = arith.mulf %3, %5 : vector<256x13xf32>
    %c0_6 = arith.constant 0 : index
    %c0_7 = arith.constant 0 : index
    %7 = vector.load %arg8[%c0_6, %c0_7] : memref<1x13xf32, #tpu.memory_space<vmem>>, vector<1x13xf32>
    %8 = vector.broadcast %7 : vector<1x13xf32> to vector<256x13xf32>
    %9 = arith.addf %6, %8 : vector<256x13xf32>
    %c0_8 = arith.constant 0 : index
    %c0_9 = arith.constant 0 : index
    %c0_10 = arith.constant 0 : index
    %10 = vector.load %arg3[%c0_8, %c0_9, %c0_10] : memref<1x256x3xf32, #tpu.memory_space<vmem>>, vector<1x256x3xf32>
    %11 = vector.shape_cast %10 : vector<1x256x3xf32> to vector<256x3xf32>
    %c0_11 = arith.constant 0 : index
    %c0_12 = arith.constant 0 : index
    %c0_13 = arith.constant 0 : index
    %12 = vector.load %arg4[%c0_11, %c0_12, %c0_13] : memref<1x256x3xf32, #tpu.memory_space<vmem>>, vector<1x256x3xf32>
    %13 = vector.shape_cast %12 : vector<1x256x3xf32> to vector<256x3xf32>
    %14 = arith.maximumf %11, %13 : vector<256x3xf32>
    %c0_14 = arith.constant 0 : index
    %c0_15 = arith.constant 0 : index
    %c0_16 = arith.constant 0 : index
    %15 = vector.load %arg5[%c0_14, %c0_15, %c0_16] : memref<1x256x3xf32, #tpu.memory_space<vmem>>, vector<1x256x3xf32>
    %16 = vector.shape_cast %15 : vector<1x256x3xf32> to vector<256x3xf32>
    %c0_17 = arith.constant 0 : index
    %c0_18 = arith.constant 0 : index
    %c0_19 = arith.constant 0 : index
    %17 = vector.load %arg6[%c0_17, %c0_18, %c0_19] : memref<1x256x3xf32, #tpu.memory_space<vmem>>, vector<1x256x3xf32>
    %18 = vector.shape_cast %17 : vector<1x256x3xf32> to vector<256x3xf32>
    %19 = arith.maximumf %16, %18 : vector<256x3xf32>
    %20 = arith.maximumf %14, %19 : vector<256x3xf32>
    %c0_20 = arith.constant 0 : index
    %c0_21 = arith.constant 0 : index
    %21 = vector.load %arg9[%c0_20, %c0_21] : memref<1x3xf32, #tpu.memory_space<vmem>>, vector<1x3xf32>
    %22 = vector.broadcast %21 : vector<1x3xf32> to vector<256x3xf32>
    %23 = arith.mulf %20, %22 : vector<256x3xf32>
    %c0_22 = arith.constant 0 : index
    %c0_23 = arith.constant 0 : index
    %24 = vector.load %arg10[%c0_22, %c0_23] : memref<1x3xf32, #tpu.memory_space<vmem>>, vector<1x3xf32>
    %25 = vector.broadcast %24 : vector<1x3xf32> to vector<256x3xf32>
    %26 = arith.addf %23, %25 : vector<256x3xf32>
    %cst_24 = arith.constant 0.000000e+00 : f32
    %27 = vector.broadcast %cst_24 : f32 to vector<256x13xf32>
    %28 = arith.maximumf %9, %27 : vector<256x13xf32>
    %c0_25 = arith.constant 0 : index
    %c0_26 = arith.constant 0 : index
    %c0_27 = arith.constant 0 : index
    %29 = vector.load %arg11[%c0_25, %c0_26, %c0_27] : memref<1x256x16xf32, #tpu.memory_space<vmem>>, vector<1x256x13xf32>
    %30 = vector.shape_cast %29 : vector<1x256x13xf32> to vector<256x13xf32>
    %31 = vector.shape_cast %28 : vector<256x13xf32> to vector<1x256x13xf32>
    tpu.vector_store %arg11[%c0_25, %c0_26, %c0_27], %31 {strides = array<i32>} : memref<1x256x16xf32, #tpu.memory_space<vmem>>, vector<1x256x13xf32>,
    %cst_28 = arith.constant 0.000000e+00 : f32
    %32 = vector.broadcast %cst_28 : f32 to vector<256x3xf32>
    %33 = arith.maximumf %26, %32 : vector<256x3xf32>
    %c0_29 = arith.constant 0 : index
    %c0_30 = arith.constant 0 : index
    %c13 = arith.constant 13 : index
    %34 = vector.load %arg11[%c0_29, %c0_30, %c13] : memref<1x256x16xf32, #tpu.memory_space<vmem>>, vector<1x256x3xf32>
    %35 = vector.shape_cast %34 : vector<1x256x3xf32> to vector<256x3xf32>
    %36 = vector.shape_cast %33 : vector<256x3xf32> to vector<1x256x3xf32>
    tpu.vector_store %arg11[%c0_29, %c0_30, %c13], %36 {strides = array<i32>} : memref<1x256x16xf32, #tpu.memory_space<vmem>>, vector<1x256x3xf32>,
    return
  }
  func.func @transform_0(%arg0: i32) -> (i32, i32, i32) {
    %c0_i32 = arith.constant 0 : i32
    %c0_i32_0 = arith.constant 0 : i32
    %c0_i32_1 = arith.constant 0 : i32
    return %arg0, %c0_i32, %c0_i32_0 : i32, i32, i32
  }
  func.func @transform_1(%arg0: i32) -> (i32, i32) {
    %c0_i32 = arith.constant 0 : i32
    %c0_i32_0 = arith.constant 0 : i32
    %c0_i32_1 = arith.constant 0 : i32
    return %c0_i32, %c0_i32_0 : i32, i32
  }
  func.func @transform_2(%arg0: i32) -> (i32, i32, i32) {
    %c0_i32 = arith.constant 0 : i32
    %c0_i32_0 = arith.constant 0 : i32
    %c0_i32_1 = arith.constant 0 : i32
    return %arg0, %c0_i32, %c0_i32_0 : i32, i32, i32
  }
  func.func @transform_3(%arg0: i32) -> (i32, i32, i32) {
    %c0_i32 = arith.constant 0 : i32
    %c0_i32_0 = arith.constant 0 : i32
    %c0_i32_1 = arith.constant 0 : i32
    return %arg0, %c0_i32, %c0_i32_0 : i32, i32, i32
  }
  func.func @transform_4(%arg0: i32) -> (i32, i32, i32) {
    %c0_i32 = arith.constant 0 : i32
    %c0_i32_0 = arith.constant 0 : i32
    %c0_i32_1 = arith.constant 0 : i32
    return %arg0, %c0_i32, %c0_i32_0 : i32, i32, i32
  }
  func.func @transform_5(%arg0: i32) -> (i32, i32, i32) {
    %c0_i32 = arith.constant 0 : i32
    %c0_i32_0 = arith.constant 0 : i32
    %c0_i32_1 = arith.constant 0 : i32
    return %arg0, %c0_i32, %c0_i32_0 : i32, i32, i32
  }
  func.func @transform_6(%arg0: i32) -> (i32, i32) {
    %c0_i32 = arith.constant 0 : i32
    %c0_i32_0 = arith.constant 0 : i32
    %c0_i32_1 = arith.constant 0 : i32
    return %c0_i32, %c0_i32_0 : i32, i32
  }
  func.func @transform_7(%arg0: i32) -> (i32, i32) {
    %c0_i32 = arith.constant 0 : i32
    %c0_i32_0 = arith.constant 0 : i32
    %c0_i32_1 = arith.constant 0 : i32
    return %c0_i32, %c0_i32_0 : i32, i32
  }
  func.func @transform_8(%arg0: i32) -> (i32, i32) {
    %c0_i32 = arith.constant 0 : i32
    %c0_i32_0 = arith.constant 0 : i32
    %c0_i32_1 = arith.constant 0 : i32
    return %c0_i32, %c0_i32_0 : i32, i32
  }
  func.func @transform_9(%arg0: i32) -> (i32, i32) {
    %c0_i32 = arith.constant 0 : i32
    %c0_i32_0 = arith.constant 0 : i32
    %c0_i32_1 = arith.constant 0 : i32
    return %c0_i32, %c0_i32_0 : i32, i32
  }
  func.func @transform_10(%arg0: i32) -> (i32, i32, i32) {
    %c0_i32 = arith.constant 0 : i32
    %c0_i32_0 = arith.constant 0 : i32
    %c0_i32_1 = arith.constant 0 : i32
    return %arg0, %c0_i32, %c0_i32_0 : i32, i32, i32
  }
}

module attributes {stable_mosaic.version = 11 : i64} {
  func.func @_nb1d_kernel(%arg0: i32, %arg1: memref<1x64x64xf32, #tpu.memory_space<vmem>>, %arg2: memref<3x64x64xbf16, #tpu.memory_space<vmem>>, %arg3: memref<1x64xf32, #tpu.memory_space<vmem>>, %arg4: memref<3x64x64xbf16, #tpu.memory_space<vmem>>, %arg5: memref<1x64xf32, #tpu.memory_space<vmem>>, %arg6: memref<1x64xf32, #tpu.memory_space<vmem>>, %arg7: memref<3x64x64xbf16, #tpu.memory_space<vmem>>, %arg8: memref<1x64xf32, #tpu.memory_space<vmem>>, %arg9: memref<3x64x64xbf16, #tpu.memory_space<vmem>>, %arg10: memref<1x64xf32, #tpu.memory_space<vmem>>, %arg11: memref<1x64xf32, #tpu.memory_space<vmem>>, %arg12: memref<1x64x64xf32, #tpu.memory_space<vmem>>) attributes {dimension_semantics = [#tpu.dimension_semantics<parallel>], iteration_bounds = array<i64: 2>, scalar_prefetch = 0 : i64, scratch_operands = 0 : i64, tpu.core_type = #tpu.core_type<tc>, window_params = [{transform_indices = @transform_0, window_bounds = array<i64: 1, 64, 64>}, {pipeline_mode = #tpu.pipeline_mode<synchronous>, transform_indices = @transform_1, window_bounds = array<i64: 3, 64, 64>}, {pipeline_mode = #tpu.pipeline_mode<synchronous>, transform_indices = @transform_2, window_bounds = array<i64: 1, 64>}, {pipeline_mode = #tpu.pipeline_mode<synchronous>, transform_indices = @transform_3, window_bounds = array<i64: 3, 64, 64>}, {pipeline_mode = #tpu.pipeline_mode<synchronous>, transform_indices = @transform_4, window_bounds = array<i64: 1, 64>}, {pipeline_mode = #tpu.pipeline_mode<synchronous>, transform_indices = @transform_5, window_bounds = array<i64: 1, 64>}, {pipeline_mode = #tpu.pipeline_mode<synchronous>, transform_indices = @transform_6, window_bounds = array<i64: 3, 64, 64>}, {pipeline_mode = #tpu.pipeline_mode<synchronous>, transform_indices = @transform_7, window_bounds = array<i64: 1, 64>}, {pipeline_mode = #tpu.pipeline_mode<synchronous>, transform_indices = @transform_8, window_bounds = array<i64: 3, 64, 64>}, {pipeline_mode = #tpu.pipeline_mode<synchronous>, transform_indices = @transform_9, window_bounds = array<i64: 1, 64>}, {pipeline_mode = #tpu.pipeline_mode<synchronous>, transform_indices = @transform_10, window_bounds = array<i64: 1, 64>}, {transform_indices = @transform_11, window_bounds = array<i64: 1, 64, 64>}]} {
    %c0 = arith.constant 0 : index
    %c0_0 = arith.constant 0 : index
    %c0_1 = arith.constant 0 : index
    %0 = vector.load %arg1[%c0, %c0_0, %c0_1] : memref<1x64x64xf32, #tpu.memory_space<vmem>>, vector<1x64x64xf32>
    %1 = vector.shape_cast %0 : vector<1x64x64xf32> to vector<64x64xf32>
    %2 = tpu.iota {dimensions = array<i32: 0>} : vector<64x64xi32>
    %c7_i32 = arith.constant 7 : i32
    %3 = vector.broadcast %c7_i32 : i32 to vector<64x64xi32>
    %4 = arith.andi %2, %3 : vector<64x64xi32>
    %cst = arith.constant 0.000000e+00 : f32
    %5 = vector.broadcast %cst : f32 to vector<64x64xf32>
    %c8_i32 = arith.constant 8 : i32
    %6 = tpu.dynamic_rotate %1 by %c8_i32 dim 0 : vector<64x64xf32>, i32 -> vector<64x64xf32>
    %c-8_i32 = arith.constant -8 : i32
    %7 = vector.broadcast %c-8_i32 : i32 to vector<64x64xi32>
    %8 = arith.addi %2, %7 : vector<64x64xi32>
    %c0_i32 = arith.constant 0 : i32
    %9 = vector.broadcast %c0_i32 : i32 to vector<64x64xi32>
    %10 = arith.cmpi sge, %8, %9 : vector<64x64xi32>
    %c-8_i32_2 = arith.constant -8 : i32
    %11 = vector.broadcast %c-8_i32_2 : i32 to vector<64x64xi32>
    %12 = arith.addi %2, %11 : vector<64x64xi32>
    %c64_i32 = arith.constant 64 : i32
    %13 = vector.broadcast %c64_i32 : i32 to vector<64x64xi32>
    %14 = arith.cmpi slt, %12, %13 : vector<64x64xi32>
    %15 = arith.andi %10, %14 : vector<64x64xi1>
    %cst_3 = arith.constant 0.000000e+00 : f32
    %16 = vector.broadcast %cst_3 : f32 to vector<64x64xf32>
    %17 = arith.select %15, %6, %16 : vector<64x64xi1>, vector<64x64xf32>
    %18 = arith.truncf %17 : vector<64x64xf32> to vector<64x64xbf16>
    %c0_4 = arith.constant 0 : index
    %c0_5 = arith.constant 0 : index
    %c0_6 = arith.constant 0 : index
    %19 = vector.load %arg2[%c0_4, %c0_5, %c0_6] : memref<3x64x64xbf16, #tpu.memory_space<vmem>>, vector<1x64x64xbf16>
    %20 = vector.shape_cast %19 : vector<1x64x64xbf16> to vector<64x64xbf16>
    %cst_7 = arith.constant dense<0.000000e+00> : vector<64x64xf32>
    %21 = tpu.matmul %18, %20, %cst_7 {dimension_numbers = #tpu.dot_dimension_numbers<[1], [0], [0], [1], [0, 0, 1, 1], [], []>} : vector<64x64xbf16>, vector<64x64xbf16>, vector<64x64xf32> -> vector<64x64xf32>
    %22 = arith.addf %5, %21 : vector<64x64xf32>
    %23 = arith.truncf %1 : vector<64x64xf32> to vector<64x64xbf16>
    %c1 = arith.constant 1 : index
    %c0_8 = arith.constant 0 : index
    %c0_9 = arith.constant 0 : index
    %24 = vector.load %arg2[%c1, %c0_8, %c0_9] : memref<3x64x64xbf16, #tpu.memory_space<vmem>>, vector<1x64x64xbf16>
    %25 = vector.shape_cast %24 : vector<1x64x64xbf16> to vector<64x64xbf16>
    %cst_10 = arith.constant dense<0.000000e+00> : vector<64x64xf32>
    %26 = tpu.matmul %23, %25, %cst_10 {dimension_numbers = #tpu.dot_dimension_numbers<[1], [0], [0], [1], [0, 0, 1, 1], [], []>} : vector<64x64xbf16>, vector<64x64xbf16>, vector<64x64xf32> -> vector<64x64xf32>
    %27 = arith.addf %22, %26 : vector<64x64xf32>
    %c56_i32 = arith.constant 56 : i32
    %28 = tpu.dynamic_rotate %1 by %c56_i32 dim 0 : vector<64x64xf32>, i32 -> vector<64x64xf32>
    %c8_i32_11 = arith.constant 8 : i32
    %29 = vector.broadcast %c8_i32_11 : i32 to vector<64x64xi32>
    %30 = arith.addi %2, %29 : vector<64x64xi32>
    %c0_i32_12 = arith.constant 0 : i32
    %31 = vector.broadcast %c0_i32_12 : i32 to vector<64x64xi32>
    %32 = arith.cmpi sge, %30, %31 : vector<64x64xi32>
    %c8_i32_13 = arith.constant 8 : i32
    %33 = vector.broadcast %c8_i32_13 : i32 to vector<64x64xi32>
    %34 = arith.addi %2, %33 : vector<64x64xi32>
    %c64_i32_14 = arith.constant 64 : i32
    %35 = vector.broadcast %c64_i32_14 : i32 to vector<64x64xi32>
    %36 = arith.cmpi slt, %34, %35 : vector<64x64xi32>
    %37 = arith.andi %32, %36 : vector<64x64xi1>
    %cst_15 = arith.constant 0.000000e+00 : f32
    %38 = vector.broadcast %cst_15 : f32 to vector<64x64xf32>
    %39 = arith.select %37, %28, %38 : vector<64x64xi1>, vector<64x64xf32>
    %40 = arith.truncf %39 : vector<64x64xf32> to vector<64x64xbf16>
    %c2 = arith.constant 2 : index
    %c0_16 = arith.constant 0 : index
    %c0_17 = arith.constant 0 : index
    %41 = vector.load %arg2[%c2, %c0_16, %c0_17] : memref<3x64x64xbf16, #tpu.memory_space<vmem>>, vector<1x64x64xbf16>
    %42 = vector.shape_cast %41 : vector<1x64x64xbf16> to vector<64x64xbf16>
    %cst_18 = arith.constant dense<0.000000e+00> : vector<64x64xf32>
    %43 = tpu.matmul %40, %42, %cst_18 {dimension_numbers = #tpu.dot_dimension_numbers<[1], [0], [0], [1], [0, 0, 1, 1], [], []>} : vector<64x64xbf16>, vector<64x64xbf16>, vector<64x64xf32> -> vector<64x64xf32>
    %44 = arith.addf %27, %43 : vector<64x64xf32>
    %c0_19 = arith.constant 0 : index
    %c0_20 = arith.constant 0 : index
    %45 = vector.load %arg3[%c0_19, %c0_20] : memref<1x64xf32, #tpu.memory_space<vmem>>, vector<1x64xf32>
    %46 = vector.broadcast %45 : vector<1x64xf32> to vector<64x64xf32>
    %47 = arith.addf %44, %46 : vector<64x64xf32>
    %cst_21 = arith.constant 0.000000e+00 : f32
    %48 = vector.broadcast %cst_21 : f32 to vector<64x64xf32>
    %49 = arith.maximumf %47, %48 : vector<64x64xf32>
    %cst_22 = arith.constant 0.000000e+00 : f32
    %50 = vector.broadcast %cst_22 : f32 to vector<64x64xf32>
    %c1_i32 = arith.constant 1 : i32
    %51 = tpu.dynamic_rotate %49 by %c1_i32 dim 0 : vector<64x64xf32>, i32 -> vector<64x64xf32>
    %c-1_i32 = arith.constant -1 : i32
    %52 = vector.broadcast %c-1_i32 : i32 to vector<64x64xi32>
    %53 = arith.addi %4, %52 : vector<64x64xi32>
    %c0_i32_23 = arith.constant 0 : i32
    %54 = vector.broadcast %c0_i32_23 : i32 to vector<64x64xi32>
    %55 = arith.cmpi sge, %53, %54 : vector<64x64xi32>
    %c-1_i32_24 = arith.constant -1 : i32
    %56 = vector.broadcast %c-1_i32_24 : i32 to vector<64x64xi32>
    %57 = arith.addi %4, %56 : vector<64x64xi32>
    %c8_i32_25 = arith.constant 8 : i32
    %58 = vector.broadcast %c8_i32_25 : i32 to vector<64x64xi32>
    %59 = arith.cmpi slt, %57, %58 : vector<64x64xi32>
    %60 = arith.andi %55, %59 : vector<64x64xi1>
    %cst_26 = arith.constant 0.000000e+00 : f32
    %61 = vector.broadcast %cst_26 : f32 to vector<64x64xf32>
    %62 = arith.select %60, %51, %61 : vector<64x64xi1>, vector<64x64xf32>
    %63 = arith.truncf %62 : vector<64x64xf32> to vector<64x64xbf16>
    %c0_27 = arith.constant 0 : index
    %c0_28 = arith.constant 0 : index
    %c0_29 = arith.constant 0 : index
    %64 = vector.load %arg4[%c0_27, %c0_28, %c0_29] : memref<3x64x64xbf16, #tpu.memory_space<vmem>>, vector<1x64x64xbf16>
    %65 = vector.shape_cast %64 : vector<1x64x64xbf16> to vector<64x64xbf16>
    %cst_30 = arith.constant dense<0.000000e+00> : vector<64x64xf32>
    %66 = tpu.matmul %63, %65, %cst_30 {dimension_numbers = #tpu.dot_dimension_numbers<[1], [0], [0], [1], [0, 0, 1, 1], [], []>} : vector<64x64xbf16>, vector<64x64xbf16>, vector<64x64xf32> -> vector<64x64xf32>
    %67 = arith.addf %50, %66 : vector<64x64xf32>
    %68 = arith.truncf %49 : vector<64x64xf32> to vector<64x64xbf16>
    %c1_31 = arith.constant 1 : index
    %c0_32 = arith.constant 0 : index
    %c0_33 = arith.constant 0 : index
    %69 = vector.load %arg4[%c1_31, %c0_32, %c0_33] : memref<3x64x64xbf16, #tpu.memory_space<vmem>>, vector<1x64x64xbf16>
    %70 = vector.shape_cast %69 : vector<1x64x64xbf16> to vector<64x64xbf16>
    %cst_34 = arith.constant dense<0.000000e+00> : vector<64x64xf32>
    %71 = tpu.matmul %68, %70, %cst_34 {dimension_numbers = #tpu.dot_dimension_numbers<[1], [0], [0], [1], [0, 0, 1, 1], [], []>} : vector<64x64xbf16>, vector<64x64xbf16>, vector<64x64xf32> -> vector<64x64xf32>
    %72 = arith.addf %67, %71 : vector<64x64xf32>
    %c63_i32 = arith.constant 63 : i32
    %73 = tpu.dynamic_rotate %49 by %c63_i32 dim 0 : vector<64x64xf32>, i32 -> vector<64x64xf32>
    %c1_i32_35 = arith.constant 1 : i32
    %74 = vector.broadcast %c1_i32_35 : i32 to vector<64x64xi32>
    %75 = arith.addi %4, %74 : vector<64x64xi32>
    %c0_i32_36 = arith.constant 0 : i32
    %76 = vector.broadcast %c0_i32_36 : i32 to vector<64x64xi32>
    %77 = arith.cmpi sge, %75, %76 : vector<64x64xi32>
    %c1_i32_37 = arith.constant 1 : i32
    %78 = vector.broadcast %c1_i32_37 : i32 to vector<64x64xi32>
    %79 = arith.addi %4, %78 : vector<64x64xi32>
    %c8_i32_38 = arith.constant 8 : i32
    %80 = vector.broadcast %c8_i32_38 : i32 to vector<64x64xi32>
    %81 = arith.cmpi slt, %79, %80 : vector<64x64xi32>
    %82 = arith.andi %77, %81 : vector<64x64xi1>
    %cst_39 = arith.constant 0.000000e+00 : f32
    %83 = vector.broadcast %cst_39 : f32 to vector<64x64xf32>
    %84 = arith.select %82, %73, %83 : vector<64x64xi1>, vector<64x64xf32>
    %85 = arith.truncf %84 : vector<64x64xf32> to vector<64x64xbf16>
    %c2_40 = arith.constant 2 : index
    %c0_41 = arith.constant 0 : index
    %c0_42 = arith.constant 0 : index
    %86 = vector.load %arg4[%c2_40, %c0_41, %c0_42] : memref<3x64x64xbf16, #tpu.memory_space<vmem>>, vector<1x64x64xbf16>
    %87 = vector.shape_cast %86 : vector<1x64x64xbf16> to vector<64x64xbf16>
    %cst_43 = arith.constant dense<0.000000e+00> : vector<64x64xf32>
    %88 = tpu.matmul %85, %87, %cst_43 {dimension_numbers = #tpu.dot_dimension_numbers<[1], [0], [0], [1], [0, 0, 1, 1], [], []>} : vector<64x64xbf16>, vector<64x64xbf16>, vector<64x64xf32> -> vector<64x64xf32>
    %89 = arith.addf %72, %88 : vector<64x64xf32>
    %c0_44 = arith.constant 0 : index
    %c0_45 = arith.constant 0 : index
    %90 = vector.load %arg5[%c0_44, %c0_45] : memref<1x64xf32, #tpu.memory_space<vmem>>, vector<1x64xf32>
    %91 = vector.broadcast %90 : vector<1x64xf32> to vector<64x64xf32>
    %92 = arith.mulf %89, %91 : vector<64x64xf32>
    %c0_46 = arith.constant 0 : index
    %c0_47 = arith.constant 0 : index
    %93 = vector.load %arg6[%c0_46, %c0_47] : memref<1x64xf32, #tpu.memory_space<vmem>>, vector<1x64xf32>
    %94 = vector.broadcast %93 : vector<1x64xf32> to vector<64x64xf32>
    %95 = arith.addf %92, %94 : vector<64x64xf32>
    %cst_48 = arith.constant 0.000000e+00 : f32
    %96 = vector.broadcast %cst_48 : f32 to vector<64x64xf32>
    %97 = arith.maximumf %95, %96 : vector<64x64xf32>
    %cst_49 = arith.constant 0.000000e+00 : f32
    %98 = vector.broadcast %cst_49 : f32 to vector<64x64xf32>
    %c8_i32_50 = arith.constant 8 : i32
    %99 = tpu.dynamic_rotate %97 by %c8_i32_50 dim 0 : vector<64x64xf32>, i32 -> vector<64x64xf32>
    %c-8_i32_51 = arith.constant -8 : i32
    %100 = vector.broadcast %c-8_i32_51 : i32 to vector<64x64xi32>
    %101 = arith.addi %2, %100 : vector<64x64xi32>
    %c0_i32_52 = arith.constant 0 : i32
    %102 = vector.broadcast %c0_i32_52 : i32 to vector<64x64xi32>
    %103 = arith.cmpi sge, %101, %102 : vector<64x64xi32>
    %c-8_i32_53 = arith.constant -8 : i32
    %104 = vector.broadcast %c-8_i32_53 : i32 to vector<64x64xi32>
    %105 = arith.addi %2, %104 : vector<64x64xi32>
    %c64_i32_54 = arith.constant 64 : i32
    %106 = vector.broadcast %c64_i32_54 : i32 to vector<64x64xi32>
    %107 = arith.cmpi slt, %105, %106 : vector<64x64xi32>
    %108 = arith.andi %103, %107 : vector<64x64xi1>
    %cst_55 = arith.constant 0.000000e+00 : f32
    %109 = vector.broadcast %cst_55 : f32 to vector<64x64xf32>
    %110 = arith.select %108, %99, %109 : vector<64x64xi1>, vector<64x64xf32>
    %111 = arith.truncf %110 : vector<64x64xf32> to vector<64x64xbf16>
    %c0_56 = arith.constant 0 : index
    %c0_57 = arith.constant 0 : index
    %c0_58 = arith.constant 0 : index
    %112 = vector.load %arg7[%c0_56, %c0_57, %c0_58] : memref<3x64x64xbf16, #tpu.memory_space<vmem>>, vector<1x64x64xbf16>
    %113 = vector.shape_cast %112 : vector<1x64x64xbf16> to vector<64x64xbf16>
    %cst_59 = arith.constant dense<0.000000e+00> : vector<64x64xf32>
    %114 = tpu.matmul %111, %113, %cst_59 {dimension_numbers = #tpu.dot_dimension_numbers<[1], [0], [0], [1], [0, 0, 1, 1], [], []>} : vector<64x64xbf16>, vector<64x64xbf16>, vector<64x64xf32> -> vector<64x64xf32>
    %115 = arith.addf %98, %114 : vector<64x64xf32>
    %116 = arith.truncf %97 : vector<64x64xf32> to vector<64x64xbf16>
    %c1_60 = arith.constant 1 : index
    %c0_61 = arith.constant 0 : index
    %c0_62 = arith.constant 0 : index
    %117 = vector.load %arg7[%c1_60, %c0_61, %c0_62] : memref<3x64x64xbf16, #tpu.memory_space<vmem>>, vector<1x64x64xbf16>
    %118 = vector.shape_cast %117 : vector<1x64x64xbf16> to vector<64x64xbf16>
    %cst_63 = arith.constant dense<0.000000e+00> : vector<64x64xf32>
    %119 = tpu.matmul %116, %118, %cst_63 {dimension_numbers = #tpu.dot_dimension_numbers<[1], [0], [0], [1], [0, 0, 1, 1], [], []>} : vector<64x64xbf16>, vector<64x64xbf16>, vector<64x64xf32> -> vector<64x64xf32>
    %120 = arith.addf %115, %119 : vector<64x64xf32>
    %c56_i32_64 = arith.constant 56 : i32
    %121 = tpu.dynamic_rotate %97 by %c56_i32_64 dim 0 : vector<64x64xf32>, i32 -> vector<64x64xf32>
    %c8_i32_65 = arith.constant 8 : i32
    %122 = vector.broadcast %c8_i32_65 : i32 to vector<64x64xi32>
    %123 = arith.addi %2, %122 : vector<64x64xi32>
    %c0_i32_66 = arith.constant 0 : i32
    %124 = vector.broadcast %c0_i32_66 : i32 to vector<64x64xi32>
    %125 = arith.cmpi sge, %123, %124 : vector<64x64xi32>
    %c8_i32_67 = arith.constant 8 : i32
    %126 = vector.broadcast %c8_i32_67 : i32 to vector<64x64xi32>
    %127 = arith.addi %2, %126 : vector<64x64xi32>
    %c64_i32_68 = arith.constant 64 : i32
    %128 = vector.broadcast %c64_i32_68 : i32 to vector<64x64xi32>
    %129 = arith.cmpi slt, %127, %128 : vector<64x64xi32>
    %130 = arith.andi %125, %129 : vector<64x64xi1>
    %cst_69 = arith.constant 0.000000e+00 : f32
    %131 = vector.broadcast %cst_69 : f32 to vector<64x64xf32>
    %132 = arith.select %130, %121, %131 : vector<64x64xi1>, vector<64x64xf32>
    %133 = arith.truncf %132 : vector<64x64xf32> to vector<64x64xbf16>
    %c2_70 = arith.constant 2 : index
    %c0_71 = arith.constant 0 : index
    %c0_72 = arith.constant 0 : index
    %134 = vector.load %arg7[%c2_70, %c0_71, %c0_72] : memref<3x64x64xbf16, #tpu.memory_space<vmem>>, vector<1x64x64xbf16>
    %135 = vector.shape_cast %134 : vector<1x64x64xbf16> to vector<64x64xbf16>
    %cst_73 = arith.constant dense<0.000000e+00> : vector<64x64xf32>
    %136 = tpu.matmul %133, %135, %cst_73 {dimension_numbers = #tpu.dot_dimension_numbers<[1], [0], [0], [1], [0, 0, 1, 1], [], []>} : vector<64x64xbf16>, vector<64x64xbf16>, vector<64x64xf32> -> vector<64x64xf32>
    %137 = arith.addf %120, %136 : vector<64x64xf32>
    %c0_74 = arith.constant 0 : index
    %c0_75 = arith.constant 0 : index
    %138 = vector.load %arg8[%c0_74, %c0_75] : memref<1x64xf32, #tpu.memory_space<vmem>>, vector<1x64xf32>
    %139 = vector.broadcast %138 : vector<1x64xf32> to vector<64x64xf32>
    %140 = arith.addf %137, %139 : vector<64x64xf32>
    %cst_76 = arith.constant 0.000000e+00 : f32
    %141 = vector.broadcast %cst_76 : f32 to vector<64x64xf32>
    %142 = arith.maximumf %140, %141 : vector<64x64xf32>
    %cst_77 = arith.constant 0.000000e+00 : f32
    %143 = vector.broadcast %cst_77 : f32 to vector<64x64xf32>
    %c1_i32_78 = arith.constant 1 : i32
    %144 = tpu.dynamic_rotate %142 by %c1_i32_78 dim 0 : vector<64x64xf32>, i32 -> vector<64x64xf32>
    %c-1_i32_79 = arith.constant -1 : i32
    %145 = vector.broadcast %c-1_i32_79 : i32 to vector<64x64xi32>
    %146 = arith.addi %4, %145 : vector<64x64xi32>
    %c0_i32_80 = arith.constant 0 : i32
    %147 = vector.broadcast %c0_i32_80 : i32 to vector<64x64xi32>
    %148 = arith.cmpi sge, %146, %147 : vector<64x64xi32>
    %c-1_i32_81 = arith.constant -1 : i32
    %149 = vector.broadcast %c-1_i32_81 : i32 to vector<64x64xi32>
    %150 = arith.addi %4, %149 : vector<64x64xi32>
    %c8_i32_82 = arith.constant 8 : i32
    %151 = vector.broadcast %c8_i32_82 : i32 to vector<64x64xi32>
    %152 = arith.cmpi slt, %150, %151 : vector<64x64xi32>
    %153 = arith.andi %148, %152 : vector<64x64xi1>
    %cst_83 = arith.constant 0.000000e+00 : f32
    %154 = vector.broadcast %cst_83 : f32 to vector<64x64xf32>
    %155 = arith.select %153, %144, %154 : vector<64x64xi1>, vector<64x64xf32>
    %156 = arith.truncf %155 : vector<64x64xf32> to vector<64x64xbf16>
    %c0_84 = arith.constant 0 : index
    %c0_85 = arith.constant 0 : index
    %c0_86 = arith.constant 0 : index
    %157 = vector.load %arg9[%c0_84, %c0_85, %c0_86] : memref<3x64x64xbf16, #tpu.memory_space<vmem>>, vector<1x64x64xbf16>
    %158 = vector.shape_cast %157 : vector<1x64x64xbf16> to vector<64x64xbf16>
    %cst_87 = arith.constant dense<0.000000e+00> : vector<64x64xf32>
    %159 = tpu.matmul %156, %158, %cst_87 {dimension_numbers = #tpu.dot_dimension_numbers<[1], [0], [0], [1], [0, 0, 1, 1], [], []>} : vector<64x64xbf16>, vector<64x64xbf16>, vector<64x64xf32> -> vector<64x64xf32>
    %160 = arith.addf %143, %159 : vector<64x64xf32>
    %161 = arith.truncf %142 : vector<64x64xf32> to vector<64x64xbf16>
    %c1_88 = arith.constant 1 : index
    %c0_89 = arith.constant 0 : index
    %c0_90 = arith.constant 0 : index
    %162 = vector.load %arg9[%c1_88, %c0_89, %c0_90] : memref<3x64x64xbf16, #tpu.memory_space<vmem>>, vector<1x64x64xbf16>
    %163 = vector.shape_cast %162 : vector<1x64x64xbf16> to vector<64x64xbf16>
    %cst_91 = arith.constant dense<0.000000e+00> : vector<64x64xf32>
    %164 = tpu.matmul %161, %163, %cst_91 {dimension_numbers = #tpu.dot_dimension_numbers<[1], [0], [0], [1], [0, 0, 1, 1], [], []>} : vector<64x64xbf16>, vector<64x64xbf16>, vector<64x64xf32> -> vector<64x64xf32>
    %165 = arith.addf %160, %164 : vector<64x64xf32>
    %c63_i32_92 = arith.constant 63 : i32
    %166 = tpu.dynamic_rotate %142 by %c63_i32_92 dim 0 : vector<64x64xf32>, i32 -> vector<64x64xf32>
    %c1_i32_93 = arith.constant 1 : i32
    %167 = vector.broadcast %c1_i32_93 : i32 to vector<64x64xi32>
    %168 = arith.addi %4, %167 : vector<64x64xi32>
    %c0_i32_94 = arith.constant 0 : i32
    %169 = vector.broadcast %c0_i32_94 : i32 to vector<64x64xi32>
    %170 = arith.cmpi sge, %168, %169 : vector<64x64xi32>
    %c1_i32_95 = arith.constant 1 : i32
    %171 = vector.broadcast %c1_i32_95 : i32 to vector<64x64xi32>
    %172 = arith.addi %4, %171 : vector<64x64xi32>
    %c8_i32_96 = arith.constant 8 : i32
    %173 = vector.broadcast %c8_i32_96 : i32 to vector<64x64xi32>
    %174 = arith.cmpi slt, %172, %173 : vector<64x64xi32>
    %175 = arith.andi %170, %174 : vector<64x64xi1>
    %cst_97 = arith.constant 0.000000e+00 : f32
    %176 = vector.broadcast %cst_97 : f32 to vector<64x64xf32>
    %177 = arith.select %175, %166, %176 : vector<64x64xi1>, vector<64x64xf32>
    %178 = arith.truncf %177 : vector<64x64xf32> to vector<64x64xbf16>
    %c2_98 = arith.constant 2 : index
    %c0_99 = arith.constant 0 : index
    %c0_100 = arith.constant 0 : index
    %179 = vector.load %arg9[%c2_98, %c0_99, %c0_100] : memref<3x64x64xbf16, #tpu.memory_space<vmem>>, vector<1x64x64xbf16>
    %180 = vector.shape_cast %179 : vector<1x64x64xbf16> to vector<64x64xbf16>
    %cst_101 = arith.constant dense<0.000000e+00> : vector<64x64xf32>
    %181 = tpu.matmul %178, %180, %cst_101 {dimension_numbers = #tpu.dot_dimension_numbers<[1], [0], [0], [1], [0, 0, 1, 1], [], []>} : vector<64x64xbf16>, vector<64x64xbf16>, vector<64x64xf32> -> vector<64x64xf32>
    %182 = arith.addf %165, %181 : vector<64x64xf32>
    %c0_102 = arith.constant 0 : index
    %c0_103 = arith.constant 0 : index
    %183 = vector.load %arg10[%c0_102, %c0_103] : memref<1x64xf32, #tpu.memory_space<vmem>>, vector<1x64xf32>
    %184 = vector.broadcast %183 : vector<1x64xf32> to vector<64x64xf32>
    %185 = arith.mulf %182, %184 : vector<64x64xf32>
    %c0_104 = arith.constant 0 : index
    %c0_105 = arith.constant 0 : index
    %186 = vector.load %arg11[%c0_104, %c0_105] : memref<1x64xf32, #tpu.memory_space<vmem>>, vector<1x64xf32>
    %187 = vector.broadcast %186 : vector<1x64xf32> to vector<64x64xf32>
    %188 = arith.addf %185, %187 : vector<64x64xf32>
    %189 = arith.addf %188, %1 : vector<64x64xf32>
    %cst_106 = arith.constant 0.000000e+00 : f32
    %190 = vector.broadcast %cst_106 : f32 to vector<64x64xf32>
    %191 = arith.maximumf %189, %190 : vector<64x64xf32>
    %c0_107 = arith.constant 0 : index
    %c0_108 = arith.constant 0 : index
    %c0_109 = arith.constant 0 : index
    %192 = vector.load %arg12[%c0_107, %c0_108, %c0_109] : memref<1x64x64xf32, #tpu.memory_space<vmem>>, vector<1x64x64xf32>
    %193 = vector.shape_cast %192 : vector<1x64x64xf32> to vector<64x64xf32>
    %194 = vector.shape_cast %191 : vector<64x64xf32> to vector<1x64x64xf32>
    tpu.vector_store %arg12[%c0_107, %c0_108, %c0_109], %194 {strides = array<i32>} : memref<1x64x64xf32, #tpu.memory_space<vmem>>, vector<1x64x64xf32>,
    return
  }
  func.func @transform_0(%arg0: i32) -> (i32, i32, i32) {
    %c0_i32 = arith.constant 0 : i32
    %c0_i32_0 = arith.constant 0 : i32
    %c0_i32_1 = arith.constant 0 : i32
    return %arg0, %c0_i32, %c0_i32_0 : i32, i32, i32
  }
  func.func @transform_1(%arg0: i32) -> (i32, i32, i32) {
    %c0_i32 = arith.constant 0 : i32
    %c0_i32_0 = arith.constant 0 : i32
    %c0_i32_1 = arith.constant 0 : i32
    %c0_i32_2 = arith.constant 0 : i32
    return %c0_i32, %c0_i32_0, %c0_i32_1 : i32, i32, i32
  }
  func.func @transform_2(%arg0: i32) -> (i32, i32) {
    %c0_i32 = arith.constant 0 : i32
    %c0_i32_0 = arith.constant 0 : i32
    %c0_i32_1 = arith.constant 0 : i32
    return %c0_i32, %c0_i32_0 : i32, i32
  }
  func.func @transform_3(%arg0: i32) -> (i32, i32, i32) {
    %c0_i32 = arith.constant 0 : i32
    %c0_i32_0 = arith.constant 0 : i32
    %c0_i32_1 = arith.constant 0 : i32
    %c0_i32_2 = arith.constant 0 : i32
    return %c0_i32, %c0_i32_0, %c0_i32_1 : i32, i32, i32
  }
  func.func @transform_4(%arg0: i32) -> (i32, i32) {
    %c0_i32 = arith.constant 0 : i32
    %c0_i32_0 = arith.constant 0 : i32
    %c0_i32_1 = arith.constant 0 : i32
    return %c0_i32, %c0_i32_0 : i32, i32
  }
  func.func @transform_5(%arg0: i32) -> (i32, i32) {
    %c0_i32 = arith.constant 0 : i32
    %c0_i32_0 = arith.constant 0 : i32
    %c0_i32_1 = arith.constant 0 : i32
    return %c0_i32, %c0_i32_0 : i32, i32
  }
  func.func @transform_6(%arg0: i32) -> (i32, i32, i32) {
    %c0_i32 = arith.constant 0 : i32
    %c0_i32_0 = arith.constant 0 : i32
    %c0_i32_1 = arith.constant 0 : i32
    %c0_i32_2 = arith.constant 0 : i32
    return %c0_i32, %c0_i32_0, %c0_i32_1 : i32, i32, i32
  }
  func.func @transform_7(%arg0: i32) -> (i32, i32) {
    %c0_i32 = arith.constant 0 : i32
    %c0_i32_0 = arith.constant 0 : i32
    %c0_i32_1 = arith.constant 0 : i32
    return %c0_i32, %c0_i32_0 : i32, i32
  }
  func.func @transform_8(%arg0: i32) -> (i32, i32, i32) {
    %c0_i32 = arith.constant 0 : i32
    %c0_i32_0 = arith.constant 0 : i32
    %c0_i32_1 = arith.constant 0 : i32
    %c0_i32_2 = arith.constant 0 : i32
    return %c0_i32, %c0_i32_0, %c0_i32_1 : i32, i32, i32
  }
  func.func @transform_9(%arg0: i32) -> (i32, i32) {
    %c0_i32 = arith.constant 0 : i32
    %c0_i32_0 = arith.constant 0 : i32
    %c0_i32_1 = arith.constant 0 : i32
    return %c0_i32, %c0_i32_0 : i32, i32
  }
  func.func @transform_10(%arg0: i32) -> (i32, i32) {
    %c0_i32 = arith.constant 0 : i32
    %c0_i32_0 = arith.constant 0 : i32
    %c0_i32_1 = arith.constant 0 : i32
    return %c0_i32, %c0_i32_0 : i32, i32
  }
  func.func @transform_11(%arg0: i32) -> (i32, i32, i32) {
    %c0_i32 = arith.constant 0 : i32
    %c0_i32_0 = arith.constant 0 : i32
    %c0_i32_1 = arith.constant 0 : i32
    return %arg0, %c0_i32, %c0_i32_0 : i32, i32, i32
  }
}

module attributes {stable_mosaic.version = 11 : i64} {
  func.func @_down_kernel(%arg0: i32, %arg1: memref<1x64x144xbf16, #tpu.memory_space<vmem>>, %arg2: memref<144x48xbf16, #tpu.memory_space<vmem>>, %arg3: memref<1x64x16xf32, #tpu.memory_space<vmem>>, %arg4: memref<1x64x16xf32, #tpu.memory_space<vmem>>, %arg5: memref<1x64x16xf32, #tpu.memory_space<vmem>>, %arg6: memref<1x64x16xf32, #tpu.memory_space<vmem>>, %arg7: memref<1x48xf32, #tpu.memory_space<vmem>>, %arg8: memref<1x48xf32, #tpu.memory_space<vmem>>, %arg9: memref<1x16xf32, #tpu.memory_space<vmem>>, %arg10: memref<1x16xf32, #tpu.memory_space<vmem>>, %arg11: memref<1x64x64xf32, #tpu.memory_space<vmem>>) attributes {dimension_semantics = [#tpu.dimension_semantics<parallel>], iteration_bounds = array<i64: 2>, scalar_prefetch = 0 : i64, scratch_operands = 0 : i64, tpu.core_type = #tpu.core_type<tc>, window_params = [{transform_indices = @transform_0, window_bounds = array<i64: 1, 64, 144>}, {pipeline_mode = #tpu.pipeline_mode<synchronous>, transform_indices = @transform_1, window_bounds = array<i64: 144, 48>}, {transform_indices = @transform_2, window_bounds = array<i64: 1, 64, 16>}, {transform_indices = @transform_3, window_bounds = array<i64: 1, 64, 16>}, {transform_indices = @transform_4, window_bounds = array<i64: 1, 64, 16>}, {transform_indices = @transform_5, window_bounds = array<i64: 1, 64, 16>}, {pipeline_mode = #tpu.pipeline_mode<synchronous>, transform_indices = @transform_6, window_bounds = array<i64: 1, 48>}, {pipeline_mode = #tpu.pipeline_mode<synchronous>, transform_indices = @transform_7, window_bounds = array<i64: 1, 48>}, {pipeline_mode = #tpu.pipeline_mode<synchronous>, transform_indices = @transform_8, window_bounds = array<i64: 1, 16>}, {pipeline_mode = #tpu.pipeline_mode<synchronous>, transform_indices = @transform_9, window_bounds = array<i64: 1, 16>}, {transform_indices = @transform_10, window_bounds = array<i64: 1, 64, 64>}]} {
    %c0 = arith.constant 0 : index
    %c0_0 = arith.constant 0 : index
    %c0_1 = arith.constant 0 : index
    %0 = vector.load %arg1[%c0, %c0_0, %c0_1] : memref<1x64x144xbf16, #tpu.memory_space<vmem>>, vector<1x64x144xbf16>
    %1 = vector.shape_cast %0 : vector<1x64x144xbf16> to vector<64x144xbf16>
    %c0_2 = arith.constant 0 : index
    %c0_3 = arith.constant 0 : index
    %2 = vector.load %arg2[%c0_2, %c0_3] : memref<144x48xbf16, #tpu.memory_space<vmem>>, vector<144x48xbf16>
    %cst = arith.constant dense<0.000000e+00> : vector<64x48xf32>
    %3 = tpu.matmul %1, %2, %cst {dimension_numbers = #tpu.dot_dimension_numbers<[1], [0], [0], [1], [0, 0, 1, 1], [], []>} : vector<64x144xbf16>, vector<144x48xbf16>, vector<64x48xf32> -> vector<64x48xf32>
    %c0_4 = arith.constant 0 : index
    %c0_5 = arith.constant 0 : index
    %4 = vector.load %arg7[%c0_4, %c0_5] : memref<1x48xf32, #tpu.memory_space<vmem>>, vector<1x48xf32>
    %5 = vector.broadcast %4 : vector<1x48xf32> to vector<64x48xf32>
    %6 = arith.mulf %3, %5 : vector<64x48xf32>
    %c0_6 = arith.constant 0 : index
    %c0_7 = arith.constant 0 : index
    %7 = vector.load %arg8[%c0_6, %c0_7] : memref<1x48xf32, #tpu.memory_space<vmem>>, vector<1x48xf32>
    %8 = vector.broadcast %7 : vector<1x48xf32> to vector<64x48xf32>
    %9 = arith.addf %6, %8 : vector<64x48xf32>
    %c0_8 = arith.constant 0 : index
    %c0_9 = arith.constant 0 : index
    %c0_10 = arith.constant 0 : index
    %10 = vector.load %arg3[%c0_8, %c0_9, %c0_10] : memref<1x64x16xf32, #tpu.memory_space<vmem>>, vector<1x64x16xf32>
    %11 = vector.shape_cast %10 : vector<1x64x16xf32> to vector<64x16xf32>
    %c0_11 = arith.constant 0 : index
    %c0_12 = arith.constant 0 : index
    %c0_13 = arith.constant 0 : index
    %12 = vector.load %arg4[%c0_11, %c0_12, %c0_13] : memref<1x64x16xf32, #tpu.memory_space<vmem>>, vector<1x64x16xf32>
    %13 = vector.shape_cast %12 : vector<1x64x16xf32> to vector<64x16xf32>
    %14 = arith.maximumf %11, %13 : vector<64x16xf32>
    %c0_14 = arith.constant 0 : index
    %c0_15 = arith.constant 0 : index
    %c0_16 = arith.constant 0 : index
    %15 = vector.load %arg5[%c0_14, %c0_15, %c0_16] : memref<1x64x16xf32, #tpu.memory_space<vmem>>, vector<1x64x16xf32>
    %16 = vector.shape_cast %15 : vector<1x64x16xf32> to vector<64x16xf32>
    %c0_17 = arith.constant 0 : index
    %c0_18 = arith.constant 0 : index
    %c0_19 = arith.constant 0 : index
    %17 = vector.load %arg6[%c0_17, %c0_18, %c0_19] : memref<1x64x16xf32, #tpu.memory_space<vmem>>, vector<1x64x16xf32>
    %18 = vector.shape_cast %17 : vector<1x64x16xf32> to vector<64x16xf32>
    %19 = arith.maximumf %16, %18 : vector<64x16xf32>
    %20 = arith.maximumf %14, %19 : vector<64x16xf32>
    %c0_20 = arith.constant 0 : index
    %c0_21 = arith.constant 0 : index
    %21 = vector.load %arg9[%c0_20, %c0_21] : memref<1x16xf32, #tpu.memory_space<vmem>>, vector<1x16xf32>
    %22 = vector.broadcast %21 : vector<1x16xf32> to vector<64x16xf32>
    %23 = arith.mulf %20, %22 : vector<64x16xf32>
    %c0_22 = arith.constant 0 : index
    %c0_23 = arith.constant 0 : index
    %24 = vector.load %arg10[%c0_22, %c0_23] : memref<1x16xf32, #tpu.memory_space<vmem>>, vector<1x16xf32>
    %25 = vector.broadcast %24 : vector<1x16xf32> to vector<64x16xf32>
    %26 = arith.addf %23, %25 : vector<64x16xf32>
    %cst_24 = arith.constant 0.000000e+00 : f32
    %27 = vector.broadcast %cst_24 : f32 to vector<64x48xf32>
    %28 = arith.maximumf %9, %27 : vector<64x48xf32>
    %c0_25 = arith.constant 0 : index
    %c0_26 = arith.constant 0 : index
    %c0_27 = arith.constant 0 : index
    %29 = vector.load %arg11[%c0_25, %c0_26, %c0_27] : memref<1x64x64xf32, #tpu.memory_space<vmem>>, vector<1x64x48xf32>
    %30 = vector.shape_cast %29 : vector<1x64x48xf32> to vector<64x48xf32>
    %31 = vector.shape_cast %28 : vector<64x48xf32> to vector<1x64x48xf32>
    tpu.vector_store %arg11[%c0_25, %c0_26, %c0_27], %31 {strides = array<i32>} : memref<1x64x64xf32, #tpu.memory_space<vmem>>, vector<1x64x48xf32>,
    %cst_28 = arith.constant 0.000000e+00 : f32
    %32 = vector.broadcast %cst_28 : f32 to vector<64x16xf32>
    %33 = arith.maximumf %26, %32 : vector<64x16xf32>
    %c0_29 = arith.constant 0 : index
    %c0_30 = arith.constant 0 : index
    %c48 = arith.constant 48 : index
    %34 = vector.load %arg11[%c0_29, %c0_30, %c48] : memref<1x64x64xf32, #tpu.memory_space<vmem>>, vector<1x64x16xf32>
    %35 = vector.shape_cast %34 : vector<1x64x16xf32> to vector<64x16xf32>
    %36 = vector.shape_cast %33 : vector<64x16xf32> to vector<1x64x16xf32>
    tpu.vector_store %arg11[%c0_29, %c0_30, %c48], %36 {strides = array<i32>} : memref<1x64x64xf32, #tpu.memory_space<vmem>>, vector<1x64x16xf32>,
    return
  }
  func.func @transform_0(%arg0: i32) -> (i32, i32, i32) {
    %c0_i32 = arith.constant 0 : i32
    %c0_i32_0 = arith.constant 0 : i32
    %c0_i32_1 = arith.constant 0 : i32
    return %arg0, %c0_i32, %c0_i32_0 : i32, i32, i32
  }
  func.func @transform_1(%arg0: i32) -> (i32, i32) {
    %c0_i32 = arith.constant 0 : i32
    %c0_i32_0 = arith.constant 0 : i32
    %c0_i32_1 = arith.constant 0 : i32
    return %c0_i32, %c0_i32_0 : i32, i32
  }
  func.func @transform_2(%arg0: i32) -> (i32, i32, i32) {
    %c0_i32 = arith.constant 0 : i32
    %c0_i32_0 = arith.constant 0 : i32
    %c0_i32_1 = arith.constant 0 : i32
    return %arg0, %c0_i32, %c0_i32_0 : i32, i32, i32
  }
  func.func @transform_3(%arg0: i32) -> (i32, i32, i32) {
    %c0_i32 = arith.constant 0 : i32
    %c0_i32_0 = arith.constant 0 : i32
    %c0_i32_1 = arith.constant 0 : i32
    return %arg0, %c0_i32, %c0_i32_0 : i32, i32, i32
  }
  func.func @transform_4(%arg0: i32) -> (i32, i32, i32) {
    %c0_i32 = arith.constant 0 : i32
    %c0_i32_0 = arith.constant 0 : i32
    %c0_i32_1 = arith.constant 0 : i32
    return %arg0, %c0_i32, %c0_i32_0 : i32, i32, i32
  }
  func.func @transform_5(%arg0: i32) -> (i32, i32, i32) {
    %c0_i32 = arith.constant 0 : i32
    %c0_i32_0 = arith.constant 0 : i32
    %c0_i32_1 = arith.constant 0 : i32
    return %arg0, %c0_i32, %c0_i32_0 : i32, i32, i32
  }
  func.func @transform_6(%arg0: i32) -> (i32, i32) {
    %c0_i32 = arith.constant 0 : i32
    %c0_i32_0 = arith.constant 0 : i32
    %c0_i32_1 = arith.constant 0 : i32
    return %c0_i32, %c0_i32_0 : i32, i32
  }
  func.func @transform_7(%arg0: i32) -> (i32, i32) {
    %c0_i32 = arith.constant 0 : i32
    %c0_i32_0 = arith.constant 0 : i32
    %c0_i32_1 = arith.constant 0 : i32
    return %c0_i32, %c0_i32_0 : i32, i32
  }
  func.func @transform_8(%arg0: i32) -> (i32, i32) {
    %c0_i32 = arith.constant 0 : i32
    %c0_i32_0 = arith.constant 0 : i32
    %c0_i32_1 = arith.constant 0 : i32
    return %c0_i32, %c0_i32_0 : i32, i32
  }
  func.func @transform_9(%arg0: i32) -> (i32, i32) {
    %c0_i32 = arith.constant 0 : i32
    %c0_i32_0 = arith.constant 0 : i32
    %c0_i32_1 = arith.constant 0 : i32
    return %c0_i32, %c0_i32_0 : i32, i32
  }
  func.func @transform_10(%arg0: i32) -> (i32, i32, i32) {
    %c0_i32 = arith.constant 0 : i32
    %c0_i32_0 = arith.constant 0 : i32
    %c0_i32_1 = arith.constant 0 : i32
    return %arg0, %c0_i32, %c0_i32_0 : i32, i32, i32
  }
}

module attributes {stable_mosaic.version = 11 : i64} {
  func.func @_nb1d_kernel(%arg0: i32, %arg1: memref<1x16x128xf32, #tpu.memory_space<vmem>>, %arg2: memref<3x128x128xbf16, #tpu.memory_space<vmem>>, %arg3: memref<1x128xf32, #tpu.memory_space<vmem>>, %arg4: memref<3x128x128xbf16, #tpu.memory_space<vmem>>, %arg5: memref<1x128xf32, #tpu.memory_space<vmem>>, %arg6: memref<1x128xf32, #tpu.memory_space<vmem>>, %arg7: memref<3x128x128xbf16, #tpu.memory_space<vmem>>, %arg8: memref<1x128xf32, #tpu.memory_space<vmem>>, %arg9: memref<3x128x128xbf16, #tpu.memory_space<vmem>>, %arg10: memref<1x128xf32, #tpu.memory_space<vmem>>, %arg11: memref<1x128xf32, #tpu.memory_space<vmem>>, %arg12: memref<1x16x128xf32, #tpu.memory_space<vmem>>) attributes {dimension_semantics = [#tpu.dimension_semantics<parallel>], iteration_bounds = array<i64: 2>, scalar_prefetch = 0 : i64, scratch_operands = 0 : i64, tpu.core_type = #tpu.core_type<tc>, window_params = [{transform_indices = @transform_0, window_bounds = array<i64: 1, 16, 128>}, {pipeline_mode = #tpu.pipeline_mode<synchronous>, transform_indices = @transform_1, window_bounds = array<i64: 3, 128, 128>}, {pipeline_mode = #tpu.pipeline_mode<synchronous>, transform_indices = @transform_2, window_bounds = array<i64: 1, 128>}, {pipeline_mode = #tpu.pipeline_mode<synchronous>, transform_indices = @transform_3, window_bounds = array<i64: 3, 128, 128>}, {pipeline_mode = #tpu.pipeline_mode<synchronous>, transform_indices = @transform_4, window_bounds = array<i64: 1, 128>}, {pipeline_mode = #tpu.pipeline_mode<synchronous>, transform_indices = @transform_5, window_bounds = array<i64: 1, 128>}, {pipeline_mode = #tpu.pipeline_mode<synchronous>, transform_indices = @transform_6, window_bounds = array<i64: 3, 128, 128>}, {pipeline_mode = #tpu.pipeline_mode<synchronous>, transform_indices = @transform_7, window_bounds = array<i64: 1, 128>}, {pipeline_mode = #tpu.pipeline_mode<synchronous>, transform_indices = @transform_8, window_bounds = array<i64: 3, 128, 128>}, {pipeline_mode = #tpu.pipeline_mode<synchronous>, transform_indices = @transform_9, window_bounds = array<i64: 1, 128>}, {pipeline_mode = #tpu.pipeline_mode<synchronous>, transform_indices = @transform_10, window_bounds = array<i64: 1, 128>}, {transform_indices = @transform_11, window_bounds = array<i64: 1, 16, 128>}]} {
    %c0 = arith.constant 0 : index
    %c0_0 = arith.constant 0 : index
    %c0_1 = arith.constant 0 : index
    %0 = vector.load %arg1[%c0, %c0_0, %c0_1] : memref<1x16x128xf32, #tpu.memory_space<vmem>>, vector<1x16x128xf32>
    %1 = vector.shape_cast %0 : vector<1x16x128xf32> to vector<16x128xf32>
    %2 = tpu.iota {dimensions = array<i32: 0>} : vector<16x128xi32>
    %c3_i32 = arith.constant 3 : i32
    %3 = vector.broadcast %c3_i32 : i32 to vector<16x128xi32>
    %4 = arith.andi %2, %3 : vector<16x128xi32>
    %cst = arith.constant 0.000000e+00 : f32
    %5 = vector.broadcast %cst : f32 to vector<16x128xf32>
    %c4_i32 = arith.constant 4 : i32
    %6 = tpu.dynamic_rotate %1 by %c4_i32 dim 0 : vector<16x128xf32>, i32 -> vector<16x128xf32>
    %c-4_i32 = arith.constant -4 : i32
    %7 = vector.broadcast %c-4_i32 : i32 to vector<16x128xi32>
    %8 = arith.addi %2, %7 : vector<16x128xi32>
    %c0_i32 = arith.constant 0 : i32
    %9 = vector.broadcast %c0_i32 : i32 to vector<16x128xi32>
    %10 = arith.cmpi sge, %8, %9 : vector<16x128xi32>
    %c-4_i32_2 = arith.constant -4 : i32
    %11 = vector.broadcast %c-4_i32_2 : i32 to vector<16x128xi32>
    %12 = arith.addi %2, %11 : vector<16x128xi32>
    %c16_i32 = arith.constant 16 : i32
    %13 = vector.broadcast %c16_i32 : i32 to vector<16x128xi32>
    %14 = arith.cmpi slt, %12, %13 : vector<16x128xi32>
    %15 = arith.andi %10, %14 : vector<16x128xi1>
    %cst_3 = arith.constant 0.000000e+00 : f32
    %16 = vector.broadcast %cst_3 : f32 to vector<16x128xf32>
    %17 = arith.select %15, %6, %16 : vector<16x128xi1>, vector<16x128xf32>
    %18 = arith.truncf %17 : vector<16x128xf32> to vector<16x128xbf16>
    %c0_4 = arith.constant 0 : index
    %c0_5 = arith.constant 0 : index
    %c0_6 = arith.constant 0 : index
    %19 = vector.load %arg2[%c0_4, %c0_5, %c0_6] : memref<3x128x128xbf16, #tpu.memory_space<vmem>>, vector<1x128x128xbf16>
    %20 = vector.shape_cast %19 : vector<1x128x128xbf16> to vector<128x128xbf16>
    %cst_7 = arith.constant dense<0.000000e+00> : vector<16x128xf32>
    %21 = tpu.matmul %18, %20, %cst_7 {dimension_numbers = #tpu.dot_dimension_numbers<[1], [0], [0], [1], [0, 0, 1, 1], [], []>} : vector<16x128xbf16>, vector<128x128xbf16>, vector<16x128xf32> -> vector<16x128xf32>
    %22 = arith.addf %5, %21 : vector<16x128xf32>
    %23 = arith.truncf %1 : vector<16x128xf32> to vector<16x128xbf16>
    %c1 = arith.constant 1 : index
    %c0_8 = arith.constant 0 : index
    %c0_9 = arith.constant 0 : index
    %24 = vector.load %arg2[%c1, %c0_8, %c0_9] : memref<3x128x128xbf16, #tpu.memory_space<vmem>>, vector<1x128x128xbf16>
    %25 = vector.shape_cast %24 : vector<1x128x128xbf16> to vector<128x128xbf16>
    %cst_10 = arith.constant dense<0.000000e+00> : vector<16x128xf32>
    %26 = tpu.matmul %23, %25, %cst_10 {dimension_numbers = #tpu.dot_dimension_numbers<[1], [0], [0], [1], [0, 0, 1, 1], [], []>} : vector<16x128xbf16>, vector<128x128xbf16>, vector<16x128xf32> -> vector<16x128xf32>
    %27 = arith.addf %22, %26 : vector<16x128xf32>
    %c12_i32 = arith.constant 12 : i32
    %28 = tpu.dynamic_rotate %1 by %c12_i32 dim 0 : vector<16x128xf32>, i32 -> vector<16x128xf32>
    %c4_i32_11 = arith.constant 4 : i32
    %29 = vector.broadcast %c4_i32_11 : i32 to vector<16x128xi32>
    %30 = arith.addi %2, %29 : vector<16x128xi32>
    %c0_i32_12 = arith.constant 0 : i32
    %31 = vector.broadcast %c0_i32_12 : i32 to vector<16x128xi32>
    %32 = arith.cmpi sge, %30, %31 : vector<16x128xi32>
    %c4_i32_13 = arith.constant 4 : i32
    %33 = vector.broadcast %c4_i32_13 : i32 to vector<16x128xi32>
    %34 = arith.addi %2, %33 : vector<16x128xi32>
    %c16_i32_14 = arith.constant 16 : i32
    %35 = vector.broadcast %c16_i32_14 : i32 to vector<16x128xi32>
    %36 = arith.cmpi slt, %34, %35 : vector<16x128xi32>
    %37 = arith.andi %32, %36 : vector<16x128xi1>
    %cst_15 = arith.constant 0.000000e+00 : f32
    %38 = vector.broadcast %cst_15 : f32 to vector<16x128xf32>
    %39 = arith.select %37, %28, %38 : vector<16x128xi1>, vector<16x128xf32>
    %40 = arith.truncf %39 : vector<16x128xf32> to vector<16x128xbf16>
    %c2 = arith.constant 2 : index
    %c0_16 = arith.constant 0 : index
    %c0_17 = arith.constant 0 : index
    %41 = vector.load %arg2[%c2, %c0_16, %c0_17] : memref<3x128x128xbf16, #tpu.memory_space<vmem>>, vector<1x128x128xbf16>
    %42 = vector.shape_cast %41 : vector<1x128x128xbf16> to vector<128x128xbf16>
    %cst_18 = arith.constant dense<0.000000e+00> : vector<16x128xf32>
    %43 = tpu.matmul %40, %42, %cst_18 {dimension_numbers = #tpu.dot_dimension_numbers<[1], [0], [0], [1], [0, 0, 1, 1], [], []>} : vector<16x128xbf16>, vector<128x128xbf16>, vector<16x128xf32> -> vector<16x128xf32>
    %44 = arith.addf %27, %43 : vector<16x128xf32>
    %c0_19 = arith.constant 0 : index
    %c0_20 = arith.constant 0 : index
    %45 = vector.load %arg3[%c0_19, %c0_20] : memref<1x128xf32, #tpu.memory_space<vmem>>, vector<1x128xf32>
    %46 = vector.broadcast %45 : vector<1x128xf32> to vector<16x128xf32>
    %47 = arith.addf %44, %46 : vector<16x128xf32>
    %cst_21 = arith.constant 0.000000e+00 : f32
    %48 = vector.broadcast %cst_21 : f32 to vector<16x128xf32>
    %49 = arith.maximumf %47, %48 : vector<16x128xf32>
    %cst_22 = arith.constant 0.000000e+00 : f32
    %50 = vector.broadcast %cst_22 : f32 to vector<16x128xf32>
    %c1_i32 = arith.constant 1 : i32
    %51 = tpu.dynamic_rotate %49 by %c1_i32 dim 0 : vector<16x128xf32>, i32 -> vector<16x128xf32>
    %c-1_i32 = arith.constant -1 : i32
    %52 = vector.broadcast %c-1_i32 : i32 to vector<16x128xi32>
    %53 = arith.addi %4, %52 : vector<16x128xi32>
    %c0_i32_23 = arith.constant 0 : i32
    %54 = vector.broadcast %c0_i32_23 : i32 to vector<16x128xi32>
    %55 = arith.cmpi sge, %53, %54 : vector<16x128xi32>
    %c-1_i32_24 = arith.constant -1 : i32
    %56 = vector.broadcast %c-1_i32_24 : i32 to vector<16x128xi32>
    %57 = arith.addi %4, %56 : vector<16x128xi32>
    %c4_i32_25 = arith.constant 4 : i32
    %58 = vector.broadcast %c4_i32_25 : i32 to vector<16x128xi32>
    %59 = arith.cmpi slt, %57, %58 : vector<16x128xi32>
    %60 = arith.andi %55, %59 : vector<16x128xi1>
    %cst_26 = arith.constant 0.000000e+00 : f32
    %61 = vector.broadcast %cst_26 : f32 to vector<16x128xf32>
    %62 = arith.select %60, %51, %61 : vector<16x128xi1>, vector<16x128xf32>
    %63 = arith.truncf %62 : vector<16x128xf32> to vector<16x128xbf16>
    %c0_27 = arith.constant 0 : index
    %c0_28 = arith.constant 0 : index
    %c0_29 = arith.constant 0 : index
    %64 = vector.load %arg4[%c0_27, %c0_28, %c0_29] : memref<3x128x128xbf16, #tpu.memory_space<vmem>>, vector<1x128x128xbf16>
    %65 = vector.shape_cast %64 : vector<1x128x128xbf16> to vector<128x128xbf16>
    %cst_30 = arith.constant dense<0.000000e+00> : vector<16x128xf32>
    %66 = tpu.matmul %63, %65, %cst_30 {dimension_numbers = #tpu.dot_dimension_numbers<[1], [0], [0], [1], [0, 0, 1, 1], [], []>} : vector<16x128xbf16>, vector<128x128xbf16>, vector<16x128xf32> -> vector<16x128xf32>
    %67 = arith.addf %50, %66 : vector<16x128xf32>
    %68 = arith.truncf %49 : vector<16x128xf32> to vector<16x128xbf16>
    %c1_31 = arith.constant 1 : index
    %c0_32 = arith.constant 0 : index
    %c0_33 = arith.constant 0 : index
    %69 = vector.load %arg4[%c1_31, %c0_32, %c0_33] : memref<3x128x128xbf16, #tpu.memory_space<vmem>>, vector<1x128x128xbf16>
    %70 = vector.shape_cast %69 : vector<1x128x128xbf16> to vector<128x128xbf16>
    %cst_34 = arith.constant dense<0.000000e+00> : vector<16x128xf32>
    %71 = tpu.matmul %68, %70, %cst_34 {dimension_numbers = #tpu.dot_dimension_numbers<[1], [0], [0], [1], [0, 0, 1, 1], [], []>} : vector<16x128xbf16>, vector<128x128xbf16>, vector<16x128xf32> -> vector<16x128xf32>
    %72 = arith.addf %67, %71 : vector<16x128xf32>
    %c15_i32 = arith.constant 15 : i32
    %73 = tpu.dynamic_rotate %49 by %c15_i32 dim 0 : vector<16x128xf32>, i32 -> vector<16x128xf32>
    %c1_i32_35 = arith.constant 1 : i32
    %74 = vector.broadcast %c1_i32_35 : i32 to vector<16x128xi32>
    %75 = arith.addi %4, %74 : vector<16x128xi32>
    %c0_i32_36 = arith.constant 0 : i32
    %76 = vector.broadcast %c0_i32_36 : i32 to vector<16x128xi32>
    %77 = arith.cmpi sge, %75, %76 : vector<16x128xi32>
    %c1_i32_37 = arith.constant 1 : i32
    %78 = vector.broadcast %c1_i32_37 : i32 to vector<16x128xi32>
    %79 = arith.addi %4, %78 : vector<16x128xi32>
    %c4_i32_38 = arith.constant 4 : i32
    %80 = vector.broadcast %c4_i32_38 : i32 to vector<16x128xi32>
    %81 = arith.cmpi slt, %79, %80 : vector<16x128xi32>
    %82 = arith.andi %77, %81 : vector<16x128xi1>
    %cst_39 = arith.constant 0.000000e+00 : f32
    %83 = vector.broadcast %cst_39 : f32 to vector<16x128xf32>
    %84 = arith.select %82, %73, %83 : vector<16x128xi1>, vector<16x128xf32>
    %85 = arith.truncf %84 : vector<16x128xf32> to vector<16x128xbf16>
    %c2_40 = arith.constant 2 : index
    %c0_41 = arith.constant 0 : index
    %c0_42 = arith.constant 0 : index
    %86 = vector.load %arg4[%c2_40, %c0_41, %c0_42] : memref<3x128x128xbf16, #tpu.memory_space<vmem>>, vector<1x128x128xbf16>
    %87 = vector.shape_cast %86 : vector<1x128x128xbf16> to vector<128x128xbf16>
    %cst_43 = arith.constant dense<0.000000e+00> : vector<16x128xf32>
    %88 = tpu.matmul %85, %87, %cst_43 {dimension_numbers = #tpu.dot_dimension_numbers<[1], [0], [0], [1], [0, 0, 1, 1], [], []>} : vector<16x128xbf16>, vector<128x128xbf16>, vector<16x128xf32> -> vector<16x128xf32>
    %89 = arith.addf %72, %88 : vector<16x128xf32>
    %c0_44 = arith.constant 0 : index
    %c0_45 = arith.constant 0 : index
    %90 = vector.load %arg5[%c0_44, %c0_45] : memref<1x128xf32, #tpu.memory_space<vmem>>, vector<1x128xf32>
    %91 = vector.broadcast %90 : vector<1x128xf32> to vector<16x128xf32>
    %92 = arith.mulf %89, %91 : vector<16x128xf32>
    %c0_46 = arith.constant 0 : index
    %c0_47 = arith.constant 0 : index
    %93 = vector.load %arg6[%c0_46, %c0_47] : memref<1x128xf32, #tpu.memory_space<vmem>>, vector<1x128xf32>
    %94 = vector.broadcast %93 : vector<1x128xf32> to vector<16x128xf32>
    %95 = arith.addf %92, %94 : vector<16x128xf32>
    %cst_48 = arith.constant 0.000000e+00 : f32
    %96 = vector.broadcast %cst_48 : f32 to vector<16x128xf32>
    %97 = arith.maximumf %95, %96 : vector<16x128xf32>
    %cst_49 = arith.constant 0.000000e+00 : f32
    %98 = vector.broadcast %cst_49 : f32 to vector<16x128xf32>
    %99 = arith.truncf %97 : vector<16x128xf32> to vector<16x128xbf16>
    %c1_50 = arith.constant 1 : index
    %c0_51 = arith.constant 0 : index
    %c0_52 = arith.constant 0 : index
    %100 = vector.load %arg7[%c1_50, %c0_51, %c0_52] : memref<3x128x128xbf16, #tpu.memory_space<vmem>>, vector<1x128x128xbf16>
    %101 = vector.shape_cast %100 : vector<1x128x128xbf16> to vector<128x128xbf16>
    %cst_53 = arith.constant dense<0.000000e+00> : vector<16x128xf32>
    %102 = tpu.matmul %99, %101, %cst_53 {dimension_numbers = #tpu.dot_dimension_numbers<[1], [0], [0], [1], [0, 0, 1, 1], [], []>} : vector<16x128xbf16>, vector<128x128xbf16>, vector<16x128xf32> -> vector<16x128xf32>
    %103 = arith.addf %98, %102 : vector<16x128xf32>
    %c0_54 = arith.constant 0 : index
    %c0_55 = arith.constant 0 : index
    %104 = vector.load %arg8[%c0_54, %c0_55] : memref<1x128xf32, #tpu.memory_space<vmem>>, vector<1x128xf32>
    %105 = vector.broadcast %104 : vector<1x128xf32> to vector<16x128xf32>
    %106 = arith.addf %103, %105 : vector<16x128xf32>
    %cst_56 = arith.constant 0.000000e+00 : f32
    %107 = vector.broadcast %cst_56 : f32 to vector<16x128xf32>
    %108 = arith.maximumf %106, %107 : vector<16x128xf32>
    %cst_57 = arith.constant 0.000000e+00 : f32
    %109 = vector.broadcast %cst_57 : f32 to vector<16x128xf32>
    %110 = arith.truncf %108 : vector<16x128xf32> to vector<16x128xbf16>
    %c1_58 = arith.constant 1 : index
    %c0_59 = arith.constant 0 : index
    %c0_60 = arith.constant 0 : index
    %111 = vector.load %arg9[%c1_58, %c0_59, %c0_60] : memref<3x128x128xbf16, #tpu.memory_space<vmem>>, vector<1x128x128xbf16>
    %112 = vector.shape_cast %111 : vector<1x128x128xbf16> to vector<128x128xbf16>
    %cst_61 = arith.constant dense<0.000000e+00> : vector<16x128xf32>
    %113 = tpu.matmul %110, %112, %cst_61 {dimension_numbers = #tpu.dot_dimension_numbers<[1], [0], [0], [1], [0, 0, 1, 1], [], []>} : vector<16x128xbf16>, vector<128x128xbf16>, vector<16x128xf32> -> vector<16x128xf32>
    %114 = arith.addf %109, %113 : vector<16x128xf32>
    %c0_62 = arith.constant 0 : index
    %c0_63 = arith.constant 0 : index
    %115 = vector.load %arg10[%c0_62, %c0_63] : memref<1x128xf32, #tpu.memory_space<vmem>>, vector<1x128xf32>
    %116 = vector.broadcast %115 : vector<1x128xf32> to vector<16x128xf32>
    %117 = arith.mulf %114, %116 : vector<16x128xf32>
    %c0_64 = arith.constant 0 : index
    %c0_65 = arith.constant 0 : index
    %118 = vector.load %arg11[%c0_64, %c0_65] : memref<1x128xf32, #tpu.memory_space<vmem>>, vector<1x128xf32>
    %119 = vector.broadcast %118 : vector<1x128xf32> to vector<16x128xf32>
    %120 = arith.addf %117, %119 : vector<16x128xf32>
    %121 = arith.addf %120, %1 : vector<16x128xf32>
    %cst_66 = arith.constant 0.000000e+00 : f32
    %122 = vector.broadcast %cst_66 : f32 to vector<16x128xf32>
    %123 = arith.maximumf %121, %122 : vector<16x128xf32>
    %c0_67 = arith.constant 0 : index
    %c0_68 = arith.constant 0 : index
    %c0_69 = arith.constant 0 : index
    %124 = vector.load %arg12[%c0_67, %c0_68, %c0_69] : memref<1x16x128xf32, #tpu.memory_space<vmem>>, vector<1x16x128xf32>
    %125 = vector.shape_cast %124 : vector<1x16x128xf32> to vector<16x128xf32>
    %126 = vector.shape_cast %123 : vector<16x128xf32> to vector<1x16x128xf32>
    tpu.vector_store %arg12[%c0_67, %c0_68, %c0_69], %126 {strides = array<i32>} : memref<1x16x128xf32, #tpu.memory_space<vmem>>, vector<1x16x128xf32>,
    return
  }
  func.func @transform_0(%arg0: i32) -> (i32, i32, i32) {
    %c0_i32 = arith.constant 0 : i32
    %c0_i32_0 = arith.constant 0 : i32
    %c0_i32_1 = arith.constant 0 : i32
    return %arg0, %c0_i32, %c0_i32_0 : i32, i32, i32
  }
  func.func @transform_1(%arg0: i32) -> (i32, i32, i32) {
    %c0_i32 = arith.constant 0 : i32
    %c0_i32_0 = arith.constant 0 : i32
    %c0_i32_1 = arith.constant 0 : i32
    %c0_i32_2 = arith.constant 0 : i32
    return %c0_i32, %c0_i32_0, %c0_i32_1 : i32, i32, i32
  }
  func.func @transform_2(%arg0: i32) -> (i32, i32) {
    %c0_i32 = arith.constant 0 : i32
    %c0_i32_0 = arith.constant 0 : i32
    %c0_i32_1 = arith.constant 0 : i32
    return %c0_i32, %c0_i32_0 : i32, i32
  }
  func.func @transform_3(%arg0: i32) -> (i32, i32, i32) {
    %c0_i32 = arith.constant 0 : i32
    %c0_i32_0 = arith.constant 0 : i32
    %c0_i32_1 = arith.constant 0 : i32
    %c0_i32_2 = arith.constant 0 : i32
    return %c0_i32, %c0_i32_0, %c0_i32_1 : i32, i32, i32
  }
  func.func @transform_4(%arg0: i32) -> (i32, i32) {
    %c0_i32 = arith.constant 0 : i32
    %c0_i32_0 = arith.constant 0 : i32
    %c0_i32_1 = arith.constant 0 : i32
    return %c0_i32, %c0_i32_0 : i32, i32
  }
  func.func @transform_5(%arg0: i32) -> (i32, i32) {
    %c0_i32 = arith.constant 0 : i32
    %c0_i32_0 = arith.constant 0 : i32
    %c0_i32_1 = arith.constant 0 : i32
    return %c0_i32, %c0_i32_0 : i32, i32
  }
  func.func @transform_6(%arg0: i32) -> (i32, i32, i32) {
    %c0_i32 = arith.constant 0 : i32
    %c0_i32_0 = arith.constant 0 : i32
    %c0_i32_1 = arith.constant 0 : i32
    %c0_i32_2 = arith.constant 0 : i32
    return %c0_i32, %c0_i32_0, %c0_i32_1 : i32, i32, i32
  }
  func.func @transform_7(%arg0: i32) -> (i32, i32) {
    %c0_i32 = arith.constant 0 : i32
    %c0_i32_0 = arith.constant 0 : i32
    %c0_i32_1 = arith.constant 0 : i32
    return %c0_i32, %c0_i32_0 : i32, i32
  }
  func.func @transform_8(%arg0: i32) -> (i32, i32, i32) {
    %c0_i32 = arith.constant 0 : i32
    %c0_i32_0 = arith.constant 0 : i32
    %c0_i32_1 = arith.constant 0 : i32
    %c0_i32_2 = arith.constant 0 : i32
    return %c0_i32, %c0_i32_0, %c0_i32_1 : i32, i32, i32
  }
  func.func @transform_9(%arg0: i32) -> (i32, i32) {
    %c0_i32 = arith.constant 0 : i32
    %c0_i32_0 = arith.constant 0 : i32
    %c0_i32_1 = arith.constant 0 : i32
    return %c0_i32, %c0_i32_0 : i32, i32
  }
  func.func @transform_10(%arg0: i32) -> (i32, i32) {
    %c0_i32 = arith.constant 0 : i32
    %c0_i32_0 = arith.constant 0 : i32
    %c0_i32_1 = arith.constant 0 : i32
    return %c0_i32, %c0_i32_0 : i32, i32
  }
  func.func @transform_11(%arg0: i32) -> (i32, i32, i32) {
    %c0_i32 = arith.constant 0 : i32
    %c0_i32_0 = arith.constant 0 : i32
    %c0_i32_1 = arith.constant 0 : i32
    return %arg0, %c0_i32, %c0_i32_0 : i32, i32, i32
  }
}

module attributes {stable_mosaic.version = 11 : i64} {
  func.func @_nb1d_kernel(%arg0: i32, %arg1: memref<1x16x128xf32, #tpu.memory_space<vmem>>, %arg2: memref<3x128x128xbf16, #tpu.memory_space<vmem>>, %arg3: memref<1x128xf32, #tpu.memory_space<vmem>>, %arg4: memref<3x128x128xbf16, #tpu.memory_space<vmem>>, %arg5: memref<1x128xf32, #tpu.memory_space<vmem>>, %arg6: memref<1x128xf32, #tpu.memory_space<vmem>>, %arg7: memref<3x128x128xbf16, #tpu.memory_space<vmem>>, %arg8: memref<1x128xf32, #tpu.memory_space<vmem>>, %arg9: memref<3x128x128xbf16, #tpu.memory_space<vmem>>, %arg10: memref<1x128xf32, #tpu.memory_space<vmem>>, %arg11: memref<1x128xf32, #tpu.memory_space<vmem>>, %arg12: memref<1x16x128xf32, #tpu.memory_space<vmem>>) attributes {dimension_semantics = [#tpu.dimension_semantics<parallel>], iteration_bounds = array<i64: 2>, scalar_prefetch = 0 : i64, scratch_operands = 0 : i64, tpu.core_type = #tpu.core_type<tc>, window_params = [{transform_indices = @transform_0, window_bounds = array<i64: 1, 16, 128>}, {pipeline_mode = #tpu.pipeline_mode<synchronous>, transform_indices = @transform_1, window_bounds = array<i64: 3, 128, 128>}, {pipeline_mode = #tpu.pipeline_mode<synchronous>, transform_indices = @transform_2, window_bounds = array<i64: 1, 128>}, {pipeline_mode = #tpu.pipeline_mode<synchronous>, transform_indices = @transform_3, window_bounds = array<i64: 3, 128, 128>}, {pipeline_mode = #tpu.pipeline_mode<synchronous>, transform_indices = @transform_4, window_bounds = array<i64: 1, 128>}, {pipeline_mode = #tpu.pipeline_mode<synchronous>, transform_indices = @transform_5, window_bounds = array<i64: 1, 128>}, {pipeline_mode = #tpu.pipeline_mode<synchronous>, transform_indices = @transform_6, window_bounds = array<i64: 3, 128, 128>}, {pipeline_mode = #tpu.pipeline_mode<synchronous>, transform_indices = @transform_7, window_bounds = array<i64: 1, 128>}, {pipeline_mode = #tpu.pipeline_mode<synchronous>, transform_indices = @transform_8, window_bounds = array<i64: 3, 128, 128>}, {pipeline_mode = #tpu.pipeline_mode<synchronous>, transform_indices = @transform_9, window_bounds = array<i64: 1, 128>}, {pipeline_mode = #tpu.pipeline_mode<synchronous>, transform_indices = @transform_10, window_bounds = array<i64: 1, 128>}, {transform_indices = @transform_11, window_bounds = array<i64: 1, 16, 128>}]} {
    %c0 = arith.constant 0 : index
    %c0_0 = arith.constant 0 : index
    %c0_1 = arith.constant 0 : index
    %0 = vector.load %arg1[%c0, %c0_0, %c0_1] : memref<1x16x128xf32, #tpu.memory_space<vmem>>, vector<1x16x128xf32>
    %1 = vector.shape_cast %0 : vector<1x16x128xf32> to vector<16x128xf32>
    %2 = tpu.iota {dimensions = array<i32: 0>} : vector<16x128xi32>
    %c3_i32 = arith.constant 3 : i32
    %3 = vector.broadcast %c3_i32 : i32 to vector<16x128xi32>
    %4 = arith.andi %2, %3 : vector<16x128xi32>
    %cst = arith.constant 0.000000e+00 : f32
    %5 = vector.broadcast %cst : f32 to vector<16x128xf32>
    %c4_i32 = arith.constant 4 : i32
    %6 = tpu.dynamic_rotate %1 by %c4_i32 dim 0 : vector<16x128xf32>, i32 -> vector<16x128xf32>
    %c-4_i32 = arith.constant -4 : i32
    %7 = vector.broadcast %c-4_i32 : i32 to vector<16x128xi32>
    %8 = arith.addi %2, %7 : vector<16x128xi32>
    %c0_i32 = arith.constant 0 : i32
    %9 = vector.broadcast %c0_i32 : i32 to vector<16x128xi32>
    %10 = arith.cmpi sge, %8, %9 : vector<16x128xi32>
    %c-4_i32_2 = arith.constant -4 : i32
    %11 = vector.broadcast %c-4_i32_2 : i32 to vector<16x128xi32>
    %12 = arith.addi %2, %11 : vector<16x128xi32>
    %c16_i32 = arith.constant 16 : i32
    %13 = vector.broadcast %c16_i32 : i32 to vector<16x128xi32>
    %14 = arith.cmpi slt, %12, %13 : vector<16x128xi32>
    %15 = arith.andi %10, %14 : vector<16x128xi1>
    %cst_3 = arith.constant 0.000000e+00 : f32
    %16 = vector.broadcast %cst_3 : f32 to vector<16x128xf32>
    %17 = arith.select %15, %6, %16 : vector<16x128xi1>, vector<16x128xf32>
    %18 = arith.truncf %17 : vector<16x128xf32> to vector<16x128xbf16>
    %c0_4 = arith.constant 0 : index
    %c0_5 = arith.constant 0 : index
    %c0_6 = arith.constant 0 : index
    %19 = vector.load %arg2[%c0_4, %c0_5, %c0_6] : memref<3x128x128xbf16, #tpu.memory_space<vmem>>, vector<1x128x128xbf16>
    %20 = vector.shape_cast %19 : vector<1x128x128xbf16> to vector<128x128xbf16>
    %cst_7 = arith.constant dense<0.000000e+00> : vector<16x128xf32>
    %21 = tpu.matmul %18, %20, %cst_7 {dimension_numbers = #tpu.dot_dimension_numbers<[1], [0], [0], [1], [0, 0, 1, 1], [], []>} : vector<16x128xbf16>, vector<128x128xbf16>, vector<16x128xf32> -> vector<16x128xf32>
    %22 = arith.addf %5, %21 : vector<16x128xf32>
    %23 = arith.truncf %1 : vector<16x128xf32> to vector<16x128xbf16>
    %c1 = arith.constant 1 : index
    %c0_8 = arith.constant 0 : index
    %c0_9 = arith.constant 0 : index
    %24 = vector.load %arg2[%c1, %c0_8, %c0_9] : memref<3x128x128xbf16, #tpu.memory_space<vmem>>, vector<1x128x128xbf16>
    %25 = vector.shape_cast %24 : vector<1x128x128xbf16> to vector<128x128xbf16>
    %cst_10 = arith.constant dense<0.000000e+00> : vector<16x128xf32>
    %26 = tpu.matmul %23, %25, %cst_10 {dimension_numbers = #tpu.dot_dimension_numbers<[1], [0], [0], [1], [0, 0, 1, 1], [], []>} : vector<16x128xbf16>, vector<128x128xbf16>, vector<16x128xf32> -> vector<16x128xf32>
    %27 = arith.addf %22, %26 : vector<16x128xf32>
    %c12_i32 = arith.constant 12 : i32
    %28 = tpu.dynamic_rotate %1 by %c12_i32 dim 0 : vector<16x128xf32>, i32 -> vector<16x128xf32>
    %c4_i32_11 = arith.constant 4 : i32
    %29 = vector.broadcast %c4_i32_11 : i32 to vector<16x128xi32>
    %30 = arith.addi %2, %29 : vector<16x128xi32>
    %c0_i32_12 = arith.constant 0 : i32
    %31 = vector.broadcast %c0_i32_12 : i32 to vector<16x128xi32>
    %32 = arith.cmpi sge, %30, %31 : vector<16x128xi32>
    %c4_i32_13 = arith.constant 4 : i32
    %33 = vector.broadcast %c4_i32_13 : i32 to vector<16x128xi32>
    %34 = arith.addi %2, %33 : vector<16x128xi32>
    %c16_i32_14 = arith.constant 16 : i32
    %35 = vector.broadcast %c16_i32_14 : i32 to vector<16x128xi32>
    %36 = arith.cmpi slt, %34, %35 : vector<16x128xi32>
    %37 = arith.andi %32, %36 : vector<16x128xi1>
    %cst_15 = arith.constant 0.000000e+00 : f32
    %38 = vector.broadcast %cst_15 : f32 to vector<16x128xf32>
    %39 = arith.select %37, %28, %38 : vector<16x128xi1>, vector<16x128xf32>
    %40 = arith.truncf %39 : vector<16x128xf32> to vector<16x128xbf16>
    %c2 = arith.constant 2 : index
    %c0_16 = arith.constant 0 : index
    %c0_17 = arith.constant 0 : index
    %41 = vector.load %arg2[%c2, %c0_16, %c0_17] : memref<3x128x128xbf16, #tpu.memory_space<vmem>>, vector<1x128x128xbf16>
    %42 = vector.shape_cast %41 : vector<1x128x128xbf16> to vector<128x128xbf16>
    %cst_18 = arith.constant dense<0.000000e+00> : vector<16x128xf32>
    %43 = tpu.matmul %40, %42, %cst_18 {dimension_numbers = #tpu.dot_dimension_numbers<[1], [0], [0], [1], [0, 0, 1, 1], [], []>} : vector<16x128xbf16>, vector<128x128xbf16>, vector<16x128xf32> -> vector<16x128xf32>
    %44 = arith.addf %27, %43 : vector<16x128xf32>
    %c0_19 = arith.constant 0 : index
    %c0_20 = arith.constant 0 : index
    %45 = vector.load %arg3[%c0_19, %c0_20] : memref<1x128xf32, #tpu.memory_space<vmem>>, vector<1x128xf32>
    %46 = vector.broadcast %45 : vector<1x128xf32> to vector<16x128xf32>
    %47 = arith.addf %44, %46 : vector<16x128xf32>
    %cst_21 = arith.constant 0.000000e+00 : f32
    %48 = vector.broadcast %cst_21 : f32 to vector<16x128xf32>
    %49 = arith.maximumf %47, %48 : vector<16x128xf32>
    %cst_22 = arith.constant 0.000000e+00 : f32
    %50 = vector.broadcast %cst_22 : f32 to vector<16x128xf32>
    %c1_i32 = arith.constant 1 : i32
    %51 = tpu.dynamic_rotate %49 by %c1_i32 dim 0 : vector<16x128xf32>, i32 -> vector<16x128xf32>
    %c-1_i32 = arith.constant -1 : i32
    %52 = vector.broadcast %c-1_i32 : i32 to vector<16x128xi32>
    %53 = arith.addi %4, %52 : vector<16x128xi32>
    %c0_i32_23 = arith.constant 0 : i32
    %54 = vector.broadcast %c0_i32_23 : i32 to vector<16x128xi32>
    %55 = arith.cmpi sge, %53, %54 : vector<16x128xi32>
    %c-1_i32_24 = arith.constant -1 : i32
    %56 = vector.broadcast %c-1_i32_24 : i32 to vector<16x128xi32>
    %57 = arith.addi %4, %56 : vector<16x128xi32>
    %c4_i32_25 = arith.constant 4 : i32
    %58 = vector.broadcast %c4_i32_25 : i32 to vector<16x128xi32>
    %59 = arith.cmpi slt, %57, %58 : vector<16x128xi32>
    %60 = arith.andi %55, %59 : vector<16x128xi1>
    %cst_26 = arith.constant 0.000000e+00 : f32
    %61 = vector.broadcast %cst_26 : f32 to vector<16x128xf32>
    %62 = arith.select %60, %51, %61 : vector<16x128xi1>, vector<16x128xf32>
    %63 = arith.truncf %62 : vector<16x128xf32> to vector<16x128xbf16>
    %c0_27 = arith.constant 0 : index
    %c0_28 = arith.constant 0 : index
    %c0_29 = arith.constant 0 : index
    %64 = vector.load %arg4[%c0_27, %c0_28, %c0_29] : memref<3x128x128xbf16, #tpu.memory_space<vmem>>, vector<1x128x128xbf16>
    %65 = vector.shape_cast %64 : vector<1x128x128xbf16> to vector<128x128xbf16>
    %cst_30 = arith.constant dense<0.000000e+00> : vector<16x128xf32>
    %66 = tpu.matmul %63, %65, %cst_30 {dimension_numbers = #tpu.dot_dimension_numbers<[1], [0], [0], [1], [0, 0, 1, 1], [], []>} : vector<16x128xbf16>, vector<128x128xbf16>, vector<16x128xf32> -> vector<16x128xf32>
    %67 = arith.addf %50, %66 : vector<16x128xf32>
    %68 = arith.truncf %49 : vector<16x128xf32> to vector<16x128xbf16>
    %c1_31 = arith.constant 1 : index
    %c0_32 = arith.constant 0 : index
    %c0_33 = arith.constant 0 : index
    %69 = vector.load %arg4[%c1_31, %c0_32, %c0_33] : memref<3x128x128xbf16, #tpu.memory_space<vmem>>, vector<1x128x128xbf16>
    %70 = vector.shape_cast %69 : vector<1x128x128xbf16> to vector<128x128xbf16>
    %cst_34 = arith.constant dense<0.000000e+00> : vector<16x128xf32>
    %71 = tpu.matmul %68, %70, %cst_34 {dimension_numbers = #tpu.dot_dimension_numbers<[1], [0], [0], [1], [0, 0, 1, 1], [], []>} : vector<16x128xbf16>, vector<128x128xbf16>, vector<16x128xf32> -> vector<16x128xf32>
    %72 = arith.addf %67, %71 : vector<16x128xf32>
    %c15_i32 = arith.constant 15 : i32
    %73 = tpu.dynamic_rotate %49 by %c15_i32 dim 0 : vector<16x128xf32>, i32 -> vector<16x128xf32>
    %c1_i32_35 = arith.constant 1 : i32
    %74 = vector.broadcast %c1_i32_35 : i32 to vector<16x128xi32>
    %75 = arith.addi %4, %74 : vector<16x128xi32>
    %c0_i32_36 = arith.constant 0 : i32
    %76 = vector.broadcast %c0_i32_36 : i32 to vector<16x128xi32>
    %77 = arith.cmpi sge, %75, %76 : vector<16x128xi32>
    %c1_i32_37 = arith.constant 1 : i32
    %78 = vector.broadcast %c1_i32_37 : i32 to vector<16x128xi32>
    %79 = arith.addi %4, %78 : vector<16x128xi32>
    %c4_i32_38 = arith.constant 4 : i32
    %80 = vector.broadcast %c4_i32_38 : i32 to vector<16x128xi32>
    %81 = arith.cmpi slt, %79, %80 : vector<16x128xi32>
    %82 = arith.andi %77, %81 : vector<16x128xi1>
    %cst_39 = arith.constant 0.000000e+00 : f32
    %83 = vector.broadcast %cst_39 : f32 to vector<16x128xf32>
    %84 = arith.select %82, %73, %83 : vector<16x128xi1>, vector<16x128xf32>
    %85 = arith.truncf %84 : vector<16x128xf32> to vector<16x128xbf16>
    %c2_40 = arith.constant 2 : index
    %c0_41 = arith.constant 0 : index
    %c0_42 = arith.constant 0 : index
    %86 = vector.load %arg4[%c2_40, %c0_41, %c0_42] : memref<3x128x128xbf16, #tpu.memory_space<vmem>>, vector<1x128x128xbf16>
    %87 = vector.shape_cast %86 : vector<1x128x128xbf16> to vector<128x128xbf16>
    %cst_43 = arith.constant dense<0.000000e+00> : vector<16x128xf32>
    %88 = tpu.matmul %85, %87, %cst_43 {dimension_numbers = #tpu.dot_dimension_numbers<[1], [0], [0], [1], [0, 0, 1, 1], [], []>} : vector<16x128xbf16>, vector<128x128xbf16>, vector<16x128xf32> -> vector<16x128xf32>
    %89 = arith.addf %72, %88 : vector<16x128xf32>
    %c0_44 = arith.constant 0 : index
    %c0_45 = arith.constant 0 : index
    %90 = vector.load %arg5[%c0_44, %c0_45] : memref<1x128xf32, #tpu.memory_space<vmem>>, vector<1x128xf32>
    %91 = vector.broadcast %90 : vector<1x128xf32> to vector<16x128xf32>
    %92 = arith.mulf %89, %91 : vector<16x128xf32>
    %c0_46 = arith.constant 0 : index
    %c0_47 = arith.constant 0 : index
    %93 = vector.load %arg6[%c0_46, %c0_47] : memref<1x128xf32, #tpu.memory_space<vmem>>, vector<1x128xf32>
    %94 = vector.broadcast %93 : vector<1x128xf32> to vector<16x128xf32>
    %95 = arith.addf %92, %94 : vector<16x128xf32>
    %cst_48 = arith.constant 0.000000e+00 : f32
    %96 = vector.broadcast %cst_48 : f32 to vector<16x128xf32>
    %97 = arith.maximumf %95, %96 : vector<16x128xf32>
    %cst_49 = arith.constant 0.000000e+00 : f32
    %98 = vector.broadcast %cst_49 : f32 to vector<16x128xf32>
    %c8_i32 = arith.constant 8 : i32
    %99 = tpu.dynamic_rotate %97 by %c8_i32 dim 0 : vector<16x128xf32>, i32 -> vector<16x128xf32>
    %c-8_i32 = arith.constant -8 : i32
    %100 = vector.broadcast %c-8_i32 : i32 to vector<16x128xi32>
    %101 = arith.addi %2, %100 : vector<16x128xi32>
    %c0_i32_50 = arith.constant 0 : i32
    %102 = vector.broadcast %c0_i32_50 : i32 to vector<16x128xi32>
    %103 = arith.cmpi sge, %101, %102 : vector<16x128xi32>
    %c-8_i32_51 = arith.constant -8 : i32
    %104 = vector.broadcast %c-8_i32_51 : i32 to vector<16x128xi32>
    %105 = arith.addi %2, %104 : vector<16x128xi32>
    %c16_i32_52 = arith.constant 16 : i32
    %106 = vector.broadcast %c16_i32_52 : i32 to vector<16x128xi32>
    %107 = arith.cmpi slt, %105, %106 : vector<16x128xi32>
    %108 = arith.andi %103, %107 : vector<16x128xi1>
    %cst_53 = arith.constant 0.000000e+00 : f32
    %109 = vector.broadcast %cst_53 : f32 to vector<16x128xf32>
    %110 = arith.select %108, %99, %109 : vector<16x128xi1>, vector<16x128xf32>
    %111 = arith.truncf %110 : vector<16x128xf32> to vector<16x128xbf16>
    %c0_54 = arith.constant 0 : index
    %c0_55 = arith.constant 0 : index
    %c0_56 = arith.constant 0 : index
    %112 = vector.load %arg7[%c0_54, %c0_55, %c0_56] : memref<3x128x128xbf16, #tpu.memory_space<vmem>>, vector<1x128x128xbf16>
    %113 = vector.shape_cast %112 : vector<1x128x128xbf16> to vector<128x128xbf16>
    %cst_57 = arith.constant dense<0.000000e+00> : vector<16x128xf32>
    %114 = tpu.matmul %111, %113, %cst_57 {dimension_numbers = #tpu.dot_dimension_numbers<[1], [0], [0], [1], [0, 0, 1, 1], [], []>} : vector<16x128xbf16>, vector<128x128xbf16>, vector<16x128xf32> -> vector<16x128xf32>
    %115 = arith.addf %98, %114 : vector<16x128xf32>
    %116 = arith.truncf %97 : vector<16x128xf32> to vector<16x128xbf16>
    %c1_58 = arith.constant 1 : index
    %c0_59 = arith.constant 0 : index
    %c0_60 = arith.constant 0 : index
    %117 = vector.load %arg7[%c1_58, %c0_59, %c0_60] : memref<3x128x128xbf16, #tpu.memory_space<vmem>>, vector<1x128x128xbf16>
    %118 = vector.shape_cast %117 : vector<1x128x128xbf16> to vector<128x128xbf16>
    %cst_61 = arith.constant dense<0.000000e+00> : vector<16x128xf32>
    %119 = tpu.matmul %116, %118, %cst_61 {dimension_numbers = #tpu.dot_dimension_numbers<[1], [0], [0], [1], [0, 0, 1, 1], [], []>} : vector<16x128xbf16>, vector<128x128xbf16>, vector<16x128xf32> -> vector<16x128xf32>
    %120 = arith.addf %115, %119 : vector<16x128xf32>
    %c8_i32_62 = arith.constant 8 : i32
    %121 = tpu.dynamic_rotate %97 by %c8_i32_62 dim 0 : vector<16x128xf32>, i32 -> vector<16x128xf32>
    %c8_i32_63 = arith.constant 8 : i32
    %122 = vector.broadcast %c8_i32_63 : i32 to vector<16x128xi32>
    %123 = arith.addi %2, %122 : vector<16x128xi32>
    %c0_i32_64 = arith.constant 0 : i32
    %124 = vector.broadcast %c0_i32_64 : i32 to vector<16x128xi32>
    %125 = arith.cmpi sge, %123, %124 : vector<16x128xi32>
    %c8_i32_65 = arith.constant 8 : i32
    %126 = vector.broadcast %c8_i32_65 : i32 to vector<16x128xi32>
    %127 = arith.addi %2, %126 : vector<16x128xi32>
    %c16_i32_66 = arith.constant 16 : i32
    %128 = vector.broadcast %c16_i32_66 : i32 to vector<16x128xi32>
    %129 = arith.cmpi slt, %127, %128 : vector<16x128xi32>
    %130 = arith.andi %125, %129 : vector<16x128xi1>
    %cst_67 = arith.constant 0.000000e+00 : f32
    %131 = vector.broadcast %cst_67 : f32 to vector<16x128xf32>
    %132 = arith.select %130, %121, %131 : vector<16x128xi1>, vector<16x128xf32>
    %133 = arith.truncf %132 : vector<16x128xf32> to vector<16x128xbf16>
    %c2_68 = arith.constant 2 : index
    %c0_69 = arith.constant 0 : index
    %c0_70 = arith.constant 0 : index
    %134 = vector.load %arg7[%c2_68, %c0_69, %c0_70] : memref<3x128x128xbf16, #tpu.memory_space<vmem>>, vector<1x128x128xbf16>
    %135 = vector.shape_cast %134 : vector<1x128x128xbf16> to vector<128x128xbf16>
    %cst_71 = arith.constant dense<0.000000e+00> : vector<16x128xf32>
    %136 = tpu.matmul %133, %135, %cst_71 {dimension_numbers = #tpu.dot_dimension_numbers<[1], [0], [0], [1], [0, 0, 1, 1], [], []>} : vector<16x128xbf16>, vector<128x128xbf16>, vector<16x128xf32> -> vector<16x128xf32>
    %137 = arith.addf %120, %136 : vector<16x128xf32>
    %c0_72 = arith.constant 0 : index
    %c0_73 = arith.constant 0 : index
    %138 = vector.load %arg8[%c0_72, %c0_73] : memref<1x128xf32, #tpu.memory_space<vmem>>, vector<1x128xf32>
    %139 = vector.broadcast %138 : vector<1x128xf32> to vector<16x128xf32>
    %140 = arith.addf %137, %139 : vector<16x128xf32>
    %cst_74 = arith.constant 0.000000e+00 : f32
    %141 = vector.broadcast %cst_74 : f32 to vector<16x128xf32>
    %142 = arith.maximumf %140, %141 : vector<16x128xf32>
    %cst_75 = arith.constant 0.000000e+00 : f32
    %143 = vector.broadcast %cst_75 : f32 to vector<16x128xf32>
    %c2_i32 = arith.constant 2 : i32
    %144 = tpu.dynamic_rotate %142 by %c2_i32 dim 0 : vector<16x128xf32>, i32 -> vector<16x128xf32>
    %c-2_i32 = arith.constant -2 : i32
    %145 = vector.broadcast %c-2_i32 : i32 to vector<16x128xi32>
    %146 = arith.addi %4, %145 : vector<16x128xi32>
    %c0_i32_76 = arith.constant 0 : i32
    %147 = vector.broadcast %c0_i32_76 : i32 to vector<16x128xi32>
    %148 = arith.cmpi sge, %146, %147 : vector<16x128xi32>
    %c-2_i32_77 = arith.constant -2 : i32
    %149 = vector.broadcast %c-2_i32_77 : i32 to vector<16x128xi32>
    %150 = arith.addi %4, %149 : vector<16x128xi32>
    %c4_i32_78 = arith.constant 4 : i32
    %151 = vector.broadcast %c4_i32_78 : i32 to vector<16x128xi32>
    %152 = arith.cmpi slt, %150, %151 : vector<16x128xi32>
    %153 = arith.andi %148, %152 : vector<16x128xi1>
    %cst_79 = arith.constant 0.000000e+00 : f32
    %154 = vector.broadcast %cst_79 : f32 to vector<16x128xf32>
    %155 = arith.select %153, %144, %154 : vector<16x128xi1>, vector<16x128xf32>
    %156 = arith.truncf %155 : vector<16x128xf32> to vector<16x128xbf16>
    %c0_80 = arith.constant 0 : index
    %c0_81 = arith.constant 0 : index
    %c0_82 = arith.constant 0 : index
    %157 = vector.load %arg9[%c0_80, %c0_81, %c0_82] : memref<3x128x128xbf16, #tpu.memory_space<vmem>>, vector<1x128x128xbf16>
    %158 = vector.shape_cast %157 : vector<1x128x128xbf16> to vector<128x128xbf16>
    %cst_83 = arith.constant dense<0.000000e+00> : vector<16x128xf32>
    %159 = tpu.matmul %156, %158, %cst_83 {dimension_numbers = #tpu.dot_dimension_numbers<[1], [0], [0], [1], [0, 0, 1, 1], [], []>} : vector<16x128xbf16>, vector<128x128xbf16>, vector<16x128xf32> -> vector<16x128xf32>
    %160 = arith.addf %143, %159 : vector<16x128xf32>
    %161 = arith.truncf %142 : vector<16x128xf32> to vector<16x128xbf16>
    %c1_84 = arith.constant 1 : index
    %c0_85 = arith.constant 0 : index
    %c0_86 = arith.constant 0 : index
    %162 = vector.load %arg9[%c1_84, %c0_85, %c0_86] : memref<3x128x128xbf16, #tpu.memory_space<vmem>>, vector<1x128x128xbf16>
    %163 = vector.shape_cast %162 : vector<1x128x128xbf16> to vector<128x128xbf16>
    %cst_87 = arith.constant dense<0.000000e+00> : vector<16x128xf32>
    %164 = tpu.matmul %161, %163, %cst_87 {dimension_numbers = #tpu.dot_dimension_numbers<[1], [0], [0], [1], [0, 0, 1, 1], [], []>} : vector<16x128xbf16>, vector<128x128xbf16>, vector<16x128xf32> -> vector<16x128xf32>
    %165 = arith.addf %160, %164 : vector<16x128xf32>
    %c14_i32 = arith.constant 14 : i32
    %166 = tpu.dynamic_rotate %142 by %c14_i32 dim 0 : vector<16x128xf32>, i32 -> vector<16x128xf32>
    %c2_i32_88 = arith.constant 2 : i32
    %167 = vector.broadcast %c2_i32_88 : i32 to vector<16x128xi32>
    %168 = arith.addi %4, %167 : vector<16x128xi32>
    %c0_i32_89 = arith.constant 0 : i32
    %169 = vector.broadcast %c0_i32_89 : i32 to vector<16x128xi32>
    %170 = arith.cmpi sge, %168, %169 : vector<16x128xi32>
    %c2_i32_90 = arith.constant 2 : i32
    %171 = vector.broadcast %c2_i32_90 : i32 to vector<16x128xi32>
    %172 = arith.addi %4, %171 : vector<16x128xi32>
    %c4_i32_91 = arith.constant 4 : i32
    %173 = vector.broadcast %c4_i32_91 : i32 to vector<16x128xi32>
    %174 = arith.cmpi slt, %172, %173 : vector<16x128xi32>
    %175 = arith.andi %170, %174 : vector<16x128xi1>
    %cst_92 = arith.constant 0.000000e+00 : f32
    %176 = vector.broadcast %cst_92 : f32 to vector<16x128xf32>
    %177 = arith.select %175, %166, %176 : vector<16x128xi1>, vector<16x128xf32>
    %178 = arith.truncf %177 : vector<16x128xf32> to vector<16x128xbf16>
    %c2_93 = arith.constant 2 : index
    %c0_94 = arith.constant 0 : index
    %c0_95 = arith.constant 0 : index
    %179 = vector.load %arg9[%c2_93, %c0_94, %c0_95] : memref<3x128x128xbf16, #tpu.memory_space<vmem>>, vector<1x128x128xbf16>
    %180 = vector.shape_cast %179 : vector<1x128x128xbf16> to vector<128x128xbf16>
    %cst_96 = arith.constant dense<0.000000e+00> : vector<16x128xf32>
    %181 = tpu.matmul %178, %180, %cst_96 {dimension_numbers = #tpu.dot_dimension_numbers<[1], [0], [0], [1], [0, 0, 1, 1], [], []>} : vector<16x128xbf16>, vector<128x128xbf16>, vector<16x128xf32> -> vector<16x128xf32>
    %182 = arith.addf %165, %181 : vector<16x128xf32>
    %c0_97 = arith.constant 0 : index
    %c0_98 = arith.constant 0 : index
    %183 = vector.load %arg10[%c0_97, %c0_98] : memref<1x128xf32, #tpu.memory_space<vmem>>, vector<1x128xf32>
    %184 = vector.broadcast %183 : vector<1x128xf32> to vector<16x128xf32>
    %185 = arith.mulf %182, %184 : vector<16x128xf32>
    %c0_99 = arith.constant 0 : index
    %c0_100 = arith.constant 0 : index
    %186 = vector.load %arg11[%c0_99, %c0_100] : memref<1x128xf32, #tpu.memory_space<vmem>>, vector<1x128xf32>
    %187 = vector.broadcast %186 : vector<1x128xf32> to vector<16x128xf32>
    %188 = arith.addf %185, %187 : vector<16x128xf32>
    %189 = arith.addf %188, %1 : vector<16x128xf32>
    %cst_101 = arith.constant 0.000000e+00 : f32
    %190 = vector.broadcast %cst_101 : f32 to vector<16x128xf32>
    %191 = arith.maximumf %189, %190 : vector<16x128xf32>
    %c0_102 = arith.constant 0 : index
    %c0_103 = arith.constant 0 : index
    %c0_104 = arith.constant 0 : index
    %192 = vector.load %arg12[%c0_102, %c0_103, %c0_104] : memref<1x16x128xf32, #tpu.memory_space<vmem>>, vector<1x16x128xf32>
    %193 = vector.shape_cast %192 : vector<1x16x128xf32> to vector<16x128xf32>
    %194 = vector.shape_cast %191 : vector<16x128xf32> to vector<1x16x128xf32>
    tpu.vector_store %arg12[%c0_102, %c0_103, %c0_104], %194 {strides = array<i32>} : memref<1x16x128xf32, #tpu.memory_space<vmem>>, vector<1x16x128xf32>,
    return
  }
  func.func @transform_0(%arg0: i32) -> (i32, i32, i32) {
    %c0_i32 = arith.constant 0 : i32
    %c0_i32_0 = arith.constant 0 : i32
    %c0_i32_1 = arith.constant 0 : i32
    return %arg0, %c0_i32, %c0_i32_0 : i32, i32, i32
  }
  func.func @transform_1(%arg0: i32) -> (i32, i32, i32) {
    %c0_i32 = arith.constant 0 : i32
    %c0_i32_0 = arith.constant 0 : i32
    %c0_i32_1 = arith.constant 0 : i32
    %c0_i32_2 = arith.constant 0 : i32
    return %c0_i32, %c0_i32_0, %c0_i32_1 : i32, i32, i32
  }
  func.func @transform_2(%arg0: i32) -> (i32, i32) {
    %c0_i32 = arith.constant 0 : i32
    %c0_i32_0 = arith.constant 0 : i32
    %c0_i32_1 = arith.constant 0 : i32
    return %c0_i32, %c0_i32_0 : i32, i32
  }
  func.func @transform_3(%arg0: i32) -> (i32, i32, i32) {
    %c0_i32 = arith.constant 0 : i32
    %c0_i32_0 = arith.constant 0 : i32
    %c0_i32_1 = arith.constant 0 : i32
    %c0_i32_2 = arith.constant 0 : i32
    return %c0_i32, %c0_i32_0, %c0_i32_1 : i32, i32, i32
  }
  func.func @transform_4(%arg0: i32) -> (i32, i32) {
    %c0_i32 = arith.constant 0 : i32
    %c0_i32_0 = arith.constant 0 : i32
    %c0_i32_1 = arith.constant 0 : i32
    return %c0_i32, %c0_i32_0 : i32, i32
  }
  func.func @transform_5(%arg0: i32) -> (i32, i32) {
    %c0_i32 = arith.constant 0 : i32
    %c0_i32_0 = arith.constant 0 : i32
    %c0_i32_1 = arith.constant 0 : i32
    return %c0_i32, %c0_i32_0 : i32, i32
  }
  func.func @transform_6(%arg0: i32) -> (i32, i32, i32) {
    %c0_i32 = arith.constant 0 : i32
    %c0_i32_0 = arith.constant 0 : i32
    %c0_i32_1 = arith.constant 0 : i32
    %c0_i32_2 = arith.constant 0 : i32
    return %c0_i32, %c0_i32_0, %c0_i32_1 : i32, i32, i32
  }
  func.func @transform_7(%arg0: i32) -> (i32, i32) {
    %c0_i32 = arith.constant 0 : i32
    %c0_i32_0 = arith.constant 0 : i32
    %c0_i32_1 = arith.constant 0 : i32
    return %c0_i32, %c0_i32_0 : i32, i32
  }
  func.func @transform_8(%arg0: i32) -> (i32, i32, i32) {
    %c0_i32 = arith.constant 0 : i32
    %c0_i32_0 = arith.constant 0 : i32
    %c0_i32_1 = arith.constant 0 : i32
    %c0_i32_2 = arith.constant 0 : i32
    return %c0_i32, %c0_i32_0, %c0_i32_1 : i32, i32, i32
  }
  func.func @transform_9(%arg0: i32) -> (i32, i32) {
    %c0_i32 = arith.constant 0 : i32
    %c0_i32_0 = arith.constant 0 : i32
    %c0_i32_1 = arith.constant 0 : i32
    return %c0_i32, %c0_i32_0 : i32, i32
  }
  func.func @transform_10(%arg0: i32) -> (i32, i32) {
    %c0_i32 = arith.constant 0 : i32
    %c0_i32_0 = arith.constant 0 : i32
    %c0_i32_1 = arith.constant 0 : i32
    return %c0_i32, %c0_i32_0 : i32, i32
  }
  func.func @transform_11(%arg0: i32) -> (i32, i32, i32) {
    %c0_i32 = arith.constant 0 : i32
    %c0_i32_0 = arith.constant 0 : i32
    %c0_i32_1 = arith.constant 0 : i32
    return %arg0, %c0_i32, %c0_i32_0 : i32, i32, i32
  }
}

module attributes {stable_mosaic.version = 11 : i64} {
  func.func @_down_kernel(%arg0: i32, %arg1: memref<1x16x576xbf16, #tpu.memory_space<vmem>>, %arg2: memref<576x64xbf16, #tpu.memory_space<vmem>>, %arg3: memref<1x16x64xf32, #tpu.memory_space<vmem>>, %arg4: memref<1x16x64xf32, #tpu.memory_space<vmem>>, %arg5: memref<1x16x64xf32, #tpu.memory_space<vmem>>, %arg6: memref<1x16x64xf32, #tpu.memory_space<vmem>>, %arg7: memref<1x64xf32, #tpu.memory_space<vmem>>, %arg8: memref<1x64xf32, #tpu.memory_space<vmem>>, %arg9: memref<1x64xf32, #tpu.memory_space<vmem>>, %arg10: memref<1x64xf32, #tpu.memory_space<vmem>>, %arg11: memref<1x16x128xf32, #tpu.memory_space<vmem>>) attributes {dimension_semantics = [#tpu.dimension_semantics<parallel>], iteration_bounds = array<i64: 2>, scalar_prefetch = 0 : i64, scratch_operands = 0 : i64, tpu.core_type = #tpu.core_type<tc>, window_params = [{transform_indices = @transform_0, window_bounds = array<i64: 1, 16, 576>}, {pipeline_mode = #tpu.pipeline_mode<synchronous>, transform_indices = @transform_1, window_bounds = array<i64: 576, 64>}, {transform_indices = @transform_2, window_bounds = array<i64: 1, 16, 64>}, {transform_indices = @transform_3, window_bounds = array<i64: 1, 16, 64>}, {transform_indices = @transform_4, window_bounds = array<i64: 1, 16, 64>}, {transform_indices = @transform_5, window_bounds = array<i64: 1, 16, 64>}, {pipeline_mode = #tpu.pipeline_mode<synchronous>, transform_indices = @transform_6, window_bounds = array<i64: 1, 64>}, {pipeline_mode = #tpu.pipeline_mode<synchronous>, transform_indices = @transform_7, window_bounds = array<i64: 1, 64>}, {pipeline_mode = #tpu.pipeline_mode<synchronous>, transform_indices = @transform_8, window_bounds = array<i64: 1, 64>}, {pipeline_mode = #tpu.pipeline_mode<synchronous>, transform_indices = @transform_9, window_bounds = array<i64: 1, 64>}, {transform_indices = @transform_10, window_bounds = array<i64: 1, 16, 128>}]} {
    %c0 = arith.constant 0 : index
    %c0_0 = arith.constant 0 : index
    %c0_1 = arith.constant 0 : index
    %0 = vector.load %arg1[%c0, %c0_0, %c0_1] : memref<1x16x576xbf16, #tpu.memory_space<vmem>>, vector<1x16x576xbf16>
    %1 = vector.shape_cast %0 : vector<1x16x576xbf16> to vector<16x576xbf16>
    %c0_2 = arith.constant 0 : index
    %c0_3 = arith.constant 0 : index
    %2 = vector.load %arg2[%c0_2, %c0_3] : memref<576x64xbf16, #tpu.memory_space<vmem>>, vector<576x64xbf16>
    %cst = arith.constant dense<0.000000e+00> : vector<16x64xf32>
    %3 = tpu.matmul %1, %2, %cst {dimension_numbers = #tpu.dot_dimension_numbers<[1], [0], [0], [1], [0, 0, 1, 1], [], []>} : vector<16x576xbf16>, vector<576x64xbf16>, vector<16x64xf32> -> vector<16x64xf32>
    %c0_4 = arith.constant 0 : index
    %c0_5 = arith.constant 0 : index
    %4 = vector.load %arg7[%c0_4, %c0_5] : memref<1x64xf32, #tpu.memory_space<vmem>>, vector<1x64xf32>
    %5 = vector.broadcast %4 : vector<1x64xf32> to vector<16x64xf32>
    %6 = arith.mulf %3, %5 : vector<16x64xf32>
    %c0_6 = arith.constant 0 : index
    %c0_7 = arith.constant 0 : index
    %7 = vector.load %arg8[%c0_6, %c0_7] : memref<1x64xf32, #tpu.memory_space<vmem>>, vector<1x64xf32>
    %8 = vector.broadcast %7 : vector<1x64xf32> to vector<16x64xf32>
    %9 = arith.addf %6, %8 : vector<16x64xf32>
    %c0_8 = arith.constant 0 : index
    %c0_9 = arith.constant 0 : index
    %c0_10 = arith.constant 0 : index
    %10 = vector.load %arg3[%c0_8, %c0_9, %c0_10] : memref<1x16x64xf32, #tpu.memory_space<vmem>>, vector<1x16x64xf32>
    %11 = vector.shape_cast %10 : vector<1x16x64xf32> to vector<16x64xf32>
    %c0_11 = arith.constant 0 : index
    %c0_12 = arith.constant 0 : index
    %c0_13 = arith.constant 0 : index
    %12 = vector.load %arg4[%c0_11, %c0_12, %c0_13] : memref<1x16x64xf32, #tpu.memory_space<vmem>>, vector<1x16x64xf32>
    %13 = vector.shape_cast %12 : vector<1x16x64xf32> to vector<16x64xf32>
    %14 = arith.maximumf %11, %13 : vector<16x64xf32>
    %c0_14 = arith.constant 0 : index
    %c0_15 = arith.constant 0 : index
    %c0_16 = arith.constant 0 : index
    %15 = vector.load %arg5[%c0_14, %c0_15, %c0_16] : memref<1x16x64xf32, #tpu.memory_space<vmem>>, vector<1x16x64xf32>
    %16 = vector.shape_cast %15 : vector<1x16x64xf32> to vector<16x64xf32>
    %c0_17 = arith.constant 0 : index
    %c0_18 = arith.constant 0 : index
    %c0_19 = arith.constant 0 : index
    %17 = vector.load %arg6[%c0_17, %c0_18, %c0_19] : memref<1x16x64xf32, #tpu.memory_space<vmem>>, vector<1x16x64xf32>
    %18 = vector.shape_cast %17 : vector<1x16x64xf32> to vector<16x64xf32>
    %19 = arith.maximumf %16, %18 : vector<16x64xf32>
    %20 = arith.maximumf %14, %19 : vector<16x64xf32>
    %c0_20 = arith.constant 0 : index
    %c0_21 = arith.constant 0 : index
    %21 = vector.load %arg9[%c0_20, %c0_21] : memref<1x64xf32, #tpu.memory_space<vmem>>, vector<1x64xf32>
    %22 = vector.broadcast %21 : vector<1x64xf32> to vector<16x64xf32>
    %23 = arith.mulf %20, %22 : vector<16x64xf32>
    %c0_22 = arith.constant 0 : index
    %c0_23 = arith.constant 0 : index
    %24 = vector.load %arg10[%c0_22, %c0_23] : memref<1x64xf32, #tpu.memory_space<vmem>>, vector<1x64xf32>
    %25 = vector.broadcast %24 : vector<1x64xf32> to vector<16x64xf32>
    %26 = arith.addf %23, %25 : vector<16x64xf32>
    %cst_24 = arith.constant 0.000000e+00 : f32
    %27 = vector.broadcast %cst_24 : f32 to vector<16x64xf32>
    %28 = arith.maximumf %9, %27 : vector<16x64xf32>
    %c0_25 = arith.constant 0 : index
    %c0_26 = arith.constant 0 : index
    %c0_27 = arith.constant 0 : index
    %29 = vector.load %arg11[%c0_25, %c0_26, %c0_27] : memref<1x16x128xf32, #tpu.memory_space<vmem>>, vector<1x16x64xf32>
    %30 = vector.shape_cast %29 : vector<1x16x64xf32> to vector<16x64xf32>
    %31 = vector.shape_cast %28 : vector<16x64xf32> to vector<1x16x64xf32>
    tpu.vector_store %arg11[%c0_25, %c0_26, %c0_27], %31 {strides = array<i32>} : memref<1x16x128xf32, #tpu.memory_space<vmem>>, vector<1x16x64xf32>,
    %cst_28 = arith.constant 0.000000e+00 : f32
    %32 = vector.broadcast %cst_28 : f32 to vector<16x64xf32>
    %33 = arith.maximumf %26, %32 : vector<16x64xf32>
    %c0_29 = arith.constant 0 : index
    %c0_30 = arith.constant 0 : index
    %c64 = arith.constant 64 : index
    %34 = vector.load %arg11[%c0_29, %c0_30, %c64] : memref<1x16x128xf32, #tpu.memory_space<vmem>>, vector<1x16x64xf32>
    %35 = vector.shape_cast %34 : vector<1x16x64xf32> to vector<16x64xf32>
    %36 = vector.shape_cast %33 : vector<16x64xf32> to vector<1x16x64xf32>
    tpu.vector_store %arg11[%c0_29, %c0_30, %c64], %36 {strides = array<i32>} : memref<1x16x128xf32, #tpu.memory_space<vmem>>, vector<1x16x64xf32>,
    return
  }
  func.func @transform_0(%arg0: i32) -> (i32, i32, i32) {
    %c0_i32 = arith.constant 0 : i32
    %c0_i32_0 = arith.constant 0 : i32
    %c0_i32_1 = arith.constant 0 : i32
    return %arg0, %c0_i32, %c0_i32_0 : i32, i32, i32
  }
  func.func @transform_1(%arg0: i32) -> (i32, i32) {
    %c0_i32 = arith.constant 0 : i32
    %c0_i32_0 = arith.constant 0 : i32
    %c0_i32_1 = arith.constant 0 : i32
    return %c0_i32, %c0_i32_0 : i32, i32
  }
  func.func @transform_2(%arg0: i32) -> (i32, i32, i32) {
    %c0_i32 = arith.constant 0 : i32
    %c0_i32_0 = arith.constant 0 : i32
    %c0_i32_1 = arith.constant 0 : i32
    return %arg0, %c0_i32, %c0_i32_0 : i32, i32, i32
  }
  func.func @transform_3(%arg0: i32) -> (i32, i32, i32) {
    %c0_i32 = arith.constant 0 : i32
    %c0_i32_0 = arith.constant 0 : i32
    %c0_i32_1 = arith.constant 0 : i32
    return %arg0, %c0_i32, %c0_i32_0 : i32, i32, i32
  }
  func.func @transform_4(%arg0: i32) -> (i32, i32, i32) {
    %c0_i32 = arith.constant 0 : i32
    %c0_i32_0 = arith.constant 0 : i32
    %c0_i32_1 = arith.constant 0 : i32
    return %arg0, %c0_i32, %c0_i32_0 : i32, i32, i32
  }
  func.func @transform_5(%arg0: i32) -> (i32, i32, i32) {
    %c0_i32 = arith.constant 0 : i32
    %c0_i32_0 = arith.constant 0 : i32
    %c0_i32_1 = arith.constant 0 : i32
    return %arg0, %c0_i32, %c0_i32_0 : i32, i32, i32
  }
  func.func @transform_6(%arg0: i32) -> (i32, i32) {
    %c0_i32 = arith.constant 0 : i32
    %c0_i32_0 = arith.constant 0 : i32
    %c0_i32_1 = arith.constant 0 : i32
    return %c0_i32, %c0_i32_0 : i32, i32
  }
  func.func @transform_7(%arg0: i32) -> (i32, i32) {
    %c0_i32 = arith.constant 0 : i32
    %c0_i32_0 = arith.constant 0 : i32
    %c0_i32_1 = arith.constant 0 : i32
    return %c0_i32, %c0_i32_0 : i32, i32
  }
  func.func @transform_8(%arg0: i32) -> (i32, i32) {
    %c0_i32 = arith.constant 0 : i32
    %c0_i32_0 = arith.constant 0 : i32
    %c0_i32_1 = arith.constant 0 : i32
    return %c0_i32, %c0_i32_0 : i32, i32
  }
  func.func @transform_9(%arg0: i32) -> (i32, i32) {
    %c0_i32 = arith.constant 0 : i32
    %c0_i32_0 = arith.constant 0 : i32
    %c0_i32_1 = arith.constant 0 : i32
    return %c0_i32, %c0_i32_0 : i32, i32
  }
  func.func @transform_10(%arg0: i32) -> (i32, i32, i32) {
    %c0_i32 = arith.constant 0 : i32
    %c0_i32_0 = arith.constant 0 : i32
    %c0_i32_1 = arith.constant 0 : i32
    return %arg0, %c0_i32, %c0_i32_0 : i32, i32, i32
  }
}

module attributes {stable_mosaic.version = 11 : i64} {
  func.func @_sc_kernel(%arg0: i32, %arg1: memref<1x16x128xf32, #tpu.memory_space<vmem>>, %arg2: memref<128x16xbf16, #tpu.memory_space<vmem>>, %arg3: memref<1x16xf32, #tpu.memory_space<vmem>>, %arg4: memref<128x16xbf16, #tpu.memory_space<vmem>>, %arg5: memref<1x16xf32, #tpu.memory_space<vmem>>, %arg6: memref<128x128xbf16, #tpu.memory_space<vmem>>, %arg7: memref<1x128xf32, #tpu.memory_space<vmem>>, %arg8: memref<128x16xbf16, #tpu.memory_space<vmem>>, %arg9: memref<128x16xbf16, #tpu.memory_space<vmem>>, %arg10: memref<16x128xbf16, #tpu.memory_space<vmem>>, %arg11: memref<1x1xf32, #tpu.memory_space<vmem>>, %arg12: memref<1x16x128xf32, #tpu.memory_space<vmem>>) attributes {dimension_semantics = [#tpu.dimension_semantics<parallel>], iteration_bounds = array<i64: 2>, scalar_prefetch = 0 : i64, scratch_operands = 0 : i64, tpu.core_type = #tpu.core_type<tc>, window_params = [{transform_indices = @transform_0, window_bounds = array<i64: 1, 16, 128>}, {pipeline_mode = #tpu.pipeline_mode<synchronous>, transform_indices = @transform_1, window_bounds = array<i64: 128, 16>}, {pipeline_mode = #tpu.pipeline_mode<synchronous>, transform_indices = @transform_2, window_bounds = array<i64: 1, 16>}, {pipeline_mode = #tpu.pipeline_mode<synchronous>, transform_indices = @transform_3, window_bounds = array<i64: 128, 16>}, {pipeline_mode = #tpu.pipeline_mode<synchronous>, transform_indices = @transform_4, window_bounds = array<i64: 1, 16>}, {pipeline_mode = #tpu.pipeline_mode<synchronous>, transform_indices = @transform_5, window_bounds = array<i64: 128, 128>}, {pipeline_mode = #tpu.pipeline_mode<synchronous>, transform_indices = @transform_6, window_bounds = array<i64: 1, 128>}, {pipeline_mode = #tpu.pipeline_mode<synchronous>, transform_indices = @transform_7, window_bounds = array<i64: 128, 16>}, {pipeline_mode = #tpu.pipeline_mode<synchronous>, transform_indices = @transform_8, window_bounds = array<i64: 128, 16>}, {pipeline_mode = #tpu.pipeline_mode<synchronous>, transform_indices = @transform_9, window_bounds = array<i64: 16, 128>}, {pipeline_mode = #tpu.pipeline_mode<synchronous>, transform_indices = @transform_10, window_bounds = array<i64: 1, 1>}, {transform_indices = @transform_11, window_bounds = array<i64: 1, 16, 128>}]} {
    %c0 = arith.constant 0 : index
    %c0_0 = arith.constant 0 : index
    %c0_1 = arith.constant 0 : index
    %0 = vector.load %arg1[%c0, %c0_0, %c0_1] : memref<1x16x128xf32, #tpu.memory_space<vmem>>, vector<1x16x128xf32>
    %1 = vector.shape_cast %0 : vector<1x16x128xf32> to vector<16x128xf32>
    %2 = arith.truncf %1 : vector<16x128xf32> to vector<16x128xbf16>
    %c0_2 = arith.constant 0 : index
    %c0_3 = arith.constant 0 : index
    %3 = vector.load %arg2[%c0_2, %c0_3] : memref<128x16xbf16, #tpu.memory_space<vmem>>, vector<128x16xbf16>
    %cst = arith.constant dense<0.000000e+00> : vector<16x16xf32>
    %4 = tpu.matmul %2, %3, %cst {dimension_numbers = #tpu.dot_dimension_numbers<[1], [0], [0], [1], [0, 0, 1, 1], [], []>} : vector<16x128xbf16>, vector<128x16xbf16>, vector<16x16xf32> -> vector<16x16xf32>
    %c0_4 = arith.constant 0 : index
    %c0_5 = arith.constant 0 : index
    %5 = vector.load %arg3[%c0_4, %c0_5] : memref<1x16xf32, #tpu.memory_space<vmem>>, vector<1x16xf32>
    %6 = vector.broadcast %5 : vector<1x16xf32> to vector<16x16xf32>
    %7 = arith.addf %4, %6 : vector<16x16xf32>
    %c0_6 = arith.constant 0 : index
    %c0_7 = arith.constant 0 : index
    %8 = vector.load %arg4[%c0_6, %c0_7] : memref<128x16xbf16, #tpu.memory_space<vmem>>, vector<128x16xbf16>
    %cst_8 = arith.constant dense<0.000000e+00> : vector<16x16xf32>
    %9 = tpu.matmul %2, %8, %cst_8 {dimension_numbers = #tpu.dot_dimension_numbers<[1], [0], [0], [1], [0, 0, 1, 1], [], []>} : vector<16x128xbf16>, vector<128x16xbf16>, vector<16x16xf32> -> vector<16x16xf32>
    %c0_9 = arith.constant 0 : index
    %c0_10 = arith.constant 0 : index
    %10 = vector.load %arg5[%c0_9, %c0_10] : memref<1x16xf32, #tpu.memory_space<vmem>>, vector<1x16xf32>
    %11 = vector.broadcast %10 : vector<1x16xf32> to vector<16x16xf32>
    %12 = arith.addf %9, %11 : vector<16x16xf32>
    %c0_11 = arith.constant 0 : index
    %c0_12 = arith.constant 0 : index
    %13 = vector.load %arg6[%c0_11, %c0_12] : memref<128x128xbf16, #tpu.memory_space<vmem>>, vector<128x128xbf16>
    %cst_13 = arith.constant dense<0.000000e+00> : vector<16x128xf32>
    %14 = tpu.matmul %2, %13, %cst_13 {dimension_numbers = #tpu.dot_dimension_numbers<[1], [0], [0], [1], [0, 0, 1, 1], [], []>} : vector<16x128xbf16>, vector<128x128xbf16>, vector<16x128xf32> -> vector<16x128xf32>
    %c0_14 = arith.constant 0 : index
    %c0_15 = arith.constant 0 : index
    %15 = vector.load %arg7[%c0_14, %c0_15] : memref<1x128xf32, #tpu.memory_space<vmem>>, vector<1x128xf32>
    %16 = vector.broadcast %15 : vector<1x128xf32> to vector<16x128xf32>
    %17 = arith.addf %14, %16 : vector<16x128xf32>
    %18 = arith.truncf %7 : vector<16x16xf32> to vector<16x16xbf16>
    %19 = arith.truncf %12 : vector<16x16xf32> to vector<16x16xbf16>
    %cst_16 = arith.constant dense<0.000000e+00> : vector<16x16xf32>
    %20 = tpu.matmul %18, %19, %cst_16 {dimension_numbers = #tpu.dot_dimension_numbers<[1], [1], [0], [0], [0, 0, 1, 0], [], []>} : vector<16x16xbf16>, vector<16x16xbf16>, vector<16x16xf32> -> vector<16x16xf32>
    %cst_17 = arith.constant dense<0xFF800000> : vector<16xf32>
    %21 = vector.multi_reduction <maximumf>, %20, %cst_17 [1] : vector<16x16xf32> to vector<16xf32>
    %22 = vector.shape_cast %21 : vector<16xf32> to vector<16x1xf32>
    %23 = vector.broadcast %22 : vector<16x1xf32> to vector<16x16xf32>
    %24 = arith.subf %20, %23 : vector<16x16xf32>
    %25 = math.exp %24 : vector<16x16xf32>
    %cst_18 = arith.constant dense<0.000000e+00> : vector<16xf32>
    %26 = vector.multi_reduction <add>, %25, %cst_18 [1] : vector<16x16xf32> to vector<16xf32>
    %27 = vector.shape_cast %26 : vector<16xf32> to vector<16x1xf32>
    %28 = vector.broadcast %27 : vector<16x1xf32> to vector<16x16xf32>
    %29 = arith.divf %25, %28 : vector<16x16xf32>
    %30 = arith.truncf %29 : vector<16x16xf32> to vector<16x16xbf16>
    %31 = arith.truncf %17 : vector<16x128xf32> to vector<16x128xbf16>
    %cst_19 = arith.constant dense<0.000000e+00> : vector<16x128xf32>
    %32 = tpu.matmul %30, %31, %cst_19 {dimension_numbers = #tpu.dot_dimension_numbers<[1], [0], [0], [1], [0, 0, 1, 1], [], []>} : vector<16x16xbf16>, vector<16x128xbf16>, vector<16x128xf32> -> vector<16x128xf32>
    %cst_20 = arith.constant dense<0.000000e+00> : vector<128xf32>
    %33 = vector.multi_reduction <add>, %1, %cst_20 [0] : vector<16x128xf32> to vector<128xf32>
    %34 = vector.shape_cast %33 : vector<128xf32> to vector<1x128xf32>
    %cst_21 = arith.constant 6.250000e-02 : f32
    %35 = vector.broadcast %cst_21 : f32 to vector<1x128xf32>
    %36 = arith.mulf %34, %35 : vector<1x128xf32>
    %37 = vector.broadcast %36 : vector<1x128xf32> to vector<16x128xf32>
    %38 = arith.subf %1, %37 : vector<16x128xf32>
    %39 = arith.mulf %38, %38 : vector<16x128xf32>
    %cst_22 = arith.constant dense<0.000000e+00> : vector<128xf32>
    %40 = vector.multi_reduction <add>, %39, %cst_22 [0] : vector<16x128xf32> to vector<128xf32>
    %41 = vector.shape_cast %40 : vector<128xf32> to vector<1x128xf32>
    %cst_23 = arith.constant 0.0666666701 : f32
    %42 = vector.broadcast %cst_23 : f32 to vector<1x128xf32>
    %43 = arith.mulf %41, %42 : vector<1x128xf32>
    %44 = math.sqrt %43 : vector<1x128xf32>
    %45 = arith.truncf %36 : vector<1x128xf32> to vector<1x128xbf16>
    %c0_24 = arith.constant 0 : index
    %c0_25 = arith.constant 0 : index
    %46 = vector.load %arg8[%c0_24, %c0_25] : memref<128x16xbf16, #tpu.memory_space<vmem>>, vector<128x16xbf16>
    %cst_26 = arith.constant dense<0.000000e+00> : vector<1x16xf32>
    %47 = tpu.matmul %45, %46, %cst_26 {dimension_numbers = #tpu.dot_dimension_numbers<[1], [0], [0], [1], [0, 0, 1, 1], [], []>} : vector<1x128xbf16>, vector<128x16xbf16>, vector<1x16xf32> -> vector<1x16xf32>
    %48 = arith.truncf %44 : vector<1x128xf32> to vector<1x128xbf16>
    %c0_27 = arith.constant 0 : index
    %c0_28 = arith.constant 0 : index
    %49 = vector.load %arg9[%c0_27, %c0_28] : memref<128x16xbf16, #tpu.memory_space<vmem>>, vector<128x16xbf16>
    %cst_29 = arith.constant dense<0.000000e+00> : vector<1x16xf32>
    %50 = tpu.matmul %48, %49, %cst_29 {dimension_numbers = #tpu.dot_dimension_numbers<[1], [0], [0], [1], [0, 0, 1, 1], [], []>} : vector<1x128xbf16>, vector<128x16xbf16>, vector<1x16xf32> -> vector<1x16xf32>
    %51 = arith.addf %47, %50 : vector<1x16xf32>
    %cst_30 = arith.constant 0.000000e+00 : f32
    %52 = vector.broadcast %cst_30 : f32 to vector<1x16xf32>
    %53 = arith.maximumf %51, %52 : vector<1x16xf32>
    %54 = arith.truncf %53 : vector<1x16xf32> to vector<1x16xbf16>
    %c0_31 = arith.constant 0 : index
    %c0_32 = arith.constant 0 : index
    %55 = vector.load %arg10[%c0_31, %c0_32] : memref<16x128xbf16, #tpu.memory_space<vmem>>, vector<16x128xbf16>
    %cst_33 = arith.constant dense<0.000000e+00> : vector<1x128xf32>
    %56 = tpu.matmul %54, %55, %cst_33 {dimension_numbers = #tpu.dot_dimension_numbers<[1], [0], [0], [1], [0, 0, 1, 1], [], []>} : vector<1x16xbf16>, vector<16x128xbf16>, vector<1x128xf32> -> vector<1x128xf32>
    %cst_34 = arith.constant 0.000000e+00 : f32
    %57 = vector.broadcast %cst_34 : f32 to vector<1x128xf32>
    %58 = arith.subf %57, %56 : vector<1x128xf32>
    %59 = math.exp %58 : vector<1x128xf32>
    %cst_35 = arith.constant 1.000000e+00 : f32
    %60 = vector.broadcast %cst_35 : f32 to vector<1x128xf32>
    %61 = arith.addf %60, %59 : vector<1x128xf32>
    %cst_36 = arith.constant 1.000000e+00 : f32
    %62 = vector.broadcast %cst_36 : f32 to vector<1x128xf32>
    %63 = arith.divf %62, %61 : vector<1x128xf32>
    %c0_37 = arith.constant 0 : index
    %c0_38 = arith.constant 0 : index
    %64 = vector.load %arg11[%c0_37, %c0_38] : memref<1x1xf32, #tpu.memory_space<vmem>>, vector<1x1xf32>
    %65 = vector.broadcast %64 : vector<1x1xf32> to vector<1x128xf32>
    %66 = arith.mulf %65, %63 : vector<1x128xf32>
    %67 = vector.broadcast %66 : vector<1x128xf32> to vector<16x128xf32>
    %68 = arith.mulf %67, %1 : vector<16x128xf32>
    %69 = arith.addf %32, %68 : vector<16x128xf32>
    %70 = arith.addf %69, %1 : vector<16x128xf32>
    %c0_39 = arith.constant 0 : index
    %c0_40 = arith.constant 0 : index
    %c0_41 = arith.constant 0 : index
    %71 = vector.load %arg12[%c0_39, %c0_40, %c0_41] : memref<1x16x128xf32, #tpu.memory_space<vmem>>, vector<1x16x128xf32>
    %72 = vector.shape_cast %71 : vector<1x16x128xf32> to vector<16x128xf32>
    %73 = vector.shape_cast %70 : vector<16x128xf32> to vector<1x16x128xf32>
    tpu.vector_store %arg12[%c0_39, %c0_40, %c0_41], %73 {strides = array<i32>} : memref<1x16x128xf32, #tpu.memory_space<vmem>>, vector<1x16x128xf32>,
    return
  }
  func.func @transform_0(%arg0: i32) -> (i32, i32, i32) {
    %c0_i32 = arith.constant 0 : i32
    %c0_i32_0 = arith.constant 0 : i32
    %c0_i32_1 = arith.constant 0 : i32
    return %arg0, %c0_i32, %c0_i32_0 : i32, i32, i32
  }
  func.func @transform_1(%arg0: i32) -> (i32, i32) {
    %c0_i32 = arith.constant 0 : i32
    %c0_i32_0 = arith.constant 0 : i32
    %c0_i32_1 = arith.constant 0 : i32
    return %c0_i32, %c0_i32_0 : i32, i32
  }
  func.func @transform_2(%arg0: i32) -> (i32, i32) {
    %c0_i32 = arith.constant 0 : i32
    %c0_i32_0 = arith.constant 0 : i32
    %c0_i32_1 = arith.constant 0 : i32
    return %c0_i32, %c0_i32_0 : i32, i32
  }
  func.func @transform_3(%arg0: i32) -> (i32, i32) {
    %c0_i32 = arith.constant 0 : i32
    %c0_i32_0 = arith.constant 0 : i32
    %c0_i32_1 = arith.constant 0 : i32
    return %c0_i32, %c0_i32_0 : i32, i32
  }
  func.func @transform_4(%arg0: i32) -> (i32, i32) {
    %c0_i32 = arith.constant 0 : i32
    %c0_i32_0 = arith.constant 0 : i32
    %c0_i32_1 = arith.constant 0 : i32
    return %c0_i32, %c0_i32_0 : i32, i32
  }
  func.func @transform_5(%arg0: i32) -> (i32, i32) {
    %c0_i32 = arith.constant 0 : i32
    %c0_i32_0 = arith.constant 0 : i32
    %c0_i32_1 = arith.constant 0 : i32
    return %c0_i32, %c0_i32_0 : i32, i32
  }
  func.func @transform_6(%arg0: i32) -> (i32, i32) {
    %c0_i32 = arith.constant 0 : i32
    %c0_i32_0 = arith.constant 0 : i32
    %c0_i32_1 = arith.constant 0 : i32
    return %c0_i32, %c0_i32_0 : i32, i32
  }
  func.func @transform_7(%arg0: i32) -> (i32, i32) {
    %c0_i32 = arith.constant 0 : i32
    %c0_i32_0 = arith.constant 0 : i32
    %c0_i32_1 = arith.constant 0 : i32
    return %c0_i32, %c0_i32_0 : i32, i32
  }
  func.func @transform_8(%arg0: i32) -> (i32, i32) {
    %c0_i32 = arith.constant 0 : i32
    %c0_i32_0 = arith.constant 0 : i32
    %c0_i32_1 = arith.constant 0 : i32
    return %c0_i32, %c0_i32_0 : i32, i32
  }
  func.func @transform_9(%arg0: i32) -> (i32, i32) {
    %c0_i32 = arith.constant 0 : i32
    %c0_i32_0 = arith.constant 0 : i32
    %c0_i32_1 = arith.constant 0 : i32
    return %c0_i32, %c0_i32_0 : i32, i32
  }
  func.func @transform_10(%arg0: i32) -> (i32, i32) {
    %c0_i32 = arith.constant 0 : i32
    %c0_i32_0 = arith.constant 0 : i32
    %c0_i32_1 = arith.constant 0 : i32
    return %c0_i32, %c0_i32_0 : i32, i32
  }
  func.func @transform_11(%arg0: i32) -> (i32, i32, i32) {
    %c0_i32 = arith.constant 0 : i32
    %c0_i32_0 = arith.constant 0 : i32
    %c0_i32_1 = arith.constant 0 : i32
    return %arg0, %c0_i32, %c0_i32_0 : i32, i32, i32
  }
}

</mosaic_0001>

<bundles_post_ra>
// kernel: _lambda_.17
= control target key start
LH: loop header
LB: loop body
LE: loop exit
PB: predicated region body
PF: predicated region fallthrough
CT: control target
= control target key end

     0   :  { %s1740_s13 = smov 0   ;;  %s2334_s0 = inlined_call_operand.vmem [shape: bf16[2,256,27], index: 0, kind: input, shape index: {}]   ;;  %s2335_s1 = inlined_call_operand.vmem [shape: bf16[27,13], index: 1, kind: input, shape index: {}]   ;;  %s2336_s2 = inlined_call_operand.vmem [shape: f32[2,256,3], index: 2, kind: input, shape index: {}]   ;;  %s2337_s3 = inlined_call_operand.vmem [shape: f32[2,256,3], index: 3, kind: input, shape index: {}]   ;;  %s2338_s4 = inlined_call_operand.vmem [shape: f32[2,256,3], index: 4, kind: input, shape index: {}]   ;;  %s2339_s5 = inlined_call_operand.vmem [shape: f32[2,256,3], index: 5, kind: input, shape index: {}]   ;;  %s2340_s6 = inlined_call_operand.vmem [shape: f32[1,13], index: 6, kind: input, shape index: {}]   ;;  %s2341_s7 = inlined_call_operand.vmem [shape: f32[1,13], index: 7, kind: input, shape index: {}]   ;;  %s2342_s8 = inlined_call_operand.vmem [shape: f32[1,3], index: 8, kind: input, shape index: {}]   ;;  %s2343_s9 = inlined_call_operand.vmem [shape: f32[1,3], index: 9, kind: input, shape index: {}]   ;;  %s2344_s10 = inlined_call_operand.vmem [shape: f32[2,256,16], index: 10, kind: output, shape index: {}]  }
   0x1 LB: > { %s1526_s14 = sadd.s32 4294967295, %s1681_s13   ;;  %p1530_p0 = scmp.ge.s32.totalorder %s1681_s13, 1  ;;  %s1681_s13 = sphi %s1740_s13, %s20_s13  }
   0x2   : > { %p352_p1 = scmp.lt.s32.totalorder %s1681_s13, 3 }
   0x4   : > { %p353_p2 = pnand %p1530_p0, %p352_p1 }
   0x5   : > { %p410_p3 = scmp.lt.s32.totalorder (!%p353_p2), %s1526_s14, 1  ;;  %s1684_s21 = smov (!%p353_p2), 13  }
   0x6   : > { %356 = sbr.rel (%p353_p2) target bundleno = 256 (0x100), region = 60 }
   0xb   : > { %v1657_v0 = vld [vmem:[%s2335_s1 + $0x8] sm:$0x3f]   ;;  %vm617_vm0 = vcmask 1044480   ;;  %vm618_vm1 = vcmask 1045504   ;;  %v1683_v1 = vmov 65535   ;;  %v1658_v5 = vld [vmem:[%s2335_s1] sm:$0xff]  }
   0xc   : > { %v619_v2 = vsel %vm617_vm0, 4294967295, %v1683_v1  ;;  %s2346_s14 = smov (!%p410_p3, %s1526_s14), 1  ;;  %vm568_vm2 = vcmask 220160   ;;  %v1816_v25 = vld [vmem:[%s2342_s8] ss:$0 sm:$0xff]  ;;  %vm1197_vm3 = vcmask 105472  }
   0xd   : > { %v620_v3 = vsel %vm618_vm1, %v619_v2, 0  ;;  %s1583_s19 = sshll.u32 %s2346_s14, 7  ;;  %s1772_s23 = sshll.u32 %s2346_s14, 8  ;;  %v1826_v33 = vld [vmem:[%s2343_s9] ss:$0 sm:$0xff]  ;;  %vm1390_vm4 = vcmask 130152  }
   0xe   : > { %v622_v4 = vand.u32 %v1657_v0, %v620_v3  ;;  %s1757_s22 = scalar_lea.vmem %s2334_s0, %s1583_s19  ;;  %s1781_s26 = scalar_lea.vmem %s2336_s2, %s1772_s23 }
   0xf   : > { %v1659_v6 = vld [vmem:[%s1757_s22] sm:$0xff]   ;;  %v1661_v8 = vld [vmem:[%s1757_s22 + $0x8] sm:$0xff]   ;;  %v1663_v10 = vld [vmem:[%s1757_s22 + $0x10] sm:$0xff]   ;;  %s1787_s29 = scalar_lea.vmem %s2337_s3, %s1772_s23  ;;  %s1793_s12 = scalar_lea.vmem %s2338_s4, %s1772_s23 }
  0x10   : > { %1607 = vmatprep.subr.bf16.mxu0 %v622_v4  ;;  %1643 = vmatprep.subr.bf16.mxu1 %v622_v4  ;;  %v1660_v7 = vld [vmem:[%s1757_s22 + $0x40] sm:$0xff]   ;;  %v1662_v9 = vld [vmem:[%s1757_s22 + $0x48] sm:$0xff]   ;;  %v1664_v11 = vld [vmem:[%s1757_s22 + $0x50] sm:$0xff]   ;;  %s1801_s16 = scalar_lea.vmem %s2339_s5, %s1772_s23 }
  0x11   : > { %1608 = vmatpush3.bf16.msra.mxu0 %v622_v4  ;;  %1645 = vmatpush3.bf16.msra.mxu1 %v622_v4  ;;  %v1665_v12 = vld [vmem:[%s1757_s22 + $0x18] sm:$0xff]   ;;  %v1667_v14 = vld [vmem:[%s1757_s22 + $0x20] sm:$0xff]   ;;  %v1669_v16 = vld [vmem:[%s1757_s22 + $0x28] sm:$0xff]  }
  0x12   : > { %1609 = vmatprep.subr.bf16.mxu0 %v1658_v5  ;;  %1644 = vmatprep.subr.bf16.mxu1 %v1658_v5  ;;  %v1666_v13 = vld [vmem:[%s1757_s22 + $0x58] sm:$0xff]   ;;  %v1668_v15 = vld [vmem:[%s1757_s22 + $0x60] sm:$0xff]   ;;  %v1670_v17 = vld [vmem:[%s1757_s22 + $0x68] sm:$0xff]  }
  0x13   : > { %1611 = vmatprep.mubr.msk.bf16.mxu0 %vm568_vm2, %v1659_v6  ;;  %1627 = vmatprep.mubr.msk.bf16.mxu1 %vm568_vm2, %v1660_v7  ;;  %v865_v18 = vld [vmem:[%s1781_s26 + $0x10] sm:$0xff]  ;;  %v863_v26 = vld [vmem:[%s1781_s26] sm:$0xff]  ;;  %v866_v32 = vld [vmem:[%s1781_s26 + $0x18] sm:$0xff] }
  0x14   : > { %v897_v19 = vld [vmem:[%s1787_s29 + $0x10] sm:$0xff]  ;;  %v895_v27 = vld [vmem:[%s1787_s29] sm:$0xff]  ;;  %v898_v35 = vld [vmem:[%s1787_s29 + $0x18] sm:$0xff] }
  0x15   : > { %1610 = vmatpush3.bf16.msra.mxu0 %v1658_v5  ;;  %1646 = vmatpush3.bf16.msra.mxu1 %v1658_v5  ;;  %v961_v20 = vld [vmem:[%s1793_s12 + $0x10] sm:$0xff]  ;;  %v929_v23 = vmax.f32 %v865_v18, %v897_v19  ;;  %v927_v29 = vmax.f32 %v863_v26, %v895_v27  ;;  %v959_v30 = vld [vmem:[%s1793_s12] sm:$0xff]  ;;  %v962_v36 = vld [vmem:[%s1793_s12 + $0x18] sm:$0xff]  ;;  %v930_v39 = vmax.f32 %v866_v32, %v898_v35 }
  0x16   : > { %v1671_v21 = vld [vmem:[%s1757_s22 + $0x30] sm:$0xff]   ;;  %v991_v31 = vld [vmem:[%s1801_s16] sm:$0xff]  ;;  %v994_v37 = vld [vmem:[%s1801_s16 + $0x18] sm:$0xff] }
  0x17   : > { %v1672_v22 = vld [vmem:[%s1757_s22 + $0x70] sm:$0xff]   ;;  %v1023_v34 = vmax.f32 %v959_v30, %v991_v31  ;;  %v1026_v40 = vmax.f32 %v962_v36, %v994_v37  ;;  %v864_v41 = vld [vmem:[%s1781_s26 + $0x8] sm:$0xff]  ;;  %v867_v54 = vld [vmem:[%s1781_s26 + $0x20] sm:$0xff] }
  0x18   : > { %1612 = vmatmul.mubr.msk.bf16.vlgmr.msra.gmra.mxu0 %vm568_vm2, %v1661_v8  ;;  %1628 = vmatmul.mubr.msk.bf16.vlgmr.msra.gmra.mxu1 %vm568_vm2, %v1662_v9  ;;  %v993_v24 = vld [vmem:[%s1801_s16 + $0x10] sm:$0xff]  ;;  %v896_v42 = vld [vmem:[%s1787_s29 + $0x8] sm:$0xff]  ;;  %v899_v58 = vld [vmem:[%s1787_s29 + $0x20] sm:$0xff] }
  0x19   : > { %1615 = vmatprep.mubr.msk.bf16.mxu0 %vm568_vm2, %v1663_v10  ;;  %1631 = vmatprep.mubr.msk.bf16.mxu1 %vm568_vm2, %v1664_v11  ;;  %v1025_v28 = vmax.f32 %v961_v20, %v993_v24  ;;  %v960_v43 = vld [vmem:[%s1793_s12 + $0x8] sm:$0xff]  ;;  %v1055_v44 = vmax.f32 %v927_v29, %v1023_v34  ;;  %v928_v45 = vmax.f32 %v864_v41, %v896_v42  ;;  %v963_v59 = vld [vmem:[%s1793_s12 + $0x20] sm:$0xff]  ;;  %v1673_v61 = vld [vmem:[%s1757_s22 + $0x38] sm:$0xff]  }
  0x1a   : > { %v992_v46 = vld [vmem:[%s1801_s16 + $0x8] sm:$0xff]  ;;  %v1058_v50 = vmax.f32 %v930_v39, %v1026_v40  ;;  %v995_v60 = vld [vmem:[%s1801_s16 + $0x20] sm:$0xff]  ;;  %v1674_v62 = vld [vmem:[%s1757_s22 + $0x78] sm:$0xff]   ;;  %v931_v2 = vmax.f32 %v867_v54, %v899_v58 }
  0x1b   : > { %v1057_v38 = vmax.f32 %v929_v23, %v1025_v28  ;;  %v868_v47 = vld [vmem:[%s1781_s26 + $0x28] sm:$0xff]  ;;  %v1024_v51 = vmax.f32 %v960_v43, %v992_v46  ;;  %v1094_v55 = vmul.f32 %v1816_v25, %v1055_v44  ;;  %v870_v3 = vld [vmem:[%s1781_s26 + $0x38] sm:$0xff]  ;;  %v1027_v8 = vmax.f32 %v963_v59, %v995_v60  ;;  %v869_v11 = vld [vmem:[%s1781_s26 + $0x30] sm:$0xff] }
  0x1c   : > { %v900_v48 = vld [vmem:[%s1787_s29 + $0x28] sm:$0xff]  ;;  %v1097_v0 = vmul.f32 %v1816_v25, %v1058_v50  ;;  %v902_v4 = vld [vmem:[%s1787_s29 + $0x38] sm:$0xff]  ;;  %v997_v18 = vld [vmem:[%s1801_s16 + $0x30] sm:$0xff] }
  0x1d   : > { %v1096_v49 = vmul.f32 %v1816_v25, %v1057_v38  ;;  %v964_v52 = vld [vmem:[%s1793_s12 + $0x28] sm:$0xff]  ;;  %v932_v56 = vmax.f32 %v868_v47, %v900_v48  ;;  %v1056_v1 = vmax.f32 %v928_v45, %v1024_v51  ;;  %v966_v5 = vld [vmem:[%s1793_s12 + $0x38] sm:$0xff]  ;;  %v1133_v6 = vadd.f32 %v1826_v33, %v1094_v55  ;;  %v871_v32 = vld [vmem:[%s1781_s26 + $0x40] sm:$0xff] }
  0x1e   : > { %v996_v53 = vld [vmem:[%s1801_s16 + $0x28] sm:$0xff]  ;;  %v934_v9 = vmax.f32 %v870_v3, %v902_v4  ;;  %v998_v10 = vld [vmem:[%s1801_s16 + $0x38] sm:$0xff]  ;;  %v903_v34 = vld [vmem:[%s1787_s29 + $0x40] sm:$0xff] }
  0x1f   : > { %v1028_v57 = vmax.f32 %v964_v52, %v996_v53  ;;  %v1135_v63 = vadd.f32 %v1826_v33, %v1096_v49  ;;  %v872_v19 = vld [vmem:[%s1781_s26 + $0x48] sm:$0xff]  ;;  %v1230_v20 = vmax.f32 %v1133_v6, 0.0  ;;  %v967_v35 = vld [vmem:[%s1793_s12 + $0x40] sm:$0xff]  ;;  %v874_v41 = vld [vmem:[%s1781_s26 + $0x58] sm:$0xff]  ;;  %v935_v46 = vmax.f32 %v871_v32, %v903_v34 }
  0x20   : > { %1616 = vmatmul.mubr.msk.bf16.gmra.mxu0 %vm568_vm2, %v1665_v12  ;;  %1632 = vmatmul.mubr.msk.bf16.gmra.mxu1 %vm568_vm2, %v1666_v13  ;;  %v901_v12 = vld [vmem:[%s1787_s29 + $0x30] sm:$0xff]  ;;  %v904_v24 = vld [vmem:[%s1787_s29 + $0x48] sm:$0xff]  ;;  %v999_v40 = vld [vmem:[%s1801_s16 + $0x40] sm:$0xff] }
  0x21   : > { %1619 = vmatprep.mubr.msk.bf16.mxu0 %vm568_vm2, %v1667_v14  ;;  %1635 = vmatprep.mubr.msk.bf16.mxu1 %vm568_vm2, %v1668_v15  ;;  %v1060_v7 = vmax.f32 %v932_v56, %v1028_v57  ;;  %v1232_v13 = vmax.f32 %v1135_v63, 0.0  ;;  %v1136_v14 = vadd.f32 %v1826_v33, %v1097_v0  ;;  %v1095_v15 = vmul.f32 %v1816_v25, %v1056_v1  ;;  %v968_v26 = vld [vmem:[%s1793_s12 + $0x48] sm:$0xff]  ;;  %v906_v42 = vld [vmem:[%s1787_s29 + $0x58] sm:$0xff]  ;;  %v873_v49 = vld [vmem:[%s1781_s26 + $0x50] sm:$0xff] }
  0x22   : > { %v933_v23 = vmax.f32 %v869_v11, %v901_v12  ;;  %v1000_v27 = vld [vmem:[%s1801_s16 + $0x48] sm:$0xff]  ;;  %1294 = vrot.lane.b32.xlu0 %v1230_v20, %s1684_s21  ;;  %v936_v38 = vmax.f32 %v872_v19, %v904_v24  ;;  %v970_v47 = vld [vmem:[%s1793_s12 + $0x58] sm:$0xff]  ;;  %v1031_v53 = vmax.f32 %v967_v35, %v999_v40  ;;  %v905_v54 = vld [vmem:[%s1787_s29 + $0x50] sm:$0xff]  ;;  %v938_v59 = vmax.f32 %v874_v41, %v906_v42 }
  0x23   : > { %1298 = vrot.lane.b32.xlu1 %v1232_v13, %s1684_s21  ;;  %v1233_v28 = vmax.f32 %v1136_v14, 0.0  ;;  %v1134_v29 = vadd.f32 %v1826_v33, %v1095_v15  ;;  %v1032_v39 = vmax.f32 %v968_v26, %v1000_v27  ;;  %v1002_v48 = vld [vmem:[%s1801_s16 + $0x58] sm:$0xff]  ;;  %v969_v55 = vld [vmem:[%s1793_s12 + $0x50] sm:$0xff]  ;;  %v972_v63 = vld [vmem:[%s1793_s12 + $0x68] sm:$0xff]  ;;  %v937_v3 = vmax.f32 %v873_v49, %v905_v54 }
  0x24   : > { %v1001_v56 = vld [vmem:[%s1801_s16 + $0x50] sm:$0xff]  ;;  %v1034_v60 = vmax.f32 %v970_v47, %v1002_v48  ;;  %v1004_v4 = vld [vmem:[%s1801_s16 + $0x68] sm:$0xff]  ;;  %v907_v6 = vld [vmem:[%s1787_s29 + $0x60] sm:$0xff] }
  0x25   : > { %v1231_v43 = vmax.f32 %v1134_v29, 0.0  ;;  %v1064_v52 = vmax.f32 %v936_v38, %v1032_v39  ;;  %v1003_v11 = vld [vmem:[%s1801_s16 + $0x60] sm:$0xff]  ;;  %v878_v12 = vld [vmem:[%s1781_s26 + $0x78] sm:$0xff]  ;;  %v877_v24 = vld [vmem:[%s1781_s26 + $0x70] sm:$0xff] }
  0x26   : > { %v1006_v19 = vld [vmem:[%s1801_s16 + $0x78] sm:$0xff]  ;;  %v909_v26 = vld [vmem:[%s1787_s29 + $0x70] sm:$0xff]  ;;  %v880_v34 = vld [vmem:[%s1781_s26 + $0x88] sm:$0xff] }
  0x27   : > { %1300 = vrot.lane.b32.xlu1 %v1233_v28, %s1684_s21  ;;  %1296 = vrot.lane.b32.xlu0 %v1231_v43, %s1684_s21  ;;  %v1103_v1 = vmul.f32 %v1816_v25, %v1064_v52  ;;  %v1005_v32 = vld [vmem:[%s1801_s16 + $0x70] sm:$0xff]  ;;  %v912_v38 = vld [vmem:[%s1787_s29 + $0x88] sm:$0xff] }
  0x28   : > { %1620 = vmatmul.mubr.msk.bf16.gmra.mxu0 %vm568_vm2, %v1669_v16  ;;  %1636 = vmatmul.mubr.msk.bf16.gmra.mxu1 %vm568_vm2, %v1670_v17  ;;  %v1030_v16 = vmax.f32 %v966_v5, %v998_v10  ;;  %v965_v17 = vld [vmem:[%s1793_s12 + $0x30] sm:$0xff]  ;;  %v875_v5 = vld [vmem:[%s1781_s26 + $0x60] sm:$0xff]  ;;  %v976_v39 = vld [vmem:[%s1793_s12 + $0x88] sm:$0xff] }
  0x29   : > { %1623 = vmatprep.mubr.msk.bf16.mxu0 %vm568_vm2, %v1671_v21  ;;  %1639 = vmatprep.mubr.msk.bf16.mxu1 %vm568_vm2, %v1672_v22  ;;  %v1099_v21 = vmul.f32 %v1816_v25, %v1060_v7  ;;  %v1059_v22 = vmax.f32 %v931_v2, %v1027_v8  ;;  %v1029_v31 = vmax.f32 %v965_v17, %v997_v18  ;;  %v971_v10 = vld [vmem:[%s1793_s12 + $0x60] sm:$0xff]  ;;  %v910_v17 = vld [vmem:[%s1787_s29 + $0x78] sm:$0xff]  ;;  %v1008_v40 = vld [vmem:[%s1801_s16 + $0x88] sm:$0xff] }
  0x2a   : > { %v1062_v30 = vmax.f32 %v934_v9, %v1030_v16  ;;  %v1063_v2 = vmax.f32 %v935_v46, %v1031_v53  ;;  %v1066_v8 = vmax.f32 %v938_v59, %v1034_v60  ;;  %v1033_v9 = vmax.f32 %v969_v55, %v1001_v56  ;;  %v974_v18 = vld [vmem:[%s1793_s12 + $0x78] sm:$0xff]  ;;  %v911_v46 = vld [vmem:[%s1787_s29 + $0x80] sm:$0xff] }
  0x2b   : > { %v1138_v36 = vadd.f32 %v1826_v33, %v1099_v21  ;;  %v1098_v37 = vmul.f32 %v1816_v25, %v1059_v22  ;;  %v1061_v45 = vmax.f32 %v933_v23, %v1029_v31  ;;  %v1142_v13 = vadd.f32 %v1826_v33, %v1103_v1  ;;  %v973_v31 = vld [vmem:[%s1793_s12 + $0x70] sm:$0xff]  ;;  %v1007_v52 = vld [vmem:[%s1801_s16 + $0x80] sm:$0xff]  ;;  %v882_v53 = vld [vmem:[%s1781_s26 + $0x98] sm:$0xff] }
  0x2c   : > { %v1101_v44 = vmul.f32 %v1816_v25, %v1062_v30  ;;  %v1102_v14 = vmul.f32 %v1816_v25, %v1063_v2  ;;  %v1036_v16 = vmax.f32 %v972_v63, %v1004_v4  ;;  %v1105_v21 = vmul.f32 %v1816_v25, %v1066_v8  ;;  %v978_v59 = vld [vmem:[%s1793_s12 + $0x98] sm:$0xff]  ;;  %v913_v1 = vld [vmem:[%s1787_s29 + $0x90] sm:$0xff] }
  0x2d   : > { %v1235_v50 = vmax.f32 %v1138_v36, 0.0  ;;  %v1137_v51 = vadd.f32 %v1826_v33, %v1098_v37  ;;  %v1100_v58 = vmul.f32 %v1816_v25, %v1061_v45  ;;  %v1065_v22 = vmax.f32 %v937_v3, %v1033_v9  ;;  %v879_v45 = vld [vmem:[%s1781_s26 + $0x80] sm:$0xff]  ;;  %v1010_v60 = vld [vmem:[%s1801_s16 + $0x98] sm:$0xff] }
  0x2e   : > { %v1140_v57 = vadd.f32 %v1826_v33, %v1101_v44  ;;  %v939_v23 = vmax.f32 %v875_v5, %v907_v6  ;;  %v1141_v28 = vadd.f32 %v1826_v33, %v1102_v14  ;;  %v1035_v30 = vmax.f32 %v971_v10, %v1003_v11  ;;  %v977_v6 = vld [vmem:[%s1793_s12 + $0x90] sm:$0xff]  ;;  %v980_v14 = vld [vmem:[%s1793_s12 + $0xa8] sm:$0xff] }
  0x2f   : > { %v1234_v0 = vmax.f32 %v1137_v51, 0.0  ;;  %v1139_v7 = vadd.f32 %v1826_v33, %v1100_v58  ;;  %1304 = vrot.lane.b32.xlu1 %v1235_v50, %s1684_s21  ;;  %v1104_v35 = vmul.f32 %v1816_v25, %v1065_v22  ;;  %v942_v36 = vmax.f32 %v878_v12, %v910_v17  ;;  %v975_v51 = vld [vmem:[%s1793_s12 + $0x80] sm:$0xff]  ;;  %v914_v58 = vld [vmem:[%s1787_s29 + $0x98] sm:$0xff]  ;;  %v884_v12 = vld [vmem:[%s1781_s26 + $0xa8] sm:$0xff] }
  0x30   : > { %1624 = vmatmul.mubr.msk.bf16.gmra.mxu0 %vm568_vm2, %v1673_v61  ;;  %1640 = vmatmul.mubr.msk.bf16.gmra.mxu1 %vm568_vm2, %v1674_v62  ;;  %v876_v61 = vld [vmem:[%s1781_s26 + $0x68] sm:$0xff]  ;;  %v1237_v20 = vmax.f32 %v1140_v57, 0.0  ;;  %v1038_v37 = vmax.f32 %v974_v18, %v1006_v19  ;;  %v1239_v41 = vmax.f32 %v1142_v13, 0.0  ;;  %v1067_v43 = vmax.f32 %v939_v23, %v1035_v30  ;;  %v883_v19 = vld [vmem:[%s1781_s26 + $0xa0] sm:$0xff]  ;;  %v918_v30 = vld [vmem:[%s1787_s29 + $0xb8] sm:$0xff] }
  0x31   : > { %v908_v62 = vld [vmem:[%s1787_s29 + $0x68] sm:$0xff]  ;;  %1302 = vrot.lane.b32.xlu0 %v1234_v0, %s1684_s21  ;;  %v1236_v27 = vmax.f32 %v1139_v7, 0.0  ;;  %v941_v44 = vmax.f32 %v877_v24, %v909_v26  ;;  %v1238_v47 = vmax.f32 %v1141_v28, 0.0  ;;  %v1144_v48 = vadd.f32 %v1826_v33, %v1105_v21  ;;  %v881_v0 = vld [vmem:[%s1781_s26 + $0x90] sm:$0xff]  ;;  %v979_v22 = vld [vmem:[%s1793_s12 + $0xa0] sm:$0xff] }
  0x32   : > { %v940_v15 = vmax.f32 %v876_v61, %v908_v62  ;;  %v1070_v49 = vmax.f32 %v942_v36, %v1038_v37  ;;  %v1037_v50 = vmax.f32 %v973_v31, %v1005_v32  ;;  %v1143_v54 = vadd.f32 %v1826_v33, %v1104_v35  ;;  %v1009_v7 = vld [vmem:[%s1801_s16 + $0x90] sm:$0xff]  ;;  %v916_v13 = vld [vmem:[%s1787_s29 + $0xa8] sm:$0xff]  ;;  %v1011_v23 = vld [vmem:[%s1801_s16 + $0xa0] sm:$0xff] }
  0x33   : > { %1308 = vrot.lane.b32.xlu1 %v1237_v20, %s1684_s21  ;;  %v1106_v55 = vmul.f32 %v1816_v25, %v1067_v43  ;;  %v944_v56 = vmax.f32 %v880_v34, %v912_v38  ;;  %v1040_v57 = vmax.f32 %v976_v39, %v1008_v40  ;;  %v943_v63 = vmax.f32 %v879_v45, %v911_v46  ;;  %v1012_v18 = vld [vmem:[%s1801_s16 + $0xa8] sm:$0xff]  ;;  %v915_v20 = vld [vmem:[%s1787_s29 + $0xa0] sm:$0xff]  ;;  %v886_v24 = vld [vmem:[%s1781_s26 + $0xb8] sm:$0xff] }
  0x34   : > { %v1068_v29 = vmax.f32 %v940_v15, %v1036_v16  ;;  %v1069_v62 = vmax.f32 %v941_v44, %v1037_v50  ;;  %v1109_v3 = vmul.f32 %v1816_v25, %v1070_v49  ;;  %v1039_v5 = vmax.f32 %v975_v51, %v1007_v52  ;;  %v982_v31 = vld [vmem:[%s1793_s12 + $0xb8] sm:$0xff]  ;;  %v885_v38 = vld [vmem:[%s1781_s26 + $0xb0] sm:$0xff]  ;;  %v888_v50 = vld [vmem:[%s1781_s26 + $0xc8] sm:$0xff] }
  0x35   : > { %1306 = vrot.lane.b32.xlu0 %v1236_v27, %s1684_s21  ;;  %v1145_v2 = vadd.f32 %v1826_v33, %v1106_v55  ;;  %v1072_v4 = vmax.f32 %v944_v56, %v1040_v57  ;;  %v1241_v8 = vmax.f32 %v1144_v48, 0.0  ;;  %v946_v10 = vmax.f32 %v882_v53, %v914_v58  ;;  %v1014_v32 = vld [vmem:[%s1801_s16 + $0xb8] sm:$0xff]  ;;  %v917_v39 = vld [vmem:[%s1787_s29 + $0xb0] sm:$0xff]  ;;  %v920_v51 = vld [vmem:[%s1787_s29 + $0xc8] sm:$0xff] }
  0x36   : > { %v1107_v42 = vmul.f32 %v1816_v25, %v1068_v29  ;;  %v1108_v9 = vmul.f32 %v1816_v25, %v1069_v62  ;;  %v1042_v11 = vmax.f32 %v978_v59, %v1010_v60  ;;  %v1240_v15 = vmax.f32 %v1143_v54, 0.0  ;;  %v981_v44 = vld [vmem:[%s1793_s12 + $0xb0] sm:$0xff]  ;;  %v984_v56 = vld [vmem:[%s1793_s12 + $0xc8] sm:$0xff]  ;;  %v887_v58 = vld [vmem:[%s1781_s26 + $0xc0] sm:$0xff] }
  0x37   : > { %1312 = vrot.lane.b32.xlu1 %v1239_v41, %s1684_s21  ;;  %v1071_v16 = vmax.f32 %v943_v63, %v1039_v5  ;;  %v945_v17 = vmax.f32 %v881_v0, %v913_v1  ;;  %v1041_v21 = vmax.f32 %v977_v6, %v1009_v7  ;;  %v1242_v27 = vmax.f32 %v1145_v2, 0.0  ;;  %v1013_v45 = vld [vmem:[%s1801_s16 + $0xb0] sm:$0xff]  ;;  %v1016_v57 = vld [vmem:[%s1801_s16 + $0xc8] sm:$0xff]  ;;  %v919_v63 = vld [vmem:[%s1787_s29 + $0xc0] sm:$0xff] }
  0x38   : > { %v1146_v61 = vadd.f32 %v1826_v33, %v1107_v42  ;;  %v1148_v28 = vadd.f32 %v1826_v33, %v1109_v3  ;;  %v1111_v29 = vmul.f32 %v1816_v25, %v1072_v4  ;;  %v1147_v34 = vadd.f32 %v1826_v33, %v1108_v9  ;;  %v983_v0 = vld [vmem:[%s1793_s12 + $0xc0] sm:$0xff]  ;;  %v890_v7 = vld [vmem:[%s1781_s26 + $0xd8] sm:$0xff] }
  0x39   : > { %1310 = vrot.lane.b32.xlu0 %v1238_v47, %s1684_s21  ;;  %v1074_v35 = vmax.f32 %v946_v10, %v1042_v11  ;;  %v948_v36 = vmax.f32 %v884_v12, %v916_v13  ;;  %v1044_v37 = vmax.f32 %v980_v14, %v1012_v18  ;;  %v1110_v40 = vmul.f32 %v1816_v25, %v1071_v16  ;;  %v1015_v1 = vld [vmem:[%s1801_s16 + $0xc0] sm:$0xff]  ;;  %v922_v12 = vld [vmem:[%s1787_s29 + $0xd8] sm:$0xff]  ;;  %v889_v18 = vld [vmem:[%s1781_s26 + $0xd0] sm:$0xff] }
  0x3a   : > { %v1243_v26 = vmax.f32 %v1146_v61, 0.0  ;;  %v1073_v41 = vmax.f32 %v945_v17, %v1041_v21  ;;  %v947_v42 = vmax.f32 %v883_v19, %v915_v20  ;;  %v1043_v43 = vmax.f32 %v979_v22, %v1011_v23  ;;  %v986_v13 = vld [vmem:[%s1793_s12 + $0xd8] sm:$0xff]  ;;  %v921_v20 = vld [vmem:[%s1787_s29 + $0xd0] sm:$0xff] }
  0x3b   : > { %1316 = vrot.lane.b32.xlu1 %v1241_v8, %s1684_s21  ;;  %v950_v46 = vmax.f32 %v886_v24, %v918_v30  ;;  %v1046_v47 = vmax.f32 %v982_v31, %v1014_v32  ;;  %v1150_v48 = vadd.f32 %v1826_v33, %v1111_v29  ;;  %v949_v49 = vmax.f32 %v885_v38, %v917_v39  ;;  %v1018_v14 = vld [vmem:[%s1801_s16 + $0xd8] sm:$0xff]  ;;  %v985_v21 = vld [vmem:[%s1793_s12 + $0xd0] sm:$0xff]  ;;  %v892_v31 = vld [vmem:[%s1781_s26 + $0xe8] sm:$0xff] }
  0x3c   : > { %v1245_v52 = vmax.f32 %v1148_v28, 0.0  ;;  %v1113_v53 = vmul.f32 %v1816_v25, %v1074_v35  ;;  %v1076_v54 = vmax.f32 %v948_v36, %v1044_v37  ;;  %v1045_v55 = vmax.f32 %v981_v44, %v1013_v45  ;;  %v1017_v22 = vld [vmem:[%s1801_s16 + $0xd0] sm:$0xff]  ;;  %v924_v32 = vld [vmem:[%s1787_s29 + $0xe8] sm:$0xff] }
  0x3d   : > { %1314 = vrot.lane.b32.xlu0 %v1240_v15, %s1684_s21  ;;  %v1244_v59 = vmax.f32 %v1147_v34, 0.0  ;;  %v1149_v60 = vadd.f32 %v1826_v33, %v1110_v40  ;;  %v1112_v61 = vmul.f32 %v1816_v25, %v1073_v41  ;;  %v1075_v62 = vmax.f32 %v947_v42, %v1043_v43  ;;  %v988_v38 = vld [vmem:[%s1793_s12 + $0xe8] sm:$0xff]  ;;  %v891_v40 = vld [vmem:[%s1781_s26 + $0xe0] sm:$0xff] }
  0x3e   : > { %v1078_v2 = vmax.f32 %v950_v46, %v1046_v47  ;;  %v1247_v3 = vmax.f32 %v1150_v48, 0.0  ;;  %v1077_v4 = vmax.f32 %v949_v49, %v1045_v55  ;;  %v952_v5 = vmax.f32 %v888_v50, %v920_v51  ;;  %v1020_v39 = vld [vmem:[%s1801_s16 + $0xe8] sm:$0xff]  ;;  %v923_v41 = vld [vmem:[%s1787_s29 + $0xe0] sm:$0xff] }
  0x3f   : > { %1320 = vrot.lane.b32.xlu1 %v1243_v26, %s1684_s21  ;;  %v1048_v6 = vmax.f32 %v984_v56, %v1016_v57  ;;  %v1152_v8 = vadd.f32 %v1826_v33, %v1113_v53  ;;  %v1115_v9 = vmul.f32 %v1816_v25, %v1076_v54  ;;  %v951_v10 = vmax.f32 %v887_v58, %v919_v63  ;;  %v987_v42 = vld [vmem:[%s1793_s12 + $0xe0] sm:$0xff]  ;;  %v926_v53 = vld [vmem:[%s1787_s29 + $0xf8] sm:$0xff]  ;;  %v1021_v63 = vld [vmem:[%s1801_s16 + $0xf0] sm:$0xff] }
  0x40   : > { %v1047_v11 = vmax.f32 %v983_v0, %v1015_v1  ;;  %v1246_v15 = vmax.f32 %v1149_v60, 0.0  ;;  %v1151_v16 = vadd.f32 %v1826_v33, %v1112_v61  ;;  %v1114_v17 = vmul.f32 %v1816_v25, %v1075_v62  ;;  %v1019_v43 = vld [vmem:[%s1801_s16 + $0xe0] sm:$0xff]  ;;  %v990_v58 = vld [vmem:[%s1793_s12 + $0xf8] sm:$0xff]  ;;  %v893_v60 = vld [vmem:[%s1781_s26 + $0xf0] sm:$0xff] }
  0x41   : > { %1318 = vrot.lane.b32.xlu0 %v1242_v27, %s1684_s21  ;;  %v1117_v19 = vmul.f32 %v1816_v25, %v1078_v2  ;;  %v1116_v23 = vmul.f32 %v1816_v25, %v1077_v4  ;;  %v1080_v24 = vmax.f32 %v952_v5, %v1048_v6  ;;  %v954_v26 = vmax.f32 %v890_v7, %v922_v12  ;;  %v925_v61 = vld [vmem:[%s1787_s29 + $0xf0] sm:$0xff]  ;;  %s2109_s29 = scalar_lea.vmem %s2344_s10, %s1772_s23 }
  0x42   : > { %v1050_v27 = vmax.f32 %v986_v13, %v1018_v14  ;;  %v1249_v28 = vmax.f32 %v1152_v8, 0.0  ;;  %v1154_v29 = vadd.f32 %v1826_v33, %v1115_v9  ;;  %v1079_v30 = vmax.f32 %v951_v10, %v1047_v11  ;;  %v989_v62 = vld [vmem:[%s1793_s12 + $0xf0] sm:$0xff] }
  0x43   : > { %1324 = vrot.lane.b32.xlu1 %v1245_v52, %s1684_s21  ;;  %v1248_v34 = vmax.f32 %v1151_v16, 0.0  ;;  %v1153_v35 = vadd.f32 %v1826_v33, %v1114_v17  ;;  %v953_v36 = vmax.f32 %v889_v18, %v921_v20  ;;  %v1049_v37 = vmax.f32 %v985_v21, %v1017_v22  ;;  %v894_v52 = vld [vmem:[%s1781_s26 + $0xf8] sm:$0xff] }
  0x44   : > { %v1156_v44 = vadd.f32 %v1826_v33, %v1117_v19  ;;  %v1155_v45 = vadd.f32 %v1826_v33, %v1116_v23  ;;  %v1119_v46 = vmul.f32 %v1816_v25, %v1080_v24  ;;  %v1082_v47 = vmax.f32 %v954_v26, %v1050_v27 }
  0x45   : > { %1322 = vrot.lane.b32.xlu0 %v1244_v59, %s1684_s21  ;;  %v1251_v48 = vmax.f32 %v1154_v29, 0.0  ;;  %v1118_v49 = vmul.f32 %v1816_v25, %v1079_v30  ;;  %v956_v50 = vmax.f32 %v892_v31, %v924_v32  ;;  %v1052_v51 = vmax.f32 %v988_v38, %v1020_v39  ;;  %v1022_v59 = vld [vmem:[%s1801_s16 + $0xf8] sm:$0xff] }
  0x46   : > { %v1250_v54 = vmax.f32 %v1153_v35, 0.0  ;;  %v1081_v55 = vmax.f32 %v953_v36, %v1049_v37  ;;  %v955_v56 = vmax.f32 %v891_v40, %v923_v41  ;;  %v1051_v57 = vmax.f32 %v987_v42, %v1019_v43 }
  0x47   : > { %1328 = vrot.lane.b32.xlu1 %v1247_v3, %s1684_s21  ;;  %v1253_v0 = vmax.f32 %v1156_v44, 0.0  ;;  %v1252_v1 = vmax.f32 %v1155_v45, 0.0  ;;  %v1158_v2 = vadd.f32 %v1826_v33, %v1119_v46  ;;  %v1121_v3 = vmul.f32 %v1816_v25, %v1082_v47 }
  0x48   : > { %v1157_v4 = vadd.f32 %v1826_v33, %v1118_v49  ;;  %v1084_v5 = vmax.f32 %v956_v50, %v1052_v51  ;;  %v958_v6 = vmax.f32 %v894_v52, %v926_v53  ;;  %v1054_v7 = vmax.f32 %v990_v58, %v1022_v59  ;;  %v2088_v52 = vld [vmem:[%s2340_s6] ss:$0 sm:$0xff] }
  0x49   : > { %1326 = vrot.lane.b32.xlu0 %v1246_v15, %s1684_s21  ;;  %v1120_v8 = vmul.f32 %v1816_v25, %v1081_v55  ;;  %v1083_v9 = vmax.f32 %v955_v56, %v1051_v57  ;;  %v957_v10 = vmax.f32 %v893_v60, %v925_v61  ;;  %v1053_v11 = vmax.f32 %v989_v62, %v1021_v63  ;;  %v2095_v55 = vld [vmem:[%s2341_s7] ss:$0 sm:$0xff] }
  0x4a   : > { %v1255_v12 = vmax.f32 %v1158_v2, 0.0  ;;  %v1160_v13 = vadd.f32 %v1826_v33, %v1121_v3  ;;  %v1123_v14 = vmul.f32 %v1816_v25, %v1084_v5  ;;  %v1086_v15 = vmax.f32 %v958_v6, %v1054_v7 }
  0x4b   : > { %1332 = vrot.lane.b32.xlu1 %v1249_v28, %s1684_s21  ;;  %v1254_v16 = vmax.f32 %v1157_v4, 0.0  ;;  %v1159_v17 = vadd.f32 %v1826_v33, %v1120_v8  ;;  %v1122_v18 = vmul.f32 %v1816_v25, %v1083_v9  ;;  %v1085_v19 = vmax.f32 %v957_v10, %v1053_v11 }
  0x4c   : > { %v1257_v20 = vmax.f32 %v1160_v13, 0.0  ;;  %v1162_v21 = vadd.f32 %v1826_v33, %v1123_v14  ;;  %v1125_v22 = vmul.f32 %v1816_v25, %v1086_v15 }
  0x4d   : > { %1330 = vrot.lane.b32.xlu0 %v1248_v34, %s1684_s21  ;;  %v1256_v23 = vmax.f32 %v1159_v17, 0.0  ;;  %v1161_v24 = vadd.f32 %v1826_v33, %v1122_v18  ;;  %v1124_v26 = vmul.f32 %v1816_v25, %v1085_v19 }
  0x4e   : > { %v1259_v27 = vmax.f32 %v1162_v21, 0.0  ;;  %v1164_v28 = vadd.f32 %v1826_v33, %v1125_v22 }
  0x4f   : > { %1336 = vrot.lane.b32.xlu1 %v1251_v48, %s1684_s21  ;;  %v1258_v29 = vmax.f32 %v1161_v24, 0.0  ;;  %v1163_v30 = vadd.f32 %v1826_v33, %v1124_v26 }
  0x50   : > { %v1261_v31 = vmax.f32 %v1164_v28, 0.0 }
  0x51   : > { %1334 = vrot.lane.b32.xlu0 %v1250_v54, %s1684_s21  ;;  %v1260_v32 = vmax.f32 %v1163_v30, 0.0 }
  0x53   : > { %1340 = vrot.lane.b32.xlu1 %v1253_v0, %s1684_s21 }
  0x55   : > { %1338 = vrot.lane.b32.xlu0 %v1252_v1, %s1684_s21 }
  0x57   : > { %1344 = vrot.lane.b32.xlu1 %v1255_v12, %s1684_s21 }
  0x59   : > { %1342 = vrot.lane.b32.xlu0 %v1254_v16, %s1684_s21 }
  0x5b   : > { %1348 = vrot.lane.b32.xlu1 %v1257_v20, %s1684_s21 }
  0x5d   : > { %1346 = vrot.lane.b32.xlu0 %v1256_v23, %s1684_s21 }
  0x5f   : > { %1352 = vrot.lane.b32.xlu1 %v1259_v27, %s1684_s21 }
  0x61   : > { %1350 = vrot.lane.b32.xlu0 %v1258_v29, %s1684_s21 }
  0x63   : > { %1356 = vrot.lane.b32.xlu1 %v1261_v31, %s1684_s21 }
  0x65   : > { %1354 = vrot.lane.b32.xlu0 %v1260_v32, %s1684_s21 }
  0x94   : > { %v2051_v34 = vpop.permute.xlu0 %1294 }
  0x95   : > { %v1299_v25 = vpop.permute.xlu1 %1298 }
  0x99   : > { %v2053_v35 = vpop.permute.xlu1 %1300  ;;  %v2055_v36 = vpop.permute.xlu0 %1296 }
  0xa1   : > { %v2059_v33 = vpop.permute.xlu1 %1304 }
  0xa3   : > { %v2057_v37 = vpop.permute.xlu0 %1302 }
  0xa5   : > { %v2063_v39 = vpop.permute.xlu1 %1308 }
  0xa7   : > { %v2061_v38 = vpop.permute.xlu0 %1306 }
  0xa9   : > { %v2067_v41 = vpop.permute.xlu1 %1312 }
  0xab   : > { %v2065_v40 = vpop.permute.xlu0 %1310 }
  0xad   : > { %v2071_v43 = vpop.permute.xlu1 %1316 }
  0xaf   : > { %v2069_v42 = vpop.permute.xlu0 %1314 }
  0xb1   : > { %v2075_v45 = vpop.permute.xlu1 %1320 }
  0xb3   : > { %v2073_v44 = vpop.permute.xlu0 %1318 }
  0xb5   : > { %v2079_v47 = vpop.permute.xlu1 %1324 }
  0xb7   : > { %v2077_v46 = vpop.permute.xlu0 %1322 }
  0xb9   : > { %v2081_v49 = vpop.permute.xlu1 %1328 }
  0xbb   : > { %v1327_v48 = vpop.permute.xlu0 %1326 }
  0xbd   : > { %v2083_v51 = vpop.permute.xlu1 %1332 }
  0xbf   : > { %v1331_v50 = vpop.permute.xlu0 %1330 }
  0xc1   : > { %v2103_v1 = vpop.permute.xlu1 %1336 }
  0xc3   : > { %v2090_v53 = vpop.permute.xlu0 %1334 }
  0xc5   : > { %v2137_v26 = vpop.permute.xlu1 %1340 }
  0xc7   : > { %v2113_v8 = vpop.permute.xlu0 %1338 }
  0xd8   : > { %v1613_v54 = vpop.f32.mrf.mxu0  ;;  %v1629_v56 = vpop.f32.mrf.mxu1 }
  0xd9   : > { %v794_v57 = vmul.f32 %v1613_v54, %v2088_v52  ;;  %v810_v58 = vmul.f32 %v1629_v56, %v2088_v52  ;;  %v2146_v54 = vpop.permute.xlu0 %1342 }
  0xda   : > { %v658_v59 = vpop.f32.mrf.mxu0  ;;  %v722_v60 = vpop.f32.mrf.mxu1 }
  0xdb   : > { %v833_v61 = vadd.f32 %v2095_v55, %v794_v57  ;;  %v849_v62 = vadd.f32 %v2095_v55, %v810_v58  ;;  %v792_v63 = vmul.f32 %v2088_v52, %v658_v59  ;;  %v808_v0 = vmul.f32 %v2088_v52, %v722_v60 }
  0xdc   : > { %v1614_v2 = vpop.f32.mrf.mxu0  ;;  %v1630_v3 = vpop.f32.mrf.mxu1 }
  0xdd   : > { %v1167_v4 = vmax.f32 %v833_v61, 0.0  ;;  %v1183_v5 = vmax.f32 %v849_v62, 0.0  ;;  %v831_v6 = vadd.f32 %v2095_v55, %v792_v63  ;;  %v847_v7 = vadd.f32 %v2095_v55, %v808_v0 }
  0xde   : > { %v795_v9 = vmul.f32 %v1614_v2, %v2088_v52  ;;  %v811_v10 = vmul.f32 %v1630_v3, %v2088_v52  ;;  %v661_v11 = vpop.f32.mrf.mxu0  ;;  %v725_v12 = vpop.f32.mrf.mxu1 }
  0xdf   : > { %1200 = vst.msk [vmem:[%s2109_s29 + $0x10] sm:$0xff] %vm1197_vm3, %v1167_v4  ;;  %1216 = vst.msk [vmem:[%s2109_s29 + $0x90] sm:$0xff] %vm1197_vm3, %v1183_v5  ;;  %v1165_v13 = vmax.f32 %v831_v6, 0.0  ;;  %v1181_v14 = vmax.f32 %v847_v7, 0.0  ;;  %v793_v15 = vmul.f32 %v2088_v52, %v661_v11  ;;  %v809_v16 = vmul.f32 %v2088_v52, %v725_v12  ;;  %v2182_v3 = vpop.permute.xlu1 %1344 }
  0xe0   : > { %1393 = vst.msk [vmem:[%s2109_s29 + $0x10] sm:$0xff] %vm1390_vm4, %v1299_v25  ;;  %v834_v17 = vadd.f32 %v2095_v55, %v795_v9  ;;  %v850_v18 = vadd.f32 %v2095_v55, %v811_v10  ;;  %v1617_v19 = vpop.f32.mrf.mxu0  ;;  %v1633_v20 = vpop.f32.mrf.mxu1  ;;  %1409 = vst.msk [vmem:[%s2109_s29 + $0x90] sm:$0xff] %vm1390_vm4, %v1331_v50 }
  0xe1   : > { %1198 = vst.msk [vmem:[%s2109_s29] sm:$0xff] %vm1197_vm3, %v1165_v13  ;;  %1214 = vst.msk [vmem:[%s2109_s29 + $0x80] sm:$0xff] %vm1197_vm3, %v1181_v14  ;;  %v832_v21 = vadd.f32 %v2095_v55, %v793_v15  ;;  %v848_v22 = vadd.f32 %v2095_v55, %v809_v16  ;;  %v798_v23 = vmul.f32 %v1617_v19, %v2088_v52  ;;  %v1347_v13 = vpop.permute.xlu0 %1346 }
  0xe2   : > { %v814_v24 = vmul.f32 %v1633_v20, %v2088_v52  ;;  %1391 = vst.msk [vmem:[%s2109_s29] sm:$0xff] %vm1390_vm4, %v2051_v34  ;;  %v1168_v27 = vmax.f32 %v834_v17, 0.0  ;;  %v1184_v28 = vmax.f32 %v850_v18, 0.0  ;;  %1407 = vst.msk [vmem:[%s2109_s29 + $0x80] sm:$0xff] %vm1390_vm4, %v1327_v48  ;;  %v674_v29 = vpop.f32.mrf.mxu0  ;;  %v738_v30 = vpop.f32.mrf.mxu1 }
  0xe3   : > { %v1166_v31 = vmax.f32 %v832_v21, 0.0  ;;  %v1182_v32 = vmax.f32 %v848_v22, 0.0  ;;  %v837_v25 = vadd.f32 %v2095_v55, %v798_v23  ;;  %v796_v34 = vmul.f32 %v2088_v52, %v674_v29 }
  0xe4   : > { %v853_v50 = vadd.f32 %v2095_v55, %v814_v24  ;;  %1201 = vst.msk [vmem:[%s2109_s29 + $0x18] sm:$0xff] %vm1197_vm3, %v1168_v27  ;;  %1217 = vst.msk [vmem:[%s2109_s29 + $0x98] sm:$0xff] %vm1197_vm3, %v1184_v28  ;;  %v812_v48 = vmul.f32 %v2088_v52, %v738_v30  ;;  %v1618_v56 = vpop.f32.mrf.mxu0  ;;  %v1634_v57 = vpop.f32.mrf.mxu1 }
  0xe5   : > { %1394 = vst.msk [vmem:[%s2109_s29 + $0x18] sm:$0xff] %vm1390_vm4, %v2053_v35  ;;  %v1171_v58 = vmax.f32 %v837_v25, 0.0  ;;  %v799_v60 = vmul.f32 %v1618_v56, %v2088_v52  ;;  %v815_v61 = vmul.f32 %v1634_v57, %v2088_v52  ;;  %1410 = vst.msk [vmem:[%s2109_s29 + $0x98] sm:$0xff] %vm1390_vm4, %v2083_v51  ;;  %v835_v35 = vadd.f32 %v2095_v55, %v796_v34  ;;  %v1349_v27 = vpop.permute.xlu1 %1348  ;;  %v2234_v34 = vpop.permute.xlu0 %1350 }
  0xe6   : > { %1199 = vst.msk [vmem:[%s2109_s29 + $0x8] sm:$0xff] %vm1197_vm3, %v1166_v31  ;;  %1215 = vst.msk [vmem:[%s2109_s29 + $0x88] sm:$0xff] %vm1197_vm3, %v1182_v32  ;;  %v1187_v59 = vmax.f32 %v853_v50, 0.0  ;;  %v851_v62 = vadd.f32 %v2095_v55, %v812_v48  ;;  %v677_v63 = vpop.f32.mrf.mxu0  ;;  %v741_v0 = vpop.f32.mrf.mxu1 }
  0xe7   : > { %1392 = vst.msk [vmem:[%s2109_s29 + $0x8] sm:$0xff] %vm1390_vm4, %v2055_v36  ;;  %1408 = vst.msk [vmem:[%s2109_s29 + $0x88] sm:$0xff] %vm1390_vm4, %v2081_v49  ;;  %v838_v2 = vadd.f32 %v2095_v55, %v799_v60  ;;  %v854_v51 = vadd.f32 %v2095_v55, %v815_v61  ;;  %v797_v36 = vmul.f32 %v2088_v52, %v677_v63  ;;  %v1169_v4 = vmax.f32 %v835_v35, 0.0 }
  0xe8   : > { %1204 = vst.msk [vmem:[%s2109_s29 + $0x30] sm:$0xff] %vm1197_vm3, %v1171_v58  ;;  %1220 = vst.msk [vmem:[%s2109_s29 + $0xb0] sm:$0xff] %vm1197_vm3, %v1187_v59  ;;  %v813_v49 = vmul.f32 %v2088_v52, %v741_v0  ;;  %v1185_v5 = vmax.f32 %v851_v62, 0.0  ;;  %v1621_v6 = vpop.f32.mrf.mxu0  ;;  %v1637_v7 = vpop.f32.mrf.mxu1 }
  0xe9   : > { %1397 = vst.msk [vmem:[%s2109_s29 + $0x30] sm:$0xff] %vm1390_vm4, %v2061_v38  ;;  %1413 = vst.msk [vmem:[%s2109_s29 + $0xb0] sm:$0xff] %vm1390_vm4, %v2113_v8  ;;  %v1172_v9 = vmax.f32 %v838_v2, 0.0  ;;  %v1188_v10 = vmax.f32 %v854_v51, 0.0  ;;  %v836_v11 = vadd.f32 %v2095_v55, %v797_v36  ;;  %v802_v38 = vmul.f32 %v1621_v6, %v2088_v52  ;;  %v1353_v51 = vpop.permute.xlu1 %1352 }
  0xea   : > { %v852_v12 = vadd.f32 %v2095_v55, %v813_v49  ;;  %1202 = vst.msk [vmem:[%s2109_s29 + $0x20] sm:$0xff] %vm1197_vm3, %v1169_v4  ;;  %1218 = vst.msk [vmem:[%s2109_s29 + $0xa0] sm:$0xff] %vm1197_vm3, %v1185_v5  ;;  %v818_v14 = vmul.f32 %v1637_v7, %v2088_v52  ;;  %v690_v15 = vpop.f32.mrf.mxu0  ;;  %v754_v8 = vpop.f32.mrf.mxu1 }
  0xeb   : > { %1395 = vst.msk [vmem:[%s2109_s29 + $0x20] sm:$0xff] %vm1390_vm4, %v2057_v37  ;;  %v1170_v16 = vmax.f32 %v836_v11, 0.0  ;;  %1411 = vst.msk [vmem:[%s2109_s29 + $0xa0] sm:$0xff] %vm1390_vm4, %v2090_v53  ;;  %v800_v18 = vmul.f32 %v2088_v52, %v690_v15  ;;  %v816_v19 = vmul.f32 %v2088_v52, %v754_v8  ;;  %v841_v37 = vadd.f32 %v2095_v55, %v802_v38 }
  0xec   : > { %1205 = vst.msk [vmem:[%s2109_s29 + $0x38] sm:$0xff] %vm1197_vm3, %v1172_v9  ;;  %1221 = vst.msk [vmem:[%s2109_s29 + $0xb8] sm:$0xff] %vm1197_vm3, %v1188_v10  ;;  %v1186_v17 = vmax.f32 %v852_v12, 0.0  ;;  %v857_v20 = vadd.f32 %v2095_v55, %v818_v14  ;;  %v1622_v21 = vpop.f32.mrf.mxu0  ;;  %v1638_v22 = vpop.f32.mrf.mxu1 }
  0xed   : > { %1398 = vst.msk [vmem:[%s2109_s29 + $0x38] sm:$0xff] %vm1390_vm4, %v2063_v39  ;;  %1414 = vst.msk [vmem:[%s2109_s29 + $0xb8] sm:$0xff] %vm1390_vm4, %v2137_v26  ;;  %v839_v53 = vadd.f32 %v2095_v55, %v800_v18  ;;  %v855_v23 = vadd.f32 %v2095_v55, %v816_v19  ;;  %v803_v39 = vmul.f32 %v1622_v21, %v2088_v52  ;;  %v1175_v28 = vmax.f32 %v841_v37, 0.0  ;;  %v1355_v10 = vpop.permute.xlu0 %1354  ;;  %v1357_v18 = vpop.permute.xlu1 %1356 }
  0xee   : > { %1203 = vst.msk [vmem:[%s2109_s29 + $0x28] sm:$0xff] %vm1197_vm3, %v1170_v16  ;;  %1219 = vst.msk [vmem:[%s2109_s29 + $0xa8] sm:$0xff] %vm1197_vm3, %v1186_v17  ;;  %v819_v24 = vmul.f32 %v1638_v22, %v2088_v52  ;;  %v1191_v26 = vmax.f32 %v857_v20, 0.0  ;;  %v693_v29 = vpop.f32.mrf.mxu0  ;;  %v757_v30 = vpop.f32.mrf.mxu1 }
  0xef   : > { %1396 = vst.msk [vmem:[%s2109_s29 + $0x28] sm:$0xff] %vm1390_vm4, %v2059_v33  ;;  %1412 = vst.msk [vmem:[%s2109_s29 + $0xa8] sm:$0xff] %vm1390_vm4, %v2103_v1  ;;  %v1173_v31 = vmax.f32 %v839_v53, 0.0  ;;  %v1189_v32 = vmax.f32 %v855_v23, 0.0  ;;  %v842_v25 = vadd.f32 %v2095_v55, %v803_v39  ;;  %v801_v33 = vmul.f32 %v2088_v52, %v693_v29 }
  0xf0   : > { %v858_v50 = vadd.f32 %v2095_v55, %v819_v24  ;;  %1208 = vst.msk [vmem:[%s2109_s29 + $0x50] sm:$0xff] %vm1197_vm3, %v1175_v28  ;;  %1224 = vst.msk [vmem:[%s2109_s29 + $0xd0] sm:$0xff] %vm1197_vm3, %v1191_v26  ;;  %v817_v1 = vmul.f32 %v2088_v52, %v757_v30  ;;  %v1625_v48 = vpop.f32.mrf.mxu0  ;;  %v1641_v56 = vpop.f32.mrf.mxu1 }
  0xf1   : > { %1401 = vst.msk [vmem:[%s2109_s29 + $0x50] sm:$0xff] %vm1390_vm4, %v2069_v42  ;;  %v1176_v57 = vmax.f32 %v842_v25, 0.0  ;;  %v806_v59 = vmul.f32 %v1625_v48, %v2088_v52  ;;  %v822_v60 = vmul.f32 %v1641_v56, %v2088_v52  ;;  %1417 = vst.msk [vmem:[%s2109_s29 + $0xd0] sm:$0xff] %vm1390_vm4, %v1347_v13  ;;  %v840_v61 = vadd.f32 %v2095_v55, %v801_v33 }
  0xf2   : > { %1206 = vst.msk [vmem:[%s2109_s29 + $0x40] sm:$0xff] %vm1197_vm3, %v1173_v31  ;;  %1222 = vst.msk [vmem:[%s2109_s29 + $0xc0] sm:$0xff] %vm1197_vm3, %v1189_v32  ;;  %v1192_v58 = vmax.f32 %v858_v50, 0.0  ;;  %v856_v42 = vadd.f32 %v2095_v55, %v817_v1  ;;  %v706_v35 = vpop.f32.mrf.mxu0  ;;  %v770_v62 = vpop.f32.mrf.mxu1 }
  0xf3   : > { %1399 = vst.msk [vmem:[%s2109_s29 + $0x40] sm:$0xff] %vm1390_vm4, %v2065_v40  ;;  %1415 = vst.msk [vmem:[%s2109_s29 + $0xc0] sm:$0xff] %vm1390_vm4, %v2146_v54  ;;  %v845_v63 = vadd.f32 %v2095_v55, %v806_v59  ;;  %v861_v0 = vadd.f32 %v2095_v55, %v822_v60  ;;  %v804_v40 = vmul.f32 %v2088_v52, %v706_v35  ;;  %v1174_v54 = vmax.f32 %v840_v61, 0.0 }
  0xf4   : > { %1209 = vst.msk [vmem:[%s2109_s29 + $0x58] sm:$0xff] %vm1197_vm3, %v1176_v57  ;;  %1225 = vst.msk [vmem:[%s2109_s29 + $0xd8] sm:$0xff] %vm1197_vm3, %v1192_v58  ;;  %v820_v2 = vmul.f32 %v2088_v52, %v770_v62  ;;  %v1190_v36 = vmax.f32 %v856_v42, 0.0  ;;  %v1626_v49 = vpop.f32.mrf.mxu0  ;;  %v1642_v4 = vpop.f32.mrf.mxu1 }
  0xf5   : > { %1402 = vst.msk [vmem:[%s2109_s29 + $0x58] sm:$0xff] %vm1390_vm4, %v2071_v43  ;;  %1418 = vst.msk [vmem:[%s2109_s29 + $0xd8] sm:$0xff] %vm1390_vm4, %v1349_v27  ;;  %v1179_v5 = vmax.f32 %v845_v63, 0.0  ;;  %v1195_v6 = vmax.f32 %v861_v0, 0.0  ;;  %v843_v7 = vadd.f32 %v2095_v55, %v804_v40  ;;  %v807_v43 = vmul.f32 %v1626_v49, %v2088_v52 }
  0xf6   : > { %v859_v9 = vadd.f32 %v2095_v55, %v820_v2  ;;  %1207 = vst.msk [vmem:[%s2109_s29 + $0x48] sm:$0xff] %vm1197_vm3, %v1174_v54  ;;  %1223 = vst.msk [vmem:[%s2109_s29 + $0xc8] sm:$0xff] %vm1197_vm3, %v1190_v36  ;;  %v823_v11 = vmul.f32 %v1642_v4, %v2088_v52  ;;  %v709_v12 = vpop.f32.mrf.mxu0  ;;  %v773_v13 = vpop.f32.mrf.mxu1 }
  0xf7   : > { %1400 = vst.msk [vmem:[%s2109_s29 + $0x48] sm:$0xff] %vm1390_vm4, %v2067_v41  ;;  %1416 = vst.msk [vmem:[%s2109_s29 + $0xc8] sm:$0xff] %vm1390_vm4, %v2182_v3  ;;  %v1177_v38 = vmax.f32 %v843_v7, 0.0  ;;  %v805_v15 = vmul.f32 %v2088_v52, %v709_v12  ;;  %v821_v8 = vmul.f32 %v2088_v52, %v773_v13  ;;  %v846_v41 = vadd.f32 %v2095_v55, %v807_v43 }
  0xf8   : > { %1212 = vst.msk [vmem:[%s2109_s29 + $0x70] sm:$0xff] %vm1197_vm3, %v1179_v5  ;;  %1228 = vst.msk [vmem:[%s2109_s29 + $0xf0] sm:$0xff] %vm1197_vm3, %v1195_v6  ;;  %v1193_v14 = vmax.f32 %v859_v9, 0.0  ;;  %v862_v16 = vadd.f32 %v2095_v55, %v823_v11 }
  0xf9   : > { %1405 = vst.msk [vmem:[%s2109_s29 + $0x70] sm:$0xff] %vm1390_vm4, %v2077_v46  ;;  %1421 = vst.msk [vmem:[%s2109_s29 + $0xf0] sm:$0xff] %vm1390_vm4, %v1355_v10  ;;  %v844_v52 = vadd.f32 %v2095_v55, %v805_v15  ;;  %v860_v46 = vadd.f32 %v2095_v55, %v821_v8  ;;  %v1180_v3 = vmax.f32 %v846_v41, 0.0 }
  0xfa   : > { %1210 = vst.msk [vmem:[%s2109_s29 + $0x60] sm:$0xff] %vm1197_vm3, %v1177_v38  ;;  %1226 = vst.msk [vmem:[%s2109_s29 + $0xe0] sm:$0xff] %vm1197_vm3, %v1193_v14  ;;  %v1196_v17 = vmax.f32 %v862_v16, 0.0 }
  0xfb   : > { %1403 = vst.msk [vmem:[%s2109_s29 + $0x60] sm:$0xff] %vm1390_vm4, %v2073_v44  ;;  %1419 = vst.msk [vmem:[%s2109_s29 + $0xe0] sm:$0xff] %vm1390_vm4, %v2234_v34  ;;  %v1178_v19 = vmax.f32 %v844_v52, 0.0  ;;  %v1194_v37 = vmax.f32 %v860_v46, 0.0 }
  0xfc   : > { %1213 = vst.msk [vmem:[%s2109_s29 + $0x78] sm:$0xff] %vm1197_vm3, %v1180_v3  ;;  %1229 = vst.msk [vmem:[%s2109_s29 + $0xf8] sm:$0xff] %vm1197_vm3, %v1196_v17 }
  0xfd   : > { %1406 = vst.msk [vmem:[%s2109_s29 + $0x78] sm:$0xff] %vm1390_vm4, %v2079_v47  ;;  %1422 = vst.msk [vmem:[%s2109_s29 + $0xf8] sm:$0xff] %vm1390_vm4, %v1357_v18 }
  0xfe   : > { %1211 = vst.msk [vmem:[%s2109_s29 + $0x68] sm:$0xff] %vm1197_vm3, %v1178_v19  ;;  %1227 = vst.msk [vmem:[%s2109_s29 + $0xe8] sm:$0xff] %vm1197_vm3, %v1194_v37 }
  0xff   : > { %1404 = vst.msk [vmem:[%s2109_s29 + $0x68] sm:$0xff] %vm1390_vm4, %v2075_v45  ;;  %1420 = vst.msk [vmem:[%s2109_s29 + $0xe8] sm:$0xff] %vm1390_vm4, %v1353_v51 }
 0x100 PF: > { %s20_s13 = sadd.s32 1, %s1681_s13  }
 0x101   : > { %p17_p4 = scmp.ge.s32.totalorder %s20_s13, 4  }
 0x103   :  { %19 = sbr.rel (!%p17_p4) target bundleno = 1 (0x1), region = 102 }

// kernel: _lambda_.18
= control target key start
LH: loop header
LB: loop body
LE: loop exit
PB: predicated region body
PF: predicated region fallthrough
CT: control target
= control target key end

     0   :  { %s1084_s13 = smov 0   ;;  %s1294_s0 = inlined_call_operand.vmem [shape: bf16[2,64,144], index: 0, kind: input, shape index: {}]   ;;  %s1295_s1 = inlined_call_operand.vmem [shape: bf16[144,48], index: 1, kind: input, shape index: {}]   ;;  %s1296_s2 = inlined_call_operand.vmem [shape: f32[2,64,16], index: 2, kind: input, shape index: {}]   ;;  %s1297_s3 = inlined_call_operand.vmem [shape: f32[2,64,16], index: 3, kind: input, shape index: {}]   ;;  %s1298_s4 = inlined_call_operand.vmem [shape: f32[2,64,16], index: 4, kind: input, shape index: {}]   ;;  %s1299_s5 = inlined_call_operand.vmem [shape: f32[2,64,16], index: 5, kind: input, shape index: {}]   ;;  %s1300_s6 = inlined_call_operand.vmem [shape: f32[1,48], index: 6, kind: input, shape index: {}]   ;;  %s1301_s7 = inlined_call_operand.vmem [shape: f32[1,48], index: 7, kind: input, shape index: {}]   ;;  %s1302_s8 = inlined_call_operand.vmem [shape: f32[1,16], index: 8, kind: input, shape index: {}]   ;;  %s1303_s9 = inlined_call_operand.vmem [shape: f32[1,16], index: 9, kind: input, shape index: {}]   ;;  %s1304_s10 = inlined_call_operand.vmem [shape: f32[2,64,64], index: 10, kind: output, shape index: {}]  }
   0x1 LB: > { %s920_s14 = sadd.s32 4294967295, %s1025_s13   ;;  %p924_p0 = scmp.ge.s32.totalorder %s1025_s13, 1  ;;  %s1025_s13 = sphi %s1084_s13, %s20_s13  }
   0x2   : > { %p352_p1 = scmp.lt.s32.totalorder %s1025_s13, 3 }
   0x4   : > { %p353_p2 = pnand %p924_p0, %p352_p1 }
   0x5   : > { %p410_p3 = scmp.lt.s32.totalorder (!%p353_p2), %s920_s14, 1 }
   0x6   : > { %356 = sbr.rel (%p353_p2) target bundleno = 261 (0x105), region = 60 }
   0xb   : > { %v998_v0 = vld [vmem:[%s1295_s1 + $0x38] sm:$0xff]   ;;  %v1027_v1 = vmov 0   ;;  %v999_v2 = vld [vmem:[%s1295_s1 + $0x30] sm:$0xff]   ;;  %s1306_s14 = smov (!%p410_p3, %s920_s14), 1  ;;  %v1000_v3 = vld [vmem:[%s1295_s1 + $0x28] sm:$0xff]   ;;  %vm557_vm0 = vcmask 130048  }
   0xc   : > { %570 = vmatprep.subr.bf16.mxu0 %v1027_v1  ;;  %970 = vmatprep.subr.bf16.mxu1 %v1027_v1  ;;  %s1102_s19 = sshll.u32 %s1306_s14, 6  ;;  %v1001_v4 = vld [vmem:[%s1295_s1 + $0x20] sm:$0xff]   ;;  %v1002_v7 = vld [vmem:[%s1295_s1 + $0x18] sm:$0xff]   ;;  %v1003_v13 = vld [vmem:[%s1295_s1 + $0x10] sm:$0xff]   ;;  %vm759_vm1 = vcmask 392192   ;;  %vm808_vm2 = vcmask 523648  }
   0xd   : > { %571 = vmatpush1.bf16.msra.mxu0 %v998_v0  ;;  %979 = vmatpush1.bf16.msra.mxu1 %v998_v0  ;;  %s1113_s24 = scalar_lea.vmem %s1294_s0, %s1102_s19  ;;  %s1126_s29 = scalar_lea.vmem %s1296_s2, %s1102_s19  ;;  %v1163_v15 = vld [vmem:[%s1302_s8] ss:$0 sm:$0xff]  ;;  %v1004_v33 = vld [vmem:[%s1295_s1 + $0x8] sm:$0xff]  }
   0xe   : > { %572 = vmatprep.subr.bf16.mxu0 %v1027_v1  ;;  %971 = vmatprep.subr.bf16.mxu1 %v1027_v1  ;;  %v1009_v5 = vld [vmem:[%s1113_s24 + $0x4] ss:$8 sps:$4 sm:$0xff]   ;;  %s1132_s12 = scalar_lea.vmem %s1297_s3, %s1102_s19  ;;  %s1139_s16 = scalar_lea.vmem %s1298_s4, %s1102_s19  ;;  %v667_v8 = vld [vmem:[%s1126_s29 + $0x10] sm:$0xff]  ;;  %v1170_v18 = vld [vmem:[%s1303_s9] ss:$0 sm:$0xff] }
   0xf   : > { %v1012_v6 = vld [vmem:[%s1113_s24 + $0x24] ss:$8 sps:$4 sm:$0xff]   ;;  %954 = vmatprep.mubr.msk.bf16.mxu0 %vm557_vm0, %v1009_v5  ;;  %s1145_s20 = scalar_lea.vmem %s1299_s5, %s1102_s19  ;;  %v675_v9 = vld [vmem:[%s1132_s12 + $0x10] sm:$0xff]  ;;  %v668_v22 = vld [vmem:[%s1126_s29 + $0x18] sm:$0xff]  ;;  %s1257_s25 = scalar_lea.vmem %s1304_s10, %s1102_s19 }
  0x10   : > { %956 = vmatprep.mubr.msk.bf16.mxu1 %vm557_vm0, %v1012_v6  ;;  %v683_v10 = vmax.f32 %v667_v8, %v675_v9  ;;  %v691_v11 = vld [vmem:[%s1139_s16 + $0x10] sm:$0xff]  ;;  %v665_v16 = vld [vmem:[%s1126_s29] sm:$0xff]  ;;  %v676_v25 = vld [vmem:[%s1132_s12 + $0x18] sm:$0xff] }
  0x11   : > { %573 = vmatpush1.bf16.msra.mxu0 %v999_v2  ;;  %980 = vmatpush1.bf16.msra.mxu1 %v999_v2  ;;  %v699_v12 = vld [vmem:[%s1145_s20 + $0x10] sm:$0xff]  ;;  %v673_v17 = vld [vmem:[%s1132_s12] sm:$0xff]  ;;  %v692_v26 = vld [vmem:[%s1139_s16 + $0x18] sm:$0xff]  ;;  %v684_v28 = vmax.f32 %v668_v22, %v676_v25 }
  0x12   : > { %574 = vmatprep.subr.bf16.mxu0 %v1027_v1  ;;  %972 = vmatprep.subr.bf16.mxu1 %v1027_v1  ;;  %v707_v14 = vmax.f32 %v691_v11, %v699_v12  ;;  %v681_v19 = vmax.f32 %v665_v16, %v673_v17  ;;  %v689_v20 = vld [vmem:[%s1139_s16] sm:$0xff]  ;;  %v700_v27 = vld [vmem:[%s1145_s20 + $0x18] sm:$0xff]  ;;  %v666_v30 = vld [vmem:[%s1126_s29 + $0x8] sm:$0xff] }
  0x13   : > { %v697_v21 = vld [vmem:[%s1145_s20] sm:$0xff]  ;;  %v708_v29 = vmax.f32 %v692_v26, %v700_v27  ;;  %v674_v31 = vld [vmem:[%s1132_s12 + $0x8] sm:$0xff]  ;;  %v672_v55 = vld [vmem:[%s1126_s29 + $0x38] sm:$0xff] }
  0x14   : > { %v715_v23 = vmax.f32 %v683_v10, %v707_v14  ;;  %v705_v24 = vmax.f32 %v689_v20, %v697_v21  ;;  %v690_v32 = vld [vmem:[%s1139_s16 + $0x8] sm:$0xff]  ;;  %v682_v36 = vmax.f32 %v666_v30, %v674_v31  ;;  %v669_v45 = vld [vmem:[%s1126_s29 + $0x20] sm:$0xff]  ;;  %v680_v56 = vld [vmem:[%s1132_s12 + $0x38] sm:$0xff] }
  0x15   : > { %575 = vmatpush1.bf16.msra.mxu0 %v1000_v3  ;;  %981 = vmatpush1.bf16.msra.mxu1 %v1000_v3  ;;  %v698_v37 = vld [vmem:[%s1145_s20 + $0x8] sm:$0xff]  ;;  %v716_v40 = vmax.f32 %v684_v28, %v708_v29  ;;  %v677_v49 = vld [vmem:[%s1132_s12 + $0x20] sm:$0xff]  ;;  %v696_v57 = vld [vmem:[%s1139_s16 + $0x38] sm:$0xff] }
  0x16   : > { %576 = vmatprep.subr.bf16.mxu0 %v1027_v1  ;;  %973 = vmatprep.subr.bf16.mxu1 %v1027_v1  ;;  %v730_v34 = vmul.f32 %v1163_v15, %v715_v23  ;;  %v713_v35 = vmax.f32 %v681_v19, %v705_v24  ;;  %v670_v38 = vld [vmem:[%s1126_s29 + $0x28] sm:$0xff]  ;;  %v706_v41 = vmax.f32 %v690_v32, %v698_v37  ;;  %v693_v50 = vld [vmem:[%s1139_s16 + $0x20] sm:$0xff]  ;;  %v704_v62 = vld [vmem:[%s1145_s20 + $0x38] sm:$0xff] }
  0x17   : > { %v678_v39 = vld [vmem:[%s1132_s12 + $0x28] sm:$0xff]  ;;  %v701_v51 = vld [vmem:[%s1145_s20 + $0x20] sm:$0xff]  ;;  %v731_v52 = vmul.f32 %v1163_v15, %v716_v40  ;;  %v685_v54 = vmax.f32 %v669_v45, %v677_v49  ;;  %v671_v63 = vld [vmem:[%s1126_s29 + $0x30] sm:$0xff]  ;;  %v712_v5 = vmax.f32 %v696_v57, %v704_v62  ;;  %s1028_s29 = smov 48  }
  0x18   : > { %v686_v42 = vmax.f32 %v670_v38, %v678_v39  ;;  %v694_v43 = vld [vmem:[%s1139_s16 + $0x28] sm:$0xff]  ;;  %v745_v46 = vadd.f32 %v1170_v18, %v730_v34  ;;  %v728_v47 = vmul.f32 %v1163_v15, %v713_v35  ;;  %v714_v53 = vmax.f32 %v682_v36, %v706_v41  ;;  %v679_v0 = vld [vmem:[%s1132_s12 + $0x30] sm:$0xff]  ;;  %v1005_v8 = vld [vmem:[%s1295_s1] sm:$0xff]  }
  0x19   : > { %577 = vmatpush1.bf16.msra.mxu0 %v1001_v4  ;;  %982 = vmatpush1.bf16.msra.mxu1 %v1001_v4  ;;  %v702_v44 = vld [vmem:[%s1145_s20 + $0x28] sm:$0xff]  ;;  %v709_v61 = vmax.f32 %v693_v50, %v701_v51  ;;  %v746_v2 = vadd.f32 %v1170_v18, %v731_v52  ;;  %v688_v4 = vmax.f32 %v672_v55, %v680_v56  ;;  %v695_v6 = vld [vmem:[%s1139_s16 + $0x30] sm:$0xff]  ;;  %v1006_v24 = vld [vmem:[%s1295_s1 + $0x40] sm:$0xff]  }
  0x1a   : > { %578 = vmatprep.subr.bf16.mxu0 %v1027_v1  ;;  %974 = vmatprep.subr.bf16.mxu1 %v1027_v1  ;;  %v710_v48 = vmax.f32 %v694_v43, %v702_v44  ;;  %v770_v58 = vmax.f32 %v745_v46, 0.0  ;;  %v743_v59 = vadd.f32 %v1170_v18, %v728_v47  ;;  %v729_v3 = vmul.f32 %v1163_v15, %v714_v53  ;;  %v1007_v30 = vld [vmem:[%s1113_s24] ss:$8 sps:$4 sm:$0xff]   ;;  %v1018_v35 = vld [vmem:[%s1113_s24 + $0x30] ss:$8 sps:$4 sm:$0xff]  }
  0x1b   : > { %v717_v11 = vmax.f32 %v685_v54, %v709_v61  ;;  %v687_v12 = vmax.f32 %v671_v63, %v679_v0  ;;  %v720_v14 = vmax.f32 %v688_v4, %v712_v5  ;;  %v771_v17 = vmax.f32 %v746_v2, 0.0  ;;  %v1010_v31 = vld [vmem:[%s1113_s24 + $0x20] ss:$8 sps:$4 sm:$0xff]  }
  0x1c   : > { %v718_v60 = vmax.f32 %v686_v42, %v710_v48  ;;  %v768_v9 = vmax.f32 %v743_v59, 0.0  ;;  %788 = vrot.lane.b32.xlu1 %v770_v58, %s1028_s29  ;;  %v958_v38 = vld [vmem:[%s1300_s6] ss:$0 sm:$0xff] }
  0x1d   : > { %579 = vmatpush1.bf16.msra.mxu0 %v1002_v7  ;;  %983 = vmatpush1.bf16.msra.mxu1 %v1002_v7  ;;  %v703_v7 = vld [vmem:[%s1145_s20 + $0x30] sm:$0xff]  ;;  %v732_v20 = vmul.f32 %v1163_v15, %v717_v11  ;;  %v735_v22 = vmul.f32 %v1163_v15, %v720_v14  ;;  %v959_v41 = vld [vmem:[%s1301_s7] ss:$0 sm:$0xff] }
  0x1e   : > { %580 = vmatprep.subr.bf16.mxu0 %v1027_v1  ;;  %975 = vmatprep.subr.bf16.mxu1 %v1027_v1  ;;  %v733_v10 = vmul.f32 %v1163_v15, %v718_v60  ;;  %v711_v16 = vmax.f32 %v695_v6, %v703_v7 }
  0x1f   : > { %784 = vrot.lane.b32.xlu0 %v768_v9, %s1028_s29  ;;  %v747_v25 = vadd.f32 %v1170_v18, %v732_v20  ;;  %v750_v29 = vadd.f32 %v1170_v18, %v735_v22 }
  0x20   : > { %v748_v19 = vadd.f32 %v1170_v18, %v733_v10  ;;  %v719_v23 = vmax.f32 %v687_v12, %v711_v16  ;;  %790 = vrot.lane.b32.xlu1 %v771_v17, %s1028_s29 }
  0x21   : > { %581 = vmatpush1.bf16.msra.mxu0 %v1003_v13  ;;  %984 = vmatpush1.bf16.msra.mxu1 %v1003_v13  ;;  %v744_v13 = vadd.f32 %v1170_v18, %v729_v3  ;;  %v772_v28 = vmax.f32 %v747_v25, 0.0 }
  0x22   : > { %582 = vmatprep.subr.bf16.mxu0 %v1027_v1  ;;  %976 = vmatprep.subr.bf16.mxu1 %v1027_v1  ;;  %v734_v26 = vmul.f32 %v1163_v15, %v719_v23  ;;  %v773_v27 = vmax.f32 %v748_v19, 0.0  ;;  %v775_v15 = vmax.f32 %v750_v29, 0.0 }
  0x23   : > { %v769_v21 = vmax.f32 %v744_v13, 0.0 }
  0x24   : > { %v749_v32 = vadd.f32 %v1170_v18, %v734_v26  ;;  %794 = vrot.lane.b32.xlu1 %v773_v27, %s1028_s29  ;;  %v1017_v18 = vld [vmem:[%s1113_s24 + $0x10] ss:$8 sps:$4 sm:$0xff]  }
  0x25   : > { %583 = vmatpush1.bf16.msra.mxu0 %v1004_v33  ;;  %985 = vmatpush1.bf16.msra.mxu1 %v1004_v33  ;;  %v1013_v33 = vld [vmem:[%s1113_s24 + $0x14] ss:$8 sps:$4 sm:$0xff]  }
  0x26   : > { %584 = vmatprep.subr.bf16.mxu0 %v1027_v1  ;;  %977 = vmatprep.subr.bf16.mxu1 %v1027_v1  ;;  %v774_v34 = vmax.f32 %v749_v32, 0.0 }
  0x27   : > { %786 = vrot.lane.b32.xlu0 %v769_v21, %s1028_s29 }
  0x28   : > { %798 = vrot.lane.b32.xlu1 %v775_v15, %s1028_s29 }
  0x29   : > { %585 = vmatpush1.bf16.msra.mxu0 %v1005_v8  ;;  %986 = vmatpush1.bf16.msra.mxu1 %v1005_v8 }
  0x2a   : > { %600 = vmatprep.subr.bf16.mxu0 %v1027_v1  ;;  %978 = vmatprep.subr.bf16.mxu1 %v1027_v1  ;;  %v1015_v1 = vld [vmem:[%s1113_s24 + $0x34] ss:$8 sps:$4 sm:$0xff]  }
  0x2b   : > { %792 = vrot.lane.b32.xlu0 %v772_v28, %s1028_s29 }
  0x2d   : > { %601 = vmatpush2.bf16.msra.mxu0 %v1006_v24  ;;  %987 = vmatpush2.bf16.msra.mxu1 %v1006_v24 }
  0x2f   : > { %796 = vrot.lane.b32.xlu0 %v774_v34, %s1028_s29 }
  0x30   : > { %603 = vmatmul.mubr.bf16.vlgmr.msra.gmra.mxu0 %v1007_v30  ;;  %619 = vmatmul.mubr.bf16.vlgmr.msra.gmra.mxu1 %v1010_v31 }
  0x31   : > { %955 = vmatprep.mubr.msk.bf16.mxu0 %vm557_vm0, %v1013_v33  ;;  %957 = vmatprep.mubr.msk.bf16.mxu1 %vm557_vm0, %v1015_v1 }
  0x38   : > { %611 = vmatmul.mubr.bf16.gmra.mxu0 %v1017_v18  ;;  %627 = vmatmul.mubr.bf16.gmra.mxu1 %v1018_v35 }
  0x8e   : > { %v789_v37 = vpop.permute.xlu1 %788 }
  0x91   : > { %v785_v36 = vpop.permute.xlu0 %784 }
  0x92   : > { %v791_v49 = vpop.permute.xlu1 %790 }
  0x96   : > { %v795_v4 = vpop.permute.xlu1 %794 }
  0x99   : > { %v787_v39 = vpop.permute.xlu0 %786 }
  0x9a   : > { %v799_v24 = vpop.permute.xlu1 %798 }
  0x9d   : > { %v793_v56 = vpop.permute.xlu0 %792 }
  0xa1   : > { %v797_v16 = vpop.permute.xlu0 %796 }
  0xf0   : > { %v604_v40 = vpop.f32.mrf.mxu0  ;;  %v620_v42 = vpop.f32.mrf.mxu1 }
  0xf1   : > { %v642_v43 = vmul.f32 %v958_v38, %v604_v40  ;;  %v646_v44 = vmul.f32 %v958_v38, %v620_v42 }
  0xf2   : > { %v606_v45 = vpop.f32.mrf.mxu0  ;;  %v622_v46 = vpop.f32.mrf.mxu1 }
  0xf3   : > { %v657_v47 = vadd.f32 %v959_v41, %v642_v43  ;;  %v661_v48 = vadd.f32 %v959_v41, %v646_v44 }
  0xf4   : > { %v607_v50 = vpop.f32.mrf.mxu0  ;;  %v623_v51 = vpop.f32.mrf.mxu1 }
  0xf5   : > { %v751_v52 = vmax.f32 %v657_v47, 0.0  ;;  %v755_v53 = vmax.f32 %v661_v48, 0.0  ;;  %v643_v54 = vmul.f32 %v958_v38, %v607_v50  ;;  %v647_v55 = vmul.f32 %v958_v38, %v623_v51 }
  0xf6   : > { %v609_v57 = vpop.f32.mrf.mxu0  ;;  %v625_v58 = vpop.f32.mrf.mxu1 }
  0xf7   : > { %v658_v59 = vadd.f32 %v959_v41, %v643_v54  ;;  %v662_v60 = vadd.f32 %v959_v41, %v647_v55  ;;  %760 = vst.msk [vmem:[%s1257_s25] sm:$0xff] %vm759_vm1, %v751_v52  ;;  %764 = vst.msk [vmem:[%s1257_s25 + $0x20] sm:$0xff] %vm759_vm1, %v755_v53 }
  0xf8   : > { %809 = vst.msk [vmem:[%s1257_s25] sm:$0xff] %vm808_vm2, %v785_v36  ;;  %v612_v61 = vpop.f32.mrf.mxu0  ;;  %v628_v62 = vpop.f32.mrf.mxu1  ;;  %813 = vst.msk [vmem:[%s1257_s25 + $0x20] sm:$0xff] %vm808_vm2, %v793_v56 }
  0xf9   : > { %v752_v63 = vmax.f32 %v658_v59, 0.0  ;;  %v756_v0 = vmax.f32 %v662_v60, 0.0  ;;  %v644_v2 = vmul.f32 %v958_v38, %v612_v61  ;;  %v648_v3 = vmul.f32 %v958_v38, %v628_v62 }
  0xfa   : > { %v614_v5 = vpop.f32.mrf.mxu0  ;;  %v630_v6 = vpop.f32.mrf.mxu1 }
  0xfb   : > { %761 = vst.msk [vmem:[%s1257_s25 + $0x8] sm:$0xff] %vm759_vm1, %v752_v63  ;;  %765 = vst.msk [vmem:[%s1257_s25 + $0x28] sm:$0xff] %vm759_vm1, %v756_v0  ;;  %v659_v7 = vadd.f32 %v959_v41, %v644_v2  ;;  %v663_v8 = vadd.f32 %v959_v41, %v648_v3 }
  0xfc   : > { %810 = vst.msk [vmem:[%s1257_s25 + $0x8] sm:$0xff] %vm808_vm2, %v787_v39  ;;  %v615_v9 = vpop.f32.mrf.mxu0  ;;  %v631_v10 = vpop.f32.mrf.mxu1  ;;  %814 = vst.msk [vmem:[%s1257_s25 + $0x28] sm:$0xff] %vm808_vm2, %v795_v4 }
  0xfd   : > { %v753_v11 = vmax.f32 %v659_v7, 0.0  ;;  %v757_v12 = vmax.f32 %v663_v8, 0.0  ;;  %v645_v13 = vmul.f32 %v958_v38, %v615_v9  ;;  %v649_v14 = vmul.f32 %v958_v38, %v631_v10 }
  0xfe   : > { %v617_v17 = vpop.f32.mrf.mxu0  ;;  %v633_v19 = vpop.f32.mrf.mxu1 }
  0xff   : > { %762 = vst.msk [vmem:[%s1257_s25 + $0x10] sm:$0xff] %vm759_vm1, %v753_v11  ;;  %766 = vst.msk [vmem:[%s1257_s25 + $0x30] sm:$0xff] %vm759_vm1, %v757_v12  ;;  %v660_v20 = vadd.f32 %v959_v41, %v645_v13  ;;  %v664_v21 = vadd.f32 %v959_v41, %v649_v14 }
 0x100   : > { %811 = vst.msk [vmem:[%s1257_s25 + $0x10] sm:$0xff] %vm808_vm2, %v789_v37  ;;  %815 = vst.msk [vmem:[%s1257_s25 + $0x30] sm:$0xff] %vm808_vm2, %v797_v16 }
 0x101   : > { %v754_v22 = vmax.f32 %v660_v20, 0.0  ;;  %v758_v23 = vmax.f32 %v664_v21, 0.0 }
 0x103   : > { %763 = vst.msk [vmem:[%s1257_s25 + $0x18] sm:$0xff] %vm759_vm1, %v754_v22  ;;  %767 = vst.msk [vmem:[%s1257_s25 + $0x38] sm:$0xff] %vm759_vm1, %v758_v23 }
 0x104   : > { %812 = vst.msk [vmem:[%s1257_s25 + $0x18] sm:$0xff] %vm808_vm2, %v791_v49  ;;  %816 = vst.msk [vmem:[%s1257_s25 + $0x38] sm:$0xff] %vm808_vm2, %v799_v24 }
 0x105 PF: > { %s20_s13 = sadd.s32 1, %s1025_s13  }
 0x106   : > { %p17_p4 = scmp.ge.s32.totalorder %s20_s13, 4  }
 0x108   :  { %19 = sbr.rel (!%p17_p4) target bundleno = 1 (0x1), region = 102 }

// kernel: _lambda_.19
= control target key start
LH: loop header
LB: loop body
LE: loop exit
PB: predicated region body
PF: predicated region fallthrough
CT: control target
= control target key end

     0   :  { %s2861_s17 = smov 0   ;;  %s3443_s0 = inlined_call_operand.vmem [shape: f32[2,64,64], index: 0, kind: input, shape index: {}]   ;;  %s3444_s1 = inlined_call_operand.vmem [shape: bf16[3,64,64], index: 1, kind: input, shape index: {}]   ;;  %s3445_s2 = inlined_call_operand.vmem [shape: f32[1,64], index: 2, kind: input, shape index: {}]   ;;  %s3446_s3 = inlined_call_operand.vmem [shape: bf16[3,64,64], index: 3, kind: input, shape index: {}]   ;;  %s3447_s4 = inlined_call_operand.vmem [shape: f32[1,64], index: 4, kind: input, shape index: {}]   ;;  %s3448_s5 = inlined_call_operand.vmem [shape: f32[1,64], index: 5, kind: input, shape index: {}]   ;;  %s3449_s6 = inlined_call_operand.vmem [shape: bf16[3,64,64], index: 6, kind: input, shape index: {}]   ;;  %s3450_s7 = inlined_call_operand.vmem [shape: f32[1,64], index: 7, kind: input, shape index: {}]   ;;  %s3451_s8 = inlined_call_operand.vmem [shape: bf16[3,64,64], index: 8, kind: input, shape index: {}]   ;;  %s3452_s9 = inlined_call_operand.vmem [shape: f32[1,64], index: 9, kind: input, shape index: {}]   ;;  %s3453_s10 = inlined_call_operand.vmem [shape: f32[1,64], index: 10, kind: input, shape index: {}]   ;;  %s3454_s11 = inlined_call_operand.vmem [shape: f32[2,64,64], index: 11, kind: output, shape index: {}]  }
   0x1 LB: > { %s2260_s18 = sadd.s32 4294967295, %s2798_s17   ;;  %p2264_p0 = scmp.ge.s32.totalorder %s2798_s17, 1  ;;  %s2798_s17 = sphi %s2861_s17, %s21_s17  }
   0x2   : > { %p337_p1 = scmp.lt.s32.totalorder %s2798_s17, 3 }
   0x4   : > { %p338_p2 = pnand %p2264_p0, %p337_p1 }
   0x5   : > { %p377_p3 = scmp.lt.s32.totalorder (!%p338_p2), %s2260_s18, 1 }
   0x6   : > { %341 = sbr.rel (%p338_p2) target bundleno = 939 (0x3ab), region = 64 }
   0xb   : > { %v2736_v0 = vld [vmem:[%s3444_s1 + $0x38] sm:$0xff]   ;;  %v2738_v2 = vld [vmem:[%s3444_s1 + $0x30] sm:$0xff]   ;;  %s3462_s18 = smov (!%p377_p3, %s2260_s18), 1  ;;  %v2740_v4 = vld [vmem:[%s3444_s1 + $0x28] sm:$0xff]   ;;  %vm502_vm0 = vcmask 523264   ;;  %v2800_v11 = vmov 0.0   ;;  %v396_v44 = vlaneseq }
   0xc   : > { %v2737_v1 = vld [vmem:[%s3444_s1 + $0x18] sm:$0xff]   ;;  %2535 = vmatprep.subr.bf16.mxu0 %v2736_v0  ;;  %v2739_v3 = vld [vmem:[%s3444_s1 + $0x10] sm:$0xff]   ;;  %s2437_s29 = sshll.u32 %s3462_s18, 6  ;;  %v2741_v5 = vld [vmem:[%s3444_s1 + $0x8] sm:$0xff]  }
   0xd   : > { %2551 = vmatprep.subr.bf16.mxu1 %v2737_v1  ;;  %2536 = vmatpush3.bf16.msra.mxu0 %v2736_v0  ;;  %s2895_s15 = scalar_lea.vmem %s3443_s0, %s2437_s29  ;;  %v2742_v6 = vld [vmem:[%s3444_s1 + $0x20] sm:$0xff]   ;;  %v2744_v15 = vld [vmem:[%s3444_s1 + $0x58] sm:$0xff]   ;;  %v2745_v19 = vld [vmem:[%s3444_s1 + $0x50] sm:$0xff]   ;;  %v2967_v48 = vshrl.u32 %v396_v44, 7  ;;  %s3404_s26 = scalar_lea.vmem %s3454_s11, %s2437_s29 }
   0xe   : > { %2552 = vmatpush3.bf16.msra.mxu1 %v2737_v1  ;;  %2537 = vmatprep.subr.bf16.mxu0 %v2738_v2  ;;  %v388_v7 = vld [vmem:[%s2895_s15] sm:$0xff]  ;;  %v389_v8 = vld [vmem:[%s2895_s15 + $0x8] sm:$0xff]  ;;  %v390_v13 = vld [vmem:[%s2895_s15 + $0x10] sm:$0xff] }
   0xf   : > { %2553 = vmatprep.subr.bf16.mxu1 %v2739_v3  ;;  %v2743_v9 = vld [vmem:[%s3444_s1] sm:$0xff]   ;;  %v465_v10 = vpack.c.bf16 %v389_v8, %v388_v7  ;;  %v453_v12 = vpack.c.bf16 %v388_v7, %v2800_v11  ;;  %v391_v14 = vld [vmem:[%s2895_s15 + $0x18] sm:$0xff]  ;;  %v393_v17 = vld [vmem:[%s2895_s15 + $0x28] sm:$0xff]  ;;  %v454_v20 = vpack.c.bf16 %v390_v13, %v389_v8  ;;  %v400_v52 = vadd.s32 24, %v2967_v48 }
  0x10   : > { %v392_v16 = vld [vmem:[%s2895_s15 + $0x20] sm:$0xff]  ;;  %v466_v18 = vpack.c.bf16 %v391_v14, %v390_v13  ;;  %v394_v23 = vld [vmem:[%s2895_s15 + $0x30] sm:$0xff]  ;;  %v395_v24 = vld [vmem:[%s2895_s15 + $0x38] sm:$0xff]  ;;  %v398_v54 = vadd.s32 8, %v2967_v48  ;;  %v399_v57 = vadd.s32 16, %v2967_v48  ;;  %v401_v60 = vadd.s32 32, %v2967_v48 }
  0x11   : > { %2538 = vmatpush3.bf16.msra.mxu0 %v2738_v2  ;;  %2543 = vmatprep.mubr.msk.bf16.mxu0 %vm502_vm0, %v465_v10  ;;  %v467_v21 = vpack.c.bf16 %v393_v17, %v392_v16  ;;  %v455_v22 = vpack.c.bf16 %v392_v16, %v391_v14  ;;  %v2746_v25 = vld [vmem:[%s3444_s1 + $0x48] sm:$0xff]   ;;  %v468_v26 = vpack.c.bf16 %v395_v24, %v394_v23  ;;  %v2747_v27 = vld [vmem:[%s3444_s1 + $0x40] sm:$0xff]   ;;  %v2748_v30 = vld [vmem:[%s3446_s3 + $0x38] sm:$0xff]   ;;  %v408_v59 = vand.u32 7, %v400_v52 }
  0x12   : > { %2554 = vmatpush3.bf16.msra.mxu1 %v2739_v3  ;;  %2539 = vmatprep.subr.bf16.mxu0 %v2740_v4  ;;  %v456_v28 = vpack.c.bf16 %v394_v23, %v393_v17  ;;  %v723_v29 = vpack.c.bf16 %v2800_v11, %v395_v24  ;;  %v2749_v31 = vld [vmem:[%s3446_s3 + $0x30] sm:$0xff]   ;;  %v2750_v32 = vld [vmem:[%s3446_s3 + $0x28] sm:$0xff]   ;;  %v2751_v33 = vld [vmem:[%s3446_s3 + $0x18] sm:$0xff]   ;;  %v405_v62 = vand.u32 7, %v2967_v48  ;;  %v406_v63 = vand.u32 7, %v398_v54 }
  0x13   : > { %2555 = vmatprep.subr.bf16.mxu1 %v2741_v5  ;;  %2559 = vmatprep.mubr.msk.bf16.mxu1 %vm502_vm0, %v453_v12  ;;  %v2752_v34 = vld [vmem:[%s3446_s3 + $0x20] sm:$0xff]   ;;  %v2753_v35 = vld [vmem:[%s3446_s3 + $0x10] sm:$0xff]   ;;  %v2958_v36 = vld [vmem:[%s3446_s3 + $0x58] sm:$0xff]   ;;  %v402_v8 = vadd.s32 40, %v2967_v48  ;;  %v2985_v12 = vadd.s32 4294967295, %v408_v59  ;;  %v409_v13 = vand.u32 7, %v401_v60 }
  0x14   : > { %v2755_v37 = vld [vmem:[%s3446_s3 + $0x8] sm:$0xff]   ;;  %v2757_v38 = vld [vmem:[%s3446_s3] sm:$0xff]   ;;  %v2989_v17 = vadd.s32 4294967295, %v406_v63  ;;  %vm873_vm1 = vcmp.lt.s32.totalorder %v2967_v48, 1  ;;  %vm1157_vm4 = vcmp.lt.s32.totalorder %v2967_v48, 7 }
  0x15   : > { %2540 = vmatpush3.bf16.msra.mxu0 %v2740_v4  ;;  %v2977_v4 = vadd.s32 56, %v2967_v48  ;;  %vm893_vm2 = vcmp.ge.s32.totalorder %v2985_v12, 0  ;;  %v3032_v52 = vadd.s32 1, %v409_v13 }
  0x16   : > { %2556 = vmatpush3.bf16.msra.mxu1 %v2741_v5  ;;  %2541 = vmatprep.subr.bf16.mxu0 %v2742_v6  ;;  %v2982_v5 = vld [vmem:[%s3445_s2] ss:$0 sm:$0xff]  ;;  %vm891_vm5 = vcmp.ge.s32.totalorder %v2989_v17, 0 }
  0x17   : > { %2557 = vmatprep.subr.bf16.mxu1 %v2743_v9  ;;  %v412_v23 = vand.u32 7, %v2977_v4  ;;  %vm1186_vm13 = vcmp.lt.s32.totalorder %v3032_v52, 8 }
  0x19   : > { %2542 = vmatpush3.bf16.msra.mxu0 %v2742_v6  ;;  %v407_v6 = vand.u32 7, %v399_v57 }
  0x1a   : > { %2558 = vmatpush3.bf16.msra.mxu1 %v2743_v9  ;;  %2567 = vmatprep.subr.bf16.mxu0 %v2744_v15 }
  0x1b   : > { %2583 = vmatprep.subr.bf16.mxu1 %v2748_v30  ;;  %v2987_v16 = vadd.s32 4294967295, %v407_v6 }
  0x1c   : > { %2544 = vmatmul.mubr.msk.bf16.vlgmr.msra.gmra.mxu0 %vm502_vm0, %v466_v18  ;;  %v2991_v18 = vadd.s32 1, %v405_v62 }
  0x1d   : > { %2560 = vmatmul.mubr.msk.bf16.vlgmr.msra.gmra.mxu1 %vm502_vm0, %v454_v20  ;;  %2568 = vmatpush3.bf16.msra.mxu0 %v2744_v15  ;;  %vm892_vm3 = vcmp.ge.s32.totalorder %v2987_v16, 0 }
  0x1e   : > { %2569 = vmatprep.subr.bf16.mxu0 %v2745_v19  ;;  %2547 = vmatprep.mubr.msk.bf16.mxu0 %vm502_vm0, %v467_v21  ;;  %vm1182_vm7 = vcmp.lt.s32.totalorder %v2991_v18, 8 }
  0x1f   : > { %2563 = vmatprep.mubr.msk.bf16.mxu1 %vm502_vm0, %v455_v22  ;;  %2584 = vmatpush3.bf16.msra.mxu1 %v2748_v30  ;;  %v3005_v30 = vadd.s32 1, %v407_v6 }
  0x20   : > { %2585 = vmatprep.subr.bf16.mxu1 %v2749_v31 }
  0x21   : > { %2570 = vmatpush3.bf16.msra.mxu0 %v2745_v19  ;;  %vm3456_vm15 = vcmp.lt.s32.totalorder %v3005_v30, 8 }
  0x22   : > { %2571 = vmatprep.subr.bf16.mxu0 %v2746_v25 }
  0x23   : > { %2586 = vmatpush3.bf16.msra.mxu1 %v2749_v31  ;;  %v3007_v31 = vadd.s32 1, %v408_v59 }
  0x24   : > { %2548 = vmatmul.mubr.msk.bf16.gmra.mxu0 %vm502_vm0, %v468_v26  ;;  %2587 = vmatprep.subr.bf16.mxu1 %v2750_v32  ;;  %v3000_v26 = vadd.s32 4294967295, %v405_v62 }
  0x25   : > { %2564 = vmatmul.mubr.msk.bf16.gmra.mxu1 %vm502_vm0, %v456_v28  ;;  %2572 = vmatpush3.bf16.msra.mxu0 %v2746_v25  ;;  %vm1185_vm11 = vcmp.lt.s32.totalorder %v3007_v31, 8 }
  0x26   : > { %2573 = vmatprep.subr.bf16.mxu0 %v2747_v27  ;;  %2575 = vmatprep.mubr.msk.bf16.mxu0 %vm502_vm0, %v454_v20  ;;  %vm890_vm6 = vcmp.ge.s32.totalorder %v3000_v26, 0 }
  0x27   : > { %2588 = vmatpush3.bf16.msra.mxu1 %v2750_v32  ;;  %v3009_v32 = vadd.s32 4294967295, %v409_v13 }
  0x28   : > { %2589 = vmatprep.subr.bf16.mxu1 %v2752_v34 }
  0x29   : > { %2574 = vmatpush3.bf16.msra.mxu0 %v2747_v27  ;;  %v3002_v27 = vadd.s32 1, %v406_v63  ;;  %vm894_vm9 = vcmp.ge.s32.totalorder %v3009_v32, 0 }
  0x2a   : > { %2599 = vmatprep.subr.bf16.mxu0 %v2751_v33 }
  0x2b   : > { %2590 = vmatpush3.bf16.msra.mxu1 %v2752_v34  ;;  %vm1183_vm8 = vcmp.lt.s32.totalorder %v3002_v27, 8  ;;  %v2783_v27 = vld [vmem:[%s3451_s8 + $0x40] sm:$0xff]  }
  0x2c   : > { %2576 = vmatmul.mubr.msk.bf16.vlgmr.msra.gmra.mxu0 %vm502_vm0, %v455_v22  ;;  %2615 = vmatprep.subr.bf16.mxu1 %v2958_v36  ;;  %v2997_v22 = vadd.s32 48, %v2967_v48 }
  0x2d   : > { %2579 = vmatprep.mubr.msk.bf16.mxu0 %vm502_vm0, %v456_v28  ;;  %2600 = vmatpush3.bf16.msra.mxu0 %v2751_v33  ;;  %v410_v28 = vand.u32 7, %v402_v8 }
  0x2e   : > { %2601 = vmatprep.subr.bf16.mxu0 %v2753_v35 }
  0x2f   : > { %v3034_v54 = vadd.s32 1, %v410_v28 }
  0x31   : > { %2602 = vmatpush3.bf16.msra.mxu0 %v2753_v35  ;;  %vm3457_vm14 = vcmp.lt.s32.totalorder %v3034_v54, 8 }
  0x32   : > { %2603 = vmatprep.subr.bf16.mxu0 %v2755_v37 }
  0x34   : > { %2580 = vmatmul.mubr.msk.bf16.gmra.mxu0 %vm502_vm0, %v723_v29 }
  0x35   : > { %2604 = vmatpush3.bf16.msra.mxu0 %v2755_v37 }
  0x36   : > { %2605 = vmatprep.subr.bf16.mxu0 %v2757_v38 }
  0x39   : > { %2606 = vmatpush3.bf16.msra.mxu0 %v2757_v38 }
  0xdc   : > { %v2545_v39 = vpop.f32.mrf.mxu0 }
  0xdd   : > { %v2561_v40 = vpop.f32.mrf.mxu1 }
  0xde   : > { %v549_v41 = vpop.f32.mrf.mxu0  ;;  %v659_v58 = vadd.f32 %v2561_v40, %v2545_v39 }
  0xdf   : > { %v650_v42 = vpop.f32.mrf.mxu1 }
  0xe0   : > { %v2546_v43 = vpop.f32.mrf.mxu0  ;;  %v651_v0 = vadd.f32 %v650_v42, %v549_v41  ;;  %v411_v42 = vand.u32 7, %v2997_v22 }
  0xe1   : > { %v2562_v46 = vpop.f32.mrf.mxu1 }
  0xe2   : > { %v552_v45 = vpop.f32.mrf.mxu0  ;;  %v662_v1 = vadd.f32 %v2562_v46, %v2546_v43  ;;  %v3023_v43 = vadd.s32 4294967295, %v412_v23  ;;  %v3041_v59 = vadd.s32 4294967295, %v411_v42 }
  0xe3   : > { %v653_v50 = vpop.f32.mrf.mxu1 }
  0xe4   : > { %v2549_v47 = vpop.f32.mrf.mxu0  ;;  %v654_v14 = vadd.f32 %v653_v50, %v552_v45  ;;  %vm896_vm12 = vcmp.ge.s32.totalorder %v3041_v59, 0 }
  0xe5   : > { %v2565_v55 = vpop.f32.mrf.mxu1 }
  0xe6   : > { %v565_v49 = vpop.f32.mrf.mxu0  ;;  %v675_v33 = vadd.f32 %v2565_v55, %v2549_v47 }
  0xe7   : > { %v666_v2 = vpop.f32.mrf.mxu1 }
  0xe8   : > { %v2550_v51 = vpop.f32.mrf.mxu0  ;;  %v667_v34 = vadd.f32 %v666_v2, %v565_v49  ;;  %v3028_v49 = vadd.s32 4294967295, %v410_v28 }
  0xe9   : > { %v2566_v19 = vpop.f32.mrf.mxu1 }
  0xea   : > { %v2970_v53 = vpop.f32.mrf.mxu0  ;;  %v678_v39 = vadd.f32 %v2566_v19, %v2550_v51  ;;  %vm3455_vm10 = vcmp.ge.s32.totalorder %v3028_v49, 0 }
  0xeb   : > { %v669_v40 = vpop.f32.mrf.mxu1 }
  0xec   : > { %v2577_v56 = vpop.f32.mrf.mxu0  ;;  %v670_v55 = vadd.f32 %v669_v40, %v2970_v53 }
  0xed   : > { %v836_v3 = vadd.f32 %v2577_v56, %v659_v58 }
  0xee   : > { %v803_v61 = vpop.f32.mrf.mxu0 }
  0xef   : > { %v834_v9 = vadd.f32 %v803_v61, %v651_v0  ;;  %v851_v20 = vadd.f32 %v2982_v5, %v836_v3 }
  0xf0   : > { %v2578_v7 = vpop.f32.mrf.mxu0 }
  0xf1   : > { %v837_v10 = vadd.f32 %v2578_v7, %v662_v1  ;;  %v849_v29 = vadd.f32 %v2982_v5, %v834_v9  ;;  %v3016_v41 = vmax.f32 %v851_v20, 0.0  ;;  %v2756_v9 = vld [vmem:[%s3446_s3 + $0x50] sm:$0xff]  }
  0xf2   : > { %v806_v15 = vpop.f32.mrf.mxu0 }
  0xf3   : > { %v852_v21 = vadd.f32 %v2982_v5, %v837_v10  ;;  %v835_v24 = vadd.f32 %v806_v15, %v654_v14  ;;  %v3030_v50 = vmax.f32 %v849_v29, 0.0  ;;  %v867_v60 = vrot.slane %v3016_v41, 7 }
  0xf4   : > { %v2581_v25 = vpop.f32.mrf.mxu0  ;;  %v1151_v61 = vrot.slane %v3016_v41, 1 }
  0xf5   : > { %v3011_v35 = vmax.f32 %v852_v21, 0.0  ;;  %v850_v37 = vadd.f32 %v2982_v5, %v835_v24  ;;  %v840_v45 = vadd.f32 %v2581_v25, %v675_v33  ;;  %v865_v3 = vrot.slane %v3030_v50, 7 }
  0xf6   : > { %v819_v38 = vpop.f32.mrf.mxu0  ;;  %v1149_v10 = vrot.slane %v3030_v50, 1 }
  0xf7   : > { %v858_v44 = vmax.f32 %v850_v37, 0.0  ;;  %v838_v46 = vadd.f32 %v819_v38, %v667_v34  ;;  %v868_v56 = vrot.slane %v3011_v35, 7  ;;  %v855_v53 = vadd.f32 %v2982_v5, %v840_v45 }
  0xf8   : > { %v2582_v47 = vpop.f32.mrf.mxu0  ;;  %v935_v6 = vpack.c.bf16 %v3011_v35, %v3016_v41  ;;  %v1152_v33 = vrot.slane %v3011_v35, 1  ;;  %v3145_v41 = vadd.s32 1, %v411_v42 }
  0xf9   : > { %v841_v51 = vadd.f32 %v2582_v47, %v678_v39  ;;  %v866_v57 = vrot.slane %v858_v44, 7  ;;  %v853_v62 = vadd.f32 %v2982_v5, %v838_v46  ;;  %v1150_v0 = vrot.slane %v858_v44, 1 }
  0xfa   : > { %v822_v58 = vpop.f32.mrf.mxu0  ;;  %v934_v2 = vpack.c.bf16 %v858_v44, %v3030_v50  ;;  %v878_v13 = vsel %vm873_vm1, %v867_v60, %v868_v56  ;;  %v3069_v24 = vmax.f32 %v855_v53, 0.0  ;;  %v2760_v50 = vld [vmem:[%s3449_s6 + $0x18] sm:$0xff]  }
  0xfb   : > { %v856_v63 = vadd.f32 %v2982_v5, %v841_v51  ;;  %v839_v1 = vadd.f32 %v822_v58, %v670_v55  ;;  %v861_v7 = vmax.f32 %v853_v62, 0.0  ;;  %v879_v14 = vsel %vm873_vm1, %v866_v57, %v867_v60 }
  0xfc   : > { %2591 = vmatprep.mubr.msk.bf16.mxu1 %vm502_vm0, %v934_v2  ;;  %v880_v21 = vsel %vm873_vm1, %v865_v3, %v866_v57  ;;  %v1164_v28 = vsel %vm1157_vm4, %v1149_v10, %v1150_v0  ;;  %v917_v29 = vsel %vm893_vm2, %v878_v13, 0.0  ;;  %v916_v34 = vsel %vm892_vm3, %v879_v14, 0.0 }
  0xfd   : > { %v3052_v8 = vmax.f32 %v856_v63, 0.0  ;;  %v854_v15 = vadd.f32 %v2982_v5, %v839_v1  ;;  %v869_v19 = vrot.slane %v861_v7, 7  ;;  %2592 = vmatmul.mubr.msk.bf16.vlgmr.msra.gmra.mxu1 %vm502_vm0, %v935_v6  ;;  %v1163_v5 = vsel %vm1157_vm4, %v1150_v0, %v1151_v61  ;;  %v2759_v0 = vld [vmem:[%s3446_s3 + $0x40] sm:$0xff]  }
  0xfe   : > { %2616 = vmatpush3.bf16.msra.mxu1 %v2958_v36  ;;  %v2758_v36 = vld [vmem:[%s3446_s3 + $0x48] sm:$0xff]   ;;  %v915_v40 = vsel %vm891_vm5, %v880_v21, 0.0  ;;  %v1153_v35 = vrot.slane %v861_v7, 1  ;;  %v1198_v46 = vsel %vm1182_vm7, %v1164_v28, 0.0  ;;  %v1199_v47 = vsel %vm1183_vm8, %v1163_v5, 0.0 }
  0xff   : > { %v872_v20 = vrot.slane %v3052_v8, 7  ;;  %v862_v25 = vmax.f32 %v854_v15, 0.0  ;;  %2617 = vmatprep.subr.bf16.mxu1 %v2756_v9  ;;  %v877_v44 = vsel %vm873_vm1, %v868_v56, %v869_v19  ;;  %v871_v51 = vrot.slane %v3069_v24, 7 }
 0x100   : > { %v923_v58 = vpack.c.bf16 %v917_v29, %v916_v34  ;;  %v937_v60 = vpack.c.bf16 %v3052_v8, %v3069_v24  ;;  %v918_v62 = vsel %vm894_vm9, %v877_v44, 0.0  ;;  %v1155_v53 = vrot.slane %v3069_v24, 1  ;;  %v2762_v34 = vld [vmem:[%s3449_s6 + $0x10] sm:$0xff]   ;;  %v3203_v44 = vld [vmem:[%s3449_s6 + $0x58] sm:$0xff]  }
 0x101   : > { %v881_v37 = vsel %vm873_vm1, %v872_v20, %v865_v3  ;;  %v870_v38 = vrot.slane %v862_v25, 7  ;;  %v936_v39 = vpack.c.bf16 %v862_v25, %v861_v7  ;;  %v1154_v55 = vrot.slane %v862_v25, 1 }
 0x102   : > { %v914_v45 = vsel %vm890_vm6, %v881_v37, 0.0  ;;  %2618 = vmatpush3.bf16.msra.mxu1 %v2756_v9  ;;  %v1206_v1 = vpack.c.bf16 %v1199_v47, %v1198_v46  ;;  %v1161_v3 = vsel %vm1157_vm4, %v1152_v33, %v1153_v35  ;;  %v1162_v13 = vsel %vm1157_vm4, %v1151_v61, %v1152_v33  ;;  %v2764_v37 = vld [vmem:[%s3449_s6 + $0x8] sm:$0xff]  }
 0x103   : > { %2595 = vmatprep.mubr.msk.bf16.mxu1 %vm502_vm0, %v936_v39  ;;  %v922_v57 = vpack.c.bf16 %v915_v40, %v914_v45  ;;  %v876_v56 = vsel %vm873_vm1, %v869_v19, %v870_v38  ;;  %2619 = vmatprep.subr.bf16.mxu1 %v2758_v36  ;;  %v875_v6 = vsel %vm873_vm1, %v870_v38, %v871_v51  ;;  %v1201_v15 = vsel %vm1185_vm11, %v1161_v3, 0.0  ;;  %v2765_v38 = vld [vmem:[%s3449_s6 + $0x28] sm:$0xff]   ;;  %v2766_v39 = vld [vmem:[%s3449_s6] sm:$0xff]  }
 0x104   : > { %v919_v63 = vsel %vm3455_vm10, %v876_v56, 0.0  ;;  %v1159_v7 = vsel %vm1157_vm4, %v1154_v55, %v1155_v53  ;;  %v1160_v9 = vsel %vm1157_vm4, %v1153_v35, %v1154_v55  ;;  %v874_v14 = vsel %vm873_vm1, %v871_v51, %v872_v20  ;;  %v2767_v40 = vld [vmem:[%s3449_s6 + $0x20] sm:$0xff]  }
 0x105   : > { %2607 = vmatprep.mubr.msk.bf16.mxu0 %vm502_vm0, %v922_v57  ;;  %v924_v2 = vpack.c.bf16 %v919_v63, %v918_v62  ;;  %2596 = vmatmul.mubr.msk.bf16.gmra.mxu1 %vm502_vm0, %v937_v60  ;;  %vm897_vm10 = vcmp.ge.s32.totalorder %v3023_v43, 0  ;;  %v920_v19 = vsel %vm896_vm12, %v875_v6, 0.0  ;;  %v1156_v61 = vrot.slane %v3052_v8, 1  ;;  %v2350_v6 = vld [vmem:[%s3447_s4] ss:$0 sm:$0xff] }
 0x106   : > { %2608 = vmatmul.mubr.msk.bf16.vlgmr.msra.gmra.mxu0 %vm502_vm0, %v923_v58  ;;  %2620 = vmatpush3.bf16.msra.mxu1 %v2758_v36  ;;  %v1202_v21 = vsel %vm1186_vm13, %v1160_v9, 0.0  ;;  %v1203_v20 = vsel %vm3457_vm14, %v1159_v7, 0.0  ;;  %v3154_v24 = vadd.s32 1, %v412_v23  ;;  %v1200_v25 = vsel %vm3456_vm15, %v1162_v13, 0.0  ;;  %v2763_v36 = vld [vmem:[%s3449_s6 + $0x30] sm:$0xff]  }
 0x107   : > { %2623 = vmatprep.mubr.msk.bf16.mxu1 %vm502_vm0, %v1206_v1  ;;  %2611 = vmatprep.mubr.msk.bf16.mxu0 %vm502_vm0, %v924_v2  ;;  %v921_v22 = vsel %vm897_vm10, %v874_v14, 0.0  ;;  %v1207_v42 = vpack.c.bf16 %v1201_v15, %v1200_v25  ;;  %v1208_v8 = vpack.c.bf16 %v1203_v20, %v1202_v21  ;;  %v1158_v28 = vsel %vm1157_vm4, %v1155_v53, %v1156_v61  ;;  %v2351_v25 = vld [vmem:[%s3448_s5] ss:$0 sm:$0xff] }
 0x108   : > { %2621 = vmatprep.subr.bf16.mxu1 %v2759_v0  ;;  %v925_v5 = vpack.c.bf16 %v921_v22, %v920_v19  ;;  %v1165_v4 = vsel %vm1157_vm4, %v1156_v61, %v1149_v10  ;;  %vm1188_vm15 = vcmp.lt.s32.totalorder %v3145_v41, 8  ;;  %vm1189_vm14 = vcmp.lt.s32.totalorder %v3154_v24, 8  ;;  %v2761_v10 = vld [vmem:[%s3449_s6 + $0x38] sm:$0xff]   ;;  %v3386_v24 = vld [vmem:[%s3452_s9] ss:$0 sm:$0xff] }
 0x109   : > { %v1204_v23 = vsel %vm1188_vm15, %v1158_v28, 0.0  ;;  %v1205_v29 = vsel %vm1189_vm14, %v1165_v4, 0.0  ;;  %2631 = vmatprep.subr.bf16.mxu0 %v2761_v10 }
 0x10a   : > { %2622 = vmatpush3.bf16.msra.mxu1 %v2759_v0  ;;  %v1209_v33 = vpack.c.bf16 %v1205_v29, %v1204_v23  ;;  %2632 = vmatpush3.bf16.msra.mxu0 %v2761_v10 }
 0x10b   : > { %2647 = vmatprep.subr.bf16.mxu1 %v2760_v50  ;;  %2633 = vmatprep.subr.bf16.mxu0 %v2763_v36 }
 0x10d   : > { %2624 = vmatmul.mubr.msk.bf16.vlgmr.msra.gmra.mxu1 %vm502_vm0, %v1207_v42 }
 0x10e   : > { %2612 = vmatmul.mubr.msk.bf16.gmra.mxu0 %vm502_vm0, %v925_v5  ;;  %2627 = vmatprep.mubr.msk.bf16.mxu1 %vm502_vm0, %v1208_v8 }
 0x10f   : > { %2648 = vmatpush3.bf16.msra.mxu1 %v2760_v50  ;;  %2634 = vmatpush3.bf16.msra.mxu0 %v2763_v36 }
 0x110   : > { %2649 = vmatprep.subr.bf16.mxu1 %v2762_v34  ;;  %2635 = vmatprep.subr.bf16.mxu0 %v2765_v38 }
 0x113   : > { %2650 = vmatpush3.bf16.msra.mxu1 %v2762_v34  ;;  %2636 = vmatpush3.bf16.msra.mxu0 %v2765_v38 }
 0x114   : > { %2651 = vmatprep.subr.bf16.mxu1 %v2764_v37  ;;  %2637 = vmatprep.subr.bf16.mxu0 %v2767_v40 }
 0x115   : > { %2628 = vmatmul.mubr.msk.bf16.gmra.mxu1 %vm502_vm0, %v1209_v33 }
 0x117   : > { %2652 = vmatpush3.bf16.msra.mxu1 %v2764_v37  ;;  %2638 = vmatpush3.bf16.msra.mxu0 %v2767_v40 }
 0x118   : > { %2653 = vmatprep.subr.bf16.mxu1 %v2766_v39  ;;  %2663 = vmatprep.subr.bf16.mxu0 %v3203_v44 }
 0x11b   : > { %2654 = vmatpush3.bf16.msra.mxu1 %v2766_v39 }
 0x1bd   : > { %v2593_v35 = vpop.f32.mrf.mxu1 }
 0x1bf   : > { %v1017_v45 = vpop.f32.mrf.mxu1 }
 0x1c1   : > { %v2594_v46 = vpop.f32.mrf.mxu1 }
 0x1c3   : > { %v1020_v47 = vpop.f32.mrf.mxu1 }
 0x1c5   : > { %v2597_v51 = vpop.f32.mrf.mxu1 }
 0x1c6   : > { %v2609_v55 = vpop.f32.mrf.mxu0 }
 0x1c7   : > { %v1033_v57 = vpop.f32.mrf.mxu1  ;;  %v1127_v0 = vadd.f32 %v2609_v55, %v2593_v35 }
 0x1c8   : > { %v1118_v56 = vpop.f32.mrf.mxu0 }
 0x1c9   : > { %v2598_v58 = vpop.f32.mrf.mxu1  ;;  %v1119_v2 = vadd.f32 %v1118_v56, %v1017_v45 }
 0x1ca   : > { %v2610_v60 = vpop.f32.mrf.mxu0 }
 0x1cb   : > { %v1036_v62 = vpop.f32.mrf.mxu1  ;;  %v1130_v9 = vadd.f32 %v2610_v60, %v2594_v46 }
 0x1cc   : > { %v1121_v63 = vpop.f32.mrf.mxu0 }
 0x1cd   : > { %v2625_v53 = vpop.f32.mrf.mxu1  ;;  %v1122_v19 = vadd.f32 %v1121_v63, %v1020_v47 }
 0x1ce   : > { %v2613_v1 = vpop.f32.mrf.mxu0  ;;  %v1322_v3 = vadd.f32 %v2625_v53, %v1127_v0 }
 0x1cf   : > { %v1289_v7 = vpop.f32.mrf.mxu1  ;;  %v1143_v4 = vadd.f32 %v2613_v1, %v2597_v51 }
 0x1d0   : > { %v1320_v13 = vadd.f32 %v1289_v7, %v1119_v2  ;;  %v1134_v14 = vpop.f32.mrf.mxu0  ;;  %v1337_v61 = vmul.f32 %v2350_v6, %v1322_v3 }
 0x1d1   : > { %v2626_v15 = vpop.f32.mrf.mxu1  ;;  %v1135_v34 = vadd.f32 %v1134_v14, %v1033_v57 }
 0x1d2   : > { %v1335_v21 = vmul.f32 %v2350_v6, %v1320_v13  ;;  %v1323_v20 = vadd.f32 %v2626_v15, %v1130_v9  ;;  %v2614_v8 = vpop.f32.mrf.mxu0  ;;  %v1352_v29 = vadd.f32 %v2351_v25, %v1337_v61  ;;  %v2769_v9 = vld [vmem:[%s3449_s6 + $0x50] sm:$0xff]  }
 0x1d3   : > { %v1292_v22 = vpop.f32.mrf.mxu1  ;;  %v1146_v39 = vadd.f32 %v2614_v8, %v2598_v58 }
 0x1d4   : > { %v1350_v42 = vadd.f32 %v2351_v25, %v1335_v21  ;;  %v1338_v5 = vmul.f32 %v2350_v6, %v1323_v20  ;;  %v1321_v28 = vadd.f32 %v1292_v22, %v1122_v19  ;;  %v1137_v35 = vpop.f32.mrf.mxu0  ;;  %v1360_v55 = vmax.f32 %v1352_v29, 0.0  ;;  %v2770_v21 = vld [vmem:[%s3449_s6 + $0x48] sm:$0xff]   ;;  %v2776_v29 = vld [vmem:[%s3451_s8 + $0x20] sm:$0xff]  }
 0x1d5   : > { %v2629_v23 = vpop.f32.mrf.mxu1  ;;  %v1138_v51 = vadd.f32 %v1137_v35, %v1036_v62 }
 0x1d6   : > { %v1358_v33 = vmax.f32 %v1350_v42, 0.0  ;;  %v1353_v50 = vadd.f32 %v2351_v25, %v1338_v5  ;;  %v1336_v10 = vmul.f32 %v2350_v6, %v1321_v28  ;;  %v1326_v36 = vadd.f32 %v2629_v23, %v1143_v4  ;;  %v2772_v28 = vld [vmem:[%s3451_s8 + $0x38] sm:$0xff]   ;;  %v2773_v4 = vld [vmem:[%s3451_s8 + $0x30] sm:$0xff]   ;;  %v2774_v23 = vld [vmem:[%s3451_s8 + $0x28] sm:$0xff]  }
 0x1d7   : > { %v1305_v37 = vpop.f32.mrf.mxu1  ;;  %2679 = vmatprep.subr.bf16.mxu1 %v2772_v28 }
 0x1d8   : > { %v1374_v38 = vpack.c.bf16 %v1358_v33, %v2800_v11  ;;  %v1351_v40 = vadd.f32 %v2351_v25, %v1336_v10  ;;  %v1361_v45 = vmax.f32 %v1353_v50, 0.0  ;;  %v1324_v46 = vadd.f32 %v1305_v37, %v1135_v34  ;;  %v3257_v50 = vld [vmem:[%s3451_s8 + $0x58] sm:$0xff]   ;;  %v2779_v10 = vld [vmem:[%s3451_s8 + $0x8] sm:$0xff]   ;;  %v2781_v34 = vld [vmem:[%s3451_s8] sm:$0xff]  }
 0x1d9   : > { %v2630_v47 = vpop.f32.mrf.mxu1  ;;  %v1341_v63 = vmul.f32 %v2350_v6, %v1326_v36 }
 0x1da   : > { %v1359_v56 = vmax.f32 %v1351_v40, 0.0  ;;  %v1327_v60 = vadd.f32 %v2630_v47, %v1146_v39  ;;  %2655 = vmatprep.mubr.msk.bf16.mxu1 %vm502_vm0, %v1374_v38  ;;  %v1339_v0 = vmul.f32 %v2350_v6, %v1324_v46  ;;  %v1387_v3 = vpack.c.bf16 %v1361_v45, %v1360_v55 }
 0x1db   : > { %v1308_v53 = vpop.f32.mrf.mxu1  ;;  %v1356_v14 = vadd.f32 %v2351_v25, %v1341_v63 }
 0x1dc   : > { %v1375_v57 = vpack.c.bf16 %v1360_v55, %v1359_v56  ;;  %v1386_v1 = vpack.c.bf16 %v1359_v56, %v1358_v33  ;;  %v1342_v2 = vmul.f32 %v2350_v6, %v1327_v60  ;;  %v1354_v7 = vadd.f32 %v2351_v25, %v1339_v0  ;;  %v2777_v33 = vld [vmem:[%s3451_s8 + $0x10] sm:$0xff]  }
 0x1dd   : > { %v1325_v58 = vadd.f32 %v1308_v53, %v1138_v51  ;;  %v1364_v22 = vmax.f32 %v1356_v14, 0.0 }
 0x1de   : > { %v1357_v13 = vadd.f32 %v2351_v25, %v1342_v2  ;;  %2639 = vmatprep.mubr.msk.bf16.mxu0 %vm502_vm0, %v1386_v1  ;;  %2656 = vmatmul.mubr.msk.bf16.vlgmr.msra.gmra.mxu1 %vm502_vm0, %v1375_v57  ;;  %v1362_v62 = vmax.f32 %v1354_v7, 0.0  ;;  %v2392_v7 = vld [vmem:[%s3450_s7] ss:$0 sm:$0xff] }
 0x1df   : > { %v1340_v15 = vmul.f32 %v2350_v6, %v1325_v58  ;;  %2640 = vmatmul.mubr.msk.bf16.vlgmr.msra.gmra.mxu0 %vm502_vm0, %v1387_v3  ;;  %2680 = vmatpush3.bf16.msra.mxu1 %v2772_v28 }
 0x1e0   : > { %2664 = vmatpush3.bf16.msra.mxu0 %v3203_v44  ;;  %v1376_v19 = vpack.c.bf16 %v1362_v62, %v1361_v45  ;;  %v1365_v20 = vmax.f32 %v1357_v13, 0.0  ;;  %v2771_v44 = vld [vmem:[%s3449_s6 + $0x40] sm:$0xff]   ;;  %2681 = vmatprep.subr.bf16.mxu1 %v2773_v4 }
 0x1e1   : > { %v1355_v61 = vadd.f32 %v2351_v25, %v1340_v15  ;;  %2665 = vmatprep.subr.bf16.mxu0 %v2769_v9 }
 0x1e2   : > { %2659 = vmatprep.mubr.msk.bf16.mxu1 %vm502_vm0, %v1376_v19  ;;  %v1389_v6 = vpack.c.bf16 %v1365_v20, %v1364_v22  ;;  %v1612_v25 = vpack.c.bf16 %v2800_v11, %v1365_v20  ;;  %v2775_v11 = vld [vmem:[%s3451_s8 + $0x18] sm:$0xff]  }
 0x1e3   : > { %v1363_v42 = vmax.f32 %v1355_v61, 0.0  ;;  %2682 = vmatpush3.bf16.msra.mxu1 %v2773_v4 }
 0x1e4   : > { %2666 = vmatpush3.bf16.msra.mxu0 %v2769_v9  ;;  %2683 = vmatprep.subr.bf16.mxu1 %v2774_v23 }
 0x1e5   : > { %v1377_v5 = vpack.c.bf16 %v1364_v22, %v1363_v42  ;;  %v1388_v8 = vpack.c.bf16 %v1363_v42, %v1362_v62  ;;  %2667 = vmatprep.subr.bf16.mxu0 %v2770_v21 }
 0x1e7   : > { %2643 = vmatprep.mubr.msk.bf16.mxu0 %vm502_vm0, %v1388_v8  ;;  %2660 = vmatmul.mubr.msk.bf16.gmra.mxu1 %vm502_vm0, %v1377_v5 }
 0x1e8   : > { %2644 = vmatmul.mubr.msk.bf16.gmra.mxu0 %vm502_vm0, %v1389_v6  ;;  %2684 = vmatpush3.bf16.msra.mxu1 %v2774_v23 }
 0x1e9   : > { %2668 = vmatpush3.bf16.msra.mxu0 %v2770_v21  ;;  %2671 = vmatprep.mubr.msk.bf16.mxu0 %vm502_vm0, %v1375_v57 }
 0x1ea   : > { %2669 = vmatprep.subr.bf16.mxu0 %v2771_v44  ;;  %2685 = vmatprep.subr.bf16.mxu1 %v2776_v29 }
 0x1ec   : > { %2686 = vmatpush3.bf16.msra.mxu1 %v2776_v29 }
 0x1ed   : > { %2670 = vmatpush3.bf16.msra.mxu0 %v2771_v44  ;;  %2711 = vmatprep.subr.bf16.mxu1 %v3257_v50 }
 0x1ee   : > { %2695 = vmatprep.subr.bf16.mxu0 %v2775_v11 }
 0x1f0   : > { %2672 = vmatmul.mubr.msk.bf16.vlgmr.msra.gmra.mxu0 %vm502_vm0, %v1376_v19 }
 0x1f1   : > { %2675 = vmatprep.mubr.msk.bf16.mxu0 %vm502_vm0, %v1377_v5  ;;  %2696 = vmatpush3.bf16.msra.mxu0 %v2775_v11 }
 0x1f2   : > { %2697 = vmatprep.subr.bf16.mxu0 %v2777_v33 }
 0x1f5   : > { %2698 = vmatpush3.bf16.msra.mxu0 %v2777_v33 }
 0x1f6   : > { %2699 = vmatprep.subr.bf16.mxu0 %v2779_v10 }
 0x1f8   : > { %2676 = vmatmul.mubr.msk.bf16.gmra.mxu0 %vm502_vm0, %v1612_v25 }
 0x1f9   : > { %2700 = vmatpush3.bf16.msra.mxu0 %v2779_v10 }
 0x1fa   : > { %2701 = vmatprep.subr.bf16.mxu0 %v2781_v34 }
 0x1fd   : > { %2702 = vmatpush3.bf16.msra.mxu0 %v2781_v34 }
 0x29e   : > { %v2657_v36 = vpop.f32.mrf.mxu1 }
 0x29f   : > { %v2641_v37 = vpop.f32.mrf.mxu0 }
 0x2a0   : > { %v1570_v39 = vpop.f32.mrf.mxu1  ;;  %v1579_v0 = vadd.f32 %v2657_v36, %v2641_v37 }
 0x2a1   : > { %v1469_v38 = vpop.f32.mrf.mxu0 }
 0x2a2   : > { %v2658_v45 = vpop.f32.mrf.mxu1  ;;  %v1571_v57 = vadd.f32 %v1570_v39, %v1469_v38 }
 0x2a3   : > { %v2642_v40 = vpop.f32.mrf.mxu0 }
 0x2a4   : > { %v1573_v55 = vpop.f32.mrf.mxu1  ;;  %v1582_v1 = vadd.f32 %v2658_v45, %v2642_v40 }
 0x2a5   : > { %v1472_v35 = vpop.f32.mrf.mxu0 }
 0x2a6   : > { %v1574_v14 = vadd.f32 %v1573_v55, %v1472_v35 }
 0x2a7   : > { %v2661_v51 = vpop.f32.mrf.mxu1 }
 0x2a8   : > { %v2645_v46 = vpop.f32.mrf.mxu0 }
 0x2a9   : > { %v1586_v2 = vpop.f32.mrf.mxu1  ;;  %v1595_v42 = vadd.f32 %v2661_v51, %v2645_v46 }
 0x2aa   : > { %v1485_v47 = vpop.f32.mrf.mxu0 }
 0x2ab   : > { %v2662_v15 = vpop.f32.mrf.mxu1  ;;  %v1587_v5 = vadd.f32 %v1586_v2, %v1485_v47 }
 0x2ac   : > { %v2646_v56 = vpop.f32.mrf.mxu0 }
 0x2ad   : > { %v1598_v25 = vadd.f32 %v2662_v15, %v2646_v56  ;;  %v1589_v28 = vpop.f32.mrf.mxu1 }
 0x2ae   : > { %v1488_v60 = vpop.f32.mrf.mxu0 }
 0x2af   : > { %v1590_v36 = vadd.f32 %v1589_v28, %v1488_v60 }
 0x2b0   : > { %v2673_v63 = vpop.f32.mrf.mxu0 }
 0x2b1   : > { %v1725_v3 = vadd.f32 %v2673_v63, %v1579_v0 }
 0x2b2   : > { %v1692_v53 = vpop.f32.mrf.mxu0 }
 0x2b3   : > { %v1723_v9 = vadd.f32 %v1692_v53, %v1571_v57  ;;  %v1740_v19 = vadd.f32 %v2392_v7, %v1725_v3  ;;  %v2780_v57 = vld [vmem:[%s3451_s8 + $0x50] sm:$0xff]  }
 0x2b4   : > { %v2674_v58 = vpop.f32.mrf.mxu0 }
 0x2b5   : > { %v1726_v13 = vadd.f32 %v2674_v58, %v1582_v1  ;;  %v1738_v22 = vadd.f32 %v2392_v7, %v1723_v9  ;;  %v3271_v4 = vmax.f32 %v1740_v19, 0.0 }
 0x2b6   : > { %v1695_v62 = vpop.f32.mrf.mxu0 }
 0x2b7   : > { %v1741_v61 = vadd.f32 %v2392_v7, %v1726_v13  ;;  %v1724_v21 = vadd.f32 %v1695_v62, %v1574_v14  ;;  %v3273_v10 = vmax.f32 %v1738_v22, 0.0  ;;  %v1756_v40 = vrot.slane %v3271_v4, 7 }
 0x2b8   : > { %v2677_v20 = vpop.f32.mrf.mxu0  ;;  %v2007_v35 = vrot.slane %v3271_v4, 1 }
 0x2b9   : > { %v3269_v8 = vmax.f32 %v1741_v61, 0.0  ;;  %v1739_v6 = vadd.f32 %v2392_v7, %v1724_v21  ;;  %v1729_v11 = vadd.f32 %v2677_v20, %v1595_v42  ;;  %v1754_v63 = vrot.slane %v3273_v10, 7 }
 0x2ba   : > { %v1708_v44 = vpop.f32.mrf.mxu0  ;;  %v2005_v1 = vrot.slane %v3273_v10, 1 }
 0x2bb   : > { %v1747_v23 = vmax.f32 %v1739_v6, 0.0  ;;  %v1727_v29 = vadd.f32 %v1708_v44, %v1587_v5  ;;  %v1757_v37 = vrot.slane %v3269_v8, 7  ;;  %v1744_v55 = vadd.f32 %v2392_v7, %v1729_v11 }
 0x2bc   : > { %v2678_v33 = vpop.f32.mrf.mxu0  ;;  %v1791_v60 = vpack.c.bf16 %v3269_v8, %v3271_v4  ;;  %v2008_v21 = vrot.slane %v3269_v8, 1 }
 0x2bd   : > { %v1730_v34 = vadd.f32 %v2678_v33, %v1598_v25  ;;  %v1755_v38 = vrot.slane %v1747_v23, 7  ;;  %v1742_v45 = vadd.f32 %v2392_v7, %v1727_v29  ;;  %v2006_v47 = vrot.slane %v1747_v23, 1 }
 0x2be   : > { %v1711_v39 = vpop.f32.mrf.mxu0  ;;  %v1790_v51 = vpack.c.bf16 %v1747_v23, %v3273_v10  ;;  %v1766_v2 = vsel %vm873_vm1, %v1756_v40, %v1757_v37  ;;  %v1752_v62 = vmax.f32 %v1744_v55, 0.0 }
 0x2bf   : > { %v1745_v46 = vadd.f32 %v2392_v7, %v1730_v34  ;;  %v1728_v56 = vadd.f32 %v1711_v39, %v1590_v36  ;;  %v1750_v0 = vmax.f32 %v1742_v45, 0.0  ;;  %v1767_v3 = vsel %vm873_vm1, %v1755_v38, %v1756_v40 }
 0x2c0   : > { %2687 = vmatprep.mubr.msk.bf16.mxu1 %vm502_vm0, %v1790_v51  ;;  %v1768_v14 = vsel %vm873_vm1, %v1754_v63, %v1755_v38  ;;  %v2018_v19 = vsel %vm1157_vm4, %v2006_v47, %v2007_v35  ;;  %v1773_v61 = vsel %vm893_vm2, %v1766_v2, 0.0  ;;  %v1772_v20 = vsel %vm892_vm3, %v1767_v3, 0.0 }
 0x2c1   : > { %v3282_v53 = vmax.f32 %v1745_v46, 0.0  ;;  %v1743_v58 = vadd.f32 %v2392_v7, %v1728_v56  ;;  %v1758_v9 = vrot.slane %v1750_v0, 7  ;;  %2688 = vmatmul.mubr.msk.bf16.vlgmr.msra.gmra.mxu1 %vm502_vm0, %v1791_v60  ;;  %v2019_v7 = vsel %vm1157_vm4, %v2005_v1, %v2006_v47 }
 0x2c2   : > { %2712 = vmatpush3.bf16.msra.mxu1 %v3257_v50  ;;  %v2782_v50 = vld [vmem:[%s3451_s8 + $0x48] sm:$0xff]   ;;  %v1771_v6 = vsel %vm891_vm5, %v1768_v14, 0.0  ;;  %v2009_v8 = vrot.slane %v1750_v0, 1  ;;  %v2021_v44 = vsel %vm1182_vm7, %v2019_v7, 0.0  ;;  %v2022_v25 = vsel %vm1183_vm8, %v2018_v19, 0.0 }
 0x2c3   : > { %v1761_v13 = vrot.slane %v3282_v53, 7  ;;  %v1751_v15 = vmax.f32 %v1743_v58, 0.0  ;;  %2713 = vmatprep.subr.bf16.mxu1 %v2780_v57  ;;  %v1765_v12 = vsel %vm873_vm1, %v1757_v37, %v1758_v9  ;;  %v1760_v28 = vrot.slane %v1752_v62, 7 }
 0x2c4   : > { %v1779_v29 = vpack.c.bf16 %v1773_v61, %v1772_v20  ;;  %v1793_v33 = vpack.c.bf16 %v3282_v53, %v1752_v62  ;;  %v1774_v18 = vsel %vm894_vm9, %v1765_v12, 0.0  ;;  %vm3458_vm2 = vcmp.ge.s32.totalorder %v3028_v49, 0  ;;  %v3391_v61 = vld [vmem:[%s3453_s10] ss:$0 sm:$0xff] }
 0x2c5   : > { %v1769_v22 = vsel %vm873_vm1, %v1761_v13, %v1754_v63  ;;  %v1759_v42 = vrot.slane %v1751_v15, 7  ;;  %v1792_v5 = vpack.c.bf16 %v1751_v15, %v1750_v0  ;;  %v2010_v23 = vrot.slane %v1751_v15, 1 }
 0x2c6   : > { %v1770_v16 = vsel %vm890_vm6, %v1769_v22, 0.0  ;;  %2714 = vmatpush3.bf16.msra.mxu1 %v2780_v57  ;;  %v2011_v34 = vrot.slane %v1752_v62, 1  ;;  %v2029_v36 = vpack.c.bf16 %v2022_v25, %v2021_v44  ;;  %v2016_v38 = vsel %vm1157_vm4, %v2008_v21, %v2009_v8 }
 0x2c7   : > { %2691 = vmatprep.mubr.msk.bf16.mxu1 %vm502_vm0, %v1792_v5  ;;  %v1778_v17 = vpack.c.bf16 %v1771_v6, %v1770_v16  ;;  %v1764_v11 = vsel %vm873_vm1, %v1758_v9, %v1759_v42  ;;  %2715 = vmatprep.subr.bf16.mxu1 %v2782_v50  ;;  %v1763_v32 = vsel %vm873_vm1, %v1759_v42, %v1760_v28  ;;  %v2024_v46 = vsel %vm1185_vm11, %v2016_v38, 0.0 }
 0x2c8   : > { %v1775_v26 = vsel %vm3458_vm2, %v1764_v11, 0.0  ;;  %v2014_v49 = vsel %vm1157_vm4, %v2010_v23, %v2011_v34  ;;  %v2015_v39 = vsel %vm1157_vm4, %v2009_v8, %v2010_v23  ;;  %v2017_v40 = vsel %vm1157_vm4, %v2007_v35, %v2008_v21 }
 0x2c9   : > { %2703 = vmatprep.mubr.msk.bf16.mxu0 %vm502_vm0, %v1778_v17  ;;  %v1780_v37 = vpack.c.bf16 %v1775_v26, %v1774_v18  ;;  %2692 = vmatmul.mubr.msk.bf16.gmra.mxu1 %vm502_vm0, %v1793_v33  ;;  %v1762_v45 = vsel %vm873_vm1, %v1760_v28, %v1761_v13  ;;  %v1776_v47 = vsel %vm896_vm12, %v1763_v32, 0.0  ;;  %v2012_v55 = vrot.slane %v3282_v53, 1  ;;  %v2784_v28 = vld [vmem:[%s2895_s15 + $0x10] sm:$0xff] }
 0x2ca   : > { %2704 = vmatmul.mubr.msk.bf16.vlgmr.msra.gmra.mxu0 %vm502_vm0, %v1779_v29  ;;  %2716 = vmatpush3.bf16.msra.mxu1 %v2782_v50  ;;  %v2025_v4 = vsel %vm1186_vm13, %v2015_v39, 0.0  ;;  %vm3459_vm3 = vcmp.lt.s32.totalorder %v3034_v54, 8  ;;  %vm3460_vm5 = vcmp.lt.s32.totalorder %v3005_v30, 8  ;;  %v1777_v51 = vsel %vm897_vm10, %v1762_v45, 0.0 }
 0x2cb   : > { %2719 = vmatprep.mubr.msk.bf16.mxu1 %vm502_vm0, %v2029_v36  ;;  %2707 = vmatprep.mubr.msk.bf16.mxu0 %vm502_vm0, %v1780_v37  ;;  %v2026_v35 = vsel %vm3459_vm3, %v2014_v49, 0.0  ;;  %v2023_v56 = vsel %vm3460_vm5, %v2017_v40, 0.0  ;;  %v1781_v63 = vpack.c.bf16 %v1777_v51, %v1776_v47  ;;  %v2013_v52 = vsel %vm1157_vm4, %v2011_v34, %v2012_v55  ;;  %v2785_v34 = vld [vmem:[%s2895_s15] sm:$0xff] }
 0x2cc   : > { %2717 = vmatprep.subr.bf16.mxu1 %v2783_v27  ;;  %v2030_v31 = vpack.c.bf16 %v2024_v46, %v2023_v56  ;;  %v2031_v60 = vpack.c.bf16 %v2026_v35, %v2025_v4  ;;  %v2020_v30 = vsel %vm1157_vm4, %v2012_v55, %v2005_v1  ;;  %v2027_v43 = vsel %vm1188_vm15, %v2013_v52, 0.0  ;;  %v2786_v46 = vld [vmem:[%s2895_s15 + $0x18] sm:$0xff] }
 0x2cd   : > { %v2028_v54 = vsel %vm1189_vm14, %v2020_v30, 0.0 }
 0x2ce   : > { %2718 = vmatpush3.bf16.msra.mxu1 %v2783_v27  ;;  %v2032_v59 = vpack.c.bf16 %v2028_v54, %v2027_v43 }
 0x2d1   : > { %2720 = vmatmul.mubr.msk.bf16.vlgmr.msra.gmra.mxu1 %vm502_vm0, %v2030_v31 }
 0x2d2   : > { %2708 = vmatmul.mubr.msk.bf16.gmra.mxu0 %vm502_vm0, %v1781_v63  ;;  %2723 = vmatprep.mubr.msk.bf16.mxu1 %vm502_vm0, %v2031_v60  ;;  %v2787_v63 = vld [vmem:[%s2895_s15 + $0x8] sm:$0xff] }
 0x2d9   : > { %2724 = vmatmul.mubr.msk.bf16.gmra.mxu1 %vm502_vm0, %v2032_v59 }
 0x381   : > { %v2689_v0 = vpop.f32.mrf.mxu1 }
 0x383   : > { %v1873_v53 = vpop.f32.mrf.mxu1 }
 0x385   : > { %v2690_v57 = vpop.f32.mrf.mxu1 }
 0x387   : > { %v1876_v2 = vpop.f32.mrf.mxu1 }
 0x389   : > { %v2693_v3 = vpop.f32.mrf.mxu1 }
 0x38a   : > { %v2705_v10 = vpop.f32.mrf.mxu0 }
 0x38b   : > { %v1889_v58 = vpop.f32.mrf.mxu1  ;;  %v1983_v41 = vadd.f32 %v2705_v10, %v2689_v0  ;;  %v2789_v10 = vld [vmem:[%s2895_s15 + $0x20] sm:$0xff] }
 0x38c   : > { %v1974_v48 = vpop.f32.mrf.mxu0 }
 0x38d   : > { %v2694_v1 = vpop.f32.mrf.mxu1  ;;  %v1975_v19 = vadd.f32 %v1974_v48, %v1873_v53 }
 0x38e   : > { %v2706_v9 = vpop.f32.mrf.mxu0 }
 0x38f   : > { %v1892_v13 = vpop.f32.mrf.mxu1  ;;  %v1986_v50 = vadd.f32 %v2706_v9, %v2690_v57 }
 0x390   : > { %v1977_v14 = vpop.f32.mrf.mxu0 }
 0x391   : > { %v2721_v62 = vpop.f32.mrf.mxu1  ;;  %v1978_v6 = vadd.f32 %v1977_v14, %v1876_v2  ;;  %v2788_v2 = vld [vmem:[%s2895_s15 + $0x30] sm:$0xff]  ;;  %v2790_v14 = vld [vmem:[%s2895_s15 + $0x38] sm:$0xff] }
 0x392   : > { %v2709_v15 = vpop.f32.mrf.mxu0  ;;  %v2145_v7 = vadd.f32 %v2721_v62, %v1983_v41 }
 0x393   : > { %v2112_v21 = vpop.f32.mrf.mxu1  ;;  %v1999_v33 = vadd.f32 %v2709_v15, %v2693_v3 }
 0x394   : > { %v1990_v20 = vpop.f32.mrf.mxu0  ;;  %v2160_v22 = vmul.f32 %v3386_v24, %v2145_v7  ;;  %v2143_v42 = vadd.f32 %v2112_v21, %v1975_v19  ;;  %v2791_v19 = vld [vmem:[%s2895_s15 + $0x28] sm:$0xff] }
 0x395   : > { %v2722_v5 = vpop.f32.mrf.mxu1  ;;  %v1991_v18 = vadd.f32 %v1990_v20, %v1889_v58 }
 0x396   : > { %v2175_v12 = vadd.f32 %v3391_v61, %v2160_v22  ;;  %v2158_v8 = vmul.f32 %v3386_v24, %v2143_v42  ;;  %v2146_v16 = vadd.f32 %v2722_v5, %v1986_v50  ;;  %v2710_v44 = vpop.f32.mrf.mxu0 }
 0x397   : > { %v2115_v25 = vpop.f32.mrf.mxu1  ;;  %v2002_v49 = vadd.f32 %v2710_v44, %v2694_v1 }
 0x398   : > { %v2183_v23 = vadd.f32 %v2784_v28, %v2175_v12  ;;  %v2173_v17 = vadd.f32 %v3391_v61, %v2158_v8  ;;  %v2161_v11 = vmul.f32 %v3386_v24, %v2146_v16  ;;  %v2144_v29 = vadd.f32 %v2115_v25, %v1978_v6  ;;  %v1993_v32 = vpop.f32.mrf.mxu0 }
 0x399   : > { %v2725_v26 = vpop.f32.mrf.mxu1  ;;  %v1994_v35 = vadd.f32 %v1993_v32, %v1892_v13 }
 0x39a   : > { %v2191_v27 = vmax.f32 %v2183_v23, 0.0  ;;  %v2181_v36 = vadd.f32 %v2785_v34, %v2173_v17  ;;  %v2176_v37 = vadd.f32 %v3391_v61, %v2161_v11  ;;  %v2159_v38 = vmul.f32 %v3386_v24, %v2144_v29 }
 0x39b   : > { %v2149_v39 = vadd.f32 %v2725_v26, %v1999_v33  ;;  %v2128_v40 = vpop.f32.mrf.mxu1 }
 0x39c   : > { %2199 = vst.msk [vmem:[%s3404_s26 + $0x10] sm:$0xff] %vm502_vm0, %v2191_v27  ;;  %v2189_v45 = vmax.f32 %v2181_v36, 0.0  ;;  %v2184_v47 = vadd.f32 %v2786_v46, %v2176_v37  ;;  %v2174_v55 = vadd.f32 %v3391_v61, %v2159_v38  ;;  %v2147_v4 = vadd.f32 %v2128_v40, %v1991_v18 }
 0x39d   : > { %v2164_v56 = vmul.f32 %v3386_v24, %v2149_v39  ;;  %v2726_v51 = vpop.f32.mrf.mxu1 }
 0x39e   : > { %2197 = vst.msk [vmem:[%s3404_s26] sm:$0xff] %vm502_vm0, %v2189_v45  ;;  %v2192_v31 = vmax.f32 %v2184_v47, 0.0  ;;  %v2182_v60 = vadd.f32 %v2787_v63, %v2174_v55  ;;  %v2162_v52 = vmul.f32 %v3386_v24, %v2147_v4  ;;  %v2150_v30 = vadd.f32 %v2726_v51, %v2002_v49 }
 0x39f   : > { %v2179_v43 = vadd.f32 %v3391_v61, %v2164_v56  ;;  %v2131_v54 = vpop.f32.mrf.mxu1 }
 0x3a0   : > { %2200 = vst.msk [vmem:[%s3404_s26 + $0x18] sm:$0xff] %vm502_vm0, %v2192_v31  ;;  %v2190_v59 = vmax.f32 %v2182_v60, 0.0  ;;  %v2177_v0 = vadd.f32 %v3391_v61, %v2162_v52  ;;  %v2165_v53 = vmul.f32 %v3386_v24, %v2150_v30  ;;  %v2148_v57 = vadd.f32 %v2131_v54, %v1994_v35 }
 0x3a1   : > { %v2187_v3 = vadd.f32 %v2788_v2, %v2179_v43 }
 0x3a2   : > { %2198 = vst.msk [vmem:[%s3404_s26 + $0x8] sm:$0xff] %vm502_vm0, %v2190_v59  ;;  %v2185_v58 = vadd.f32 %v2789_v10, %v2177_v0  ;;  %v2180_v48 = vadd.f32 %v3391_v61, %v2165_v53  ;;  %v2163_v1 = vmul.f32 %v3386_v24, %v2148_v57 }
 0x3a3   : > { %v2195_v9 = vmax.f32 %v2187_v3, 0.0 }
 0x3a4   : > { %v2193_v13 = vmax.f32 %v2185_v58, 0.0  ;;  %v2188_v41 = vadd.f32 %v2790_v14, %v2180_v48  ;;  %v2178_v62 = vadd.f32 %v3391_v61, %v2163_v1 }
 0x3a5   : > { %2203 = vst.msk [vmem:[%s3404_s26 + $0x30] sm:$0xff] %vm502_vm0, %v2195_v9 }
 0x3a6   : > { %2201 = vst.msk [vmem:[%s3404_s26 + $0x20] sm:$0xff] %vm502_vm0, %v2193_v13  ;;  %v2196_v15 = vmax.f32 %v2188_v41, 0.0  ;;  %v2186_v7 = vadd.f32 %v2791_v19, %v2178_v62 }
 0x3a8   : > { %2204 = vst.msk [vmem:[%s3404_s26 + $0x38] sm:$0xff] %vm502_vm0, %v2196_v15  ;;  %v2194_v21 = vmax.f32 %v2186_v7, 0.0 }
 0x3aa   : > { %2202 = vst.msk [vmem:[%s3404_s26 + $0x28] sm:$0xff] %vm502_vm0, %v2194_v21 }
 0x3ab PF: > { %s21_s17 = sadd.s32 1, %s2798_s17  }
 0x3ac   : > { %p18_p4 = scmp.ge.s32.totalorder %s21_s17, 4  }
 0x3ae   :  { %20 = sbr.rel (!%p18_p4) target bundleno = 1 (0x1), region = 102 }

// kernel: _lambda_.26
= control target key start
LH: loop header
LB: loop body
LE: loop exit
PB: predicated region body
PF: predicated region fallthrough
CT: control target
= control target key end

     0   :  { %s1996_s17 = smov 0   ;;  %s2340_s0 = inlined_call_operand.vmem [shape: f32[2,16,128], index: 0, kind: input, shape index: {}]   ;;  %s2341_s1 = inlined_call_operand.vmem [shape: bf16[3,128,128], index: 1, kind: input, shape index: {}]   ;;  %s2342_s2 = inlined_call_operand.vmem [shape: f32[1,128], index: 2, kind: input, shape index: {}]   ;;  %s2343_s3 = inlined_call_operand.vmem [shape: bf16[3,128,128], index: 3, kind: input, shape index: {}]   ;;  %s2344_s4 = inlined_call_operand.vmem [shape: f32[1,128], index: 4, kind: input, shape index: {}]   ;;  %s2345_s5 = inlined_call_operand.vmem [shape: f32[1,128], index: 5, kind: input, shape index: {}]   ;;  %s2346_s6 = inlined_call_operand.vmem [shape: bf16[3,128,128], index: 6, kind: input, shape index: {}]   ;;  %s2347_s7 = inlined_call_operand.vmem [shape: f32[1,128], index: 7, kind: input, shape index: {}]   ;;  %s2348_s8 = inlined_call_operand.vmem [shape: bf16[3,128,128], index: 8, kind: input, shape index: {}]   ;;  %s2349_s9 = inlined_call_operand.vmem [shape: f32[1,128], index: 9, kind: input, shape index: {}]   ;;  %s2350_s10 = inlined_call_operand.vmem [shape: f32[1,128], index: 10, kind: input, shape index: {}]   ;;  %s2351_s11 = inlined_call_operand.vmem [shape: f32[2,16,128], index: 11, kind: output, shape index: {}]  }
   0x1 LB: > { %s1427_s18 = sadd.s32 4294967295, %s1931_s17   ;;  %p1431_p0 = scmp.ge.s32.totalorder %s1931_s17, 1  ;;  %s1931_s17 = sphi %s1996_s17, %s21_s17  }
   0x2   : > { %p337_p1 = scmp.lt.s32.totalorder %s1931_s17, 3 }
   0x4   : > { %p338_p2 = pnand %p1431_p0, %p337_p1 }
   0x5   : > { %p377_p3 = scmp.lt.s32.totalorder (!%p338_p2), %s1427_s18, 1 }
   0x6   : > { %341 = sbr.rel (%p338_p2) target bundleno = 929 (0x3a1), region = 64 }
   0xb   : > { %v1861_v0 = vld [vmem:[%s2341_s1 + $0x78] sm:$0xff]   ;;  %v1933_v1 = vmov 0.0   ;;  %v1863_v3 = vld [vmem:[%s2341_s1 + $0x70] sm:$0xff]   ;;  %vm1934_vm0 = vmmov 0   ;;  %v1865_v5 = vld [vmem:[%s2341_s1 + $0x68] sm:$0xff]   ;;  %s2355_s18 = smov (!%p377_p3, %s1427_s18), 1  ;;  %v390_v8 = vlaneseq }
   0xc   : > { %1690 = vmatprep.subr.bf16.mxu0 %v1933_v1  ;;  %1710 = vmatprep.subr.bf16.mxu1 %v1933_v1  ;;  %v1862_v2 = vld [vmem:[%s2341_s1 + $0x38] sm:$0xff]   ;;  %v1864_v4 = vld [vmem:[%s2341_s1 + $0x30] sm:$0xff]   ;;  %v1866_v6 = vld [vmem:[%s2341_s1 + $0x28] sm:$0xff]   ;;  %s1616_s16 = sshll.u32 %s2355_s18, 4  ;;  %vm1935_vm3 = vmmov 1  }
   0xd   : > { %1691 = vmatpush3.bf16.msra.mxu0 %v1861_v0  ;;  %1706 = vmatprep.mubr.msk.bf16.mxu0 %vm1934_vm0, %v1933_v1  ;;  %v1867_v7 = vld [vmem:[%s2341_s1 + $0x60] sm:$0xff]   ;;  %v1869_v10 = vld [vmem:[%s2341_s1 + $0x58] sm:$0xff]   ;;  %v2046_v11 = vshrl.u32 %v390_v8, 7  ;;  %s381_s25 = scalar_lea.vmem %s2340_s0, %s1616_s16  ;;  %v1871_v13 = vld [vmem:[%s2341_s1 + $0x50] sm:$0xff]   ;;  %s386_s20 = scalar_lea.vmem %s2351_s11, %s1616_s16 }
   0xe   : > { %1711 = vmatpush3.bf16.msra.mxu1 %v1862_v2  ;;  %1692 = vmatprep.subr.bf16.mxu0 %v1933_v1  ;;  %v1868_v9 = vld [vmem:[%s2341_s1 + $0x20] sm:$0xff]   ;;  %v1870_v12 = vld [vmem:[%s2341_s1 + $0x18] sm:$0xff]   ;;  %v1872_v14 = vld [vmem:[%s2341_s1 + $0x10] sm:$0xff]  }
   0xf   : > { %1712 = vmatprep.subr.bf16.mxu1 %v1933_v1  ;;  %1726 = vmatprep.mubr.msk.bf16.mxu1 %vm1934_vm0, %v1933_v1  ;;  %v400_v15 = vadd.s32 4294967292, %v2046_v11  ;;  %v2066_v16 = vld [vmem:[%s381_s25] sm:$0xff]  ;;  %v2069_v17 = vld [vmem:[%s381_s25 + $0x8] sm:$0xff]  ;;  %vm397_vm2 = vcmp.lt.s32.totalorder %v2046_v11, 4  ;;  %v2089_v24 = vadd.s32 8, %v2046_v11  ;;  %v1877_v28 = vld [vmem:[%s2341_s1 + $0xb8] sm:$0xff]  }
  0x10   : > { %v1873_v18 = vld [vmem:[%s2341_s1 + $0x48] sm:$0xff]   ;;  %v395_v20 = vrot.slane %v2066_v16, 4  ;;  %v396_v21 = vrot.slane %v2069_v17, 4  ;;  %v1875_v22 = vld [vmem:[%s2341_s1 + $0x40] sm:$0xff]   ;;  %v427_v29 = vpack.c.bf16 %v2069_v17, %v2066_v16  ;;  %v1878_v31 = vld [vmem:[%s2341_s1 + $0xb0] sm:$0xff]   ;;  %vm755_vm7 = vcmp.lt.s32.totalorder %v2046_v11, 1 }
  0x11   : > { %1693 = vmatpush3.bf16.msra.mxu0 %v1863_v3  ;;  %v1874_v19 = vld [vmem:[%s2341_s1 + $0x8] sm:$0xff]   ;;  %vm402_vm1 = vcmp.ge.s32.totalorder %v400_v15, 0  ;;  %v1876_v23 = vld [vmem:[%s2341_s1] sm:$0xff]   ;;  %v1881_v34 = vld [vmem:[%s2341_s1 + $0x98] sm:$0xff]   ;;  %v624_v37 = vadd.s32 4, %v2089_v24  ;;  %vm983_vm11 = vcmp.lt.s32.totalorder %v2046_v11, 7 }
  0x12   : > { %1713 = vmatpush3.bf16.msra.mxu1 %v1864_v4  ;;  %1694 = vmatprep.subr.bf16.mxu0 %v1933_v1  ;;  %vm2092_vm4 = vmpackc.low %vm1935_vm3, %vm402_vm1  ;;  %v398_v26 = vsel %vm397_vm2, %v395_v20, %v396_v21  ;;  %v399_v27 = vsel %vm397_vm2, %v396_v21, %v395_v20  ;;  %v1879_v32 = vld [vmem:[%s2341_s1 + $0xa8] sm:$0xff]   ;;  %v1880_v33 = vld [vmem:[%s2341_s1 + $0xa0] sm:$0xff]  }
  0x13   : > { %1714 = vmatprep.subr.bf16.mxu1 %v1933_v1  ;;  %v1469_v30 = vpack.c.bf16 %v398_v26, %v399_v27  ;;  %v1882_v35 = vld [vmem:[%s2341_s1 + $0x90] sm:$0xff]   ;;  %v1883_v36 = vld [vmem:[%s2341_s1 + $0x88] sm:$0xff]   ;;  %v1884_v38 = vld [vmem:[%s2341_s1 + $0x80] sm:$0xff]   ;;  %vm628_vm5 = vcmp.lt.s32.totalorder %v624_v37, 16  ;;  %v1496_v39 = vpack.c.bf16 %v399_v27, %v398_v26 }
  0x14   : > { %vm1495_vm6 = vmpackc.low %vm628_vm5, %vm1935_vm3  ;;  %v1885_v40 = vld [vmem:[%s2343_s3 + $0x78] sm:$0xff]   ;;  %v1886_v42 = vld [vmem:[%s2343_s3 + $0x70] sm:$0xff]  }
  0x15   : > { %1695 = vmatpush3.bf16.msra.mxu0 %v1865_v5  ;;  %v1887_v41 = vld [vmem:[%s2343_s3 + $0x38] sm:$0xff]   ;;  %v1889_v43 = vld [vmem:[%s2343_s3 + $0x30] sm:$0xff]   ;;  %v1888_v44 = vld [vmem:[%s2343_s3 + $0x68] sm:$0xff]  }
  0x16   : > { %1715 = vmatpush3.bf16.msra.mxu1 %v1866_v6  ;;  %1696 = vmatprep.subr.bf16.mxu0 %v1933_v1  ;;  %v1891_v45 = vld [vmem:[%s2343_s3 + $0x28] sm:$0xff]   ;;  %v1890_v46 = vld [vmem:[%s2343_s3 + $0x60] sm:$0xff]   ;;  %v1892_v48 = vld [vmem:[%s2343_s3 + $0x58] sm:$0xff]   ;;  %v393_v6 = vand.u32 3, %v2046_v11 }
  0x17   : > { %1716 = vmatprep.subr.bf16.mxu1 %v1933_v1  ;;  %v1893_v47 = vld [vmem:[%s2343_s3 + $0x20] sm:$0xff]   ;;  %v1894_v49 = vld [vmem:[%s2343_s3 + $0x50] sm:$0xff]   ;;  %v1895_v50 = vld [vmem:[%s2343_s3 + $0x18] sm:$0xff]  }
  0x18   : > { %v1896_v51 = vld [vmem:[%s2343_s3 + $0x48] sm:$0xff]   ;;  %v1897_v52 = vld [vmem:[%s2343_s3 + $0x10] sm:$0xff]   ;;  %v1898_v53 = vld [vmem:[%s2343_s3 + $0x40] sm:$0xff]  }
  0x19   : > { %1697 = vmatpush3.bf16.msra.mxu0 %v1867_v7  ;;  %v1899_v54 = vld [vmem:[%s2343_s3 + $0x8] sm:$0xff]   ;;  %v1900_v55 = vld [vmem:[%s2343_s3] sm:$0xff]   ;;  %v394_v7 = vand.u32 3, %v2089_v24  ;;  %v1901_v21 = vld [vmem:[%s2343_s3 + $0xb8] sm:$0xff]  }
  0x1a   : > { %1717 = vmatpush3.bf16.msra.mxu1 %v1868_v9  ;;  %1698 = vmatprep.subr.bf16.mxu0 %v1933_v1  ;;  %v1498_v3 = vld [vmem:[%s2342_s2] ss:$0 sm:$0xff]  ;;  %v1909_v11 = vld [vmem:[%s2346_s6 + $0x78] sm:$0xff]  }
  0x1b   : > { %1718 = vmatprep.subr.bf16.mxu1 %v1933_v1  ;;  %v759_v15 = vadd.s32 4294967295, %v394_v7 }
  0x1d   : > { %1699 = vmatpush3.bf16.msra.mxu0 %v1869_v10  ;;  %vm761_vm9 = vcmp.ge.s32.totalorder %v759_v15, 0 }
  0x1e   : > { %1719 = vmatpush3.bf16.msra.mxu1 %v1870_v12  ;;  %1700 = vmatprep.subr.bf16.mxu0 %v1933_v1 }
  0x1f   : > { %1720 = vmatprep.subr.bf16.mxu1 %v1933_v1 }
  0x21   : > { %1701 = vmatpush3.bf16.msra.mxu0 %v1871_v13 }
  0x22   : > { %1721 = vmatpush3.bf16.msra.mxu1 %v1872_v14  ;;  %1702 = vmatprep.subr.bf16.mxu0 %v1933_v1  ;;  %v758_v14 = vadd.s32 4294967295, %v393_v6 }
  0x23   : > { %1722 = vmatprep.subr.bf16.mxu1 %v1933_v1 }
  0x24   : > { %vm760_vm8 = vcmp.ge.s32.totalorder %v758_v14, 0 }
  0x25   : > { %1703 = vmatpush3.bf16.msra.mxu0 %v1873_v18  ;;  %vm1531_vm10 = vmpackc.low %vm761_vm9, %vm760_vm8 }
  0x26   : > { %1723 = vmatpush3.bf16.msra.mxu1 %v1874_v19  ;;  %1704 = vmatprep.subr.bf16.mxu0 %v1933_v1 }
  0x27   : > { %1724 = vmatprep.subr.bf16.mxu1 %v1933_v1 }
  0x29   : > { %1705 = vmatpush3.bf16.msra.mxu0 %v1875_v22 }
  0x2a   : > { %1725 = vmatpush3.bf16.msra.mxu1 %v1876_v23  ;;  %1730 = vmatprep.subr.bf16.mxu0 %v1933_v1 }
  0x2b   : > { %1750 = vmatprep.subr.bf16.mxu1 %v1933_v1 }
  0x2c   : > { %1707 = vmatmul.mubr.bf16.vlgmr.msra.gmra.mxu0 %v427_v29  ;;  %v1903_v29 = vld [vmem:[%s2343_s3 + $0xa8] sm:$0xff]  }
  0x2d   : > { %1727 = vmatmul.mubr.msk.bf16.vlgmr.msra.gmra.mxu1 %vm2092_vm4, %v1469_v30  ;;  %1731 = vmatpush3.bf16.msra.mxu0 %v1877_v28  ;;  %v1902_v28 = vld [vmem:[%s2343_s3 + $0xb0] sm:$0xff]   ;;  %v1904_v30 = vld [vmem:[%s2343_s3 + $0xa0] sm:$0xff]  }
  0x2e   : > { %1732 = vmatprep.subr.bf16.mxu0 %v1933_v1  ;;  %1746 = vmatprep.mubr.msk.bf16.mxu0 %vm1934_vm0, %v1933_v1 }
  0x2f   : > { %1766 = vmatprep.mubr.msk.bf16.mxu1 %vm1934_vm0, %v1933_v1  ;;  %1751 = vmatpush3.bf16.msra.mxu1 %v1885_v40 }
  0x30   : > { %1752 = vmatprep.subr.bf16.mxu1 %v1933_v1 }
  0x31   : > { %1733 = vmatpush3.bf16.msra.mxu0 %v1878_v31  ;;  %v1905_v31 = vld [vmem:[%s2343_s3 + $0x98] sm:$0xff]  }
  0x32   : > { %1734 = vmatprep.subr.bf16.mxu0 %v1933_v1 }
  0x33   : > { %1753 = vmatpush3.bf16.msra.mxu1 %v1886_v42  ;;  %v1910_v42 = vld [vmem:[%s2346_s6 + $0x70] sm:$0xff]  }
  0x34   : > { %1754 = vmatprep.subr.bf16.mxu1 %v1933_v1 }
  0x35   : > { %1735 = vmatpush3.bf16.msra.mxu0 %v1879_v32  ;;  %v1906_v32 = vld [vmem:[%s2343_s3 + $0x90] sm:$0xff]  }
  0x36   : > { %1736 = vmatprep.subr.bf16.mxu0 %v1933_v1 }
  0x37   : > { %1755 = vmatpush3.bf16.msra.mxu1 %v1888_v44  ;;  %v1912_v44 = vld [vmem:[%s2346_s6 + $0x60] sm:$0xff]  }
  0x38   : > { %1756 = vmatprep.subr.bf16.mxu1 %v1933_v1 }
  0x39   : > { %1737 = vmatpush3.bf16.msra.mxu0 %v1880_v33  ;;  %v1907_v33 = vld [vmem:[%s2343_s3 + $0x88] sm:$0xff]  }
  0x3a   : > { %1738 = vmatprep.subr.bf16.mxu0 %v1933_v1 }
  0x3b   : > { %1757 = vmatpush3.bf16.msra.mxu1 %v1890_v46  ;;  %v1914_v46 = vld [vmem:[%s2346_s6 + $0x50] sm:$0xff]  }
  0x3c   : > { %1758 = vmatprep.subr.bf16.mxu1 %v1933_v1 }
  0x3d   : > { %1739 = vmatpush3.bf16.msra.mxu0 %v1881_v34  ;;  %v986_v34 = vadd.s32 1, %v393_v6  ;;  %v1562_v6 = vld [vmem:[%s2345_s5] ss:$0 sm:$0xff] }
  0x3e   : > { %1740 = vmatprep.subr.bf16.mxu0 %v1933_v1 }
  0x3f   : > { %1759 = vmatpush3.bf16.msra.mxu1 %v1892_v48  ;;  %vm990_vm12 = vcmp.lt.s32.totalorder %v986_v34, 4  ;;  %v1916_v48 = vld [vmem:[%s2346_s6 + $0x40] sm:$0xff]  }
  0x40   : > { %1760 = vmatprep.subr.bf16.mxu1 %v1933_v1 }
  0x41   : > { %1741 = vmatpush3.bf16.msra.mxu0 %v1882_v35  ;;  %v987_v35 = vadd.s32 1, %v394_v7 }
  0x42   : > { %1742 = vmatprep.subr.bf16.mxu0 %v1933_v1 }
  0x43   : > { %1761 = vmatpush3.bf16.msra.mxu1 %v1894_v49  ;;  %vm991_vm13 = vcmp.lt.s32.totalorder %v987_v35, 4  ;;  %v1917_v49 = vld [vmem:[%s2348_s8 + $0x78] sm:$0xff]  }
  0x44   : > { %1762 = vmatprep.subr.bf16.mxu1 %v1933_v1  ;;  %vm1558_vm14 = vmpackc.low %vm991_vm13, %vm990_vm12 }
  0x45   : > { %1743 = vmatpush3.bf16.msra.mxu0 %v1883_v36 }
  0x46   : > { %1744 = vmatprep.subr.bf16.mxu0 %v1933_v1 }
  0x47   : > { %1763 = vmatpush3.bf16.msra.mxu1 %v1896_v51  ;;  %v1919_v51 = vld [vmem:[%s2348_s8 + $0x68] sm:$0xff]  }
  0x48   : > { %1764 = vmatprep.subr.bf16.mxu1 %v1933_v1 }
  0x49   : > { %1745 = vmatpush3.bf16.msra.mxu0 %v1884_v38  ;;  %v1908_v38 = vld [vmem:[%s2343_s3 + $0x80] sm:$0xff]  }
  0x4a   : > { %1770 = vmatprep.subr.bf16.mxu0 %v1933_v1 }
  0x4b   : > { %1765 = vmatpush3.bf16.msra.mxu1 %v1898_v53  ;;  %v1921_v53 = vld [vmem:[%s2348_s8 + $0x58] sm:$0xff]  }
  0x4c   : > { %1747 = vmatmul.mubr.msk.bf16.vlgmr.msra.gmra.mxu0 %vm1495_vm6, %v1496_v39  ;;  %1790 = vmatprep.subr.bf16.mxu1 %v1933_v1 }
  0x4d   : > { %1786 = vmatprep.mubr.msk.bf16.mxu0 %vm1934_vm0, %v1933_v1  ;;  %1771 = vmatpush3.bf16.msra.mxu0 %v1887_v41 }
  0x4e   : > { %1772 = vmatprep.subr.bf16.mxu0 %v1933_v1 }
  0x51   : > { %1773 = vmatpush3.bf16.msra.mxu0 %v1889_v43  ;;  %v1911_v43 = vld [vmem:[%s2346_s6 + $0x68] sm:$0xff]  }
  0x52   : > { %1774 = vmatprep.subr.bf16.mxu0 %v1933_v1 }
  0x55   : > { %1775 = vmatpush3.bf16.msra.mxu0 %v1891_v45  ;;  %v1913_v45 = vld [vmem:[%s2346_s6 + $0x58] sm:$0xff]  }
  0x56   : > { %1776 = vmatprep.subr.bf16.mxu0 %v1933_v1 }
  0x59   : > { %1777 = vmatpush3.bf16.msra.mxu0 %v1893_v47  ;;  %v1915_v47 = vld [vmem:[%s2346_s6 + $0x48] sm:$0xff]  }
  0x5a   : > { %1778 = vmatprep.subr.bf16.mxu0 %v1933_v1 }
  0x5d   : > { %1779 = vmatpush3.bf16.msra.mxu0 %v1895_v50  ;;  %v1918_v50 = vld [vmem:[%s2348_s8 + $0x70] sm:$0xff]  }
  0x5e   : > { %1780 = vmatprep.subr.bf16.mxu0 %v1933_v1 }
  0x61   : > { %1781 = vmatpush3.bf16.msra.mxu0 %v1897_v52  ;;  %v1920_v52 = vld [vmem:[%s2348_s8 + $0x60] sm:$0xff]  }
  0x62   : > { %1782 = vmatprep.subr.bf16.mxu0 %v1933_v1 }
  0x65   : > { %1783 = vmatpush3.bf16.msra.mxu0 %v1899_v54 }
  0x66   : > { %1784 = vmatprep.subr.bf16.mxu0 %v1933_v1 }
  0x69   : > { %1785 = vmatpush3.bf16.msra.mxu0 %v1900_v55 }
  0x6a   : > { %1810 = vmatprep.subr.bf16.mxu0 %v1933_v1 }
  0xec   : > { %v527_v56 = vpop.f32.mrf.mxu0 }
  0xed   : > { %v616_v57 = vpop.f32.mrf.mxu1 }
  0xee   : > { %v1708_v58 = vpop.f32.mrf.mxu0  ;;  %v617_v0 = vadd.f32 %v616_v57, %v527_v56 }
  0xef   : > { %v1728_v59 = vpop.f32.mrf.mxu1 }
  0xf0   : > { %v530_v60 = vpop.f32.mrf.mxu0 }
  0xf1   : > { %v619_v61 = vpop.f32.mrf.mxu1 }
  0xf2   : > { %v1709_v62 = vpop.f32.mrf.mxu0  ;;  %v620_v8 = vadd.f32 %v619_v61, %v530_v60 }
  0xf3   : > { %v1729_v63 = vpop.f32.mrf.mxu1 }
 0x10c   : > { %v733_v2 = vpop.f32.mrf.mxu0 }
 0x10d   : > { %v740_v4 = vadd.f32 %v733_v2, %v617_v0  ;;  %v1561_v0 = vld [vmem:[%s2344_s4] ss:$0 sm:$0xff] }
 0x10e   : > { %v1748_v5 = vpop.f32.mrf.mxu0 }
 0x10f   : > { %v749_v9 = vadd.f32 %v1498_v3, %v740_v4 }
 0x110   : > { %v736_v10 = vpop.f32.mrf.mxu0 }
 0x111   : > { %v741_v12 = vadd.f32 %v736_v10, %v620_v8  ;;  %v751_v18 = vmax.f32 %v749_v9, 0.0 }
 0x112   : > { %v1749_v13 = vpop.f32.mrf.mxu0 }
 0x113   : > { %v750_v19 = vadd.f32 %v1498_v3, %v741_v12  ;;  %v753_v22 = vrot.slane %v751_v18, 7  ;;  %v981_v37 = vrot.slane %v751_v18, 1 }
 0x115   : > { %v752_v20 = vmax.f32 %v750_v19, 0.0  ;;  %v1922_v19 = vld [vmem:[%s2348_s8 + $0x50] sm:$0xff]  }
 0x117   : > { %v754_v23 = vrot.slane %v752_v20, 7  ;;  %v785_v24 = vpack.c.bf16 %v752_v20, %v751_v18  ;;  %v982_v36 = vrot.slane %v752_v20, 1  ;;  %v1923_v20 = vld [vmem:[%s2348_s8 + $0x48] sm:$0xff]  }
 0x119   : > { %v756_v25 = vsel %vm755_vm7, %v753_v22, %v754_v23  ;;  %v757_v26 = vsel %vm755_vm7, %v754_v23, %v753_v22  ;;  %1767 = vmatmul.mubr.bf16.vlgmr.msra.gmra.mxu1 %v785_v24  ;;  %v984_v39 = vsel %vm983_vm11, %v981_v37, %v982_v36  ;;  %v985_v40 = vsel %vm983_vm11, %v982_v36, %v981_v37  ;;  %v1579_v22 = vld [vmem:[%s2347_s7] ss:$0 sm:$0xff] }
 0x11a   : > { %1791 = vmatpush3.bf16.msra.mxu1 %v1901_v21  ;;  %v1532_v27 = vpack.c.bf16 %v756_v25, %v757_v26  ;;  %1806 = vmatprep.mubr.msk.bf16.mxu1 %vm1934_vm0, %v1933_v1  ;;  %v1559_v41 = vpack.c.bf16 %v985_v40, %v984_v39  ;;  %v1924_v21 = vld [vmem:[%s2348_s8 + $0x40] sm:$0xff]  }
 0x11b   : > { %1792 = vmatprep.subr.bf16.mxu1 %v1933_v1 }
 0x11c   : > { %1787 = vmatmul.mubr.msk.bf16.vlgmr.msra.gmra.mxu0 %vm1531_vm10, %v1532_v27 }
 0x11d   : > { %1826 = vmatprep.mubr.msk.bf16.mxu0 %vm1934_vm0, %v1933_v1  ;;  %1811 = vmatpush3.bf16.msra.mxu0 %v1909_v11 }
 0x11e   : > { %1793 = vmatpush3.bf16.msra.mxu1 %v1902_v28  ;;  %1812 = vmatprep.subr.bf16.mxu0 %v1933_v1 }
 0x11f   : > { %1794 = vmatprep.subr.bf16.mxu1 %v1933_v1 }
 0x121   : > { %1813 = vmatpush3.bf16.msra.mxu0 %v1910_v42 }
 0x122   : > { %1795 = vmatpush3.bf16.msra.mxu1 %v1903_v29  ;;  %1814 = vmatprep.subr.bf16.mxu0 %v1933_v1 }
 0x123   : > { %1796 = vmatprep.subr.bf16.mxu1 %v1933_v1 }
 0x125   : > { %1815 = vmatpush3.bf16.msra.mxu0 %v1911_v43 }
 0x126   : > { %1797 = vmatpush3.bf16.msra.mxu1 %v1904_v30  ;;  %1816 = vmatprep.subr.bf16.mxu0 %v1933_v1 }
 0x127   : > { %1798 = vmatprep.subr.bf16.mxu1 %v1933_v1 }
 0x129   : > { %1817 = vmatpush3.bf16.msra.mxu0 %v1912_v44 }
 0x12a   : > { %1799 = vmatpush3.bf16.msra.mxu1 %v1905_v31  ;;  %1818 = vmatprep.subr.bf16.mxu0 %v1933_v1 }
 0x12b   : > { %1800 = vmatprep.subr.bf16.mxu1 %v1933_v1 }
 0x12d   : > { %1819 = vmatpush3.bf16.msra.mxu0 %v1913_v45 }
 0x12e   : > { %1801 = vmatpush3.bf16.msra.mxu1 %v1906_v32  ;;  %1820 = vmatprep.subr.bf16.mxu0 %v1933_v1 }
 0x12f   : > { %1802 = vmatprep.subr.bf16.mxu1 %v1933_v1 }
 0x131   : > { %1821 = vmatpush3.bf16.msra.mxu0 %v1914_v46 }
 0x132   : > { %1803 = vmatpush3.bf16.msra.mxu1 %v1907_v33  ;;  %1822 = vmatprep.subr.bf16.mxu0 %v1933_v1  ;;  %v1613_v33 = vld [vmem:[%s2350_s10] ss:$0 sm:$0xff] }
 0x133   : > { %1804 = vmatprep.subr.bf16.mxu1 %v1933_v1 }
 0x135   : > { %1823 = vmatpush3.bf16.msra.mxu0 %v1915_v47 }
 0x136   : > { %1805 = vmatpush3.bf16.msra.mxu1 %v1908_v38  ;;  %1824 = vmatprep.subr.bf16.mxu0 %v1933_v1 }
 0x137   : > { %1830 = vmatprep.subr.bf16.mxu1 %v1933_v1 }
 0x139   : > { %1807 = vmatmul.mubr.msk.bf16.vlgmr.msra.gmra.mxu1 %vm1558_vm14, %v1559_v41  ;;  %1825 = vmatpush3.bf16.msra.mxu0 %v1916_v48 }
 0x13a   : > { %1846 = vmatprep.mubr.msk.bf16.mxu1 %vm1934_vm0, %v1933_v1  ;;  %1831 = vmatpush3.bf16.msra.mxu1 %v1917_v49 }
 0x13b   : > { %1832 = vmatprep.subr.bf16.mxu1 %v1933_v1 }
 0x13e   : > { %1833 = vmatpush3.bf16.msra.mxu1 %v1918_v50 }
 0x13f   : > { %1834 = vmatprep.subr.bf16.mxu1 %v1933_v1 }
 0x142   : > { %1835 = vmatpush3.bf16.msra.mxu1 %v1919_v51 }
 0x143   : > { %1836 = vmatprep.subr.bf16.mxu1 %v1933_v1 }
 0x146   : > { %1837 = vmatpush3.bf16.msra.mxu1 %v1920_v52 }
 0x147   : > { %1838 = vmatprep.subr.bf16.mxu1 %v1933_v1 }
 0x14a   : > { %1839 = vmatpush3.bf16.msra.mxu1 %v1921_v53 }
 0x14b   : > { %1840 = vmatprep.subr.bf16.mxu1 %v1933_v1 }
 0x14e   : > { %1841 = vmatpush3.bf16.msra.mxu1 %v1922_v19 }
 0x14f   : > { %1842 = vmatprep.subr.bf16.mxu1 %v1933_v1 }
 0x152   : > { %1843 = vmatpush3.bf16.msra.mxu1 %v1923_v20 }
 0x153   : > { %1844 = vmatprep.subr.bf16.mxu1 %v1933_v1  ;;  %v1612_v1 = vld [vmem:[%s2349_s9] ss:$0 sm:$0xff] }
 0x156   : > { %1845 = vmatpush3.bf16.msra.mxu1 %v1924_v21 }
 0x1d9   : > { %v885_v54 = vpop.f32.mrf.mxu1 }
 0x1db   : > { %v1768_v55 = vpop.f32.mrf.mxu1 }
 0x1dc   : > { %v974_v56 = vpop.f32.mrf.mxu0 }
 0x1dd   : > { %v888_v57 = vpop.f32.mrf.mxu1  ;;  %v975_v62 = vadd.f32 %v974_v56, %v885_v54 }
 0x1de   : > { %v1788_v58 = vpop.f32.mrf.mxu0 }
 0x1df   : > { %v1769_v59 = vpop.f32.mrf.mxu1 }
 0x1e0   : > { %v977_v60 = vpop.f32.mrf.mxu0 }
 0x1e1   : > { %v978_v4 = vadd.f32 %v977_v60, %v888_v57 }
 0x1e2   : > { %v1789_v61 = vpop.f32.mrf.mxu0 }
 0x1f9   : > { %v1096_v63 = vpop.f32.mrf.mxu1 }
 0x1fa   : > { %v1103_v2 = vadd.f32 %v1096_v63, %v975_v62 }
 0x1fb   : > { %v1808_v3 = vpop.f32.mrf.mxu1 }
 0x1fc   : > { %v1112_v5 = vmul.f32 %v1561_v0, %v1103_v2 }
 0x1fd   : > { %v1099_v7 = vpop.f32.mrf.mxu1 }
 0x1fe   : > { %v1104_v8 = vadd.f32 %v1099_v7, %v978_v4  ;;  %v1121_v10 = vadd.f32 %v1562_v6, %v1112_v5 }
 0x1ff   : > { %v1809_v9 = vpop.f32.mrf.mxu1 }
 0x200   : > { %v1113_v12 = vmul.f32 %v1561_v0, %v1104_v8  ;;  %v1123_v14 = vmax.f32 %v1121_v10, 0.0 }
 0x202   : > { %v1122_v13 = vadd.f32 %v1562_v6, %v1113_v12 }
 0x204   : > { %v1124_v15 = vmax.f32 %v1122_v13, 0.0 }
 0x206   : > { %v1125_v18 = vpack.c.bf16 %v1124_v15, %v1123_v14 }
 0x208   : > { %1827 = vmatmul.mubr.bf16.vlgmr.msra.gmra.mxu0 %v1125_v18 }
 0x2c8   : > { %v1232_v23 = vpop.f32.mrf.mxu0 }
 0x2c9   : > { %v1233_v25 = vadd.f32 %v1579_v22, %v1232_v23 }
 0x2ca   : > { %v1828_v24 = vpop.f32.mrf.mxu0 }
 0x2cb   : > { %v1239_v29 = vmax.f32 %v1233_v25, 0.0 }
 0x2cc   : > { %v1235_v26 = vpop.f32.mrf.mxu0 }
 0x2cd   : > { %v1236_v27 = vadd.f32 %v1579_v22, %v1235_v26 }
 0x2ce   : > { %v1829_v28 = vpop.f32.mrf.mxu0 }
 0x2cf   : > { %v1240_v30 = vmax.f32 %v1236_v27, 0.0 }
 0x2d1   : > { %v1241_v31 = vpack.c.bf16 %v1240_v30, %v1239_v29 }
 0x2d3   : > { %1847 = vmatmul.mubr.bf16.vlgmr.msra.gmra.mxu1 %v1241_v31 }
 0x393   : > { %v1341_v32 = vpop.f32.mrf.mxu1 }
 0x394   : > { %v1355_v34 = vmul.f32 %v1612_v1, %v1341_v32 }
 0x395   : > { %v1848_v35 = vpop.f32.mrf.mxu1 }
 0x396   : > { %v1364_v36 = vadd.f32 %v1613_v33, %v1355_v34 }
 0x397   : > { %v1344_v37 = vpop.f32.mrf.mxu1 }
 0x398   : > { %v1366_v38 = vadd.f32 %v1364_v36, %v2066_v16  ;;  %v1356_v39 = vmul.f32 %v1612_v1, %v1344_v37 }
 0x399   : > { %v1849_v40 = vpop.f32.mrf.mxu1 }
 0x39a   : > { %v1368_v41 = vmax.f32 %v1366_v38, 0.0  ;;  %v1365_v11 = vadd.f32 %v1613_v33, %v1356_v39 }
 0x39c   : > { %1370 = vst [vmem:[%s386_s20] sm:$0xff] %v1368_v41  ;;  %v1367_v42 = vadd.f32 %v1365_v11, %v2069_v17 }
 0x39e   : > { %v1369_v43 = vmax.f32 %v1367_v42, 0.0 }
 0x3a0   : > { %1371 = vst [vmem:[%s386_s20 + $0x8] sm:$0xff] %v1369_v43 }
 0x3a1 PF: > { %s21_s17 = sadd.s32 1, %s1931_s17  }
 0x3a2   : > { %p18_p4 = scmp.ge.s32.totalorder %s21_s17, 4  }
 0x3a4   :  { %20 = sbr.rel (!%p18_p4) target bundleno = 1 (0x1), region = 100 }

// kernel: _lambda_.24
= control target key start
LH: loop header
LB: loop body
LE: loop exit
PB: predicated region body
PF: predicated region fallthrough
CT: control target
= control target key end

     0   :  { %s1308_s13 = smov 0   ;;  %s1478_s0 = inlined_call_operand.vmem [shape: bf16[2,16,576], index: 0, kind: input, shape index: {}]   ;;  %s1479_s1 = inlined_call_operand.vmem [shape: bf16[576,64], index: 1, kind: input, shape index: {}]   ;;  %s1480_s2 = inlined_call_operand.vmem [shape: f32[2,16,64], index: 2, kind: input, shape index: {}]   ;;  %s1481_s3 = inlined_call_operand.vmem [shape: f32[2,16,64], index: 3, kind: input, shape index: {}]   ;;  %s1482_s4 = inlined_call_operand.vmem [shape: f32[2,16,64], index: 4, kind: input, shape index: {}]   ;;  %s1483_s5 = inlined_call_operand.vmem [shape: f32[2,16,64], index: 5, kind: input, shape index: {}]   ;;  %s1484_s6 = inlined_call_operand.vmem [shape: f32[1,64], index: 6, kind: input, shape index: {}]   ;;  %s1485_s7 = inlined_call_operand.vmem [shape: f32[1,64], index: 7, kind: input, shape index: {}]   ;;  %s1486_s8 = inlined_call_operand.vmem [shape: f32[1,64], index: 8, kind: input, shape index: {}]   ;;  %s1487_s9 = inlined_call_operand.vmem [shape: f32[1,64], index: 9, kind: input, shape index: {}]   ;;  %s1488_s10 = inlined_call_operand.vmem [shape: f32[2,16,128], index: 10, kind: output, shape index: {}]  }
   0x1 LB: > { %s1057_s14 = sadd.s32 4294967295, %s1248_s13   ;;  %p1061_p0 = scmp.ge.s32.totalorder %s1248_s13, 1  ;;  %s1248_s13 = sphi %s1308_s13, %s20_s13  }
   0x2   : > { %p352_p1 = scmp.lt.s32.totalorder %s1248_s13, 3 }
   0x4   : > { %p353_p2 = pnand %p1061_p0, %p352_p1 }
   0x5   : > { %p410_p3 = scmp.lt.s32.totalorder (!%p353_p2), %s1057_s14, 1  ;;  %s1252_s18 = smov (!%p353_p2), 64  }
   0x6   : > { %356 = sbr.rel (%p353_p2) target bundleno = 268 (0x10c), region = 60 }
   0xb   : > { %v1199_v0 = vld [vmem:[%s1479_s1 + $0x78] sm:$0xff]   ;;  %v1203_v4 = vld [vmem:[%s1479_s1 + $0x70] sm:$0xff]   ;;  %v1207_v8 = vld [vmem:[%s1479_s1 + $0x68] sm:$0xff]   ;;  %s1490_s14 = smov (!%p410_p3, %s1057_s14), 1  ;;  %v1250_v34 = vmov 0.0   ;;  %vm1251_vm0 = vmmov 0  }
   0xc   : > { %v1200_v1 = vld [vmem:[%s1479_s1 + $0xf8] sm:$0xff]   ;;  %1126 = vmatprep.subr.bf16.mxu0 %v1199_v0  ;;  %v1204_v5 = vld [vmem:[%s1479_s1 + $0xf0] sm:$0xff]   ;;  %v1208_v9 = vld [vmem:[%s1479_s1 + $0xe8] sm:$0xff]   ;;  %s1187_s11 = smul.u32 40, %s1490_s14  ;;  %s1422_s29 = sshll.u32 %s1490_s14, 4  ;;  %vm760_vm1 = vcmask 523264  }
   0xd   : > { %v1201_v2 = vld [vmem:[%s1479_s1 + $0x38] sm:$0xff]   ;;  %1148 = vmatprep.subr.bf16.mxu1 %v1200_v1  ;;  %v1205_v6 = vld [vmem:[%s1479_s1 + $0x30] sm:$0xff]   ;;  %v1209_v10 = vld [vmem:[%s1479_s1 + $0x28] sm:$0xff]   ;;  %s419_s14 = scalar_lea.vmem %s1480_s2, %s1422_s29  ;;  %s424_s20 = scalar_lea.vmem %s1481_s3, %s1422_s29  ;;  %vm951_vm2 = vcmask 1048064  }
   0xe   : > { %v1202_v3 = vld [vmem:[%s1479_s1 + $0xb8] sm:$0xff]   ;;  %1127 = vmatpush3.bf16.msra.mxu0 %v1201_v2  ;;  %v1206_v7 = vld [vmem:[%s1479_s1 + $0xb0] sm:$0xff]   ;;  %v1210_v11 = vld [vmem:[%s1479_s1 + $0xa8] sm:$0xff]   ;;  %s1413_s24 = scalar_lea.vmem %s1478_s0, %s1187_s11  ;;  %s429_s23 = scalar_lea.vmem %s1482_s4, %s1422_s29 }
   0xf   : > { %1149 = vmatpush3.bf16.msra.mxu1 %v1202_v3  ;;  %1128 = vmatprep.subr.bf16.mxu0 %v1203_v4  ;;  %v1211_v12 = vld [vmem:[%s1479_s1 + $0x60] sm:$0xff]   ;;  %v1215_v16 = vld [vmem:[%s1479_s1 + $0x58] sm:$0xff]   ;;  %v1219_v20 = vld [vmem:[%s1479_s1 + $0x50] sm:$0xff]   ;;  %s434_s27 = scalar_lea.vmem %s1483_s5, %s1422_s29  ;;  %s439_s25 = scalar_lea.vmem %s1488_s10, %s1422_s29 }
  0x10   : > { %1150 = vmatprep.subr.bf16.mxu1 %v1204_v5  ;;  %v1212_v13 = vld [vmem:[%s1479_s1 + $0xe0] sm:$0xff]   ;;  %v1216_v17 = vld [vmem:[%s1479_s1 + $0xd8] sm:$0xff]   ;;  %v1220_v21 = vld [vmem:[%s1479_s1 + $0xd0] sm:$0xff]  }
  0x11   : > { %v1213_v14 = vld [vmem:[%s1479_s1 + $0x20] sm:$0xff]   ;;  %v1217_v18 = vld [vmem:[%s1479_s1 + $0x18] sm:$0xff]   ;;  %v1221_v22 = vld [vmem:[%s1479_s1 + $0x10] sm:$0xff]  }
  0x12   : > { %1129 = vmatpush3.bf16.msra.mxu0 %v1205_v6  ;;  %v1214_v15 = vld [vmem:[%s1479_s1 + $0xa0] sm:$0xff]   ;;  %v1218_v19 = vld [vmem:[%s1479_s1 + $0x98] sm:$0xff]   ;;  %v1222_v23 = vld [vmem:[%s1479_s1 + $0x90] sm:$0xff]  }
  0x13   : > { %1151 = vmatpush3.bf16.msra.mxu1 %v1206_v7  ;;  %1130 = vmatprep.subr.bf16.mxu0 %v1207_v8  ;;  %v1223_v24 = vld [vmem:[%s1479_s1 + $0x48] sm:$0xff]   ;;  %v1227_v28 = vld [vmem:[%s1479_s1 + $0x40] sm:$0xff]   ;;  %v1237_v37 = vld [vmem:[%s1479_s1 + $0x118] sm:$0xff]  }
  0x14   : > { %1152 = vmatprep.subr.bf16.mxu1 %v1208_v9  ;;  %v1224_v25 = vld [vmem:[%s1479_s1 + $0xc8] sm:$0xff]   ;;  %v1228_v29 = vld [vmem:[%s1479_s1 + $0xc0] sm:$0xff]   ;;  %v1238_v38 = vld [vmem:[%s1479_s1 + $0x110] sm:$0xff]  }
  0x15   : > { %v1225_v26 = vld [vmem:[%s1479_s1 + $0x8] sm:$0xff]   ;;  %v1229_v30 = vld [vmem:[%s1479_s1] sm:$0xff]  }
  0x16   : > { %1131 = vmatpush3.bf16.msra.mxu0 %v1209_v10  ;;  %v1226_v27 = vld [vmem:[%s1479_s1 + $0x88] sm:$0xff]   ;;  %v1230_v31 = vld [vmem:[%s1479_s1 + $0x80] sm:$0xff]  }
  0x17   : > { %1153 = vmatpush3.bf16.msra.mxu1 %v1210_v11  ;;  %1132 = vmatprep.subr.bf16.mxu0 %v1211_v12  ;;  %v1231_v32 = vld [vmem:[%s1413_s24] ss:$20 sps:$4 sm:$0xff]   ;;  %v1233_v33 = vld [vmem:[%s1413_s24 + $0x4] ss:$20 sps:$4 sm:$0xff]   ;;  %v1234_v35 = vld [vmem:[%s1413_s24 + $0x8] ss:$20 sps:$4 sm:$0xff]  }
  0x18   : > { %1154 = vmatprep.subr.bf16.mxu1 %v1212_v13  ;;  %v1236_v36 = vld [vmem:[%s1413_s24 + $0xc] ss:$20 sps:$4 sm:$0xff]   ;;  %796 = vmatprep.mubr.bf16.mxu0 %v1233_v33  ;;  %v1241_v59 = vld [vmem:[%s1413_s24 + $0x10] ss:$20 sps:$4 sm:$0xff]  }
  0x19   : > { %837 = vmatprep.mubr.bf16.mxu1 %v1236_v36  ;;  %v1239_v39 = vld [vmem:[%s1479_s1 + $0x108] sm:$0xff]   ;;  %v905_v40 = vld [vmem:[%s419_s14] sm:$0xff] }
  0x1a   : > { %1133 = vmatpush3.bf16.msra.mxu0 %v1213_v14  ;;  %v906_v41 = vld [vmem:[%s419_s14 + $0x8] sm:$0xff]  ;;  %v907_v42 = vld [vmem:[%s424_s20] sm:$0xff] }
  0x1b   : > { %1155 = vmatpush3.bf16.msra.mxu1 %v1214_v15  ;;  %1134 = vmatprep.subr.bf16.mxu0 %v1215_v16  ;;  %v908_v43 = vld [vmem:[%s424_s20 + $0x8] sm:$0xff]  ;;  %v909_v44 = vmax.f32 %v905_v40, %v907_v42  ;;  %v911_v46 = vld [vmem:[%s429_s23] sm:$0xff] }
  0x1c   : > { %1156 = vmatprep.subr.bf16.mxu1 %v1216_v17  ;;  %v910_v45 = vmax.f32 %v906_v41, %v908_v43  ;;  %v912_v47 = vld [vmem:[%s429_s23 + $0x8] sm:$0xff]  ;;  %v913_v48 = vld [vmem:[%s434_s27] sm:$0xff] }
  0x1d   : > { %v914_v49 = vld [vmem:[%s434_s27 + $0x8] sm:$0xff]  ;;  %v915_v50 = vmax.f32 %v911_v46, %v913_v48  ;;  %v1117_v52 = vld [vmem:[%s1486_s8] ss:$0 sm:$0xff] }
  0x1e   : > { %1135 = vmatpush3.bf16.msra.mxu0 %v1217_v18  ;;  %v916_v51 = vmax.f32 %v912_v47, %v914_v49  ;;  %v1240_v54 = vld [vmem:[%s1479_s1 + $0x100] sm:$0xff]  }
  0x1f   : > { %1157 = vmatpush3.bf16.msra.mxu1 %v1218_v19  ;;  %1136 = vmatprep.subr.bf16.mxu0 %v1219_v20  ;;  %v917_v53 = vmax.f32 %v909_v44, %v915_v50  ;;  %v1118_v56 = vld [vmem:[%s1487_s9] ss:$0 sm:$0xff] }
  0x20   : > { %1158 = vmatprep.subr.bf16.mxu1 %v1220_v21  ;;  %v918_v55 = vmax.f32 %v910_v45, %v916_v51  ;;  %v1115_v14 = vld [vmem:[%s1484_s6] ss:$0 sm:$0xff] }
  0x21   : > { %v926_v57 = vmul.f32 %v1117_v52, %v917_v53  ;;  %v1116_v16 = vld [vmem:[%s1485_s7] ss:$0 sm:$0xff] }
  0x22   : > { %1137 = vmatpush3.bf16.msra.mxu0 %v1221_v22  ;;  %v927_v58 = vmul.f32 %v1117_v52, %v918_v55 }
  0x23   : > { %1159 = vmatpush3.bf16.msra.mxu1 %v1222_v23  ;;  %1138 = vmatprep.subr.bf16.mxu0 %v1223_v24  ;;  %v935_v60 = vadd.f32 %v1118_v56, %v926_v57 }
  0x24   : > { %1160 = vmatprep.subr.bf16.mxu1 %v1224_v25  ;;  %v936_v61 = vadd.f32 %v1118_v56, %v927_v58 }
  0x25   : > { %v941_v62 = vmax.f32 %v935_v60, 0.0 }
  0x26   : > { %1139 = vmatpush3.bf16.msra.mxu0 %v1225_v26  ;;  %v942_v63 = vmax.f32 %v936_v61, 0.0 }
  0x27   : > { %1161 = vmatpush3.bf16.msra.mxu1 %v1226_v27  ;;  %1140 = vmatprep.subr.bf16.mxu0 %v1227_v28 }
  0x28   : > { %1162 = vmatprep.subr.bf16.mxu1 %v1228_v29  ;;  %945 = vrot.lane.b32.xlu0 %v941_v62, %s1252_s18 }
  0x2a   : > { %1141 = vmatpush3.bf16.msra.mxu0 %v1229_v30 }
  0x2b   : > { %1163 = vmatpush3.bf16.msra.mxu1 %v1230_v31  ;;  %1175 = vmatprep.subr.bf16.mxu0 %v1250_v34 }
  0x2c   : > { %947 = vrot.lane.b32.xlu0 %v942_v63, %s1252_s18 }
  0x2d   : > { %797 = vmatmul.mubr.bf16.vlgmr.msra.gmra.mxu0 %v1231_v32 }
  0x2e   : > { %838 = vmatmul.mubr.bf16.vlgmr.msra.gmra.mxu1 %v1234_v35  ;;  %1176 = vmatpush3.bf16.msra.mxu0 %v1237_v37 }
  0x2f   : > { %1177 = vmatprep.subr.bf16.mxu0 %v1250_v34  ;;  %1183 = vmatprep.mubr.msk.bf16.mxu0 %vm1251_vm0, %v1250_v34 }
  0x32   : > { %1178 = vmatpush3.bf16.msra.mxu0 %v1238_v38 }
  0x33   : > { %1179 = vmatprep.subr.bf16.mxu0 %v1250_v34 }
  0x36   : > { %1180 = vmatpush3.bf16.msra.mxu0 %v1239_v39 }
  0x37   : > { %1181 = vmatprep.subr.bf16.mxu0 %v1250_v34 }
  0x3a   : > { %1182 = vmatpush3.bf16.msra.mxu0 %v1240_v54 }
  0x3d   : > { %1184 = vmatmul.mubr.msk.bf16.vlgmr.msra.gmra.mxu0 %vm760_vm1, %v1241_v59 }
  0x9a   : > { %v946_v23 = vpop.permute.xlu0 %945 }
  0x9e   : > { %v948_v29 = vpop.permute.xlu0 %947 }
  0xed   : > { %v1142_v0 = vpop.f32.mrf.mxu0 }
  0xee   : > { %v1164_v1 = vpop.f32.mrf.mxu1 }
  0xef   : > { %v1143_v2 = vpop.f32.mrf.mxu0 }
  0xf0   : > { %v1165_v3 = vpop.f32.mrf.mxu1  ;;  %v1144_v6 = vadd.f32 %v1143_v2, %v1142_v0 }
  0xf1   : > { %v1145_v4 = vpop.f32.mrf.mxu0  ;;  %v1166_v7 = vadd.f32 %v1165_v3, %v1164_v1 }
  0xf2   : > { %v1167_v5 = vpop.f32.mrf.mxu1 }
  0xf3   : > { %v1146_v8 = vpop.f32.mrf.mxu0  ;;  %v840_v12 = vadd.f32 %v1166_v7, %v1144_v6 }
  0xf4   : > { %v1168_v9 = vpop.f32.mrf.mxu1  ;;  %v1147_v10 = vadd.f32 %v1146_v8, %v1145_v4 }
  0xf5   : > { %v1169_v11 = vadd.f32 %v1168_v9, %v1167_v5 }
  0xf7   : > { %v843_v19 = vadd.f32 %v1169_v11, %v1147_v10 }
  0xfd   : > { %v880_v13 = vpop.f32.mrf.mxu0 }
  0xfe   : > { %v881_v15 = vadd.f32 %v880_v13, %v840_v12 }
  0xff   : > { %v1185_v17 = vpop.f32.mrf.mxu0 }
 0x100   : > { %v894_v18 = vmul.f32 %v1115_v14, %v881_v15 }
 0x101   : > { %v883_v20 = vpop.f32.mrf.mxu0 }
 0x102   : > { %v903_v21 = vadd.f32 %v1116_v16, %v894_v18  ;;  %v884_v22 = vadd.f32 %v883_v20, %v843_v19 }
 0x103   : > { %v1186_v24 = vpop.f32.mrf.mxu0 }
 0x104   : > { %v937_v25 = vmax.f32 %v903_v21, 0.0  ;;  %v895_v26 = vmul.f32 %v1115_v14, %v884_v22 }
 0x106   : > { %v904_v27 = vadd.f32 %v1116_v16, %v895_v26  ;;  %939 = vst.msk [vmem:[%s439_s25] sm:$0xff] %vm760_vm1, %v937_v25 }
 0x107   : > { %952 = vst.msk [vmem:[%s439_s25] sm:$0xff] %vm951_vm2, %v946_v23 }
 0x108   : > { %v938_v28 = vmax.f32 %v904_v27, 0.0 }
 0x10a   : > { %940 = vst.msk [vmem:[%s439_s25 + $0x8] sm:$0xff] %vm760_vm1, %v938_v28 }
 0x10b   : > { %953 = vst.msk [vmem:[%s439_s25 + $0x8] sm:$0xff] %vm951_vm2, %v948_v29 }
 0x10c PF: > { %s20_s13 = sadd.s32 1, %s1248_s13  }
 0x10d   : > { %p17_p4 = scmp.ge.s32.totalorder %s20_s13, 4  }
 0x10f   :  { %19 = sbr.rel (!%p17_p4) target bundleno = 1 (0x1), region = 102 }

// kernel: _lambda_.33
= control target key start
LH: loop header
LB: loop body
LE: loop exit
PB: predicated region body
PF: predicated region fallthrough
CT: control target
= control target key end

     0   :  { %s2025_s0 = inlined_call_operand.vmem [shape: f32[2,16,128], index: 0, kind: input, shape index: {}]   ;;  %s2026_s1 = inlined_call_operand.vmem [shape: bf16[128,16], index: 1, kind: input, shape index: {}]   ;;  %s2027_s2 = inlined_call_operand.vmem [shape: f32[1,16], index: 2, kind: input, shape index: {}]   ;;  %s2028_s3 = inlined_call_operand.vmem [shape: bf16[128,16], index: 3, kind: input, shape index: {}]   ;;  %s2029_s4 = inlined_call_operand.vmem [shape: f32[1,16], index: 4, kind: input, shape index: {}]   ;;  %s2030_s5 = inlined_call_operand.vmem [shape: bf16[128,128], index: 5, kind: input, shape index: {}]   ;;  %s2031_s6 = inlined_call_operand.vmem [shape: f32[1,128], index: 6, kind: input, shape index: {}]   ;;  %s2032_s7 = inlined_call_operand.vmem [shape: bf16[128,16], index: 7, kind: input, shape index: {}]   ;;  %s2033_s8 = inlined_call_operand.vmem [shape: bf16[128,16], index: 8, kind: input, shape index: {}]   ;;  %s2034_s9 = inlined_call_operand.vmem [shape: bf16[16,128], index: 9, kind: input, shape index: {}]   ;;  %s2035_s10 = inlined_call_operand.<no memory space> [shape: f32[1,1], index: 10, kind: input, shape index: {}]   ;;  %s2036_s11 = inlined_call_operand.hbm [shape: f32[2,16,128], index: 11, kind: output, shape index: {}]  }
   0x1   :  { %v16_v0 = vstv %s2035_s10 }
   0x2   :  { %17 = vst [vmem:[#allocation2] sm:$0x1] %v16_v0 }
   0x3   :  { %18 = vsyncpa [#allocation4], 0 }
   0x4   :  { %20 = vsyncpa [#allocation4 + $0x1], 0  ;;  %s1699_s19 = smov 0   ;;  %s1701_s20 = smov 0  }
   0x5   :  { %s1703_s21 = smov 0   ;;  %s1705_s22 = smov 0  }
   0x6 LB: > { %s1720_s10 = sadd.s32 4294967295, %s1628_s22   ;;  %s1238_s23 = sadd.s32 4294967294, %s1628_s22   ;;  %s1628_s22 = sphi %s1705_s22, %s2042_s22   ;;  %s1624_s21 = sphi %s1703_s21, %s2041_s21   ;;  %s1620_s20 = sphi %s1701_s20, %s2040_s20   ;;  %s1616_s19 = sphi %s1699_s19, %s2039_s19  }
   0x7   : > { %s1724_s24 = sadd.s32 1, %s1628_s22   ;;  %s269_s25 = sadd.s32 1, %s1624_s21 }
   0x8   : > { %s266_s26 = ssub.s32 %s1628_s22, %s1724_s24  ;;  %p279_p0 = scmp.ne.s32.totalorder %s1624_s21, %s1620_s20 }
   0x9   : > { %p267_p1 = scmp.eq.s32.totalorder %s266_s26, 0  ;;  %p280_p2 = scmp.eq.s32.totalorder %s1720_s10, 1 }
   0xa   : > { %p285_p3 = scmp.ne.s32.totalorder %s1620_s20, %s1616_s19  ;;  %p286_p4 = scmp.eq.s32.totalorder %s1238_s23, 1 }
   0xb   : > { %s1735_s27 = scalar_select %p267_p1, %s1624_s21, %s269_s25  }
   0xc   : > { %p1737_p5 = por %p280_p2, %p279_p0  ;;  %p1741_p6 = por %p286_p4, %p285_p3 }
   0xd   : > { %p1241_p7 = scmp.ge.s32.totalorder %s1628_s22, 1  ;;  %p342_p8 = scmp.lt.s32.totalorder %s1628_s22, 3 }
   0xf   : > { %p343_p9 = pnand %p1241_p7, %p342_p8 }
  0x10   : > { %p382_p10 = scmp.lt.s32.totalorder (!%p343_p9), %s1720_s10, 1  ;;  %s379_s17 = sand.u32 (!%p343_p9), 1, %s1620_s20  }
  0x11   : > { %346 = sbr.rel (%p343_p9) target bundleno = 990 (0x3de), region = 64  ;;  %s1242_s18 = sshll.u32 (!%p343_p9), %s379_s17, 4 }
  0x12   : > { %s381_s23 = scalar_lea.vmem (!%p343_p9), [#allocation3], %s1242_s18  ;;  %s1633_s14 = smov (!%p343_p9), [#allocation3]  }
  0x13   : > { %s1572_s15 = sshll.u32 (!%p343_p9), %s1633_s14, 4  ;;  %s1573_s15 = int_to_ptr.vmem [resolvable:$false] %s1572_s15 }
  0x14   : > { %s1574_s18 = scalar_lea.vmem (!%p343_p9), %s1573_s15, 512 }
  0x16   : > { %v1513_v1 = vld [vmem:[%s2028_s3 + $0x38] sm:$0xff]   ;;  %v1630_v2 = vmov 0.0   ;;  %v1515_v4 = vld [vmem:[%s2028_s3 + $0x30] sm:$0xff]   ;;  %vm1631_vm0 = vmmov 0   ;;  %v1517_v6 = vld [vmem:[%s2028_s3 + $0x28] sm:$0xff]   ;;  %s383_s16 = scalar_select %p382_p10, %s1720_s10, 1 }
  0x17   : > { %1370 = vmatprep.subr.bf16.mxu1 %v1630_v2  ;;  %1350 = vmatprep.subr.bf16.mxu0 %v1630_v2  ;;  %v1514_v3 = vld [vmem:[%s2026_s1 + $0x38] sm:$0xff]   ;;  %v1516_v5 = vld [vmem:[%s2026_s1 + $0x30] sm:$0xff]   ;;  %v1518_v7 = vld [vmem:[%s2026_s1 + $0x28] sm:$0xff]   ;;  %vm729_vm1 = vcmask 130048  }
  0x18   : > { %1371 = vmatpush3.bf16.msra.mxu1 %v1513_v1  ;;  %1386 = vmatprep.mubr.msk.bf16.mxu1 %vm1631_vm0, %v1630_v2  ;;  %v1519_v8 = vld [vmem:[%s2028_s3 + $0x20] sm:$0xff]   ;;  %v1521_v10 = vld [vmem:[%s2028_s3 + $0x18] sm:$0xff]   ;;  %v1523_v12 = vld [vmem:[%s2028_s3 + $0x10] sm:$0xff]   ;;  %s1297_s12 = sshll.u32 %s383_s16, 4  ;;  %s1298_s16 = sshll.u32 %s1720_s10, 8 }
  0x19   : > { %1351 = vmatpush3.bf16.msra.mxu0 %v1514_v3  ;;  %1372 = vmatprep.subr.bf16.mxu1 %v1630_v2  ;;  %v1520_v9 = vld [vmem:[%s2026_s1 + $0x20] sm:$0xff]   ;;  %v1522_v11 = vld [vmem:[%s2026_s1 + $0x18] sm:$0xff]   ;;  %v1524_v13 = vld [vmem:[%s2026_s1 + $0x10] sm:$0xff]   ;;  %s386_s25 = scalar_lea.vmem %s2025_s0, %s1297_s12  ;;  %s1982_s13 = scalar_lea.hbm %s2036_s11, %s1298_s16 }
  0x1a   : > { %1352 = vmatprep.subr.bf16.mxu0 %v1630_v2  ;;  %1366 = vmatprep.mubr.msk.bf16.mxu0 %vm1631_vm0, %v1630_v2  ;;  %v1525_v14 = vld [vmem:[%s2028_s3 + $0x8] sm:$0xff]   ;;  %v1527_v16 = vld [vmem:[%s2028_s3] sm:$0xff]   ;;  %v1529_v21 = vld [vmem:[%s2030_s5 + $0x38] sm:$0xff]   ;;  %s1985_s12 = scalar_lea.sflag [#allocation4], %s379_s17 }
  0x1b   : > { %v1526_v15 = vld [vmem:[%s2026_s1 + $0x8] sm:$0xff]   ;;  %v1815_v17 = vld [vmem:[%s386_s25] sm:$0xff]  ;;  %v1530_v22 = vld [vmem:[%s2030_s5 + $0x30] sm:$0xff]  }
  0x1c   : > { %1373 = vmatpush3.bf16.msra.mxu1 %v1515_v4  ;;  %v1817_v18 = vld [vmem:[%s386_s25 + $0x8] sm:$0xff]  ;;  %v1528_v19 = vld [vmem:[%s2026_s1] sm:$0xff]   ;;  %v1533_v61 = vld [vmem:[%s2030_s5 + $0x18] sm:$0xff]   ;;  %s1176_s25 = sshll.u32 %s381_s23, 4  ;;  %s1977_s25 = int_to_ptr.vmem [resolvable:$true] %s1176_s25 }
  0x1d   : > { %1353 = vmatpush3.bf16.msra.mxu0 %v1516_v5  ;;  %1374 = vmatprep.subr.bf16.mxu1 %v1630_v2  ;;  %v1826_v20 = vpack.c.bf16 %v1817_v18, %v1815_v17  ;;  %v1531_v23 = vld [vmem:[%s2030_s5 + $0x28] sm:$0xff]   ;;  %v1254_v26 = vld [vmem:[%s2029_s4] ss:$0 sm:$0xff]  ;;  %v801_v41 = vadd.f32 %v1817_v18, %v1815_v17  ;;  %v1534_v63 = vld [vmem:[%s2030_s5 + $0x10] sm:$0xff]   ;;  %s1568_s10 = scalar_lea.vmem %s1977_s25, 256  ;;  %p1575_p0 = scmp.lt.s32.totalorder %s1977_s25, %s1573_s15 }
  0x1e   : > { %1354 = vmatprep.subr.bf16.mxu0 %v1630_v2  ;;  %v1245_v36 = vld [vmem:[%s2027_s2] ss:$0 sm:$0xff]  ;;  %v1537_v0 = vld [vmem:[%s2033_s8 + $0x38] sm:$0xff]   ;;  %v1535_v1 = vld [vmem:[%s2030_s5 + $0x8] sm:$0xff]   ;;  %p1569_p11 = scmp.ne.s32.totalorder %s1977_s25, %s1568_s10  ;;  %p1576_p1 = scmp.lt.s32.totalorder %s1574_s18, %s1568_s10 }
  0x1f   : > { %v802_v42 = vrot.slane %v801_v41, 4  ;;  %v1532_v59 = vld [vmem:[%s2030_s5 + $0x20] sm:$0xff]   ;;  %v1539_v3 = vld [vmem:[%s2033_s8 + $0x30] sm:$0xff]   ;;  %v1541_v5 = vld [vmem:[%s2033_s8 + $0x28] sm:$0xff]  }
  0x20   : > { %1375 = vmatpush3.bf16.msra.mxu1 %v1517_v6  ;;  %v1536_v4 = vld [vmem:[%s2030_s5] sm:$0xff]   ;;  %v1538_v6 = vld [vmem:[%s2032_s7 + $0x38] sm:$0xff]   ;;  %p1570_p12 = pnand %p1569_p11, %p1737_p5  ;;  %p1577_p2 = por %p1576_p1, %p1575_p0 }
  0x21   : > { %1355 = vmatpush3.bf16.msra.mxu0 %v1518_v7  ;;  %1376 = vmatprep.subr.bf16.mxu1 %v1630_v2  ;;  %v803_v43 = vadd.f32 %v802_v42, %v801_v41  ;;  %v1543_v7 = vld [vmem:[%s2033_s8 + $0x20] sm:$0xff]  }
  0x22   : > { %1356 = vmatprep.subr.bf16.mxu0 %v1630_v2  ;;  %p1571_p13 = pneg %p1570_p12 }
  0x23   : > { %v804_v44 = vrot.slane %v803_v43, 2 }
  0x24   : > { %1377 = vmatpush3.bf16.msra.mxu1 %v1519_v8  ;;  %v1540_v8 = vld [vmem:[%s2032_s7 + $0x30] sm:$0xff]   ;;  %p1578_p3 = pnand %p1577_p2, %p1571_p13 }
  0x25   : > { %1357 = vmatpush3.bf16.msra.mxu0 %v1520_v9  ;;  %1378 = vmatprep.subr.bf16.mxu1 %v1630_v2  ;;  %v805_v45 = vadd.f32 %v804_v44, %v803_v43  ;;  %v1545_v9 = vld [vmem:[%s2033_s8 + $0x18] sm:$0xff]   ;;  %v1263_v43 = vld [vmem:[%s2031_s6] ss:$0 sm:$0xff] }
  0x26   : > { %1358 = vmatprep.subr.bf16.mxu0 %v1630_v2 }
  0x27   : > { %v806_v46 = vrot.slane %v805_v45, 1 }
  0x28   : > { %1379 = vmatpush3.bf16.msra.mxu1 %v1521_v10 }
  0x29   : > { %1359 = vmatpush3.bf16.msra.mxu0 %v1522_v11  ;;  %1380 = vmatprep.subr.bf16.mxu1 %v1630_v2  ;;  %v807_v47 = vadd.f32 %v806_v46, %v805_v45  ;;  %v1542_v11 = vld [vmem:[%s2032_s7 + $0x28] sm:$0xff]  }
  0x2a   : > { %1360 = vmatprep.subr.bf16.mxu0 %v1630_v2 }
  0x2b   : > { %v1861_v48 = vmul.f32 0.0625, %v807_v47 }
  0x2c   : > { %1381 = vmatpush3.bf16.msra.mxu1 %v1523_v12  ;;  %v1547_v12 = vld [vmem:[%s2033_s8 + $0x10] sm:$0xff]  }
  0x2d   : > { %1361 = vmatpush3.bf16.msra.mxu0 %v1524_v13  ;;  %1382 = vmatprep.subr.bf16.mxu1 %v1630_v2  ;;  %v809_v49 = vsub.f32 %v1815_v17, %v1861_v48  ;;  %v810_v50 = vsub.f32 %v1817_v18, %v1861_v48 }
  0x2e   : > { %1362 = vmatprep.subr.bf16.mxu0 %v1630_v2 }
  0x2f   : > { %v811_v51 = vmul.f32 %v809_v49, %v809_v49  ;;  %v812_v52 = vmul.f32 %v810_v50, %v810_v50 }
  0x30   : > { %1383 = vmatpush3.bf16.msra.mxu1 %v1525_v14  ;;  %v1544_v14 = vld [vmem:[%s2032_s7 + $0x20] sm:$0xff]  }
  0x31   : > { %1363 = vmatpush3.bf16.msra.mxu0 %v1526_v15  ;;  %1384 = vmatprep.subr.bf16.mxu1 %v1630_v2  ;;  %v813_v53 = vadd.f32 %v812_v52, %v811_v51  ;;  %v1549_v15 = vld [vmem:[%s2033_s8 + $0x8] sm:$0xff]  }
  0x32   : > { %1364 = vmatprep.subr.bf16.mxu0 %v1630_v2 }
  0x33   : > { %v814_v54 = vrot.slane %v813_v53, 4 }
  0x34   : > { %1385 = vmatpush3.bf16.msra.mxu1 %v1527_v16 }
  0x35   : > { %1365 = vmatpush3.bf16.msra.mxu0 %v1528_v19  ;;  %1410 = vmatprep.subr.bf16.mxu1 %v1630_v2  ;;  %v815_v55 = vadd.f32 %v814_v54, %v813_v53 }
  0x36   : > { %1390 = vmatprep.subr.bf16.mxu0 %v1630_v2 }
  0x37   : > { %1387 = vmatmul.mubr.bf16.vlgmr.msra.gmra.mxu1 %v1826_v20  ;;  %v816_v56 = vrot.slane %v815_v55, 2 }
  0x38   : > { %1367 = vmatmul.mubr.bf16.vlgmr.msra.gmra.mxu0 %v1826_v20  ;;  %1412 = vmatprep.mubr.msk.bf16.mxu1 %vm1631_vm0, %v1630_v2 }
  0x39   : > { %1406 = vmatprep.mubr.msk.bf16.mxu0 %vm1631_vm0, %v1630_v2  ;;  %1391 = vmatpush3.bf16.msra.mxu0 %v1529_v21  ;;  %v817_v57 = vadd.f32 %v816_v56, %v815_v55  ;;  %v1551_v21 = vld [vmem:[%s2033_s8] sm:$0xff]  }
  0x3a   : > { %1392 = vmatprep.subr.bf16.mxu0 %v1630_v2 }
  0x3b   : > { %v818_v58 = vrot.slane %v817_v57, 1 }
  0x3d   : > { %1393 = vmatpush3.bf16.msra.mxu0 %v1530_v22  ;;  %v819_v60 = vadd.f32 %v818_v58, %v817_v57 }
  0x3e   : > { %1394 = vmatprep.subr.bf16.mxu0 %v1630_v2 }
  0x3f   : > { %v820_v62 = vmul.f32 0.06666667, %v819_v60 }
  0x41   : > { %1395 = vmatpush3.bf16.msra.mxu0 %v1531_v23  ;;  %1554 = vrsqrt.f32 %v820_v62  ;;  %vm823_vm2 = vcmp.eq.f32.partialorder %v820_v62, inf  ;;  %v826_v16 = vand.u32 2147483648, %v820_v62  ;;  %vm825_vm3 = vcmp.eq.f32.partialorder %v820_v62, 0.0  ;;  %v1548_v23 = vld [vmem:[%s2032_s7 + $0x10] sm:$0xff]  }
  0x42   : > { %1396 = vmatprep.subr.bf16.mxu0 %v1630_v2 }
  0x45   : > { %1397 = vmatpush3.bf16.msra.mxu0 %v1532_v59 }
  0x46   : > { %1398 = vmatprep.subr.bf16.mxu0 %v1630_v2 }
  0x49   : > { %1399 = vmatpush3.bf16.msra.mxu0 %v1533_v61 }
  0x4a   : > { %1400 = vmatprep.subr.bf16.mxu0 %v1630_v2 }
  0x4d   : > { %1401 = vmatpush3.bf16.msra.mxu0 %v1534_v63 }
  0x4e   : > { %1402 = vmatprep.subr.bf16.mxu0 %v1630_v2  ;;  %v1555_v10 = vpop.eup %1554 }
  0x4f   : > { %v822_v13 = vmul.f32 %v1555_v10, %v820_v62 }
  0x51   : > { %1403 = vmatpush3.bf16.msra.mxu0 %v1535_v1  ;;  %v824_v19 = vsel %vm823_vm2, %v820_v62, %v822_v13  ;;  %v1632_v1 = vmov 0  }
  0x52   : > { %1404 = vmatprep.subr.bf16.mxu0 %v1630_v2  ;;  %v827_v22 = vsel %vm825_vm3, %v826_v16, %v824_v19  ;;  %1512 = vset.pattern.permute.xlu0 %v1632_v1  ;;  %v1103_v19 = vlaneseq }
  0x55   : > { %1405 = vmatpush3.bf16.msra.mxu0 %v1536_v4 }
  0x56   : > { %1436 = vmatprep.subr.bf16.mxu0 %v1630_v2 }
  0x58   : > { %1407 = vmatmul.mubr.bf16.vlgmr.msra.gmra.mxu0 %v1826_v20  ;;  %v1546_v20 = vld [vmem:[%s2032_s7 + $0x18] sm:$0xff]  }
  0x59   : > { %1437 = vmatpush3.bf16.msra.mxu0 %v1538_v6  ;;  %1452 = vmatprep.mubr.msk.bf16.mxu0 %vm1631_vm0, %v1630_v2 }
  0x5a   : > { %1438 = vmatprep.subr.bf16.mxu0 %v1630_v2 }
  0x5d   : > { %1439 = vmatpush3.bf16.msra.mxu0 %v1540_v8 }
  0x5e   : > { %1440 = vmatprep.subr.bf16.mxu0 %v1630_v2 }
  0x61   : > { %1441 = vmatpush3.bf16.msra.mxu0 %v1542_v11 }
  0x62   : > { %1442 = vmatprep.subr.bf16.mxu0 %v1630_v2 }
  0x65   : > { %1443 = vmatpush3.bf16.msra.mxu0 %v1544_v14 }
  0x66   : > { %1444 = vmatprep.subr.bf16.mxu0 %v1630_v2 }
  0x69   : > { %1445 = vmatpush3.bf16.msra.mxu0 %v1546_v20  ;;  %v1104_v20 = vshrl.u32 %v1103_v19, 7 }
  0x6a   : > { %1446 = vmatprep.subr.bf16.mxu0 %v1630_v2 }
  0x6d   : > { %1447 = vmatpush3.bf16.msra.mxu0 %v1548_v23 }
  0x6e   : > { %1448 = vmatprep.subr.bf16.mxu0 %v1630_v2 }
  0xf7   : > { %v608_v24 = vpop.f32.mrf.mxu1 }
  0xf8   : > { %v496_v25 = vpop.f32.mrf.mxu0  ;;  %v609_v30 = vadd.f32 %v1254_v26, %v608_v24  ;;  %v845_v24 = vpack.c.bf16 %v827_v22, %v827_v22 }
  0xf9   : > { %v1388_v27 = vpop.f32.mrf.mxu1  ;;  %v497_v38 = vadd.f32 %v1245_v36, %v496_v25  ;;  %v1550_v25 = vld [vmem:[%s2032_s7 + $0x8] sm:$0xff]  }
  0xfa   : > { %v1368_v28 = vpop.f32.mrf.mxu0  ;;  %1449 = vmatpush3.bf16.msra.mxu0 %v1550_v25  ;;  %v828_v27 = vpack.c.bf16 %v1861_v48, %v1861_v48 }
  0xfb   : > { %v611_v29 = vpop.f32.mrf.mxu1  ;;  %1450 = vmatprep.subr.bf16.mxu0 %v1630_v2 }
  0xfc   : > { %v612_v31 = vadd.f32 %v1254_v26, %v611_v29  ;;  %v499_v32 = vpop.f32.mrf.mxu0  ;;  %v1552_v26 = vld [vmem:[%s2032_s7] sm:$0xff]  }
  0xfd   : > { %v1389_v33 = vpop.f32.mrf.mxu1  ;;  %v500_v39 = vadd.f32 %v1245_v36, %v499_v32 }
  0xfe   : > { %v728_v34 = vpack.c.bf16 %v612_v31, %v609_v30  ;;  %v1369_v35 = vpop.f32.mrf.mxu0  ;;  %1451 = vmatpush3.bf16.msra.mxu0 %v1552_v26 }
  0xff   : > { %v727_v40 = vpack.c.bf16 %v500_v39, %v497_v38 }
 0x100   : > { %v734_v37 = vsel %vm729_vm1, %v728_v34, 0  ;;  %v1553_v34 = vld [vmem:[%s2034_s9] sm:$0xff]  }
 0x101   : > { %1411 = vmatpush3.bf16.xpose.msra.mxu1 %v734_v37  ;;  %1453 = vmatmul.mubr.bf16.vlgmr.msra.gmra.mxu0 %v828_v27 }
 0x102   : > { %1416 = vmatprep.subr.bf16.mxu1 %v1630_v2 }
 0x108   : > { %1413 = vmatmul.mubr.msk.bf16.vlgmr.msra.gmra.mxu1 %vm729_vm1, %v727_v40 }
 0x109   : > { %1432 = vmatprep.mubr.msk.bf16.mxu1 %vm1631_vm0, %v1630_v2  ;;  %1417 = vmatpush3.bf16.msra.mxu1 %v1537_v0  ;;  %v1097_v0 = vld [vmem:[#allocation2] sm:$0x1] }
 0x10a   : > { %1418 = vmatprep.subr.bf16.mxu1 %v1630_v2 }
 0x10d   : > { %1419 = vmatpush3.bf16.msra.mxu1 %v1539_v3 }
 0x10e   : > { %1420 = vmatprep.subr.bf16.mxu1 %v1630_v2 }
 0x111   : > { %1421 = vmatpush3.bf16.msra.mxu1 %v1541_v5 }
 0x112   : > { %1422 = vmatprep.subr.bf16.mxu1 %v1630_v2 }
 0x115   : > { %1423 = vmatpush3.bf16.msra.mxu1 %v1543_v7 }
 0x116   : > { %1424 = vmatprep.subr.bf16.mxu1 %v1630_v2 }
 0x118   : > { %v720_v35 = vpop.f32.mrf.mxu0 }
 0x119   : > { %1425 = vmatpush3.bf16.msra.mxu1 %v1545_v9  ;;  %v721_v44 = vadd.f32 %v1263_v43, %v720_v35 }
 0x11a   : > { %1426 = vmatprep.subr.bf16.mxu1 %v1630_v2  ;;  %v1408_v36 = vpop.f32.mrf.mxu0 }
 0x11c   : > { %v723_v37 = vpop.f32.mrf.mxu0 }
 0x11d   : > { %1427 = vmatpush3.bf16.msra.mxu1 %v1547_v12  ;;  %v724_v45 = vadd.f32 %v1263_v43, %v723_v37 }
 0x11e   : > { %1428 = vmatprep.subr.bf16.mxu1 %v1630_v2  ;;  %v1409_v38 = vpop.f32.mrf.mxu0 }
 0x11f   : > { %v800_v50 = vpack.c.bf16 %v724_v45, %v721_v44 }
 0x121   : > { %1429 = vmatpush3.bf16.msra.mxu1 %v1549_v15 }
 0x122   : > { %1430 = vmatprep.subr.bf16.mxu1 %v1630_v2 }
 0x125   : > { %1431 = vmatpush3.bf16.msra.mxu1 %v1551_v21  ;;  %v1105_v21 = vsub.s32 0, %v1104_v20 }
 0x126   : > { %1456 = vmatprep.subr.bf16.mxu1 %v1630_v2 }
 0x128   : > { %1433 = vmatmul.mubr.bf16.vlgmr.msra.gmra.mxu1 %v845_v24 }
 0x129   : > { %1458 = vmatprep.mubr.msk.bf16.mxu1 %vm1631_vm0, %v1630_v2  ;;  %1457 = vmatpush3.bf16.msra.mxu1 %v1553_v34 }
 0x12a   : > { %1462 = vmatprep.subr.bf16.mxu1 %v1630_v2 }
 0x1c1   : > { %v1032_v46 = vpop.f32.mrf.mxu0 }
 0x1c3   : > { %v1454_v48 = vpop.f32.mrf.mxu0 }
 0x1c5   : > { %v1035_v51 = vpop.f32.mrf.mxu0 }
 0x1c7   : > { %v1455_v53 = vpop.f32.mrf.mxu0 }
 0x1c8   : > { %v770_v28 = vpop.f32.mrf.mxu1 }
 0x1c9   : > { %v777_v29 = vsel %vm729_vm1, %v770_v28, -inf }
 0x1ca   : > { %778 = vmax.xlane.f32.xlu0 %v777_v29  ;;  %v1414_v30 = vpop.f32.mrf.mxu1 }
 0x1cc   : > { %v773_v31 = vpop.f32.mrf.mxu1 }
 0x1cd   : > { %v780_v32 = vsel %vm729_vm1, %v773_v31, -inf }
 0x1ce   : > { %781 = vmax.xlane.f32.xlu0 %v780_v32  ;;  %v1415_v33 = vpop.f32.mrf.mxu1 }
 0x1e4   : > { %1100 = vperm.xlu0 %1512, %v1097_v0  }
 0x1e8   : > { %v944_v39 = vpop.f32.mrf.mxu1 }
 0x1e9   : > { %v1033_v47 = vadd.f32 %v1032_v46, %v944_v39 }
 0x1ea   : > { %v1434_v40 = vpop.f32.mrf.mxu1 }
 0x1eb   : > { %v1038_v49 = vmax.f32 %v1033_v47, 0.0 }
 0x1ec   : > { %v947_v41 = vpop.f32.mrf.mxu1 }
 0x1ed   : > { %v1039_v52 = vpack.c.bf16 %v1038_v49, %v1038_v49 }
 0x1ee   : > { %v1435_v42 = vpop.f32.mrf.mxu1 }
 0x1ef   : > { %1459 = vmatmul.mubr.msk.bf16.vlgmr.msra.gmra.mxu1 %vm729_vm1, %v1039_v52 }
 0x1f0   : > { %1463 = vmatpush3.bf16.msra.mxu1 %v800_v50  ;;  %1464 = vmatprep.mubr.msk.bf16.mxu1 %vm1631_vm0, %v1630_v2 }
 0x253   : > { %v779_v54 = vpop.xlane.xlu0 %778 }
 0x254   : > { %v783_v55 = vsub.f32 %v770_v28, %v779_v54 }
 0x256   : > { %v785_v56 = vmul.f32 1.442695, %v783_v55 }
 0x257   : > { %v782_v57 = vpop.xlane.xlu0 %781 }
 0x258   : > { %1556 = vpow2.f32 %v785_v56  ;;  %v784_v58 = vsub.f32 %v773_v31, %v782_v57 }
 0x25a   : > { %v787_v59 = vmul.f32 1.442695, %v784_v58 }
 0x25c   : > { %1558 = vpow2.f32 %v787_v59 }
 0x25f   : > { %v1101_v22 = vpop.permute.xlu0 %1100 }
 0x260   : > { %v1106_v23 = vrot.slane %v1101_v22, %v1105_v21 }
 0x265   : > { %v1557_v60 = vpop.eup %1556 }
 0x266   : > { %v789_v61 = vsel %vm729_vm1, %v1557_v60, 0.0 }
 0x267   : > { %790 = vadd.xlane.f32.xlu1 %v789_v61 }
 0x269   : > { %v1559_v62 = vpop.eup %1558 }
 0x26a   : > { %v792_v63 = vsel %vm729_vm1, %v1559_v62, 0.0 }
 0x26b   : > { %793 = vadd.xlane.f32.xlu1 %v792_v63 }
 0x2af   : > { %v1085_v6 = vpop.f32.mrf.mxu1 }
 0x2b0   : > { %v1091_v13 = vsub.f32 0.0, %v1085_v6 }
 0x2b1   : > { %v1460_v9 = vpop.f32.mrf.mxu1 }
 0x2b2   : > { %v1092_v14 = vmul.f32 1.442695, %v1091_v13 }
 0x2b3   : > { %v1088_v11 = vpop.f32.mrf.mxu1 }
 0x2b5   : > { %v1461_v12 = vpop.f32.mrf.mxu1 }
 0x2f0   : > { %v791_v2 = vpop.xlane.xlu1 %790 }
 0x2f1   : > { %1560 = vrcp.f32 %v791_v2 }
 0x2f4   : > { %v794_v3 = vpop.xlane.xlu1 %793 }
 0x2f5   : > { %1562 = vrcp.f32 %v794_v3 }
 0x2f6   : > { %1564 = vpow2.f32 %v1092_v14 }
 0x2fe   : > { %v1561_v4 = vpop.eup %1560 }
 0x2ff   : > { %v796_v8 = vmul.f32 %v1561_v4, %v1557_v60 }
 0x302   : > { %v1563_v5 = vpop.eup %1562 }
 0x303   : > { %v798_v7 = vmul.f32 %v1563_v5, %v1559_v62  ;;  %v1565_v15 = vpop.eup %1564 }
 0x304   : > { %v1094_v16 = vadd.f32 1.0, %v1565_v15 }
 0x305   : > { %v799_v10 = vpack.c.bf16 %v798_v7, %v796_v8 }
 0x306   : > { %1566 = vrcp.f32 %v1094_v16 }
 0x307   : > { %1465 = vmatmul.mubr.msk.bf16.vlgmr.msra.gmra.mxu1 %vm729_vm1, %v799_v10 }
 0x313   : > { %v1567_v24 = vpop.eup %1566 }
 0x314   : > { %v1107_v25 = vmul.f32 %v1567_v24, %v1106_v23 }
 0x316   : > { %v1111_v26 = vrot.slane %v1107_v25, %v1105_v21 }
 0x318   : > { %v1112_v27 = vmul.f32 %v1111_v26, %v1815_v17  ;;  %v1113_v30 = vmul.f32 %v1111_v26, %v1817_v18 }
 0x3c7   : > { %v1151_v28 = vpop.f32.mrf.mxu1 }
 0x3c8   : > { %v1152_v29 = vadd.f32 %v1151_v28, %v1112_v27 }
 0x3c9   : > { %v1466_v31 = vpop.f32.mrf.mxu1 }
 0x3ca   : > { %v1158_v32 = vadd.f32 %v1152_v29, %v1815_v17 }
 0x3cb   : > { %v1154_v33 = vpop.f32.mrf.mxu1 }
 0x3cc   : > { %1160 = vst [vmem:[%s381_s23] sm:$0xff] %v1158_v32  ;;  %v1155_v34 = vadd.f32 %v1154_v33, %v1113_v30 }
 0x3cd   : > { %v1467_v35 = vpop.f32.mrf.mxu1 }
 0x3ce   : > { %v1159_v36 = vadd.f32 %v1155_v34, %v1817_v18 }
 0x3d0   : > { %1161 = vst [vmem:[%s381_s23 + $0x8] sm:$0xff] %v1159_v36 }
 0x3d1   : > { %1581 = shalt.err (!%p1578_p3)
}
 0x3d2   : > { %s1582_s17 = scalar_lea.hbm %s1982_s13, 256  ;;  %s1586_s26 = scalar_lea.hbm %s2036_s11, 512 }
 0x3d3   : > { %p1583_p4 = scmp.ne.s32.totalorder %s1982_s13, %s1582_s17  ;;  %p1587_p9 = scmp.lt.s32.totalorder %s1982_s13, %s2036_s11 }
 0x3d4   : > { %p1588_p10 = scmp.lt.s32.totalorder %s1586_s26, %s1582_s17 }
 0x3d5   : > { %p1584_p7 = pnand %p1583_p4, %p1737_p5 }
 0x3d6   : > { %p1589_p11 = por %p1588_p10, %p1587_p9 }
 0x3d7   : > { %p1585_p8 = pneg %p1584_p7 }
 0x3d9   : > { %p1590_p12 = pnand %p1589_p11, %p1585_p8 }
 0x3db   : > { %1593 = shalt.err (!%p1590_p12)
}
 0x3dc   : > { %s1634_s10 = smov 128   ;;  %s1635_s15 = smov 8  }
 0x3dd   : > { %1468 = dma.vmem_to_hbm [thread:$0]  (%p1737_p5), %s1977_s25, 256, %s1982_s13, %s1985_s12, %s1634_s10, %s1634_s10, %s1635_s15  }
 0x3de PF: > { %p1474_p13 = scmp.ge.s32.totalorder %s1628_s22, 2  ;;  %s1191_s18 = sand.u32 1, %s1616_s19  }
 0x3df   : > { %s1192_s17 = scalar_lea.sflag [#allocation4], %s1191_s18 }
 0x3e0   : > { %p1471_p0 = pnand %p1474_p13, %p1741_p6 }
 0x3e2   : > { %p1472_p1 = pneg %p1471_p0 }
 0x3e4   : > { %1611 = dma.done.wait (%p1472_p1), %s1192_s17, 256  }
 0x3e5   : > { %1613 = vsyncadd (%p1472_p1), %s1192_s17, 4294967040  ;;  %p23_p2 = scmp.ge.s32.totalorder %s1724_s24, 4   ;;  %s2039_s19 = smov %s1620_s20 }
 0x3e6   : > { %s2040_s20 = smov %s1624_s21  ;;  %s2041_s21 = smov %s1735_s27 }
 0x3e7   : > { %s2042_s22 = smov %s1724_s24  ;;  %25 = sbr.rel (!%p23_p2) target bundleno = 6 (0x6), region = 99 }
 0x3ec   :  { %1197 = vsyncpa [#allocation4], 1 }
 0x3ed   :  { %1199 = vsyncpa [#allocation4 + $0x1], 1 }

// kernel: _lambda_.25
= control target key start
LH: loop header
LB: loop body
LE: loop exit
PB: predicated region body
PF: predicated region fallthrough
CT: control target
= control target key end

     0   :  { %s2697_s17 = smov 0   ;;  %s3189_s0 = inlined_call_operand.vmem [shape: f32[2,16,128], index: 0, kind: input, shape index: {}]   ;;  %s3190_s1 = inlined_call_operand.vmem [shape: bf16[3,128,128], index: 1, kind: input, shape index: {}]   ;;  %s3191_s2 = inlined_call_operand.vmem [shape: f32[1,128], index: 2, kind: input, shape index: {}]   ;;  %s3192_s3 = inlined_call_operand.vmem [shape: bf16[3,128,128], index: 3, kind: input, shape index: {}]   ;;  %s3193_s4 = inlined_call_operand.vmem [shape: f32[1,128], index: 4, kind: input, shape index: {}]   ;;  %s3194_s5 = inlined_call_operand.vmem [shape: f32[1,128], index: 5, kind: input, shape index: {}]   ;;  %s3195_s6 = inlined_call_operand.vmem [shape: bf16[3,128,128], index: 6, kind: input, shape index: {}]   ;;  %s3196_s7 = inlined_call_operand.vmem [shape: f32[1,128], index: 7, kind: input, shape index: {}]   ;;  %s3197_s8 = inlined_call_operand.vmem [shape: bf16[3,128,128], index: 8, kind: input, shape index: {}]   ;;  %s3198_s9 = inlined_call_operand.vmem [shape: f32[1,128], index: 9, kind: input, shape index: {}]   ;;  %s3199_s10 = inlined_call_operand.vmem [shape: f32[1,128], index: 10, kind: input, shape index: {}]   ;;  %s3200_s11 = inlined_call_operand.vmem [shape: f32[2,16,128], index: 11, kind: output, shape index: {}]  }
   0x1 LB: > { %s1908_s18 = sadd.s32 4294967295, %s2632_s17   ;;  %p1912_p0 = scmp.ge.s32.totalorder %s2632_s17, 1  ;;  %s2632_s17 = sphi %s2697_s17, %s21_s17  }
   0x2   : > { %p337_p1 = scmp.lt.s32.totalorder %s2632_s17, 3 }
   0x4   : > { %p338_p2 = pnand %p1912_p0, %p337_p1 }
   0x5   : > { %p377_p3 = scmp.lt.s32.totalorder (!%p338_p2), %s1908_s18, 1 }
   0x6   : > { %341 = sbr.rel (%p338_p2) target bundleno = 997 (0x3e5), region = 64 }
   0xb   : > { %v2528_v0 = vld [vmem:[%s3190_s1 + $0x78] sm:$0xff]   ;;  %v2634_v1 = vmov 0.0   ;;  %v2530_v3 = vld [vmem:[%s3190_s1 + $0x70] sm:$0xff]   ;;  %vm2635_vm0 = vmmov 0   ;;  %v2532_v5 = vld [vmem:[%s3190_s1 + $0x68] sm:$0xff]   ;;  %s3204_s18 = smov (!%p377_p3, %s1908_s18), 1  ;;  %v390_v8 = vlaneseq }
   0xc   : > { %2277 = vmatprep.subr.bf16.mxu0 %v2634_v1  ;;  %2297 = vmatprep.subr.bf16.mxu1 %v2634_v1  ;;  %v2529_v2 = vld [vmem:[%s3190_s1 + $0x38] sm:$0xff]   ;;  %v2531_v4 = vld [vmem:[%s3190_s1 + $0x30] sm:$0xff]   ;;  %v2533_v6 = vld [vmem:[%s3190_s1 + $0x28] sm:$0xff]   ;;  %s2167_s16 = sshll.u32 %s3204_s18, 4  ;;  %vm2636_vm3 = vmmov 1  }
   0xd   : > { %2278 = vmatpush3.bf16.msra.mxu0 %v2528_v0  ;;  %2293 = vmatprep.mubr.msk.bf16.mxu0 %vm2635_vm0, %v2634_v1  ;;  %v2534_v7 = vld [vmem:[%s3190_s1 + $0x60] sm:$0xff]   ;;  %v2536_v10 = vld [vmem:[%s3190_s1 + $0x58] sm:$0xff]   ;;  %v2747_v11 = vshrl.u32 %v390_v8, 7  ;;  %s2759_s25 = scalar_lea.vmem %s3189_s0, %s2167_s16  ;;  %v2538_v13 = vld [vmem:[%s3190_s1 + $0x50] sm:$0xff]   ;;  %s386_s13 = scalar_lea.vmem %s3200_s11, %s2167_s16 }
   0xe   : > { %2298 = vmatpush3.bf16.msra.mxu1 %v2529_v2  ;;  %2279 = vmatprep.subr.bf16.mxu0 %v2634_v1  ;;  %v2535_v9 = vld [vmem:[%s3190_s1 + $0x20] sm:$0xff]   ;;  %v2537_v12 = vld [vmem:[%s3190_s1 + $0x18] sm:$0xff]   ;;  %v2539_v14 = vld [vmem:[%s3190_s1 + $0x10] sm:$0xff]  }
   0xf   : > { %2299 = vmatprep.subr.bf16.mxu1 %v2634_v1  ;;  %2313 = vmatprep.mubr.msk.bf16.mxu1 %vm2635_vm0, %v2634_v1  ;;  %v400_v15 = vadd.s32 4294967292, %v2747_v11  ;;  %v388_v16 = vld [vmem:[%s2759_s25] sm:$0xff]  ;;  %v389_v17 = vld [vmem:[%s2759_s25 + $0x8] sm:$0xff]  ;;  %v2773_v18 = vadd.s32 8, %v2747_v11  ;;  %vm397_vm2 = vcmp.lt.s32.totalorder %v2747_v11, 4  ;;  %v2544_v29 = vld [vmem:[%s3190_s1 + $0xb8] sm:$0xff]  }
  0x10   : > { %v2540_v19 = vld [vmem:[%s3190_s1 + $0x48] sm:$0xff]   ;;  %v395_v21 = vrot.slane %v388_v16, 4  ;;  %v396_v22 = vrot.slane %v389_v17, 4  ;;  %v2542_v23 = vld [vmem:[%s3190_s1 + $0x40] sm:$0xff]   ;;  %v427_v30 = vpack.c.bf16 %v389_v17, %v388_v16  ;;  %v2545_v32 = vld [vmem:[%s3190_s1 + $0xb0] sm:$0xff]   ;;  %vm755_vm7 = vcmp.lt.s32.totalorder %v2747_v11, 1 }
  0x11   : > { %2280 = vmatpush3.bf16.msra.mxu0 %v2530_v3  ;;  %v2541_v20 = vld [vmem:[%s3190_s1 + $0x8] sm:$0xff]   ;;  %vm402_vm1 = vcmp.ge.s32.totalorder %v400_v15, 0  ;;  %v2543_v24 = vld [vmem:[%s3190_s1] sm:$0xff]   ;;  %v624_v26 = vadd.s32 4, %v2773_v18  ;;  %v2548_v35 = vld [vmem:[%s3190_s1 + $0x98] sm:$0xff]   ;;  %vm983_vm11 = vcmp.lt.s32.totalorder %v2747_v11, 7 }
  0x12   : > { %2300 = vmatpush3.bf16.msra.mxu1 %v2531_v4  ;;  %2281 = vmatprep.subr.bf16.mxu0 %v2634_v1  ;;  %vm2791_vm4 = vmpackc.low %vm2636_vm3, %vm402_vm1  ;;  %v398_v27 = vsel %vm397_vm2, %v395_v21, %v396_v22  ;;  %v399_v28 = vsel %vm397_vm2, %v396_v22, %v395_v21  ;;  %v2546_v33 = vld [vmem:[%s3190_s1 + $0xa8] sm:$0xff]   ;;  %v2547_v34 = vld [vmem:[%s3190_s1 + $0xa0] sm:$0xff]   ;;  %vm1479_vm15 = vcmp.lt.s32.totalorder %v2747_v11, 2 }
  0x13   : > { %2301 = vmatprep.subr.bf16.mxu1 %v2634_v1  ;;  %v1950_v31 = vpack.c.bf16 %v398_v27, %v399_v28  ;;  %vm628_vm5 = vcmp.lt.s32.totalorder %v624_v26, 16  ;;  %v2549_v36 = vld [vmem:[%s3190_s1 + $0x90] sm:$0xff]   ;;  %v2550_v37 = vld [vmem:[%s3190_s1 + $0x88] sm:$0xff]   ;;  %v2551_v38 = vld [vmem:[%s3190_s1 + $0x80] sm:$0xff]   ;;  %v1977_v39 = vpack.c.bf16 %v399_v28, %v398_v27 }
  0x14   : > { %vm1976_vm6 = vmpackc.low %vm628_vm5, %vm2636_vm3  ;;  %v2552_v40 = vld [vmem:[%s3192_s3 + $0x78] sm:$0xff]   ;;  %v2553_v42 = vld [vmem:[%s3192_s3 + $0x70] sm:$0xff]  }
  0x15   : > { %2282 = vmatpush3.bf16.msra.mxu0 %v2532_v5  ;;  %v2554_v41 = vld [vmem:[%s3192_s3 + $0x38] sm:$0xff]   ;;  %v2556_v43 = vld [vmem:[%s3192_s3 + $0x30] sm:$0xff]   ;;  %v2555_v44 = vld [vmem:[%s3192_s3 + $0x68] sm:$0xff]   ;;  %v2909_v5 = vand.u32 3, %v2773_v18 }
  0x16   : > { %2302 = vmatpush3.bf16.msra.mxu1 %v2533_v6  ;;  %2283 = vmatprep.subr.bf16.mxu0 %v2634_v1  ;;  %v2558_v45 = vld [vmem:[%s3192_s3 + $0x28] sm:$0xff]   ;;  %v2557_v46 = vld [vmem:[%s3192_s3 + $0x60] sm:$0xff]   ;;  %v2559_v48 = vld [vmem:[%s3192_s3 + $0x58] sm:$0xff]  }
  0x17   : > { %2303 = vmatprep.subr.bf16.mxu1 %v2634_v1  ;;  %v2560_v47 = vld [vmem:[%s3192_s3 + $0x20] sm:$0xff]   ;;  %v2561_v49 = vld [vmem:[%s3192_s3 + $0x50] sm:$0xff]   ;;  %v2562_v50 = vld [vmem:[%s3192_s3 + $0x18] sm:$0xff]   ;;  %v759_v15 = vadd.s32 4294967295, %v2909_v5 }
  0x18   : > { %v2563_v51 = vld [vmem:[%s3192_s3 + $0x48] sm:$0xff]   ;;  %v2564_v52 = vld [vmem:[%s3192_s3 + $0x10] sm:$0xff]   ;;  %v2565_v53 = vld [vmem:[%s3192_s3 + $0x40] sm:$0xff]  }
  0x19   : > { %2284 = vmatpush3.bf16.msra.mxu0 %v2534_v7  ;;  %v2566_v54 = vld [vmem:[%s3192_s3 + $0x8] sm:$0xff]   ;;  %v2567_v55 = vld [vmem:[%s3192_s3] sm:$0xff]   ;;  %v2912_v7 = vand.u32 3, %v2747_v11  ;;  %v2568_v18 = vld [vmem:[%s3192_s3 + $0xb8] sm:$0xff]   ;;  %vm761_vm9 = vcmp.ge.s32.totalorder %v759_v15, 0 }
  0x1a   : > { %2304 = vmatpush3.bf16.msra.mxu1 %v2535_v9  ;;  %2285 = vmatprep.subr.bf16.mxu0 %v2634_v1  ;;  %v1979_v3 = vld [vmem:[%s3191_s2] ss:$0 sm:$0xff]  ;;  %v2569_v26 = vld [vmem:[%s3192_s3 + $0xb0] sm:$0xff]   ;;  %v2570_v27 = vld [vmem:[%s3192_s3 + $0xa8] sm:$0xff]  }
  0x1b   : > { %2305 = vmatprep.subr.bf16.mxu1 %v2634_v1  ;;  %v2571_v28 = vld [vmem:[%s3192_s3 + $0xa0] sm:$0xff]  }
  0x1d   : > { %2286 = vmatpush3.bf16.msra.mxu0 %v2536_v10 }
  0x1e   : > { %2306 = vmatpush3.bf16.msra.mxu1 %v2537_v12  ;;  %2287 = vmatprep.subr.bf16.mxu0 %v2634_v1 }
  0x1f   : > { %2307 = vmatprep.subr.bf16.mxu1 %v2634_v1 }
  0x21   : > { %2288 = vmatpush3.bf16.msra.mxu0 %v2538_v13 }
  0x22   : > { %2308 = vmatpush3.bf16.msra.mxu1 %v2539_v14  ;;  %2289 = vmatprep.subr.bf16.mxu0 %v2634_v1  ;;  %v758_v14 = vadd.s32 4294967295, %v2912_v7 }
  0x23   : > { %2309 = vmatprep.subr.bf16.mxu1 %v2634_v1 }
  0x24   : > { %vm760_vm8 = vcmp.ge.s32.totalorder %v758_v14, 0 }
  0x25   : > { %2290 = vmatpush3.bf16.msra.mxu0 %v2540_v19  ;;  %vm2012_vm10 = vmpackc.low %vm761_vm9, %vm760_vm8 }
  0x26   : > { %2310 = vmatpush3.bf16.msra.mxu1 %v2541_v20  ;;  %2291 = vmatprep.subr.bf16.mxu0 %v2634_v1 }
  0x27   : > { %2311 = vmatprep.subr.bf16.mxu1 %v2634_v1 }
  0x29   : > { %2292 = vmatpush3.bf16.msra.mxu0 %v2542_v23 }
  0x2a   : > { %2312 = vmatpush3.bf16.msra.mxu1 %v2543_v24  ;;  %2317 = vmatprep.subr.bf16.mxu0 %v2634_v1 }
  0x2b   : > { %2337 = vmatprep.subr.bf16.mxu1 %v2634_v1 }
  0x2c   : > { %2294 = vmatmul.mubr.bf16.vlgmr.msra.gmra.mxu0 %v427_v30  ;;  %v2573_v30 = vld [vmem:[%s3192_s3 + $0x90] sm:$0xff]  }
  0x2d   : > { %2314 = vmatmul.mubr.msk.bf16.vlgmr.msra.gmra.mxu1 %vm2791_vm4, %v1950_v31  ;;  %2318 = vmatpush3.bf16.msra.mxu0 %v2544_v29  ;;  %v2572_v29 = vld [vmem:[%s3192_s3 + $0x98] sm:$0xff]   ;;  %v2574_v31 = vld [vmem:[%s3192_s3 + $0x88] sm:$0xff]  }
  0x2e   : > { %2319 = vmatprep.subr.bf16.mxu0 %v2634_v1  ;;  %2333 = vmatprep.mubr.msk.bf16.mxu0 %vm2635_vm0, %v2634_v1 }
  0x2f   : > { %2353 = vmatprep.mubr.msk.bf16.mxu1 %vm2635_vm0, %v2634_v1  ;;  %2338 = vmatpush3.bf16.msra.mxu1 %v2552_v40  ;;  %v2576_v40 = vld [vmem:[%s3195_s6 + $0x38] sm:$0xff]  }
  0x30   : > { %2339 = vmatprep.subr.bf16.mxu1 %v2634_v1 }
  0x31   : > { %2320 = vmatpush3.bf16.msra.mxu0 %v2545_v32  ;;  %v986_v32 = vadd.s32 1, %v2912_v7 }
  0x32   : > { %2321 = vmatprep.subr.bf16.mxu0 %v2634_v1 }
  0x33   : > { %2340 = vmatpush3.bf16.msra.mxu1 %v2553_v42  ;;  %vm990_vm12 = vcmp.lt.s32.totalorder %v986_v32, 4  ;;  %v2578_v42 = vld [vmem:[%s3195_s6 + $0x30] sm:$0xff]   ;;  %v2602_v32 = vld [vmem:[%s3197_s8 + $0x38] sm:$0xff]  }
  0x34   : > { %2341 = vmatprep.subr.bf16.mxu1 %v2634_v1 }
  0x35   : > { %2322 = vmatpush3.bf16.msra.mxu0 %v2546_v33  ;;  %v987_v33 = vadd.s32 1, %v2909_v5 }
  0x36   : > { %2323 = vmatprep.subr.bf16.mxu0 %v2634_v1 }
  0x37   : > { %2342 = vmatpush3.bf16.msra.mxu1 %v2555_v44  ;;  %vm991_vm13 = vcmp.lt.s32.totalorder %v987_v33, 4  ;;  %v2580_v44 = vld [vmem:[%s3195_s6 + $0x28] sm:$0xff]   ;;  %v2601_v33 = vld [vmem:[%s3197_s8 + $0x70] sm:$0xff]  }
  0x38   : > { %2343 = vmatprep.subr.bf16.mxu1 %v2634_v1  ;;  %vm2039_vm14 = vmpackc.low %vm991_vm13, %vm990_vm12 }
  0x39   : > { %2324 = vmatpush3.bf16.msra.mxu0 %v2547_v34 }
  0x3a   : > { %2325 = vmatprep.subr.bf16.mxu0 %v2634_v1 }
  0x3b   : > { %2344 = vmatpush3.bf16.msra.mxu1 %v2557_v46  ;;  %v2582_v46 = vld [vmem:[%s3195_s6 + $0x20] sm:$0xff]  }
  0x3c   : > { %2345 = vmatprep.subr.bf16.mxu1 %v2634_v1 }
  0x3d   : > { %2326 = vmatpush3.bf16.msra.mxu0 %v2548_v35 }
  0x3e   : > { %2327 = vmatprep.subr.bf16.mxu0 %v2634_v1 }
  0x3f   : > { %2346 = vmatpush3.bf16.msra.mxu1 %v2559_v48  ;;  %v2584_v48 = vld [vmem:[%s3195_s6 + $0x18] sm:$0xff]  }
  0x40   : > { %2347 = vmatprep.subr.bf16.mxu1 %v2634_v1 }
  0x41   : > { %2328 = vmatpush3.bf16.msra.mxu0 %v2549_v36  ;;  %v2575_v36 = vld [vmem:[%s3192_s3 + $0x80] sm:$0xff]  }
  0x42   : > { %2329 = vmatprep.subr.bf16.mxu0 %v2634_v1 }
  0x43   : > { %2348 = vmatpush3.bf16.msra.mxu1 %v2561_v49  ;;  %v2585_v49 = vld [vmem:[%s3195_s6 + $0x58] sm:$0xff]  }
  0x44   : > { %2349 = vmatprep.subr.bf16.mxu1 %v2634_v1 }
  0x45   : > { %2330 = vmatpush3.bf16.msra.mxu0 %v2550_v37 }
  0x46   : > { %2331 = vmatprep.subr.bf16.mxu0 %v2634_v1 }
  0x47   : > { %2350 = vmatpush3.bf16.msra.mxu1 %v2563_v51  ;;  %v2587_v51 = vld [vmem:[%s3195_s6 + $0x50] sm:$0xff]  }
  0x48   : > { %2351 = vmatprep.subr.bf16.mxu1 %v2634_v1 }
  0x49   : > { %2332 = vmatpush3.bf16.msra.mxu0 %v2551_v38 }
  0x4a   : > { %2357 = vmatprep.subr.bf16.mxu0 %v2634_v1 }
  0x4b   : > { %2352 = vmatpush3.bf16.msra.mxu1 %v2565_v53  ;;  %v2589_v53 = vld [vmem:[%s3195_s6 + $0x48] sm:$0xff]  }
  0x4c   : > { %2334 = vmatmul.mubr.msk.bf16.vlgmr.msra.gmra.mxu0 %vm1976_vm6, %v1977_v39  ;;  %2377 = vmatprep.subr.bf16.mxu1 %v2634_v1 }
  0x4d   : > { %2373 = vmatprep.mubr.msk.bf16.mxu0 %vm2635_vm0, %v2634_v1  ;;  %2358 = vmatpush3.bf16.msra.mxu0 %v2554_v41  ;;  %v2577_v41 = vld [vmem:[%s3195_s6 + $0x78] sm:$0xff]  }
  0x4e   : > { %2359 = vmatprep.subr.bf16.mxu0 %v2634_v1 }
  0x51   : > { %2360 = vmatpush3.bf16.msra.mxu0 %v2556_v43  ;;  %v2579_v43 = vld [vmem:[%s3195_s6 + $0x70] sm:$0xff]  }
  0x52   : > { %2361 = vmatprep.subr.bf16.mxu0 %v2634_v1 }
  0x55   : > { %2362 = vmatpush3.bf16.msra.mxu0 %v2558_v45  ;;  %v2581_v45 = vld [vmem:[%s3195_s6 + $0x68] sm:$0xff]  }
  0x56   : > { %2363 = vmatprep.subr.bf16.mxu0 %v2634_v1 }
  0x59   : > { %2364 = vmatpush3.bf16.msra.mxu0 %v2560_v47  ;;  %v2583_v47 = vld [vmem:[%s3195_s6 + $0x60] sm:$0xff]  }
  0x5a   : > { %2365 = vmatprep.subr.bf16.mxu0 %v2634_v1 }
  0x5d   : > { %2366 = vmatpush3.bf16.msra.mxu0 %v2562_v50  ;;  %v2586_v50 = vld [vmem:[%s3195_s6 + $0x10] sm:$0xff]  }
  0x5e   : > { %2367 = vmatprep.subr.bf16.mxu0 %v2634_v1 }
  0x61   : > { %2368 = vmatpush3.bf16.msra.mxu0 %v2564_v52  ;;  %v2588_v52 = vld [vmem:[%s3195_s6 + $0x8] sm:$0xff]  }
  0x62   : > { %2369 = vmatprep.subr.bf16.mxu0 %v2634_v1 }
  0x65   : > { %2370 = vmatpush3.bf16.msra.mxu0 %v2566_v54  ;;  %v2590_v54 = vld [vmem:[%s3195_s6] sm:$0xff]  }
  0x66   : > { %2371 = vmatprep.subr.bf16.mxu0 %v2634_v1 }
  0x69   : > { %2372 = vmatpush3.bf16.msra.mxu0 %v2567_v55  ;;  %v2591_v55 = vld [vmem:[%s3195_s6 + $0x40] sm:$0xff]  }
  0x6a   : > { %2397 = vmatprep.subr.bf16.mxu0 %v2634_v1 }
  0xec   : > { %v527_v56 = vpop.f32.mrf.mxu0 }
  0xed   : > { %v616_v57 = vpop.f32.mrf.mxu1 }
  0xee   : > { %v2295_v58 = vpop.f32.mrf.mxu0  ;;  %v617_v0 = vadd.f32 %v616_v57, %v527_v56 }
  0xef   : > { %v2315_v59 = vpop.f32.mrf.mxu1 }
  0xf0   : > { %v530_v60 = vpop.f32.mrf.mxu0 }
  0xf1   : > { %v619_v61 = vpop.f32.mrf.mxu1 }
  0xf2   : > { %v2296_v62 = vpop.f32.mrf.mxu0  ;;  %v620_v8 = vadd.f32 %v619_v61, %v530_v60 }
  0xf3   : > { %v2316_v63 = vpop.f32.mrf.mxu1 }
 0x10c   : > { %v733_v2 = vpop.f32.mrf.mxu0 }
 0x10d   : > { %v740_v4 = vadd.f32 %v733_v2, %v617_v0 }
 0x10e   : > { %v2335_v6 = vpop.f32.mrf.mxu0 }
 0x10f   : > { %v749_v9 = vadd.f32 %v1979_v3, %v740_v4  ;;  %v2043_v6 = vld [vmem:[%s3194_s5] ss:$0 sm:$0xff] }
 0x110   : > { %v736_v10 = vpop.f32.mrf.mxu0 }
 0x111   : > { %v741_v12 = vadd.f32 %v736_v10, %v620_v8  ;;  %v751_v16 = vmax.f32 %v749_v9, 0.0 }
 0x112   : > { %v2336_v13 = vpop.f32.mrf.mxu0 }
 0x113   : > { %v750_v17 = vadd.f32 %v1979_v3, %v741_v12  ;;  %v753_v20 = vrot.slane %v751_v16, 7  ;;  %v981_v35 = vrot.slane %v751_v16, 1  ;;  %v2042_v3 = vld [vmem:[%s3193_s4] ss:$0 sm:$0xff] }
 0x115   : > { %v752_v19 = vmax.f32 %v750_v17, 0.0 }
 0x117   : > { %v754_v21 = vrot.slane %v752_v19, 7  ;;  %v785_v22 = vpack.c.bf16 %v752_v19, %v751_v16  ;;  %v982_v34 = vrot.slane %v752_v19, 1 }
 0x119   : > { %v756_v23 = vsel %vm755_vm7, %v753_v20, %v754_v21  ;;  %v757_v24 = vsel %vm755_vm7, %v754_v21, %v753_v20  ;;  %2354 = vmatmul.mubr.bf16.vlgmr.msra.gmra.mxu1 %v785_v22  ;;  %v984_v37 = vsel %vm983_vm11, %v981_v35, %v982_v34  ;;  %v985_v38 = vsel %vm983_vm11, %v982_v34, %v981_v35  ;;  %v2592_v21 = vld [vmem:[%s3195_s6 + $0xb8] sm:$0xff]   ;;  %v2604_v34 = vld [vmem:[%s3197_s8 + $0x30] sm:$0xff]   ;;  %v2603_v35 = vld [vmem:[%s3197_s8 + $0x68] sm:$0xff]  }
 0x11a   : > { %2378 = vmatpush3.bf16.msra.mxu1 %v2568_v18  ;;  %v2013_v25 = vpack.c.bf16 %v756_v23, %v757_v24  ;;  %2393 = vmatprep.mubr.msk.bf16.mxu1 %vm2635_vm0, %v2634_v1  ;;  %v2040_v39 = vpack.c.bf16 %v985_v38, %v984_v37  ;;  %v2593_v23 = vld [vmem:[%s3195_s6 + $0xb0] sm:$0xff]   ;;  %v2594_v24 = vld [vmem:[%s3195_s6 + $0xa8] sm:$0xff]   ;;  %v2605_v37 = vld [vmem:[%s3197_s8 + $0x60] sm:$0xff]  }
 0x11b   : > { %2379 = vmatprep.subr.bf16.mxu1 %v2634_v1  ;;  %v2608_v38 = vld [vmem:[%s3197_s8 + $0x20] sm:$0xff]  }
 0x11c   : > { %2374 = vmatmul.mubr.msk.bf16.vlgmr.msra.gmra.mxu0 %vm2012_vm10, %v2013_v25  ;;  %v2595_v25 = vld [vmem:[%s3195_s6 + $0xa0] sm:$0xff]  }
 0x11d   : > { %2413 = vmatprep.mubr.msk.bf16.mxu0 %vm2635_vm0, %v2634_v1  ;;  %2398 = vmatpush3.bf16.msra.mxu0 %v2577_v41  ;;  %v2610_v41 = vld [vmem:[%s3197_s8 + $0x18] sm:$0xff]  }
 0x11e   : > { %2380 = vmatpush3.bf16.msra.mxu1 %v2569_v26  ;;  %2399 = vmatprep.subr.bf16.mxu0 %v2634_v1  ;;  %v2596_v26 = vld [vmem:[%s3195_s6 + $0x98] sm:$0xff]  }
 0x11f   : > { %2381 = vmatprep.subr.bf16.mxu1 %v2634_v1 }
 0x121   : > { %2400 = vmatpush3.bf16.msra.mxu0 %v2579_v43  ;;  %v2612_v43 = vld [vmem:[%s3197_s8 + $0x10] sm:$0xff]  }
 0x122   : > { %2382 = vmatpush3.bf16.msra.mxu1 %v2570_v27  ;;  %2401 = vmatprep.subr.bf16.mxu0 %v2634_v1  ;;  %v2597_v27 = vld [vmem:[%s3195_s6 + $0x90] sm:$0xff]  }
 0x123   : > { %2383 = vmatprep.subr.bf16.mxu1 %v2634_v1 }
 0x125   : > { %2402 = vmatpush3.bf16.msra.mxu0 %v2581_v45  ;;  %v2614_v45 = vld [vmem:[%s3197_s8 + $0x8] sm:$0xff]  }
 0x126   : > { %2384 = vmatpush3.bf16.msra.mxu1 %v2571_v28  ;;  %2403 = vmatprep.subr.bf16.mxu0 %v2634_v1  ;;  %v2598_v28 = vld [vmem:[%s3195_s6 + $0x88] sm:$0xff]  }
 0x127   : > { %2385 = vmatprep.subr.bf16.mxu1 %v2634_v1 }
 0x129   : > { %2404 = vmatpush3.bf16.msra.mxu0 %v2583_v47 }
 0x12a   : > { %2386 = vmatpush3.bf16.msra.mxu1 %v2572_v29  ;;  %2405 = vmatprep.subr.bf16.mxu0 %v2634_v1  ;;  %v2599_v29 = vld [vmem:[%s3195_s6 + $0x80] sm:$0xff]  }
 0x12b   : > { %2387 = vmatprep.subr.bf16.mxu1 %v2634_v1 }
 0x12d   : > { %2406 = vmatpush3.bf16.msra.mxu0 %v2585_v49 }
 0x12e   : > { %2388 = vmatpush3.bf16.msra.mxu1 %v2573_v30  ;;  %2407 = vmatprep.subr.bf16.mxu0 %v2634_v1 }
 0x12f   : > { %2389 = vmatprep.subr.bf16.mxu1 %v2634_v1 }
 0x131   : > { %2408 = vmatpush3.bf16.msra.mxu0 %v2587_v51 }
 0x132   : > { %2390 = vmatpush3.bf16.msra.mxu1 %v2574_v31  ;;  %2409 = vmatprep.subr.bf16.mxu0 %v2634_v1  ;;  %v2600_v31 = vld [vmem:[%s3197_s8 + $0x78] sm:$0xff]  }
 0x133   : > { %2391 = vmatprep.subr.bf16.mxu1 %v2634_v1 }
 0x135   : > { %2410 = vmatpush3.bf16.msra.mxu0 %v2589_v53 }
 0x136   : > { %2392 = vmatpush3.bf16.msra.mxu1 %v2575_v36  ;;  %2411 = vmatprep.subr.bf16.mxu0 %v2634_v1  ;;  %v2606_v36 = vld [vmem:[%s3197_s8 + $0x28] sm:$0xff]  }
 0x137   : > { %2417 = vmatprep.subr.bf16.mxu1 %v2634_v1 }
 0x139   : > { %2394 = vmatmul.mubr.msk.bf16.vlgmr.msra.gmra.mxu1 %vm2039_vm14, %v2040_v39  ;;  %2412 = vmatpush3.bf16.msra.mxu0 %v2591_v55  ;;  %v2607_v39 = vld [vmem:[%s3197_s8 + $0x58] sm:$0xff]  }
 0x13a   : > { %2433 = vmatprep.mubr.msk.bf16.mxu1 %vm2635_vm0, %v2634_v1  ;;  %2418 = vmatpush3.bf16.msra.mxu1 %v2576_v40  ;;  %v2609_v40 = vld [vmem:[%s3197_s8 + $0x50] sm:$0xff]  }
 0x13b   : > { %2419 = vmatprep.subr.bf16.mxu1 %v2634_v1  ;;  %2437 = vmatprep.subr.bf16.mxu0 %v2634_v1 }
 0x13e   : > { %2420 = vmatpush3.bf16.msra.mxu1 %v2578_v42  ;;  %v2611_v42 = vld [vmem:[%s3197_s8 + $0x48] sm:$0xff]  }
 0x13f   : > { %2421 = vmatprep.subr.bf16.mxu1 %v2634_v1 }
 0x142   : > { %2422 = vmatpush3.bf16.msra.mxu1 %v2580_v44  ;;  %v2613_v44 = vld [vmem:[%s3197_s8 + $0x40] sm:$0xff]  }
 0x143   : > { %2423 = vmatprep.subr.bf16.mxu1 %v2634_v1 }
 0x146   : > { %2424 = vmatpush3.bf16.msra.mxu1 %v2582_v46  ;;  %v2615_v46 = vld [vmem:[%s3197_s8] sm:$0xff]  }
 0x147   : > { %2425 = vmatprep.subr.bf16.mxu1 %v2634_v1 }
 0x14a   : > { %2426 = vmatpush3.bf16.msra.mxu1 %v2584_v48 }
 0x14b   : > { %2427 = vmatprep.subr.bf16.mxu1 %v2634_v1 }
 0x14e   : > { %2428 = vmatpush3.bf16.msra.mxu1 %v2586_v50 }
 0x14f   : > { %2429 = vmatprep.subr.bf16.mxu1 %v2634_v1 }
 0x152   : > { %2430 = vmatpush3.bf16.msra.mxu1 %v2588_v52 }
 0x153   : > { %2431 = vmatprep.subr.bf16.mxu1 %v2634_v1 }
 0x156   : > { %2432 = vmatpush3.bf16.msra.mxu1 %v2590_v54 }
 0x157   : > { %2457 = vmatprep.subr.bf16.mxu1 %v2634_v1 }
 0x1d9   : > { %v885_v56 = vpop.f32.mrf.mxu1 }
 0x1db   : > { %v2355_v57 = vpop.f32.mrf.mxu1 }
 0x1dc   : > { %v974_v58 = vpop.f32.mrf.mxu0  ;;  %v2100_v57 = vld [vmem:[%s3196_s7] ss:$0 sm:$0xff] }
 0x1dd   : > { %v888_v59 = vpop.f32.mrf.mxu1  ;;  %v975_v0 = vadd.f32 %v974_v58, %v885_v56 }
 0x1de   : > { %v2375_v60 = vpop.f32.mrf.mxu0 }
 0x1df   : > { %v2356_v61 = vpop.f32.mrf.mxu1 }
 0x1e0   : > { %v977_v62 = vpop.f32.mrf.mxu0 }
 0x1e1   : > { %v978_v9 = vadd.f32 %v977_v62, %v888_v59 }
 0x1e2   : > { %v2376_v63 = vpop.f32.mrf.mxu0 }
 0x1f9   : > { %v1096_v2 = vpop.f32.mrf.mxu1 }
 0x1fa   : > { %v1103_v4 = vadd.f32 %v1096_v2, %v975_v0  ;;  %v1482_v2 = vadd.s32 4294967294, %v2912_v7 }
 0x1fb   : > { %v2395_v8 = vpop.f32.mrf.mxu1 }
 0x1fc   : > { %v1112_v10 = vmul.f32 %v2042_v3, %v1103_v4  ;;  %vm1484_vm1 = vcmp.ge.s32.totalorder %v1482_v2, 0 }
 0x1fd   : > { %v1099_v12 = vpop.f32.mrf.mxu1 }
 0x1fe   : > { %v1121_v13 = vadd.f32 %v2043_v6, %v1112_v10  ;;  %v1104_v14 = vadd.f32 %v1099_v12, %v978_v9  ;;  %v2616_v9 = vld [vmem:[%s3197_s8 + $0xb8] sm:$0xff]  }
 0x1ff   : > { %v2396_v15 = vpop.f32.mrf.mxu1 }
 0x200   : > { %v1123_v16 = vmax.f32 %v1121_v13, 0.0  ;;  %v1113_v17 = vmul.f32 %v2042_v3, %v1104_v14  ;;  %v1483_v3 = vadd.s32 4294967294, %v2909_v5 }
 0x202   : > { %v1135_v19 = vpack.c.bf16 %v1123_v16, %v2634_v1  ;;  %v1122_v18 = vadd.f32 %v2043_v6, %v1113_v17  ;;  %vm1485_vm2 = vcmp.ge.s32.totalorder %v1483_v3, 0  ;;  %v2617_v17 = vld [vmem:[%s3197_s8 + $0xb0] sm:$0xff]  }
 0x203   : > { %vm2133_vm3 = vmpackc.low %vm1485_vm2, %vm1484_vm1 }
 0x204   : > { %v1124_v20 = vmax.f32 %v1122_v18, 0.0  ;;  %2434 = vmatmul.mubr.bf16.vlgmr.msra.gmra.mxu1 %v1135_v19  ;;  %v2618_v19 = vld [vmem:[%s3197_s8 + $0xa8] sm:$0xff]   ;;  %v2619_v18 = vld [vmem:[%s3197_s8 + $0xa0] sm:$0xff]  }
 0x205   : > { %2473 = vmatprep.mubr.msk.bf16.mxu1 %vm2635_vm0, %v2634_v1  ;;  %2458 = vmatpush3.bf16.msra.mxu1 %v2600_v31 }
 0x206   : > { %v1152_v22 = vpack.c.bf16 %v1124_v20, %v1123_v16  ;;  %v1357_v30 = vpack.c.bf16 %v2634_v1, %v1124_v20  ;;  %2459 = vmatprep.subr.bf16.mxu1 %v2634_v1  ;;  %v2620_v20 = vld [vmem:[%s3197_s8 + $0x98] sm:$0xff]  }
 0x208   : > { %2414 = vmatmul.mubr.bf16.vlgmr.msra.gmra.mxu0 %v1152_v22  ;;  %v2622_v22 = vld [vmem:[%s3197_s8 + $0x88] sm:$0xff]  }
 0x209   : > { %2438 = vmatpush3.bf16.msra.mxu0 %v2592_v21  ;;  %2453 = vmatprep.mubr.msk.bf16.mxu0 %vm2635_vm0, %v2634_v1  ;;  %v2621_v21 = vld [vmem:[%s3197_s8 + $0x90] sm:$0xff]  }
 0x20a   : > { %2439 = vmatprep.subr.bf16.mxu0 %v2634_v1  ;;  %2460 = vmatpush3.bf16.msra.mxu1 %v2601_v33 }
 0x20b   : > { %2461 = vmatprep.subr.bf16.mxu1 %v2634_v1 }
 0x20d   : > { %2440 = vmatpush3.bf16.msra.mxu0 %v2593_v23  ;;  %v1710_v23 = vadd.s32 2, %v2912_v7 }
 0x20e   : > { %2441 = vmatprep.subr.bf16.mxu0 %v2634_v1  ;;  %2462 = vmatpush3.bf16.msra.mxu1 %v2603_v35 }
 0x20f   : > { %2463 = vmatprep.subr.bf16.mxu1 %v2634_v1  ;;  %vm1714_vm4 = vcmp.lt.s32.totalorder %v1710_v23, 4 }
 0x211   : > { %2442 = vmatpush3.bf16.msra.mxu0 %v2594_v24  ;;  %v1711_v24 = vadd.s32 2, %v2909_v5 }
 0x212   : > { %2443 = vmatprep.subr.bf16.mxu0 %v2634_v1  ;;  %2464 = vmatpush3.bf16.msra.mxu1 %v2605_v37  ;;  %v2163_v37 = vld [vmem:[%s3198_s9] ss:$0 sm:$0xff] }
 0x213   : > { %2465 = vmatprep.subr.bf16.mxu1 %v2634_v1  ;;  %vm1715_vm5 = vcmp.lt.s32.totalorder %v1711_v24, 4 }
 0x214   : > { %vm2160_vm6 = vmpackc.low %vm1715_vm5, %vm1714_vm4 }
 0x215   : > { %2444 = vmatpush3.bf16.msra.mxu0 %v2595_v25 }
 0x216   : > { %2445 = vmatprep.subr.bf16.mxu0 %v2634_v1  ;;  %2466 = vmatpush3.bf16.msra.mxu1 %v2607_v39  ;;  %v2164_v39 = vld [vmem:[%s3199_s10] ss:$0 sm:$0xff] }
 0x217   : > { %2467 = vmatprep.subr.bf16.mxu1 %v2634_v1 }
 0x219   : > { %2446 = vmatpush3.bf16.msra.mxu0 %v2596_v26 }
 0x21a   : > { %2447 = vmatprep.subr.bf16.mxu0 %v2634_v1  ;;  %2468 = vmatpush3.bf16.msra.mxu1 %v2609_v40 }
 0x21b   : > { %2469 = vmatprep.subr.bf16.mxu1 %v2634_v1 }
 0x21d   : > { %2448 = vmatpush3.bf16.msra.mxu0 %v2597_v27  ;;  %v2623_v27 = vld [vmem:[%s3197_s8 + $0x80] sm:$0xff]  }
 0x21e   : > { %2449 = vmatprep.subr.bf16.mxu0 %v2634_v1  ;;  %2470 = vmatpush3.bf16.msra.mxu1 %v2611_v42 }
 0x21f   : > { %2471 = vmatprep.subr.bf16.mxu1 %v2634_v1 }
 0x221   : > { %2450 = vmatpush3.bf16.msra.mxu0 %v2598_v28 }
 0x222   : > { %2451 = vmatprep.subr.bf16.mxu0 %v2634_v1  ;;  %2472 = vmatpush3.bf16.msra.mxu1 %v2613_v44 }
 0x223   : > { %2497 = vmatprep.subr.bf16.mxu1 %v2634_v1 }
 0x225   : > { %2452 = vmatpush3.bf16.msra.mxu0 %v2599_v29 }
 0x226   : > { %2477 = vmatprep.subr.bf16.mxu0 %v2634_v1 }
 0x228   : > { %2454 = vmatmul.mubr.bf16.vlgmr.msra.gmra.mxu0 %v1357_v30 }
 0x229   : > { %2493 = vmatprep.mubr.msk.bf16.mxu0 %vm2635_vm0, %v2634_v1  ;;  %2478 = vmatpush3.bf16.msra.mxu0 %v2602_v32 }
 0x22a   : > { %2479 = vmatprep.subr.bf16.mxu0 %v2634_v1 }
 0x22d   : > { %2480 = vmatpush3.bf16.msra.mxu0 %v2604_v34 }
 0x22e   : > { %2481 = vmatprep.subr.bf16.mxu0 %v2634_v1 }
 0x231   : > { %2482 = vmatpush3.bf16.msra.mxu0 %v2606_v36 }
 0x232   : > { %2483 = vmatprep.subr.bf16.mxu0 %v2634_v1 }
 0x235   : > { %2484 = vmatpush3.bf16.msra.mxu0 %v2608_v38 }
 0x236   : > { %2485 = vmatprep.subr.bf16.mxu0 %v2634_v1 }
 0x239   : > { %2486 = vmatpush3.bf16.msra.mxu0 %v2610_v41 }
 0x23a   : > { %2487 = vmatprep.subr.bf16.mxu0 %v2634_v1 }
 0x23d   : > { %2488 = vmatpush3.bf16.msra.mxu0 %v2612_v43 }
 0x23e   : > { %2489 = vmatprep.subr.bf16.mxu0 %v2634_v1 }
 0x241   : > { %2490 = vmatpush3.bf16.msra.mxu0 %v2614_v45 }
 0x242   : > { %2491 = vmatprep.subr.bf16.mxu0 %v2634_v1 }
 0x245   : > { %2492 = vmatpush3.bf16.msra.mxu0 %v2615_v46 }
 0x2c4   : > { %v1341_v47 = vpop.f32.mrf.mxu1 }
 0x2c6   : > { %v2435_v48 = vpop.f32.mrf.mxu1 }
 0x2c8   : > { %v1252_v49 = vpop.f32.mrf.mxu0  ;;  %v1344_v50 = vpop.f32.mrf.mxu1 }
 0x2c9   : > { %v1342_v55 = vadd.f32 %v1341_v47, %v1252_v49  ;;  %v2624_v47 = vld [vmem:[%s2759_s25] sm:$0xff] }
 0x2ca   : > { %v2415_v51 = vpop.f32.mrf.mxu0  ;;  %v2436_v52 = vpop.f32.mrf.mxu1 }
 0x2cb   : > { %v2625_v52 = vld [vmem:[%s2759_s25 + $0x8] sm:$0xff] }
 0x2cc   : > { %v1255_v53 = vpop.f32.mrf.mxu0 }
 0x2cd   : > { %v1345_v60 = vadd.f32 %v1344_v50, %v1255_v53 }
 0x2ce   : > { %v2416_v54 = vpop.f32.mrf.mxu0 }
 0x2e8   : > { %v1457_v56 = vpop.f32.mrf.mxu0 }
 0x2e9   : > { %v1464_v58 = vadd.f32 %v1457_v56, %v1342_v55 }
 0x2ea   : > { %v2455_v59 = vpop.f32.mrf.mxu0 }
 0x2eb   : > { %v1473_v61 = vadd.f32 %v2100_v57, %v1464_v58 }
 0x2ec   : > { %v1460_v62 = vpop.f32.mrf.mxu0 }
 0x2ed   : > { %v1465_v63 = vadd.f32 %v1460_v62, %v1345_v60  ;;  %v1475_v4 = vmax.f32 %v1473_v61, 0.0 }
 0x2ee   : > { %v2456_v0 = vpop.f32.mrf.mxu0 }
 0x2ef   : > { %v1474_v6 = vadd.f32 %v2100_v57, %v1465_v63  ;;  %v1477_v10 = vrot.slane %v1475_v4, 6  ;;  %v1705_v26 = vrot.slane %v1475_v4, 2 }
 0x2f1   : > { %v1476_v8 = vmax.f32 %v1474_v6, 0.0 }
 0x2f3   : > { %v1478_v12 = vrot.slane %v1476_v8, 6  ;;  %v1509_v13 = vpack.c.bf16 %v1476_v8, %v1475_v4  ;;  %v1706_v25 = vrot.slane %v1476_v8, 2 }
 0x2f5   : > { %v1480_v14 = vsel %vm1479_vm15, %v1477_v10, %v1478_v12  ;;  %v1481_v15 = vsel %vm1479_vm15, %v1478_v12, %v1477_v10  ;;  %2474 = vmatmul.mubr.bf16.vlgmr.msra.gmra.mxu1 %v1509_v13 }
 0x2f6   : > { %2498 = vmatpush3.bf16.msra.mxu1 %v2616_v9  ;;  %v2134_v16 = vpack.c.bf16 %v1480_v14, %v1481_v15  ;;  %2513 = vmatprep.mubr.msk.bf16.mxu1 %vm2635_vm0, %v2634_v1  ;;  %vm1707_vm0 = vcmp.lt.s32.totalorder %v2747_v11, 6 }
 0x2f7   : > { %2499 = vmatprep.subr.bf16.mxu1 %v2634_v1  ;;  %v1708_v28 = vsel %vm1707_vm0, %v1705_v26, %v1706_v25  ;;  %v1709_v29 = vsel %vm1707_vm0, %v1706_v25, %v1705_v26 }
 0x2f8   : > { %2494 = vmatmul.mubr.msk.bf16.vlgmr.msra.gmra.mxu0 %vm2133_vm3, %v2134_v16  ;;  %v2161_v7 = vpack.c.bf16 %v1709_v29, %v1708_v28 }
 0x2fa   : > { %2500 = vmatpush3.bf16.msra.mxu1 %v2617_v17 }
 0x2fb   : > { %2501 = vmatprep.subr.bf16.mxu1 %v2634_v1 }
 0x2fe   : > { %2502 = vmatpush3.bf16.msra.mxu1 %v2618_v19 }
 0x2ff   : > { %2503 = vmatprep.subr.bf16.mxu1 %v2634_v1 }
 0x302   : > { %2504 = vmatpush3.bf16.msra.mxu1 %v2619_v18 }
 0x303   : > { %2505 = vmatprep.subr.bf16.mxu1 %v2634_v1 }
 0x306   : > { %2506 = vmatpush3.bf16.msra.mxu1 %v2620_v20 }
 0x307   : > { %2507 = vmatprep.subr.bf16.mxu1 %v2634_v1 }
 0x30a   : > { %2508 = vmatpush3.bf16.msra.mxu1 %v2621_v21 }
 0x30b   : > { %2509 = vmatprep.subr.bf16.mxu1 %v2634_v1 }
 0x30e   : > { %2510 = vmatpush3.bf16.msra.mxu1 %v2622_v22 }
 0x30f   : > { %2511 = vmatprep.subr.bf16.mxu1 %v2634_v1 }
 0x312   : > { %2512 = vmatpush3.bf16.msra.mxu1 %v2623_v27 }
 0x315   : > { %2514 = vmatmul.mubr.msk.bf16.vlgmr.msra.gmra.mxu1 %vm2160_vm6, %v2161_v7 }
 0x3b5   : > { %v1609_v5 = vpop.f32.mrf.mxu1 }
 0x3b7   : > { %v2475_v30 = vpop.f32.mrf.mxu1 }
 0x3b8   : > { %v1698_v31 = vpop.f32.mrf.mxu0 }
 0x3b9   : > { %v1612_v11 = vpop.f32.mrf.mxu1  ;;  %v1699_v36 = vadd.f32 %v1698_v31, %v1609_v5 }
 0x3ba   : > { %v2495_v32 = vpop.f32.mrf.mxu0 }
 0x3bb   : > { %v2476_v33 = vpop.f32.mrf.mxu1 }
 0x3bc   : > { %v1701_v34 = vpop.f32.mrf.mxu0 }
 0x3bd   : > { %v1702_v41 = vadd.f32 %v1701_v34, %v1612_v11 }
 0x3be   : > { %v2496_v35 = vpop.f32.mrf.mxu0 }
 0x3d5   : > { %v1820_v1 = vpop.f32.mrf.mxu1 }
 0x3d6   : > { %v1827_v38 = vadd.f32 %v1820_v1, %v1699_v36 }
 0x3d7   : > { %v2515_v40 = vpop.f32.mrf.mxu1 }
 0x3d8   : > { %v1836_v42 = vmul.f32 %v2163_v37, %v1827_v38 }
 0x3d9   : > { %v1823_v43 = vpop.f32.mrf.mxu1 }
 0x3da   : > { %v1845_v44 = vadd.f32 %v2164_v39, %v1836_v42  ;;  %v1828_v45 = vadd.f32 %v1823_v43, %v1702_v41 }
 0x3db   : > { %v2516_v46 = vpop.f32.mrf.mxu1 }
 0x3dc   : > { %v1847_v48 = vadd.f32 %v2624_v47, %v1845_v44  ;;  %v1837_v49 = vmul.f32 %v2163_v37, %v1828_v45 }
 0x3de   : > { %v1849_v50 = vmax.f32 %v1847_v48, 0.0  ;;  %v1846_v51 = vadd.f32 %v2164_v39, %v1837_v49 }
 0x3e0   : > { %1851 = vst [vmem:[%s386_s13] sm:$0xff] %v1849_v50  ;;  %v1848_v53 = vadd.f32 %v2625_v52, %v1846_v51 }
 0x3e2   : > { %v1850_v54 = vmax.f32 %v1848_v53, 0.0 }
 0x3e4   : > { %1852 = vst [vmem:[%s386_s13 + $0x8] sm:$0xff] %v1850_v54 }
 0x3e5 PF: > { %s21_s17 = sadd.s32 1, %s2632_s17  }
 0x3e6   : > { %p18_p4 = scmp.ge.s32.totalorder %s21_s17, 4  }
 0x3e8   :  { %20 = sbr.rel (!%p18_p4) target bundleno = 1 (0x1), region = 102 }

</bundles_post_ra>
